<compile_context>
chip_gen: v6e
topology: v6e:2x2x1
jax: 0.10.0
libtpu: 0.0.40
codegen_flags: <defaults>
</compile_context>

<pallas_src>
import functools

import jax
import jax.numpy as jnp
from jax import lax
from jax.experimental import pallas as pl
from jax.experimental.pallas import tpu as pltpu

NEG_SLOPE = 0.2
RES_SCALE = 0.2


def _rdb_fused_kernel(x_ref, w1_ref, b1_ref, w2_ref, b2_ref, w3_ref, b3_ref,
                      w4_ref, b4_ref, w5_ref, b5_ref, o_ref, act_ref,
                      *, H, W, nf, ng):
    # x_ref  : (1, H, W, nf)  f32   one batch element, NHWC
    # w*_ref : (9, cin, cout) bf16  tap-major 3x3 weights (HWIO flattened)
    # b*_ref : (1, cout)      f32
    # o_ref  : (1, H, W, nf)  f32
    # act_ref: (H+2, Wp, nf+4*ng) f32 zero-padded concat-activation scratch

    # Scratch persists across grid steps (and is per-core uninitialized under
    # megacore), so re-zero each step.  The interior is fully overwritten
    # below; only the 1-pixel border actually relies on these zeros.
    act_ref[...] = jnp.zeros_like(act_ref)

    x = x_ref[0]                                   # (H, W, nf) f32
    act_ref[1:H + 1, 1:W + 1, 0:nf] = x            # write interior only

    def conv3x3(cin, w_ref, b_ref):
        # Sum of nine tap matmuls over the prefix [0:cin] of the concat
        # buffer; the (H*W, 9*cin) im2col is never materialized.
        cout = b_ref.shape[-1]
        acc = jnp.zeros((H * W, cout), jnp.float32)
        for dh in range(3):
            for dw in range(3):
                lhs = act_ref[dh:dh + H, dw:dw + W, 0:cin]     # (H, W, cin)
                lhs = lhs.reshape(H * W, cin).astype(jnp.bfloat16)
                acc += jnp.dot(lhs, w_ref[dh * 3 + dw],
                               preferred_element_type=jnp.float32)
        return acc + b_ref[...]                    # bias in f32

    # conv1..conv4: LeakyReLU(0.2), then append the ng new channels in place
    # (the torch.cat((x, x1, ...), 1) is implicit in the persistent buffer).
    ch = nf
    for w_ref, b_ref in ((w1_ref, b1_ref), (w2_ref, b2_ref),
                         (w3_ref, b3_ref), (w4_ref, b4_ref)):
        y = conv3x3(ch, w_ref, b_ref)              # (H*W, ng) f32
        y = jnp.where(y >= 0, y, NEG_SLOPE * y)    # LeakyReLU, f32
        act_ref[1:H + 1, 1:W + 1, ch:ch + ng] = y.reshape(H, W, ng)
        ch += ng

    # conv5 + fused residual: out = x5 * 0.2 + x (residual taken from the
    # original f32 input, not a rounded copy).
    x5 = conv3x3(ch, w5_ref, b5_ref)               # (H*W, nf) f32
    out = x5 * RES_SCALE + x.reshape(H * W, nf)
    o_ref[...] = out.reshape(1, H, W, nf).astype(o_ref.dtype)


def residual_dense_block_lp(x_nchw, params):
    """Forward pass of ResidualDenseBlock_LP (padding_mode='zeros').

    x_nchw: (N, num_feat, H, W) float32
    params: list of 5 (w_hwio (3,3,Cin,Cout), b (Cout,)) pairs
    returns: (N, num_feat, H, W) float32
    """
    N, nf, H, W = x_nchw.shape
    ng = params[0][0].shape[-1]
    c_tot = nf + 4 * ng
    w_pad = ((W + 2 + 7) // 8) * 8   # padded width, rounded to sublane multiple

    # NCHW -> NHWC once (and back below).  For a fully-NHWC model these two
    # small host transposes disappear (v5e feedback); they exist only because
    # the PyTorch module is NCHW.
    x_nhwc = jnp.transpose(x_nchw, (0, 2, 3, 1)).astype(jnp.float32)

    args = [x_nhwc]
    in_specs = [pl.BlockSpec((1, H, W, nf), lambda n: (n, 0, 0, 0))]
    for w, b in params:
        cin, cout = w.shape[2], w.shape[3]
        # HWIO (3,3,cin,cout) -> tap-major (9,cin,cout); bf16 MXU operands.
        args.append(w.astype(jnp.bfloat16).reshape(9, cin, cout))
        args.append(b.astype(jnp.float32).reshape(1, cout))
        # Constant index_map: weights/biases are DMA'd once, never re-fetched
        # across grid steps.
        in_specs.append(pl.BlockSpec((9, cin, cout), lambda n: (0, 0, 0)))
        in_specs.append(pl.BlockSpec((1, cout), lambda n: (0, 0)))

    kernel = functools.partial(_rdb_fused_kernel, H=H, W=W, nf=nf, ng=ng)
    out_nhwc = pl.pallas_call(
        kernel,
        out_shape=jax.ShapeDtypeStruct((N, H, W, nf), jnp.float32),
        grid=(N,),
        in_specs=in_specs,
        out_specs=pl.BlockSpec((1, H, W, nf), lambda n: (n, 0, 0, 0)),
        scratch_shapes=[pltpu.VMEM((H + 2, w_pad, c_tot), jnp.float32)],
        compiler_params=pltpu.CompilerParams(
            dimension_semantics=("parallel",),
            vmem_limit_bytes=32 * 1024 * 1024),
    )(*args)

    return jnp.transpose(out_nhwc, (0, 3, 1, 2))


def init_rdb_params(key, num_feat, num_grow_ch):
    """Deterministic params. Mimics default_init_weights: kaiming-ish * 0.1, bias=0."""
    ch_ins = [
        num_feat,
        num_feat + num_grow_ch,
        num_feat + 2 * num_grow_ch,
        num_feat + 3 * num_grow_ch,
        num_feat + 4 * num_grow_ch,
    ]
    ch_outs = [num_grow_ch] * 4 + [num_feat]
    params = []
    for ci, co in zip(ch_ins, ch_outs):
        key, wk = jax.random.split(key)
        std = (2.0 / (ci * 9)) ** 0.5
        # HWIO layout (PyTorch conv weight is OIHW).
        w = jax.random.normal(wk, (3, 3, ci, co), jnp.float32) * std * 0.1
        b = jnp.zeros((co,), jnp.float32)
        params.append((w, b))
    return params


def _reference_rdb(x_nchw, params):
    """Pure-JAX reference (lax.conv) for correctness checking."""
    def conv(x_nhwc, w, b):
        y = lax.conv_general_dilated(
            x_nhwc, w, window_strides=(1, 1), padding=((1, 1), (1, 1)),
            dimension_numbers=("NHWC", "HWIO", "NHWC"))
        return y + b.reshape(1, 1, 1, -1)

    def lrelu(v):
        return jnp.where(v >= 0, v, NEG_SLOPE * v)

    x = jnp.transpose(x_nchw, (0, 2, 3, 1)).astype(jnp.float32)
    (w1, b1), (w2, b2), (w3, b3), (w4, b4), (w5, b5) = params
    x1 = lrelu(conv(x, w1, b1))
    x2 = lrelu(conv(jnp.concatenate([x, x1], -1), w2, b2))
    x3 = lrelu(conv(jnp.concatenate([x, x1, x2], -1), w3, b3))
    x4 = lrelu(conv(jnp.concatenate([x, x1, x2, x3], -1), w4, b4))
    x5 = conv(jnp.concatenate([x, x1, x2, x3, x4], -1), w5, b5)
    out = x5 * RES_SCALE + x
    return jnp.transpose(out, (0, 3, 1, 2))


if __name__ == "__main__":
    # Small shapes consistent with the module: batch=2, num_feat=16,
    # num_grow_ch=8, spatial=16x16. Input is NCHW like PyTorch.
    N, NUM_FEAT, NUM_GROW, H, W = 2, 16, 8, 16, 16

    key = jax.random.PRNGKey(0)
    key, xk = jax.random.split(key)
    x = jax.random.normal(xk, (N, NUM_FEAT, H, W), jnp.float32)
    params = init_rdb_params(key, NUM_FEAT, NUM_GROW)

    out = jax.block_until_ready(residual_dense_block_lp(x, params))
    ref = jax.block_until_ready(_reference_rdb(x, params))

    assert out.shape == (N, NUM_FEAT, H, W)
    # Tolerance relaxed 1e-4 -> 2e-3: the kernel feeds bf16 operands to the MXU
    # (explicit decision per perf review; remove the bf16 casts for 1e-4).
    assert jnp.allclose(out, ref, atol=2e-3, rtol=2e-3), "mismatch vs reference"

    print("KERNEL_OK")
</pallas_src>

<mosaic_0001>
module attributes {stable_mosaic.version = 11 : i64} {
  func.func @_rdb_fused_kernel(%arg0: i32, %arg1: memref<1x16x16x16xf32, #tpu.memory_space<vmem>>, %arg2: memref<9x16x8xbf16, #tpu.memory_space<vmem>>, %arg3: memref<1x8xf32, #tpu.memory_space<vmem>>, %arg4: memref<9x24x8xbf16, #tpu.memory_space<vmem>>, %arg5: memref<1x8xf32, #tpu.memory_space<vmem>>, %arg6: memref<9x32x8xbf16, #tpu.memory_space<vmem>>, %arg7: memref<1x8xf32, #tpu.memory_space<vmem>>, %arg8: memref<9x40x8xbf16, #tpu.memory_space<vmem>>, %arg9: memref<1x8xf32, #tpu.memory_space<vmem>>, %arg10: memref<9x48x16xbf16, #tpu.memory_space<vmem>>, %arg11: memref<1x16xf32, #tpu.memory_space<vmem>>, %arg12: memref<1x16x16x16xf32, #tpu.memory_space<vmem>>, %arg13: memref<18x24x48xf32, #tpu.memory_space<vmem>>) attributes {dimension_semantics = [#tpu.dimension_semantics<parallel>], iteration_bounds = array<i64: 2>, scalar_prefetch = 0 : i64, scratch_operands = 1 : i64, tpu.core_type = #tpu.core_type<tc>, window_params = [{transform_indices = @transform_0, window_bounds = array<i64: 1, 16, 16, 16>}, {pipeline_mode = #tpu.pipeline_mode<synchronous>, transform_indices = @transform_1, window_bounds = array<i64: 9, 16, 8>}, {pipeline_mode = #tpu.pipeline_mode<synchronous>, transform_indices = @transform_2, window_bounds = array<i64: 1, 8>}, {pipeline_mode = #tpu.pipeline_mode<synchronous>, transform_indices = @transform_3, window_bounds = array<i64: 9, 24, 8>}, {pipeline_mode = #tpu.pipeline_mode<synchronous>, transform_indices = @transform_4, window_bounds = array<i64: 1, 8>}, {pipeline_mode = #tpu.pipeline_mode<synchronous>, transform_indices = @transform_5, window_bounds = array<i64: 9, 32, 8>}, {pipeline_mode = #tpu.pipeline_mode<synchronous>, transform_indices = @transform_6, window_bounds = array<i64: 1, 8>}, {pipeline_mode = #tpu.pipeline_mode<synchronous>, transform_indices = @transform_7, window_bounds = array<i64: 9, 40, 8>}, {pipeline_mode = #tpu.pipeline_mode<synchronous>, transform_indices = @transform_8, window_bounds = array<i64: 1, 8>}, {pipeline_mode = #tpu.pipeline_mode<synchronous>, transform_indices = @transform_9, window_bounds = array<i64: 9, 48, 16>}, {pipeline_mode = #tpu.pipeline_mode<synchronous>, transform_indices = @transform_10, window_bounds = array<i64: 1, 16>}, {transform_indices = @transform_11, window_bounds = array<i64: 1, 16, 16, 16>}]} {
    %cst = arith.constant 0.000000e+00 : f32
    %0 = vector.broadcast %cst : f32 to vector<18x24x48xf32>
    %c0 = arith.constant 0 : index
    %c0_0 = arith.constant 0 : index
    %c0_1 = arith.constant 0 : index
    %1 = vector.load %arg13[%c0, %c0_0, %c0_1] : memref<18x24x48xf32, #tpu.memory_space<vmem>>, vector<18x24x48xf32>
    tpu.vector_store %arg13[%c0, %c0_0, %c0_1], %0 {strides = array<i32>} : memref<18x24x48xf32, #tpu.memory_space<vmem>>, vector<18x24x48xf32>,
    %c0_2 = arith.constant 0 : index
    %c0_3 = arith.constant 0 : index
    %c0_4 = arith.constant 0 : index
    %c0_5 = arith.constant 0 : index
    %2 = vector.load %arg1[%c0_2, %c0_3, %c0_4, %c0_5] : memref<1x16x16x16xf32, #tpu.memory_space<vmem>>, vector<1x16x16x16xf32>
    %3 = vector.shape_cast %2 : vector<1x16x16x16xf32> to vector<16x16x16xf32>
    %c1 = arith.constant 1 : index
    %c1_6 = arith.constant 1 : index
    %c0_7 = arith.constant 0 : index
    %4 = vector.load %arg13[%c1, %c1_6, %c0_7] : memref<18x24x48xf32, #tpu.memory_space<vmem>>, vector<16x16x16xf32>
    tpu.vector_store %arg13[%c1, %c1_6, %c0_7], %3 {strides = array<i32>} : memref<18x24x48xf32, #tpu.memory_space<vmem>>, vector<16x16x16xf32>,
    %cst_8 = arith.constant 0.000000e+00 : f32
    %5 = vector.broadcast %cst_8 : f32 to vector<256x8xf32>
    %c0_9 = arith.constant 0 : index
    %c0_10 = arith.constant 0 : index
    %c0_11 = arith.constant 0 : index
    %6 = vector.load %arg13[%c0_9, %c0_10, %c0_11] : memref<18x24x48xf32, #tpu.memory_space<vmem>>, vector<16x16x16xf32>
    %7 = vector.shape_cast %6 : vector<16x16x16xf32> to vector<256x16xf32>
    %8 = arith.truncf %7 : vector<256x16xf32> to vector<256x16xbf16>
    %c0_12 = arith.constant 0 : index
    %c0_13 = arith.constant 0 : index
    %c0_14 = arith.constant 0 : index
    %9 = vector.load %arg2[%c0_12, %c0_13, %c0_14] : memref<9x16x8xbf16, #tpu.memory_space<vmem>>, vector<1x16x8xbf16>
    %10 = vector.shape_cast %9 : vector<1x16x8xbf16> to vector<16x8xbf16>
    %cst_15 = arith.constant dense<0.000000e+00> : vector<256x8xf32>
    %11 = tpu.matmul %8, %10, %cst_15 {dimension_numbers = #tpu.dot_dimension_numbers<[1], [0], [0], [1], [0, 0, 1, 1], [], []>} : vector<256x16xbf16>, vector<16x8xbf16>, vector<256x8xf32> -> vector<256x8xf32>
    %12 = arith.addf %5, %11 : vector<256x8xf32>
    %c0_16 = arith.constant 0 : index
    %c1_17 = arith.constant 1 : index
    %c0_18 = arith.constant 0 : index
    %13 = vector.load %arg13[%c0_16, %c1_17, %c0_18] : memref<18x24x48xf32, #tpu.memory_space<vmem>>, vector<16x16x16xf32>
    %14 = vector.shape_cast %13 : vector<16x16x16xf32> to vector<256x16xf32>
    %15 = arith.truncf %14 : vector<256x16xf32> to vector<256x16xbf16>
    %c1_19 = arith.constant 1 : index
    %c0_20 = arith.constant 0 : index
    %c0_21 = arith.constant 0 : index
    %16 = vector.load %arg2[%c1_19, %c0_20, %c0_21] : memref<9x16x8xbf16, #tpu.memory_space<vmem>>, vector<1x16x8xbf16>
    %17 = vector.shape_cast %16 : vector<1x16x8xbf16> to vector<16x8xbf16>
    %cst_22 = arith.constant dense<0.000000e+00> : vector<256x8xf32>
    %18 = tpu.matmul %15, %17, %cst_22 {dimension_numbers = #tpu.dot_dimension_numbers<[1], [0], [0], [1], [0, 0, 1, 1], [], []>} : vector<256x16xbf16>, vector<16x8xbf16>, vector<256x8xf32> -> vector<256x8xf32>
    %19 = arith.addf %12, %18 : vector<256x8xf32>
    %c0_23 = arith.constant 0 : index
    %c2 = arith.constant 2 : index
    %c0_24 = arith.constant 0 : index
    %20 = vector.load %arg13[%c0_23, %c2, %c0_24] : memref<18x24x48xf32, #tpu.memory_space<vmem>>, vector<16x16x16xf32>
    %21 = vector.shape_cast %20 : vector<16x16x16xf32> to vector<256x16xf32>
    %22 = arith.truncf %21 : vector<256x16xf32> to vector<256x16xbf16>
    %c2_25 = arith.constant 2 : index
    %c0_26 = arith.constant 0 : index
    %c0_27 = arith.constant 0 : index
    %23 = vector.load %arg2[%c2_25, %c0_26, %c0_27] : memref<9x16x8xbf16, #tpu.memory_space<vmem>>, vector<1x16x8xbf16>
    %24 = vector.shape_cast %23 : vector<1x16x8xbf16> to vector<16x8xbf16>
    %cst_28 = arith.constant dense<0.000000e+00> : vector<256x8xf32>
    %25 = tpu.matmul %22, %24, %cst_28 {dimension_numbers = #tpu.dot_dimension_numbers<[1], [0], [0], [1], [0, 0, 1, 1], [], []>} : vector<256x16xbf16>, vector<16x8xbf16>, vector<256x8xf32> -> vector<256x8xf32>
    %26 = arith.addf %19, %25 : vector<256x8xf32>
    %c1_29 = arith.constant 1 : index
    %c0_30 = arith.constant 0 : index
    %c0_31 = arith.constant 0 : index
    %27 = vector.load %arg13[%c1_29, %c0_30, %c0_31] : memref<18x24x48xf32, #tpu.memory_space<vmem>>, vector<16x16x16xf32>
    %28 = vector.shape_cast %27 : vector<16x16x16xf32> to vector<256x16xf32>
    %29 = arith.truncf %28 : vector<256x16xf32> to vector<256x16xbf16>
    %c3 = arith.constant 3 : index
    %c0_32 = arith.constant 0 : index
    %c0_33 = arith.constant 0 : index
    %30 = vector.load %arg2[%c3, %c0_32, %c0_33] : memref<9x16x8xbf16, #tpu.memory_space<vmem>>, vector<1x16x8xbf16>
    %31 = vector.shape_cast %30 : vector<1x16x8xbf16> to vector<16x8xbf16>
    %cst_34 = arith.constant dense<0.000000e+00> : vector<256x8xf32>
    %32 = tpu.matmul %29, %31, %cst_34 {dimension_numbers = #tpu.dot_dimension_numbers<[1], [0], [0], [1], [0, 0, 1, 1], [], []>} : vector<256x16xbf16>, vector<16x8xbf16>, vector<256x8xf32> -> vector<256x8xf32>
    %33 = arith.addf %26, %32 : vector<256x8xf32>
    %c1_35 = arith.constant 1 : index
    %c1_36 = arith.constant 1 : index
    %c0_37 = arith.constant 0 : index
    %34 = vector.load %arg13[%c1_35, %c1_36, %c0_37] : memref<18x24x48xf32, #tpu.memory_space<vmem>>, vector<16x16x16xf32>
    %35 = vector.shape_cast %34 : vector<16x16x16xf32> to vector<256x16xf32>
    %36 = arith.truncf %35 : vector<256x16xf32> to vector<256x16xbf16>
    %c4 = arith.constant 4 : index
    %c0_38 = arith.constant 0 : index
    %c0_39 = arith.constant 0 : index
    %37 = vector.load %arg2[%c4, %c0_38, %c0_39] : memref<9x16x8xbf16, #tpu.memory_space<vmem>>, vector<1x16x8xbf16>
    %38 = vector.shape_cast %37 : vector<1x16x8xbf16> to vector<16x8xbf16>
    %cst_40 = arith.constant dense<0.000000e+00> : vector<256x8xf32>
    %39 = tpu.matmul %36, %38, %cst_40 {dimension_numbers = #tpu.dot_dimension_numbers<[1], [0], [0], [1], [0, 0, 1, 1], [], []>} : vector<256x16xbf16>, vector<16x8xbf16>, vector<256x8xf32> -> vector<256x8xf32>
    %40 = arith.addf %33, %39 : vector<256x8xf32>
    %c1_41 = arith.constant 1 : index
    %c2_42 = arith.constant 2 : index
    %c0_43 = arith.constant 0 : index
    %41 = vector.load %arg13[%c1_41, %c2_42, %c0_43] : memref<18x24x48xf32, #tpu.memory_space<vmem>>, vector<16x16x16xf32>
    %42 = vector.shape_cast %41 : vector<16x16x16xf32> to vector<256x16xf32>
    %43 = arith.truncf %42 : vector<256x16xf32> to vector<256x16xbf16>
    %c5 = arith.constant 5 : index
    %c0_44 = arith.constant 0 : index
    %c0_45 = arith.constant 0 : index
    %44 = vector.load %arg2[%c5, %c0_44, %c0_45] : memref<9x16x8xbf16, #tpu.memory_space<vmem>>, vector<1x16x8xbf16>
    %45 = vector.shape_cast %44 : vector<1x16x8xbf16> to vector<16x8xbf16>
    %cst_46 = arith.constant dense<0.000000e+00> : vector<256x8xf32>
    %46 = tpu.matmul %43, %45, %cst_46 {dimension_numbers = #tpu.dot_dimension_numbers<[1], [0], [0], [1], [0, 0, 1, 1], [], []>} : vector<256x16xbf16>, vector<16x8xbf16>, vector<256x8xf32> -> vector<256x8xf32>
    %47 = arith.addf %40, %46 : vector<256x8xf32>
    %c2_47 = arith.constant 2 : index
    %c0_48 = arith.constant 0 : index
    %c0_49 = arith.constant 0 : index
    %48 = vector.load %arg13[%c2_47, %c0_48, %c0_49] : memref<18x24x48xf32, #tpu.memory_space<vmem>>, vector<16x16x16xf32>
    %49 = vector.shape_cast %48 : vector<16x16x16xf32> to vector<256x16xf32>
    %50 = arith.truncf %49 : vector<256x16xf32> to vector<256x16xbf16>
    %c6 = arith.constant 6 : index
    %c0_50 = arith.constant 0 : index
    %c0_51 = arith.constant 0 : index
    %51 = vector.load %arg2[%c6, %c0_50, %c0_51] : memref<9x16x8xbf16, #tpu.memory_space<vmem>>, vector<1x16x8xbf16>
    %52 = vector.shape_cast %51 : vector<1x16x8xbf16> to vector<16x8xbf16>
    %cst_52 = arith.constant dense<0.000000e+00> : vector<256x8xf32>
    %53 = tpu.matmul %50, %52, %cst_52 {dimension_numbers = #tpu.dot_dimension_numbers<[1], [0], [0], [1], [0, 0, 1, 1], [], []>} : vector<256x16xbf16>, vector<16x8xbf16>, vector<256x8xf32> -> vector<256x8xf32>
    %54 = arith.addf %47, %53 : vector<256x8xf32>
    %c2_53 = arith.constant 2 : index
    %c1_54 = arith.constant 1 : index
    %c0_55 = arith.constant 0 : index
    %55 = vector.load %arg13[%c2_53, %c1_54, %c0_55] : memref<18x24x48xf32, #tpu.memory_space<vmem>>, vector<16x16x16xf32>
    %56 = vector.shape_cast %55 : vector<16x16x16xf32> to vector<256x16xf32>
    %57 = arith.truncf %56 : vector<256x16xf32> to vector<256x16xbf16>
    %c7 = arith.constant 7 : index
    %c0_56 = arith.constant 0 : index
    %c0_57 = arith.constant 0 : index
    %58 = vector.load %arg2[%c7, %c0_56, %c0_57] : memref<9x16x8xbf16, #tpu.memory_space<vmem>>, vector<1x16x8xbf16>
    %59 = vector.shape_cast %58 : vector<1x16x8xbf16> to vector<16x8xbf16>
    %cst_58 = arith.constant dense<0.000000e+00> : vector<256x8xf32>
    %60 = tpu.matmul %57, %59, %cst_58 {dimension_numbers = #tpu.dot_dimension_numbers<[1], [0], [0], [1], [0, 0, 1, 1], [], []>} : vector<256x16xbf16>, vector<16x8xbf16>, vector<256x8xf32> -> vector<256x8xf32>
    %61 = arith.addf %54, %60 : vector<256x8xf32>
    %c2_59 = arith.constant 2 : index
    %c2_60 = arith.constant 2 : index
    %c0_61 = arith.constant 0 : index
    %62 = vector.load %arg13[%c2_59, %c2_60, %c0_61] : memref<18x24x48xf32, #tpu.memory_space<vmem>>, vector<16x16x16xf32>
    %63 = vector.shape_cast %62 : vector<16x16x16xf32> to vector<256x16xf32>
    %64 = arith.truncf %63 : vector<256x16xf32> to vector<256x16xbf16>
    %c8 = arith.constant 8 : index
    %c0_62 = arith.constant 0 : index
    %c0_63 = arith.constant 0 : index
    %65 = vector.load %arg2[%c8, %c0_62, %c0_63] : memref<9x16x8xbf16, #tpu.memory_space<vmem>>, vector<1x16x8xbf16>
    %66 = vector.shape_cast %65 : vector<1x16x8xbf16> to vector<16x8xbf16>
    %cst_64 = arith.constant dense<0.000000e+00> : vector<256x8xf32>
    %67 = tpu.matmul %64, %66, %cst_64 {dimension_numbers = #tpu.dot_dimension_numbers<[1], [0], [0], [1], [0, 0, 1, 1], [], []>} : vector<256x16xbf16>, vector<16x8xbf16>, vector<256x8xf32> -> vector<256x8xf32>
    %68 = arith.addf %61, %67 : vector<256x8xf32>
    %c0_65 = arith.constant 0 : index
    %c0_66 = arith.constant 0 : index
    %69 = vector.load %arg3[%c0_65, %c0_66] : memref<1x8xf32, #tpu.memory_space<vmem>>, vector<1x8xf32>
    %70 = vector.broadcast %69 : vector<1x8xf32> to vector<256x8xf32>
    %71 = arith.addf %68, %70 : vector<256x8xf32>
    %cst_67 = arith.constant 0.000000e+00 : f32
    %72 = vector.broadcast %cst_67 : f32 to vector<256x8xf32>
    %73 = arith.cmpf oge, %71, %72 : vector<256x8xf32>
    %cst_68 = arith.constant 2.000000e-01 : f32
    %74 = vector.broadcast %cst_68 : f32 to vector<256x8xf32>
    %75 = arith.mulf %74, %71 : vector<256x8xf32>
    %76 = arith.select %73, %71, %75 : vector<256x8xi1>, vector<256x8xf32>
    %77 = vector.shape_cast %76 : vector<256x8xf32> to vector<16x16x8xf32>
    %c1_69 = arith.constant 1 : index
    %c1_70 = arith.constant 1 : index
    %c16 = arith.constant 16 : index
    %78 = vector.load %arg13[%c1_69, %c1_70, %c16] : memref<18x24x48xf32, #tpu.memory_space<vmem>>, vector<16x16x8xf32>
    tpu.vector_store %arg13[%c1_69, %c1_70, %c16], %77 {strides = array<i32>} : memref<18x24x48xf32, #tpu.memory_space<vmem>>, vector<16x16x8xf32>,
    %cst_71 = arith.constant 0.000000e+00 : f32
    %79 = vector.broadcast %cst_71 : f32 to vector<256x8xf32>
    %c0_72 = arith.constant 0 : index
    %c0_73 = arith.constant 0 : index
    %c0_74 = arith.constant 0 : index
    %80 = vector.load %arg13[%c0_72, %c0_73, %c0_74] : memref<18x24x48xf32, #tpu.memory_space<vmem>>, vector<16x16x24xf32>
    %81 = vector.shape_cast %80 : vector<16x16x24xf32> to vector<256x24xf32>
    %82 = arith.truncf %81 : vector<256x24xf32> to vector<256x24xbf16>
    %c0_75 = arith.constant 0 : index
    %c0_76 = arith.constant 0 : index
    %c0_77 = arith.constant 0 : index
    %83 = vector.load %arg4[%c0_75, %c0_76, %c0_77] : memref<9x24x8xbf16, #tpu.memory_space<vmem>>, vector<1x24x8xbf16>
    %84 = vector.shape_cast %83 : vector<1x24x8xbf16> to vector<24x8xbf16>
    %cst_78 = arith.constant dense<0.000000e+00> : vector<256x8xf32>
    %85 = tpu.matmul %82, %84, %cst_78 {dimension_numbers = #tpu.dot_dimension_numbers<[1], [0], [0], [1], [0, 0, 1, 1], [], []>} : vector<256x24xbf16>, vector<24x8xbf16>, vector<256x8xf32> -> vector<256x8xf32>
    %86 = arith.addf %79, %85 : vector<256x8xf32>
    %c0_79 = arith.constant 0 : index
    %c1_80 = arith.constant 1 : index
    %c0_81 = arith.constant 0 : index
    %87 = vector.load %arg13[%c0_79, %c1_80, %c0_81] : memref<18x24x48xf32, #tpu.memory_space<vmem>>, vector<16x16x24xf32>
    %88 = vector.shape_cast %87 : vector<16x16x24xf32> to vector<256x24xf32>
    %89 = arith.truncf %88 : vector<256x24xf32> to vector<256x24xbf16>
    %c1_82 = arith.constant 1 : index
    %c0_83 = arith.constant 0 : index
    %c0_84 = arith.constant 0 : index
    %90 = vector.load %arg4[%c1_82, %c0_83, %c0_84] : memref<9x24x8xbf16, #tpu.memory_space<vmem>>, vector<1x24x8xbf16>
    %91 = vector.shape_cast %90 : vector<1x24x8xbf16> to vector<24x8xbf16>
    %cst_85 = arith.constant dense<0.000000e+00> : vector<256x8xf32>
    %92 = tpu.matmul %89, %91, %cst_85 {dimension_numbers = #tpu.dot_dimension_numbers<[1], [0], [0], [1], [0, 0, 1, 1], [], []>} : vector<256x24xbf16>, vector<24x8xbf16>, vector<256x8xf32> -> vector<256x8xf32>
    %93 = arith.addf %86, %92 : vector<256x8xf32>
    %c0_86 = arith.constant 0 : index
    %c2_87 = arith.constant 2 : index
    %c0_88 = arith.constant 0 : index
    %94 = vector.load %arg13[%c0_86, %c2_87, %c0_88] : memref<18x24x48xf32, #tpu.memory_space<vmem>>, vector<16x16x24xf32>
    %95 = vector.shape_cast %94 : vector<16x16x24xf32> to vector<256x24xf32>
    %96 = arith.truncf %95 : vector<256x24xf32> to vector<256x24xbf16>
    %c2_89 = arith.constant 2 : index
    %c0_90 = arith.constant 0 : index
    %c0_91 = arith.constant 0 : index
    %97 = vector.load %arg4[%c2_89, %c0_90, %c0_91] : memref<9x24x8xbf16, #tpu.memory_space<vmem>>, vector<1x24x8xbf16>
    %98 = vector.shape_cast %97 : vector<1x24x8xbf16> to vector<24x8xbf16>
    %cst_92 = arith.constant dense<0.000000e+00> : vector<256x8xf32>
    %99 = tpu.matmul %96, %98, %cst_92 {dimension_numbers = #tpu.dot_dimension_numbers<[1], [0], [0], [1], [0, 0, 1, 1], [], []>} : vector<256x24xbf16>, vector<24x8xbf16>, vector<256x8xf32> -> vector<256x8xf32>
    %100 = arith.addf %93, %99 : vector<256x8xf32>
    %c1_93 = arith.constant 1 : index
    %c0_94 = arith.constant 0 : index
    %c0_95 = arith.constant 0 : index
    %101 = vector.load %arg13[%c1_93, %c0_94, %c0_95] : memref<18x24x48xf32, #tpu.memory_space<vmem>>, vector<16x16x24xf32>
    %102 = vector.shape_cast %101 : vector<16x16x24xf32> to vector<256x24xf32>
    %103 = arith.truncf %102 : vector<256x24xf32> to vector<256x24xbf16>
    %c3_96 = arith.constant 3 : index
    %c0_97 = arith.constant 0 : index
    %c0_98 = arith.constant 0 : index
    %104 = vector.load %arg4[%c3_96, %c0_97, %c0_98] : memref<9x24x8xbf16, #tpu.memory_space<vmem>>, vector<1x24x8xbf16>
    %105 = vector.shape_cast %104 : vector<1x24x8xbf16> to vector<24x8xbf16>
    %cst_99 = arith.constant dense<0.000000e+00> : vector<256x8xf32>
    %106 = tpu.matmul %103, %105, %cst_99 {dimension_numbers = #tpu.dot_dimension_numbers<[1], [0], [0], [1], [0, 0, 1, 1], [], []>} : vector<256x24xbf16>, vector<24x8xbf16>, vector<256x8xf32> -> vector<256x8xf32>
    %107 = arith.addf %100, %106 : vector<256x8xf32>
    %c1_100 = arith.constant 1 : index
    %c1_101 = arith.constant 1 : index
    %c0_102 = arith.constant 0 : index
    %108 = vector.load %arg13[%c1_100, %c1_101, %c0_102] : memref<18x24x48xf32, #tpu.memory_space<vmem>>, vector<16x16x24xf32>
    %109 = vector.shape_cast %108 : vector<16x16x24xf32> to vector<256x24xf32>
    %110 = arith.truncf %109 : vector<256x24xf32> to vector<256x24xbf16>
    %c4_103 = arith.constant 4 : index
    %c0_104 = arith.constant 0 : index
    %c0_105 = arith.constant 0 : index
    %111 = vector.load %arg4[%c4_103, %c0_104, %c0_105] : memref<9x24x8xbf16, #tpu.memory_space<vmem>>, vector<1x24x8xbf16>
    %112 = vector.shape_cast %111 : vector<1x24x8xbf16> to vector<24x8xbf16>
    %cst_106 = arith.constant dense<0.000000e+00> : vector<256x8xf32>
    %113 = tpu.matmul %110, %112, %cst_106 {dimension_numbers = #tpu.dot_dimension_numbers<[1], [0], [0], [1], [0, 0, 1, 1], [], []>} : vector<256x24xbf16>, vector<24x8xbf16>, vector<256x8xf32> -> vector<256x8xf32>
    %114 = arith.addf %107, %113 : vector<256x8xf32>
    %c1_107 = arith.constant 1 : index
    %c2_108 = arith.constant 2 : index
    %c0_109 = arith.constant 0 : index
    %115 = vector.load %arg13[%c1_107, %c2_108, %c0_109] : memref<18x24x48xf32, #tpu.memory_space<vmem>>, vector<16x16x24xf32>
    %116 = vector.shape_cast %115 : vector<16x16x24xf32> to vector<256x24xf32>
    %117 = arith.truncf %116 : vector<256x24xf32> to vector<256x24xbf16>
    %c5_110 = arith.constant 5 : index
    %c0_111 = arith.constant 0 : index
    %c0_112 = arith.constant 0 : index
    %118 = vector.load %arg4[%c5_110, %c0_111, %c0_112] : memref<9x24x8xbf16, #tpu.memory_space<vmem>>, vector<1x24x8xbf16>
    %119 = vector.shape_cast %118 : vector<1x24x8xbf16> to vector<24x8xbf16>
    %cst_113 = arith.constant dense<0.000000e+00> : vector<256x8xf32>
    %120 = tpu.matmul %117, %119, %cst_113 {dimension_numbers = #tpu.dot_dimension_numbers<[1], [0], [0], [1], [0, 0, 1, 1], [], []>} : vector<256x24xbf16>, vector<24x8xbf16>, vector<256x8xf32> -> vector<256x8xf32>
    %121 = arith.addf %114, %120 : vector<256x8xf32>
    %c2_114 = arith.constant 2 : index
    %c0_115 = arith.constant 0 : index
    %c0_116 = arith.constant 0 : index
    %122 = vector.load %arg13[%c2_114, %c0_115, %c0_116] : memref<18x24x48xf32, #tpu.memory_space<vmem>>, vector<16x16x24xf32>
    %123 = vector.shape_cast %122 : vector<16x16x24xf32> to vector<256x24xf32>
    %124 = arith.truncf %123 : vector<256x24xf32> to vector<256x24xbf16>
    %c6_117 = arith.constant 6 : index
    %c0_118 = arith.constant 0 : index
    %c0_119 = arith.constant 0 : index
    %125 = vector.load %arg4[%c6_117, %c0_118, %c0_119] : memref<9x24x8xbf16, #tpu.memory_space<vmem>>, vector<1x24x8xbf16>
    %126 = vector.shape_cast %125 : vector<1x24x8xbf16> to vector<24x8xbf16>
    %cst_120 = arith.constant dense<0.000000e+00> : vector<256x8xf32>
    %127 = tpu.matmul %124, %126, %cst_120 {dimension_numbers = #tpu.dot_dimension_numbers<[1], [0], [0], [1], [0, 0, 1, 1], [], []>} : vector<256x24xbf16>, vector<24x8xbf16>, vector<256x8xf32> -> vector<256x8xf32>
    %128 = arith.addf %121, %127 : vector<256x8xf32>
    %c2_121 = arith.constant 2 : index
    %c1_122 = arith.constant 1 : index
    %c0_123 = arith.constant 0 : index
    %129 = vector.load %arg13[%c2_121, %c1_122, %c0_123] : memref<18x24x48xf32, #tpu.memory_space<vmem>>, vector<16x16x24xf32>
    %130 = vector.shape_cast %129 : vector<16x16x24xf32> to vector<256x24xf32>
    %131 = arith.truncf %130 : vector<256x24xf32> to vector<256x24xbf16>
    %c7_124 = arith.constant 7 : index
    %c0_125 = arith.constant 0 : index
    %c0_126 = arith.constant 0 : index
    %132 = vector.load %arg4[%c7_124, %c0_125, %c0_126] : memref<9x24x8xbf16, #tpu.memory_space<vmem>>, vector<1x24x8xbf16>
    %133 = vector.shape_cast %132 : vector<1x24x8xbf16> to vector<24x8xbf16>
    %cst_127 = arith.constant dense<0.000000e+00> : vector<256x8xf32>
    %134 = tpu.matmul %131, %133, %cst_127 {dimension_numbers = #tpu.dot_dimension_numbers<[1], [0], [0], [1], [0, 0, 1, 1], [], []>} : vector<256x24xbf16>, vector<24x8xbf16>, vector<256x8xf32> -> vector<256x8xf32>
    %135 = arith.addf %128, %134 : vector<256x8xf32>
    %c2_128 = arith.constant 2 : index
    %c2_129 = arith.constant 2 : index
    %c0_130 = arith.constant 0 : index
    %136 = vector.load %arg13[%c2_128, %c2_129, %c0_130] : memref<18x24x48xf32, #tpu.memory_space<vmem>>, vector<16x16x24xf32>
    %137 = vector.shape_cast %136 : vector<16x16x24xf32> to vector<256x24xf32>
    %138 = arith.truncf %137 : vector<256x24xf32> to vector<256x24xbf16>
    %c8_131 = arith.constant 8 : index
    %c0_132 = arith.constant 0 : index
    %c0_133 = arith.constant 0 : index
    %139 = vector.load %arg4[%c8_131, %c0_132, %c0_133] : memref<9x24x8xbf16, #tpu.memory_space<vmem>>, vector<1x24x8xbf16>
    %140 = vector.shape_cast %139 : vector<1x24x8xbf16> to vector<24x8xbf16>
    %cst_134 = arith.constant dense<0.000000e+00> : vector<256x8xf32>
    %141 = tpu.matmul %138, %140, %cst_134 {dimension_numbers = #tpu.dot_dimension_numbers<[1], [0], [0], [1], [0, 0, 1, 1], [], []>} : vector<256x24xbf16>, vector<24x8xbf16>, vector<256x8xf32> -> vector<256x8xf32>
    %142 = arith.addf %135, %141 : vector<256x8xf32>
    %c0_135 = arith.constant 0 : index
    %c0_136 = arith.constant 0 : index
    %143 = vector.load %arg5[%c0_135, %c0_136] : memref<1x8xf32, #tpu.memory_space<vmem>>, vector<1x8xf32>
    %144 = vector.broadcast %143 : vector<1x8xf32> to vector<256x8xf32>
    %145 = arith.addf %142, %144 : vector<256x8xf32>
    %cst_137 = arith.constant 0.000000e+00 : f32
    %146 = vector.broadcast %cst_137 : f32 to vector<256x8xf32>
    %147 = arith.cmpf oge, %145, %146 : vector<256x8xf32>
    %cst_138 = arith.constant 2.000000e-01 : f32
    %148 = vector.broadcast %cst_138 : f32 to vector<256x8xf32>
    %149 = arith.mulf %148, %145 : vector<256x8xf32>
    %150 = arith.select %147, %145, %149 : vector<256x8xi1>, vector<256x8xf32>
    %151 = vector.shape_cast %150 : vector<256x8xf32> to vector<16x16x8xf32>
    %c1_139 = arith.constant 1 : index
    %c1_140 = arith.constant 1 : index
    %c24 = arith.constant 24 : index
    %152 = vector.load %arg13[%c1_139, %c1_140, %c24] : memref<18x24x48xf32, #tpu.memory_space<vmem>>, vector<16x16x8xf32>
    tpu.vector_store %arg13[%c1_139, %c1_140, %c24], %151 {strides = array<i32>} : memref<18x24x48xf32, #tpu.memory_space<vmem>>, vector<16x16x8xf32>,
    %cst_141 = arith.constant 0.000000e+00 : f32
    %153 = vector.broadcast %cst_141 : f32 to vector<256x8xf32>
    %c0_142 = arith.constant 0 : index
    %c0_143 = arith.constant 0 : index
    %c0_144 = arith.constant 0 : index
    %154 = vector.load %arg13[%c0_142, %c0_143, %c0_144] : memref<18x24x48xf32, #tpu.memory_space<vmem>>, vector<16x16x32xf32>
    %155 = vector.shape_cast %154 : vector<16x16x32xf32> to vector<256x32xf32>
    %156 = arith.truncf %155 : vector<256x32xf32> to vector<256x32xbf16>
    %c0_145 = arith.constant 0 : index
    %c0_146 = arith.constant 0 : index
    %c0_147 = arith.constant 0 : index
    %157 = vector.load %arg6[%c0_145, %c0_146, %c0_147] : memref<9x32x8xbf16, #tpu.memory_space<vmem>>, vector<1x32x8xbf16>
    %158 = vector.shape_cast %157 : vector<1x32x8xbf16> to vector<32x8xbf16>
    %cst_148 = arith.constant dense<0.000000e+00> : vector<256x8xf32>
    %159 = tpu.matmul %156, %158, %cst_148 {dimension_numbers = #tpu.dot_dimension_numbers<[1], [0], [0], [1], [0, 0, 1, 1], [], []>} : vector<256x32xbf16>, vector<32x8xbf16>, vector<256x8xf32> -> vector<256x8xf32>
    %160 = arith.addf %153, %159 : vector<256x8xf32>
    %c0_149 = arith.constant 0 : index
    %c1_150 = arith.constant 1 : index
    %c0_151 = arith.constant 0 : index
    %161 = vector.load %arg13[%c0_149, %c1_150, %c0_151] : memref<18x24x48xf32, #tpu.memory_space<vmem>>, vector<16x16x32xf32>
    %162 = vector.shape_cast %161 : vector<16x16x32xf32> to vector<256x32xf32>
    %163 = arith.truncf %162 : vector<256x32xf32> to vector<256x32xbf16>
    %c1_152 = arith.constant 1 : index
    %c0_153 = arith.constant 0 : index
    %c0_154 = arith.constant 0 : index
    %164 = vector.load %arg6[%c1_152, %c0_153, %c0_154] : memref<9x32x8xbf16, #tpu.memory_space<vmem>>, vector<1x32x8xbf16>
    %165 = vector.shape_cast %164 : vector<1x32x8xbf16> to vector<32x8xbf16>
    %cst_155 = arith.constant dense<0.000000e+00> : vector<256x8xf32>
    %166 = tpu.matmul %163, %165, %cst_155 {dimension_numbers = #tpu.dot_dimension_numbers<[1], [0], [0], [1], [0, 0, 1, 1], [], []>} : vector<256x32xbf16>, vector<32x8xbf16>, vector<256x8xf32> -> vector<256x8xf32>
    %167 = arith.addf %160, %166 : vector<256x8xf32>
    %c0_156 = arith.constant 0 : index
    %c2_157 = arith.constant 2 : index
    %c0_158 = arith.constant 0 : index
    %168 = vector.load %arg13[%c0_156, %c2_157, %c0_158] : memref<18x24x48xf32, #tpu.memory_space<vmem>>, vector<16x16x32xf32>
    %169 = vector.shape_cast %168 : vector<16x16x32xf32> to vector<256x32xf32>
    %170 = arith.truncf %169 : vector<256x32xf32> to vector<256x32xbf16>
    %c2_159 = arith.constant 2 : index
    %c0_160 = arith.constant 0 : index
    %c0_161 = arith.constant 0 : index
    %171 = vector.load %arg6[%c2_159, %c0_160, %c0_161] : memref<9x32x8xbf16, #tpu.memory_space<vmem>>, vector<1x32x8xbf16>
    %172 = vector.shape_cast %171 : vector<1x32x8xbf16> to vector<32x8xbf16>
    %cst_162 = arith.constant dense<0.000000e+00> : vector<256x8xf32>
    %173 = tpu.matmul %170, %172, %cst_162 {dimension_numbers = #tpu.dot_dimension_numbers<[1], [0], [0], [1], [0, 0, 1, 1], [], []>} : vector<256x32xbf16>, vector<32x8xbf16>, vector<256x8xf32> -> vector<256x8xf32>
    %174 = arith.addf %167, %173 : vector<256x8xf32>
    %c1_163 = arith.constant 1 : index
    %c0_164 = arith.constant 0 : index
    %c0_165 = arith.constant 0 : index
    %175 = vector.load %arg13[%c1_163, %c0_164, %c0_165] : memref<18x24x48xf32, #tpu.memory_space<vmem>>, vector<16x16x32xf32>
    %176 = vector.shape_cast %175 : vector<16x16x32xf32> to vector<256x32xf32>
    %177 = arith.truncf %176 : vector<256x32xf32> to vector<256x32xbf16>
    %c3_166 = arith.constant 3 : index
    %c0_167 = arith.constant 0 : index
    %c0_168 = arith.constant 0 : index
    %178 = vector.load %arg6[%c3_166, %c0_167, %c0_168] : memref<9x32x8xbf16, #tpu.memory_space<vmem>>, vector<1x32x8xbf16>
    %179 = vector.shape_cast %178 : vector<1x32x8xbf16> to vector<32x8xbf16>
    %cst_169 = arith.constant dense<0.000000e+00> : vector<256x8xf32>
    %180 = tpu.matmul %177, %179, %cst_169 {dimension_numbers = #tpu.dot_dimension_numbers<[1], [0], [0], [1], [0, 0, 1, 1], [], []>} : vector<256x32xbf16>, vector<32x8xbf16>, vector<256x8xf32> -> vector<256x8xf32>
    %181 = arith.addf %174, %180 : vector<256x8xf32>
    %c1_170 = arith.constant 1 : index
    %c1_171 = arith.constant 1 : index
    %c0_172 = arith.constant 0 : index
    %182 = vector.load %arg13[%c1_170, %c1_171, %c0_172] : memref<18x24x48xf32, #tpu.memory_space<vmem>>, vector<16x16x32xf32>
    %183 = vector.shape_cast %182 : vector<16x16x32xf32> to vector<256x32xf32>
    %184 = arith.truncf %183 : vector<256x32xf32> to vector<256x32xbf16>
    %c4_173 = arith.constant 4 : index
    %c0_174 = arith.constant 0 : index
    %c0_175 = arith.constant 0 : index
    %185 = vector.load %arg6[%c4_173, %c0_174, %c0_175] : memref<9x32x8xbf16, #tpu.memory_space<vmem>>, vector<1x32x8xbf16>
    %186 = vector.shape_cast %185 : vector<1x32x8xbf16> to vector<32x8xbf16>
    %cst_176 = arith.constant dense<0.000000e+00> : vector<256x8xf32>
    %187 = tpu.matmul %184, %186, %cst_176 {dimension_numbers = #tpu.dot_dimension_numbers<[1], [0], [0], [1], [0, 0, 1, 1], [], []>} : vector<256x32xbf16>, vector<32x8xbf16>, vector<256x8xf32> -> vector<256x8xf32>
    %188 = arith.addf %181, %187 : vector<256x8xf32>
    %c1_177 = arith.constant 1 : index
    %c2_178 = arith.constant 2 : index
    %c0_179 = arith.constant 0 : index
    %189 = vector.load %arg13[%c1_177, %c2_178, %c0_179] : memref<18x24x48xf32, #tpu.memory_space<vmem>>, vector<16x16x32xf32>
    %190 = vector.shape_cast %189 : vector<16x16x32xf32> to vector<256x32xf32>
    %191 = arith.truncf %190 : vector<256x32xf32> to vector<256x32xbf16>
    %c5_180 = arith.constant 5 : index
    %c0_181 = arith.constant 0 : index
    %c0_182 = arith.constant 0 : index
    %192 = vector.load %arg6[%c5_180, %c0_181, %c0_182] : memref<9x32x8xbf16, #tpu.memory_space<vmem>>, vector<1x32x8xbf16>
    %193 = vector.shape_cast %192 : vector<1x32x8xbf16> to vector<32x8xbf16>
    %cst_183 = arith.constant dense<0.000000e+00> : vector<256x8xf32>
    %194 = tpu.matmul %191, %193, %cst_183 {dimension_numbers = #tpu.dot_dimension_numbers<[1], [0], [0], [1], [0, 0, 1, 1], [], []>} : vector<256x32xbf16>, vector<32x8xbf16>, vector<256x8xf32> -> vector<256x8xf32>
    %195 = arith.addf %188, %194 : vector<256x8xf32>
    %c2_184 = arith.constant 2 : index
    %c0_185 = arith.constant 0 : index
    %c0_186 = arith.constant 0 : index
    %196 = vector.load %arg13[%c2_184, %c0_185, %c0_186] : memref<18x24x48xf32, #tpu.memory_space<vmem>>, vector<16x16x32xf32>
    %197 = vector.shape_cast %196 : vector<16x16x32xf32> to vector<256x32xf32>
    %198 = arith.truncf %197 : vector<256x32xf32> to vector<256x32xbf16>
    %c6_187 = arith.constant 6 : index
    %c0_188 = arith.constant 0 : index
    %c0_189 = arith.constant 0 : index
    %199 = vector.load %arg6[%c6_187, %c0_188, %c0_189] : memref<9x32x8xbf16, #tpu.memory_space<vmem>>, vector<1x32x8xbf16>
    %200 = vector.shape_cast %199 : vector<1x32x8xbf16> to vector<32x8xbf16>
    %cst_190 = arith.constant dense<0.000000e+00> : vector<256x8xf32>
    %201 = tpu.matmul %198, %200, %cst_190 {dimension_numbers = #tpu.dot_dimension_numbers<[1], [0], [0], [1], [0, 0, 1, 1], [], []>} : vector<256x32xbf16>, vector<32x8xbf16>, vector<256x8xf32> -> vector<256x8xf32>
    %202 = arith.addf %195, %201 : vector<256x8xf32>
    %c2_191 = arith.constant 2 : index
    %c1_192 = arith.constant 1 : index
    %c0_193 = arith.constant 0 : index
    %203 = vector.load %arg13[%c2_191, %c1_192, %c0_193] : memref<18x24x48xf32, #tpu.memory_space<vmem>>, vector<16x16x32xf32>
    %204 = vector.shape_cast %203 : vector<16x16x32xf32> to vector<256x32xf32>
    %205 = arith.truncf %204 : vector<256x32xf32> to vector<256x32xbf16>
    %c7_194 = arith.constant 7 : index
    %c0_195 = arith.constant 0 : index
    %c0_196 = arith.constant 0 : index
    %206 = vector.load %arg6[%c7_194, %c0_195, %c0_196] : memref<9x32x8xbf16, #tpu.memory_space<vmem>>, vector<1x32x8xbf16>
    %207 = vector.shape_cast %206 : vector<1x32x8xbf16> to vector<32x8xbf16>
    %cst_197 = arith.constant dense<0.000000e+00> : vector<256x8xf32>
    %208 = tpu.matmul %205, %207, %cst_197 {dimension_numbers = #tpu.dot_dimension_numbers<[1], [0], [0], [1], [0, 0, 1, 1], [], []>} : vector<256x32xbf16>, vector<32x8xbf16>, vector<256x8xf32> -> vector<256x8xf32>
    %209 = arith.addf %202, %208 : vector<256x8xf32>
    %c2_198 = arith.constant 2 : index
    %c2_199 = arith.constant 2 : index
    %c0_200 = arith.constant 0 : index
    %210 = vector.load %arg13[%c2_198, %c2_199, %c0_200] : memref<18x24x48xf32, #tpu.memory_space<vmem>>, vector<16x16x32xf32>
    %211 = vector.shape_cast %210 : vector<16x16x32xf32> to vector<256x32xf32>
    %212 = arith.truncf %211 : vector<256x32xf32> to vector<256x32xbf16>
    %c8_201 = arith.constant 8 : index
    %c0_202 = arith.constant 0 : index
    %c0_203 = arith.constant 0 : index
    %213 = vector.load %arg6[%c8_201, %c0_202, %c0_203] : memref<9x32x8xbf16, #tpu.memory_space<vmem>>, vector<1x32x8xbf16>
    %214 = vector.shape_cast %213 : vector<1x32x8xbf16> to vector<32x8xbf16>
    %cst_204 = arith.constant dense<0.000000e+00> : vector<256x8xf32>
    %215 = tpu.matmul %212, %214, %cst_204 {dimension_numbers = #tpu.dot_dimension_numbers<[1], [0], [0], [1], [0, 0, 1, 1], [], []>} : vector<256x32xbf16>, vector<32x8xbf16>, vector<256x8xf32> -> vector<256x8xf32>
    %216 = arith.addf %209, %215 : vector<256x8xf32>
    %c0_205 = arith.constant 0 : index
    %c0_206 = arith.constant 0 : index
    %217 = vector.load %arg7[%c0_205, %c0_206] : memref<1x8xf32, #tpu.memory_space<vmem>>, vector<1x8xf32>
    %218 = vector.broadcast %217 : vector<1x8xf32> to vector<256x8xf32>
    %219 = arith.addf %216, %218 : vector<256x8xf32>
    %cst_207 = arith.constant 0.000000e+00 : f32
    %220 = vector.broadcast %cst_207 : f32 to vector<256x8xf32>
    %221 = arith.cmpf oge, %219, %220 : vector<256x8xf32>
    %cst_208 = arith.constant 2.000000e-01 : f32
    %222 = vector.broadcast %cst_208 : f32 to vector<256x8xf32>
    %223 = arith.mulf %222, %219 : vector<256x8xf32>
    %224 = arith.select %221, %219, %223 : vector<256x8xi1>, vector<256x8xf32>
    %225 = vector.shape_cast %224 : vector<256x8xf32> to vector<16x16x8xf32>
    %c1_209 = arith.constant 1 : index
    %c1_210 = arith.constant 1 : index
    %c32 = arith.constant 32 : index
    %226 = vector.load %arg13[%c1_209, %c1_210, %c32] : memref<18x24x48xf32, #tpu.memory_space<vmem>>, vector<16x16x8xf32>
    tpu.vector_store %arg13[%c1_209, %c1_210, %c32], %225 {strides = array<i32>} : memref<18x24x48xf32, #tpu.memory_space<vmem>>, vector<16x16x8xf32>,
    %cst_211 = arith.constant 0.000000e+00 : f32
    %227 = vector.broadcast %cst_211 : f32 to vector<256x8xf32>
    %c0_212 = arith.constant 0 : index
    %c0_213 = arith.constant 0 : index
    %c0_214 = arith.constant 0 : index
    %228 = vector.load %arg13[%c0_212, %c0_213, %c0_214] : memref<18x24x48xf32, #tpu.memory_space<vmem>>, vector<16x16x40xf32>
    %229 = vector.shape_cast %228 : vector<16x16x40xf32> to vector<256x40xf32>
    %230 = arith.truncf %229 : vector<256x40xf32> to vector<256x40xbf16>
    %c0_215 = arith.constant 0 : index
    %c0_216 = arith.constant 0 : index
    %c0_217 = arith.constant 0 : index
    %231 = vector.load %arg8[%c0_215, %c0_216, %c0_217] : memref<9x40x8xbf16, #tpu.memory_space<vmem>>, vector<1x40x8xbf16>
    %232 = vector.shape_cast %231 : vector<1x40x8xbf16> to vector<40x8xbf16>
    %cst_218 = arith.constant dense<0.000000e+00> : vector<256x8xf32>
    %233 = tpu.matmul %230, %232, %cst_218 {dimension_numbers = #tpu.dot_dimension_numbers<[1], [0], [0], [1], [0, 0, 1, 1], [], []>} : vector<256x40xbf16>, vector<40x8xbf16>, vector<256x8xf32> -> vector<256x8xf32>
    %234 = arith.addf %227, %233 : vector<256x8xf32>
    %c0_219 = arith.constant 0 : index
    %c1_220 = arith.constant 1 : index
    %c0_221 = arith.constant 0 : index
    %235 = vector.load %arg13[%c0_219, %c1_220, %c0_221] : memref<18x24x48xf32, #tpu.memory_space<vmem>>, vector<16x16x40xf32>
    %236 = vector.shape_cast %235 : vector<16x16x40xf32> to vector<256x40xf32>
    %237 = arith.truncf %236 : vector<256x40xf32> to vector<256x40xbf16>
    %c1_222 = arith.constant 1 : index
    %c0_223 = arith.constant 0 : index
    %c0_224 = arith.constant 0 : index
    %238 = vector.load %arg8[%c1_222, %c0_223, %c0_224] : memref<9x40x8xbf16, #tpu.memory_space<vmem>>, vector<1x40x8xbf16>
    %239 = vector.shape_cast %238 : vector<1x40x8xbf16> to vector<40x8xbf16>
    %cst_225 = arith.constant dense<0.000000e+00> : vector<256x8xf32>
    %240 = tpu.matmul %237, %239, %cst_225 {dimension_numbers = #tpu.dot_dimension_numbers<[1], [0], [0], [1], [0, 0, 1, 1], [], []>} : vector<256x40xbf16>, vector<40x8xbf16>, vector<256x8xf32> -> vector<256x8xf32>
    %241 = arith.addf %234, %240 : vector<256x8xf32>
    %c0_226 = arith.constant 0 : index
    %c2_227 = arith.constant 2 : index
    %c0_228 = arith.constant 0 : index
    %242 = vector.load %arg13[%c0_226, %c2_227, %c0_228] : memref<18x24x48xf32, #tpu.memory_space<vmem>>, vector<16x16x40xf32>
    %243 = vector.shape_cast %242 : vector<16x16x40xf32> to vector<256x40xf32>
    %244 = arith.truncf %243 : vector<256x40xf32> to vector<256x40xbf16>
    %c2_229 = arith.constant 2 : index
    %c0_230 = arith.constant 0 : index
    %c0_231 = arith.constant 0 : index
    %245 = vector.load %arg8[%c2_229, %c0_230, %c0_231] : memref<9x40x8xbf16, #tpu.memory_space<vmem>>, vector<1x40x8xbf16>
    %246 = vector.shape_cast %245 : vector<1x40x8xbf16> to vector<40x8xbf16>
    %cst_232 = arith.constant dense<0.000000e+00> : vector<256x8xf32>
    %247 = tpu.matmul %244, %246, %cst_232 {dimension_numbers = #tpu.dot_dimension_numbers<[1], [0], [0], [1], [0, 0, 1, 1], [], []>} : vector<256x40xbf16>, vector<40x8xbf16>, vector<256x8xf32> -> vector<256x8xf32>
    %248 = arith.addf %241, %247 : vector<256x8xf32>
    %c1_233 = arith.constant 1 : index
    %c0_234 = arith.constant 0 : index
    %c0_235 = arith.constant 0 : index
    %249 = vector.load %arg13[%c1_233, %c0_234, %c0_235] : memref<18x24x48xf32, #tpu.memory_space<vmem>>, vector<16x16x40xf32>
    %250 = vector.shape_cast %249 : vector<16x16x40xf32> to vector<256x40xf32>
    %251 = arith.truncf %250 : vector<256x40xf32> to vector<256x40xbf16>
    %c3_236 = arith.constant 3 : index
    %c0_237 = arith.constant 0 : index
    %c0_238 = arith.constant 0 : index
    %252 = vector.load %arg8[%c3_236, %c0_237, %c0_238] : memref<9x40x8xbf16, #tpu.memory_space<vmem>>, vector<1x40x8xbf16>
    %253 = vector.shape_cast %252 : vector<1x40x8xbf16> to vector<40x8xbf16>
    %cst_239 = arith.constant dense<0.000000e+00> : vector<256x8xf32>
    %254 = tpu.matmul %251, %253, %cst_239 {dimension_numbers = #tpu.dot_dimension_numbers<[1], [0], [0], [1], [0, 0, 1, 1], [], []>} : vector<256x40xbf16>, vector<40x8xbf16>, vector<256x8xf32> -> vector<256x8xf32>
    %255 = arith.addf %248, %254 : vector<256x8xf32>
    %c1_240 = arith.constant 1 : index
    %c1_241 = arith.constant 1 : index
    %c0_242 = arith.constant 0 : index
    %256 = vector.load %arg13[%c1_240, %c1_241, %c0_242] : memref<18x24x48xf32, #tpu.memory_space<vmem>>, vector<16x16x40xf32>
    %257 = vector.shape_cast %256 : vector<16x16x40xf32> to vector<256x40xf32>
    %258 = arith.truncf %257 : vector<256x40xf32> to vector<256x40xbf16>
    %c4_243 = arith.constant 4 : index
    %c0_244 = arith.constant 0 : index
    %c0_245 = arith.constant 0 : index
    %259 = vector.load %arg8[%c4_243, %c0_244, %c0_245] : memref<9x40x8xbf16, #tpu.memory_space<vmem>>, vector<1x40x8xbf16>
    %260 = vector.shape_cast %259 : vector<1x40x8xbf16> to vector<40x8xbf16>
    %cst_246 = arith.constant dense<0.000000e+00> : vector<256x8xf32>
    %261 = tpu.matmul %258, %260, %cst_246 {dimension_numbers = #tpu.dot_dimension_numbers<[1], [0], [0], [1], [0, 0, 1, 1], [], []>} : vector<256x40xbf16>, vector<40x8xbf16>, vector<256x8xf32> -> vector<256x8xf32>
    %262 = arith.addf %255, %261 : vector<256x8xf32>
    %c1_247 = arith.constant 1 : index
    %c2_248 = arith.constant 2 : index
    %c0_249 = arith.constant 0 : index
    %263 = vector.load %arg13[%c1_247, %c2_248, %c0_249] : memref<18x24x48xf32, #tpu.memory_space<vmem>>, vector<16x16x40xf32>
    %264 = vector.shape_cast %263 : vector<16x16x40xf32> to vector<256x40xf32>
    %265 = arith.truncf %264 : vector<256x40xf32> to vector<256x40xbf16>
    %c5_250 = arith.constant 5 : index
    %c0_251 = arith.constant 0 : index
    %c0_252 = arith.constant 0 : index
    %266 = vector.load %arg8[%c5_250, %c0_251, %c0_252] : memref<9x40x8xbf16, #tpu.memory_space<vmem>>, vector<1x40x8xbf16>
    %267 = vector.shape_cast %266 : vector<1x40x8xbf16> to vector<40x8xbf16>
    %cst_253 = arith.constant dense<0.000000e+00> : vector<256x8xf32>
    %268 = tpu.matmul %265, %267, %cst_253 {dimension_numbers = #tpu.dot_dimension_numbers<[1], [0], [0], [1], [0, 0, 1, 1], [], []>} : vector<256x40xbf16>, vector<40x8xbf16>, vector<256x8xf32> -> vector<256x8xf32>
    %269 = arith.addf %262, %268 : vector<256x8xf32>
    %c2_254 = arith.constant 2 : index
    %c0_255 = arith.constant 0 : index
    %c0_256 = arith.constant 0 : index
    %270 = vector.load %arg13[%c2_254, %c0_255, %c0_256] : memref<18x24x48xf32, #tpu.memory_space<vmem>>, vector<16x16x40xf32>
    %271 = vector.shape_cast %270 : vector<16x16x40xf32> to vector<256x40xf32>
    %272 = arith.truncf %271 : vector<256x40xf32> to vector<256x40xbf16>
    %c6_257 = arith.constant 6 : index
    %c0_258 = arith.constant 0 : index
    %c0_259 = arith.constant 0 : index
    %273 = vector.load %arg8[%c6_257, %c0_258, %c0_259] : memref<9x40x8xbf16, #tpu.memory_space<vmem>>, vector<1x40x8xbf16>
    %274 = vector.shape_cast %273 : vector<1x40x8xbf16> to vector<40x8xbf16>
    %cst_260 = arith.constant dense<0.000000e+00> : vector<256x8xf32>
    %275 = tpu.matmul %272, %274, %cst_260 {dimension_numbers = #tpu.dot_dimension_numbers<[1], [0], [0], [1], [0, 0, 1, 1], [], []>} : vector<256x40xbf16>, vector<40x8xbf16>, vector<256x8xf32> -> vector<256x8xf32>
    %276 = arith.addf %269, %275 : vector<256x8xf32>
    %c2_261 = arith.constant 2 : index
    %c1_262 = arith.constant 1 : index
    %c0_263 = arith.constant 0 : index
    %277 = vector.load %arg13[%c2_261, %c1_262, %c0_263] : memref<18x24x48xf32, #tpu.memory_space<vmem>>, vector<16x16x40xf32>
    %278 = vector.shape_cast %277 : vector<16x16x40xf32> to vector<256x40xf32>
    %279 = arith.truncf %278 : vector<256x40xf32> to vector<256x40xbf16>
    %c7_264 = arith.constant 7 : index
    %c0_265 = arith.constant 0 : index
    %c0_266 = arith.constant 0 : index
    %280 = vector.load %arg8[%c7_264, %c0_265, %c0_266] : memref<9x40x8xbf16, #tpu.memory_space<vmem>>, vector<1x40x8xbf16>
    %281 = vector.shape_cast %280 : vector<1x40x8xbf16> to vector<40x8xbf16>
    %cst_267 = arith.constant dense<0.000000e+00> : vector<256x8xf32>
    %282 = tpu.matmul %279, %281, %cst_267 {dimension_numbers = #tpu.dot_dimension_numbers<[1], [0], [0], [1], [0, 0, 1, 1], [], []>} : vector<256x40xbf16>, vector<40x8xbf16>, vector<256x8xf32> -> vector<256x8xf32>
    %283 = arith.addf %276, %282 : vector<256x8xf32>
    %c2_268 = arith.constant 2 : index
    %c2_269 = arith.constant 2 : index
    %c0_270 = arith.constant 0 : index
    %284 = vector.load %arg13[%c2_268, %c2_269, %c0_270] : memref<18x24x48xf32, #tpu.memory_space<vmem>>, vector<16x16x40xf32>
    %285 = vector.shape_cast %284 : vector<16x16x40xf32> to vector<256x40xf32>
    %286 = arith.truncf %285 : vector<256x40xf32> to vector<256x40xbf16>
    %c8_271 = arith.constant 8 : index
    %c0_272 = arith.constant 0 : index
    %c0_273 = arith.constant 0 : index
    %287 = vector.load %arg8[%c8_271, %c0_272, %c0_273] : memref<9x40x8xbf16, #tpu.memory_space<vmem>>, vector<1x40x8xbf16>
    %288 = vector.shape_cast %287 : vector<1x40x8xbf16> to vector<40x8xbf16>
    %cst_274 = arith.constant dense<0.000000e+00> : vector<256x8xf32>
    %289 = tpu.matmul %286, %288, %cst_274 {dimension_numbers = #tpu.dot_dimension_numbers<[1], [0], [0], [1], [0, 0, 1, 1], [], []>} : vector<256x40xbf16>, vector<40x8xbf16>, vector<256x8xf32> -> vector<256x8xf32>
    %290 = arith.addf %283, %289 : vector<256x8xf32>
    %c0_275 = arith.constant 0 : index
    %c0_276 = arith.constant 0 : index
    %291 = vector.load %arg9[%c0_275, %c0_276] : memref<1x8xf32, #tpu.memory_space<vmem>>, vector<1x8xf32>
    %292 = vector.broadcast %291 : vector<1x8xf32> to vector<256x8xf32>
    %293 = arith.addf %290, %292 : vector<256x8xf32>
    %cst_277 = arith.constant 0.000000e+00 : f32
    %294 = vector.broadcast %cst_277 : f32 to vector<256x8xf32>
    %295 = arith.cmpf oge, %293, %294 : vector<256x8xf32>
    %cst_278 = arith.constant 2.000000e-01 : f32
    %296 = vector.broadcast %cst_278 : f32 to vector<256x8xf32>
    %297 = arith.mulf %296, %293 : vector<256x8xf32>
    %298 = arith.select %295, %293, %297 : vector<256x8xi1>, vector<256x8xf32>
    %299 = vector.shape_cast %298 : vector<256x8xf32> to vector<16x16x8xf32>
    %c1_279 = arith.constant 1 : index
    %c1_280 = arith.constant 1 : index
    %c40 = arith.constant 40 : index
    %300 = vector.load %arg13[%c1_279, %c1_280, %c40] : memref<18x24x48xf32, #tpu.memory_space<vmem>>, vector<16x16x8xf32>
    tpu.vector_store %arg13[%c1_279, %c1_280, %c40], %299 {strides = array<i32>} : memref<18x24x48xf32, #tpu.memory_space<vmem>>, vector<16x16x8xf32>,
    %cst_281 = arith.constant 0.000000e+00 : f32
    %301 = vector.broadcast %cst_281 : f32 to vector<256x16xf32>
    %c0_282 = arith.constant 0 : index
    %c0_283 = arith.constant 0 : index
    %c0_284 = arith.constant 0 : index
    %302 = vector.load %arg13[%c0_282, %c0_283, %c0_284] : memref<18x24x48xf32, #tpu.memory_space<vmem>>, vector<16x16x48xf32>
    %303 = vector.shape_cast %302 : vector<16x16x48xf32> to vector<256x48xf32>
    %304 = arith.truncf %303 : vector<256x48xf32> to vector<256x48xbf16>
    %c0_285 = arith.constant 0 : index
    %c0_286 = arith.constant 0 : index
    %c0_287 = arith.constant 0 : index
    %305 = vector.load %arg10[%c0_285, %c0_286, %c0_287] : memref<9x48x16xbf16, #tpu.memory_space<vmem>>, vector<1x48x16xbf16>
    %306 = vector.shape_cast %305 : vector<1x48x16xbf16> to vector<48x16xbf16>
    %cst_288 = arith.constant dense<0.000000e+00> : vector<256x16xf32>
    %307 = tpu.matmul %304, %306, %cst_288 {dimension_numbers = #tpu.dot_dimension_numbers<[1], [0], [0], [1], [0, 0, 1, 1], [], []>} : vector<256x48xbf16>, vector<48x16xbf16>, vector<256x16xf32> -> vector<256x16xf32>
    %308 = arith.addf %301, %307 : vector<256x16xf32>
    %c0_289 = arith.constant 0 : index
    %c1_290 = arith.constant 1 : index
    %c0_291 = arith.constant 0 : index
    %309 = vector.load %arg13[%c0_289, %c1_290, %c0_291] : memref<18x24x48xf32, #tpu.memory_space<vmem>>, vector<16x16x48xf32>
    %310 = vector.shape_cast %309 : vector<16x16x48xf32> to vector<256x48xf32>
    %311 = arith.truncf %310 : vector<256x48xf32> to vector<256x48xbf16>
    %c1_292 = arith.constant 1 : index
    %c0_293 = arith.constant 0 : index
    %c0_294 = arith.constant 0 : index
    %312 = vector.load %arg10[%c1_292, %c0_293, %c0_294] : memref<9x48x16xbf16, #tpu.memory_space<vmem>>, vector<1x48x16xbf16>
    %313 = vector.shape_cast %312 : vector<1x48x16xbf16> to vector<48x16xbf16>
    %cst_295 = arith.constant dense<0.000000e+00> : vector<256x16xf32>
    %314 = tpu.matmul %311, %313, %cst_295 {dimension_numbers = #tpu.dot_dimension_numbers<[1], [0], [0], [1], [0, 0, 1, 1], [], []>} : vector<256x48xbf16>, vector<48x16xbf16>, vector<256x16xf32> -> vector<256x16xf32>
    %315 = arith.addf %308, %314 : vector<256x16xf32>
    %c0_296 = arith.constant 0 : index
    %c2_297 = arith.constant 2 : index
    %c0_298 = arith.constant 0 : index
    %316 = vector.load %arg13[%c0_296, %c2_297, %c0_298] : memref<18x24x48xf32, #tpu.memory_space<vmem>>, vector<16x16x48xf32>
    %317 = vector.shape_cast %316 : vector<16x16x48xf32> to vector<256x48xf32>
    %318 = arith.truncf %317 : vector<256x48xf32> to vector<256x48xbf16>
    %c2_299 = arith.constant 2 : index
    %c0_300 = arith.constant 0 : index
    %c0_301 = arith.constant 0 : index
    %319 = vector.load %arg10[%c2_299, %c0_300, %c0_301] : memref<9x48x16xbf16, #tpu.memory_space<vmem>>, vector<1x48x16xbf16>
    %320 = vector.shape_cast %319 : vector<1x48x16xbf16> to vector<48x16xbf16>
    %cst_302 = arith.constant dense<0.000000e+00> : vector<256x16xf32>
    %321 = tpu.matmul %318, %320, %cst_302 {dimension_numbers = #tpu.dot_dimension_numbers<[1], [0], [0], [1], [0, 0, 1, 1], [], []>} : vector<256x48xbf16>, vector<48x16xbf16>, vector<256x16xf32> -> vector<256x16xf32>
    %322 = arith.addf %315, %321 : vector<256x16xf32>
    %c1_303 = arith.constant 1 : index
    %c0_304 = arith.constant 0 : index
    %c0_305 = arith.constant 0 : index
    %323 = vector.load %arg13[%c1_303, %c0_304, %c0_305] : memref<18x24x48xf32, #tpu.memory_space<vmem>>, vector<16x16x48xf32>
    %324 = vector.shape_cast %323 : vector<16x16x48xf32> to vector<256x48xf32>
    %325 = arith.truncf %324 : vector<256x48xf32> to vector<256x48xbf16>
    %c3_306 = arith.constant 3 : index
    %c0_307 = arith.constant 0 : index
    %c0_308 = arith.constant 0 : index
    %326 = vector.load %arg10[%c3_306, %c0_307, %c0_308] : memref<9x48x16xbf16, #tpu.memory_space<vmem>>, vector<1x48x16xbf16>
    %327 = vector.shape_cast %326 : vector<1x48x16xbf16> to vector<48x16xbf16>
    %cst_309 = arith.constant dense<0.000000e+00> : vector<256x16xf32>
    %328 = tpu.matmul %325, %327, %cst_309 {dimension_numbers = #tpu.dot_dimension_numbers<[1], [0], [0], [1], [0, 0, 1, 1], [], []>} : vector<256x48xbf16>, vector<48x16xbf16>, vector<256x16xf32> -> vector<256x16xf32>
    %329 = arith.addf %322, %328 : vector<256x16xf32>
    %c1_310 = arith.constant 1 : index
    %c1_311 = arith.constant 1 : index
    %c0_312 = arith.constant 0 : index
    %330 = vector.load %arg13[%c1_310, %c1_311, %c0_312] : memref<18x24x48xf32, #tpu.memory_space<vmem>>, vector<16x16x48xf32>
    %331 = vector.shape_cast %330 : vector<16x16x48xf32> to vector<256x48xf32>
    %332 = arith.truncf %331 : vector<256x48xf32> to vector<256x48xbf16>
    %c4_313 = arith.constant 4 : index
    %c0_314 = arith.constant 0 : index
    %c0_315 = arith.constant 0 : index
    %333 = vector.load %arg10[%c4_313, %c0_314, %c0_315] : memref<9x48x16xbf16, #tpu.memory_space<vmem>>, vector<1x48x16xbf16>
    %334 = vector.shape_cast %333 : vector<1x48x16xbf16> to vector<48x16xbf16>
    %cst_316 = arith.constant dense<0.000000e+00> : vector<256x16xf32>
    %335 = tpu.matmul %332, %334, %cst_316 {dimension_numbers = #tpu.dot_dimension_numbers<[1], [0], [0], [1], [0, 0, 1, 1], [], []>} : vector<256x48xbf16>, vector<48x16xbf16>, vector<256x16xf32> -> vector<256x16xf32>
    %336 = arith.addf %329, %335 : vector<256x16xf32>
    %c1_317 = arith.constant 1 : index
    %c2_318 = arith.constant 2 : index
    %c0_319 = arith.constant 0 : index
    %337 = vector.load %arg13[%c1_317, %c2_318, %c0_319] : memref<18x24x48xf32, #tpu.memory_space<vmem>>, vector<16x16x48xf32>
    %338 = vector.shape_cast %337 : vector<16x16x48xf32> to vector<256x48xf32>
    %339 = arith.truncf %338 : vector<256x48xf32> to vector<256x48xbf16>
    %c5_320 = arith.constant 5 : index
    %c0_321 = arith.constant 0 : index
    %c0_322 = arith.constant 0 : index
    %340 = vector.load %arg10[%c5_320, %c0_321, %c0_322] : memref<9x48x16xbf16, #tpu.memory_space<vmem>>, vector<1x48x16xbf16>
    %341 = vector.shape_cast %340 : vector<1x48x16xbf16> to vector<48x16xbf16>
    %cst_323 = arith.constant dense<0.000000e+00> : vector<256x16xf32>
    %342 = tpu.matmul %339, %341, %cst_323 {dimension_numbers = #tpu.dot_dimension_numbers<[1], [0], [0], [1], [0, 0, 1, 1], [], []>} : vector<256x48xbf16>, vector<48x16xbf16>, vector<256x16xf32> -> vector<256x16xf32>
    %343 = arith.addf %336, %342 : vector<256x16xf32>
    %c2_324 = arith.constant 2 : index
    %c0_325 = arith.constant 0 : index
    %c0_326 = arith.constant 0 : index
    %344 = vector.load %arg13[%c2_324, %c0_325, %c0_326] : memref<18x24x48xf32, #tpu.memory_space<vmem>>, vector<16x16x48xf32>
    %345 = vector.shape_cast %344 : vector<16x16x48xf32> to vector<256x48xf32>
    %346 = arith.truncf %345 : vector<256x48xf32> to vector<256x48xbf16>
    %c6_327 = arith.constant 6 : index
    %c0_328 = arith.constant 0 : index
    %c0_329 = arith.constant 0 : index
    %347 = vector.load %arg10[%c6_327, %c0_328, %c0_329] : memref<9x48x16xbf16, #tpu.memory_space<vmem>>, vector<1x48x16xbf16>
    %348 = vector.shape_cast %347 : vector<1x48x16xbf16> to vector<48x16xbf16>
    %cst_330 = arith.constant dense<0.000000e+00> : vector<256x16xf32>
    %349 = tpu.matmul %346, %348, %cst_330 {dimension_numbers = #tpu.dot_dimension_numbers<[1], [0], [0], [1], [0, 0, 1, 1], [], []>} : vector<256x48xbf16>, vector<48x16xbf16>, vector<256x16xf32> -> vector<256x16xf32>
    %350 = arith.addf %343, %349 : vector<256x16xf32>
    %c2_331 = arith.constant 2 : index
    %c1_332 = arith.constant 1 : index
    %c0_333 = arith.constant 0 : index
    %351 = vector.load %arg13[%c2_331, %c1_332, %c0_333] : memref<18x24x48xf32, #tpu.memory_space<vmem>>, vector<16x16x48xf32>
    %352 = vector.shape_cast %351 : vector<16x16x48xf32> to vector<256x48xf32>
    %353 = arith.truncf %352 : vector<256x48xf32> to vector<256x48xbf16>
    %c7_334 = arith.constant 7 : index
    %c0_335 = arith.constant 0 : index
    %c0_336 = arith.constant 0 : index
    %354 = vector.load %arg10[%c7_334, %c0_335, %c0_336] : memref<9x48x16xbf16, #tpu.memory_space<vmem>>, vector<1x48x16xbf16>
    %355 = vector.shape_cast %354 : vector<1x48x16xbf16> to vector<48x16xbf16>
    %cst_337 = arith.constant dense<0.000000e+00> : vector<256x16xf32>
    %356 = tpu.matmul %353, %355, %cst_337 {dimension_numbers = #tpu.dot_dimension_numbers<[1], [0], [0], [1], [0, 0, 1, 1], [], []>} : vector<256x48xbf16>, vector<48x16xbf16>, vector<256x16xf32> -> vector<256x16xf32>
    %357 = arith.addf %350, %356 : vector<256x16xf32>
    %c2_338 = arith.constant 2 : index
    %c2_339 = arith.constant 2 : index
    %c0_340 = arith.constant 0 : index
    %358 = vector.load %arg13[%c2_338, %c2_339, %c0_340] : memref<18x24x48xf32, #tpu.memory_space<vmem>>, vector<16x16x48xf32>
    %359 = vector.shape_cast %358 : vector<16x16x48xf32> to vector<256x48xf32>
    %360 = arith.truncf %359 : vector<256x48xf32> to vector<256x48xbf16>
    %c8_341 = arith.constant 8 : index
    %c0_342 = arith.constant 0 : index
    %c0_343 = arith.constant 0 : index
    %361 = vector.load %arg10[%c8_341, %c0_342, %c0_343] : memref<9x48x16xbf16, #tpu.memory_space<vmem>>, vector<1x48x16xbf16>
    %362 = vector.shape_cast %361 : vector<1x48x16xbf16> to vector<48x16xbf16>
    %cst_344 = arith.constant dense<0.000000e+00> : vector<256x16xf32>
    %363 = tpu.matmul %360, %362, %cst_344 {dimension_numbers = #tpu.dot_dimension_numbers<[1], [0], [0], [1], [0, 0, 1, 1], [], []>} : vector<256x48xbf16>, vector<48x16xbf16>, vector<256x16xf32> -> vector<256x16xf32>
    %364 = arith.addf %357, %363 : vector<256x16xf32>
    %c0_345 = arith.constant 0 : index
    %c0_346 = arith.constant 0 : index
    %365 = vector.load %arg11[%c0_345, %c0_346] : memref<1x16xf32, #tpu.memory_space<vmem>>, vector<1x16xf32>
    %366 = vector.broadcast %365 : vector<1x16xf32> to vector<256x16xf32>
    %367 = arith.addf %364, %366 : vector<256x16xf32>
    %cst_347 = arith.constant 2.000000e-01 : f32
    %368 = vector.broadcast %cst_347 : f32 to vector<256x16xf32>
    %369 = arith.mulf %367, %368 : vector<256x16xf32>
    %370 = vector.shape_cast %3 : vector<16x16x16xf32> to vector<256x16xf32>
    %371 = arith.addf %369, %370 : vector<256x16xf32>
    %372 = vector.shape_cast %371 : vector<256x16xf32> to vector<1x16x16x16xf32>
    %c0_348 = arith.constant 0 : index
    %c0_349 = arith.constant 0 : index
    %c0_350 = arith.constant 0 : index
    %c0_351 = arith.constant 0 : index
    %373 = vector.load %arg12[%c0_348, %c0_349, %c0_350, %c0_351] : memref<1x16x16x16xf32, #tpu.memory_space<vmem>>, vector<1x16x16x16xf32>
    tpu.vector_store %arg12[%c0_348, %c0_349, %c0_350, %c0_351], %372 {strides = array<i32>} : memref<1x16x16x16xf32, #tpu.memory_space<vmem>>, vector<1x16x16x16xf32>,
    return
  }
  func.func @transform_0(%arg0: i32) -> (i32, i32, i32, i32) {
    %c0_i32 = arith.constant 0 : i32
    %c0_i32_0 = arith.constant 0 : i32
    %c0_i32_1 = arith.constant 0 : i32
    %c0_i32_2 = arith.constant 0 : i32
    return %arg0, %c0_i32, %c0_i32_0, %c0_i32_1 : i32, i32, i32, i32
  }
  func.func @transform_1(%arg0: i32) -> (i32, i32, i32) {
    %c0_i32 = arith.constant 0 : i32
    %c0_i32_0 = arith.constant 0 : i32
    %c0_i32_1 = arith.constant 0 : i32
    %c0_i32_2 = arith.constant 0 : i32
    return %c0_i32, %c0_i32_0, %c0_i32_1 : i32, i32, i32
  }
  func.func @transform_2(%arg0: i32) -> (i32, i32) {
    %c0_i32 = arith.constant 0 : i32
    %c0_i32_0 = arith.constant 0 : i32
    %c0_i32_1 = arith.constant 0 : i32
    return %c0_i32, %c0_i32_0 : i32, i32
  }
  func.func @transform_3(%arg0: i32) -> (i32, i32, i32) {
    %c0_i32 = arith.constant 0 : i32
    %c0_i32_0 = arith.constant 0 : i32
    %c0_i32_1 = arith.constant 0 : i32
    %c0_i32_2 = arith.constant 0 : i32
    return %c0_i32, %c0_i32_0, %c0_i32_1 : i32, i32, i32
  }
  func.func @transform_4(%arg0: i32) -> (i32, i32) {
    %c0_i32 = arith.constant 0 : i32
    %c0_i32_0 = arith.constant 0 : i32
    %c0_i32_1 = arith.constant 0 : i32
    return %c0_i32, %c0_i32_0 : i32, i32
  }
  func.func @transform_5(%arg0: i32) -> (i32, i32, i32) {
    %c0_i32 = arith.constant 0 : i32
    %c0_i32_0 = arith.constant 0 : i32
    %c0_i32_1 = arith.constant 0 : i32
    %c0_i32_2 = arith.constant 0 : i32
    return %c0_i32, %c0_i32_0, %c0_i32_1 : i32, i32, i32
  }
  func.func @transform_6(%arg0: i32) -> (i32, i32) {
    %c0_i32 = arith.constant 0 : i32
    %c0_i32_0 = arith.constant 0 : i32
    %c0_i32_1 = arith.constant 0 : i32
    return %c0_i32, %c0_i32_0 : i32, i32
  }
  func.func @transform_7(%arg0: i32) -> (i32, i32, i32) {
    %c0_i32 = arith.constant 0 : i32
    %c0_i32_0 = arith.constant 0 : i32
    %c0_i32_1 = arith.constant 0 : i32
    %c0_i32_2 = arith.constant 0 : i32
    return %c0_i32, %c0_i32_0, %c0_i32_1 : i32, i32, i32
  }
  func.func @transform_8(%arg0: i32) -> (i32, i32) {
    %c0_i32 = arith.constant 0 : i32
    %c0_i32_0 = arith.constant 0 : i32
    %c0_i32_1 = arith.constant 0 : i32
    return %c0_i32, %c0_i32_0 : i32, i32
  }
  func.func @transform_9(%arg0: i32) -> (i32, i32, i32) {
    %c0_i32 = arith.constant 0 : i32
    %c0_i32_0 = arith.constant 0 : i32
    %c0_i32_1 = arith.constant 0 : i32
    %c0_i32_2 = arith.constant 0 : i32
    return %c0_i32, %c0_i32_0, %c0_i32_1 : i32, i32, i32
  }
  func.func @transform_10(%arg0: i32) -> (i32, i32) {
    %c0_i32 = arith.constant 0 : i32
    %c0_i32_0 = arith.constant 0 : i32
    %c0_i32_1 = arith.constant 0 : i32
    return %c0_i32, %c0_i32_0 : i32, i32
  }
  func.func @transform_11(%arg0: i32) -> (i32, i32, i32, i32) {
    %c0_i32 = arith.constant 0 : i32
    %c0_i32_0 = arith.constant 0 : i32
    %c0_i32_1 = arith.constant 0 : i32
    %c0_i32_2 = arith.constant 0 : i32
    return %arg0, %c0_i32, %c0_i32_0, %c0_i32_1 : i32, i32, i32, i32
  }
}

</mosaic_0001>

<bundles_post_ra>
// kernel: tpu_custom_call.1
= control target key start
LH: loop header
LB: loop body
LE: loop exit
PB: predicated region body
PF: predicated region fallthrough
CT: control target
= control target key end

     0   :  { %s24887_s0 = inlined_call_operand.vmem [shape: f32[2,16,16,16], index: 0, kind: input, shape index: {}]   ;;  %s24888_s1 = inlined_call_operand.vmem [shape: bf16[9,16,8], index: 1, kind: input, shape index: {}]   ;;  %s24889_s2 = inlined_call_operand.vmem [shape: f32[1,8], index: 2, kind: input, shape index: {}]   ;;  %s24890_s3 = inlined_call_operand.vmem [shape: bf16[9,24,8], index: 3, kind: input, shape index: {}]   ;;  %s24891_s4 = inlined_call_operand.vmem [shape: f32[1,8], index: 4, kind: input, shape index: {}]   ;;  %s24892_s5 = inlined_call_operand.vmem [shape: bf16[9,32,8], index: 5, kind: input, shape index: {}]   ;;  %s24893_s6 = inlined_call_operand.vmem [shape: f32[1,8], index: 6, kind: input, shape index: {}]   ;;  %s24894_s7 = inlined_call_operand.vmem [shape: bf16[9,40,8], index: 7, kind: input, shape index: {}]   ;;  %s24895_s8 = inlined_call_operand.vmem [shape: f32[1,8], index: 8, kind: input, shape index: {}]   ;;  %s24896_s9 = inlined_call_operand.vmem [shape: bf16[9,48,16], index: 9, kind: input, shape index: {}]   ;;  %s24897_s10 = inlined_call_operand.vmem [shape: f32[1,16], index: 10, kind: input, shape index: {}]   ;;  %s24898_s11 = inlined_call_operand.hbm [shape: f32[2,16,16,16], index: 11, kind: output, shape index: {}]  }
   0x1   :  { %24931 = sst [smem:[#allocation93_spill]] %s24887_s0 }
   0x2   :  { %16 = vsyncpa [#allocation4], 0 }
   0x3   :  { %18 = vsyncpa [#allocation4 + $0x1], 0  ;;  %s19156_s17 = smov 0   ;;  %s19158_s18 = smov 0  }
   0x4   :  { %s19160_s19 = smov 0   ;;  %s19162_s20 = smov 0  }
   0x5 LB: > { %s19177_s21 = sadd.s32 4294967295, %s19086_s20   ;;  %s15406_s22 = sadd.s32 4294967294, %s19086_s20   ;;  %s19086_s20 = sphi %s19162_s20, %s25472_s20   ;;  %s19082_s19 = sphi %s19160_s19, %s25471_s19   ;;  %s19078_s18 = sphi %s19158_s18, %s25470_s18   ;;  %s19074_s17 = sphi %s19156_s17, %s25469_s17  }
   0x6   : > { %s19181_s23 = sadd.s32 1, %s19086_s20   ;;  %s267_s24 = sadd.s32 1, %s19082_s19 }
   0x7   : > { %s264_s25 = ssub.s32 %s19086_s20, %s19181_s23  ;;  %p277_p0 = scmp.ne.s32.totalorder %s19082_s19, %s19078_s18 }
   0x8   : > { %p265_p1 = scmp.eq.s32.totalorder %s264_s25, 0  ;;  %p278_p2 = scmp.eq.s32.totalorder %s19177_s21, 1 }
   0x9   : > { %p283_p3 = scmp.ne.s32.totalorder %s19078_s18, %s19074_s17  ;;  %p284_p4 = scmp.eq.s32.totalorder %s15406_s22, 1 }
   0xa   : > { %s19192_s26 = scalar_select %p265_p1, %s19082_s19, %s267_s24  }
   0xb   : > { %p19194_p5 = por %p278_p2, %p277_p0  ;;  %p19198_p6 = por %p284_p4, %p283_p3 }
   0xc   : > { %p15409_p7 = scmp.ge.s32.totalorder %s19086_s20, 1  ;;  %p340_p8 = scmp.lt.s32.totalorder %s19086_s20, 3 }
   0xe   : > { %p341_p9 = pnand %p15409_p7, %p340_p8 }
  0x10   : > { %344 = sbr.rel (%p341_p9) target bundleno = 2917 (0xb65), region = 64 }
  0x15   : > { %v18927_v0 = vld [vmem:[%s24888_s1 + $0x8] sm:$0xff]   ;;  %vm386_vm0 = vcmask 392192   ;;  %p380_p10 = scmp.lt.s32.totalorder %s19177_s21, 1  ;;  %v19211_v1 = vld [vmem:[%s24888_s1] sm:$0xff]   ;;  %v19088_v2 = vmov 0.0   ;;  %v19273_v3 = vld [vmem:[%s24888_s1 + $0x10] sm:$0xff]  }
  0x16   : > { %17223 = vmatprep.subr.bf16.mxu0 %v18927_v0  ;;  %18861 = vmatprep.subr.bf16.mxu1 %v18927_v0  ;;  %387 = vst.msk [vmem:[#allocation2] sm:$0xff] %vm386_vm0, %v19088_v2  ;;  %388 = vst.msk [vmem:[#allocation2 + $0x8] sm:$0xff] %vm386_vm0, %v19088_v2  ;;  %vm474_vm1 = vcmask 130048   ;;  %s24934_s0 = sld [smem:[#allocation93_spill]]  ;;  %v19390_v29 = vld [vmem:[%s24888_s1 + $0x20] sm:$0xff]   ;;  %v19419_v44 = vld [vmem:[%s24888_s1 + $0x18] sm:$0xff]  }
  0x17   : > { %389 = vst.msk [vmem:[#allocation2 + $0x10] sm:$0xff] %vm386_vm0, %v19088_v2  ;;  %390 = vst.msk [vmem:[#allocation2 + $0x18] sm:$0xff] %vm386_vm0, %v19088_v2  ;;  %17224 = vmatpush3.bf16.msra.mxu0 %v18927_v0  ;;  %18862 = vmatpush3.bf16.msra.mxu1 %v18927_v0  ;;  %s381_s14 = scalar_select %p380_p10, %s19177_s21, 1  ;;  %vm3582_vm2 = vcmask 1043456   ;;  %vm3533_vm6 = vcmask 195584  }
  0x18   : > { %391 = vst.msk [vmem:[#allocation2 + $0x20] sm:$0xff] %vm386_vm0, %v19088_v2  ;;  %392 = vst.msk [vmem:[#allocation2 + $0x28] sm:$0xff] %vm386_vm0, %v19088_v2  ;;  %17257 = vmatprep.subr.bf16.mxu1 %v19211_v1  ;;  %17291 = vmatprep.subr.bf16.mxu0 %v19273_v3  ;;  %s19089_s13 = smov 16   ;;  %s377_s15 = sand.u32 1, %s19078_s18  }
  0x19   : > { %393 = vst.msk [vmem:[#allocation2 + $0x30] sm:$0xff] %vm386_vm0, %v19088_v2  ;;  %394 = vst.msk [vmem:[#allocation2 + $0x38] sm:$0xff] %vm386_vm0, %v19088_v2  ;;  %s16402_s22 = sshll.u32 %s381_s14, 8  ;;  %s19090_s14 = smov 24  }
  0x1a   : > { %395 = vst.msk [vmem:[#allocation2 + $0x40] sm:$0xff] %vm386_vm0, %v19088_v2  ;;  %396 = vst.msk [vmem:[#allocation2 + $0x48] sm:$0xff] %vm386_vm0, %v19088_v2  ;;  %s15410_s24 = sshll.u32 %s377_s15, 8 }
  0x1b   : > { %397 = vst.msk [vmem:[#allocation2 + $0x50] sm:$0xff] %vm386_vm0, %v19088_v2  ;;  %398 = vst.msk [vmem:[#allocation2 + $0x58] sm:$0xff] %vm386_vm0, %v19088_v2  ;;  %s24606_s25 = scalar_lea.vmem [#allocation3], %s15410_s24 }
  0x1c   : > { %399 = vst.msk [vmem:[#allocation2 + $0x60] sm:$0xff] %vm386_vm0, %v19088_v2  ;;  %400 = vst.msk [vmem:[#allocation2 + $0x68] sm:$0xff] %vm386_vm0, %v19088_v2  ;;  %s19280_s29 = scalar_lea.vmem %s24934_s0, %s16402_s22  ;;  %s19091_s22 = smov 32  }
  0x1d   : > { %401 = vst.msk [vmem:[#allocation2 + $0x70] sm:$0xff] %vm386_vm0, %v19088_v2  ;;  %402 = vst.msk [vmem:[#allocation2 + $0x78] sm:$0xff] %vm386_vm0, %v19088_v2  ;;  %v19283_v4 = vld [vmem:[%s19280_s29] sm:$0xff]  ;;  %v19286_v5 = vld [vmem:[%s19280_s29 + $0x8] sm:$0xff]  ;;  %s15344_s30 = sshll.u32 %s24606_s25, 4  ;;  %s24838_s30 = int_to_ptr.vmem [resolvable:$true] %s15344_s30 }
  0x1e   : > { %403 = vst.msk [vmem:[#allocation2 + $0x80] sm:$0xff] %vm386_vm0, %v19088_v2  ;;  %404 = vst.msk [vmem:[#allocation2 + $0x88] sm:$0xff] %vm386_vm0, %v19088_v2  ;;  %v19289_v6 = vld [vmem:[%s19280_s29 + $0x70] sm:$0xff]  ;;  %v19296_v7 = vld [vmem:[%s19280_s29 + $0x78] sm:$0xff]  ;;  %s19026_s16 = scalar_lea.vmem %s24838_s30, 4096 }
  0x1f   : > { %405 = vst.msk [vmem:[#allocation2 + $0x90] sm:$0xff] %vm386_vm0, %v19088_v2  ;;  %406 = vst.msk [vmem:[#allocation2 + $0x98] sm:$0xff] %vm386_vm0, %v19088_v2  ;;  %v19301_v8 = vld [vmem:[%s19280_s29 + $0x80] sm:$0xff]  ;;  %v19304_v9 = vld [vmem:[%s19280_s29 + $0x88] sm:$0xff]  ;;  %p19027_p11 = scmp.ne.s32.totalorder %s24838_s30, %s19026_s16 }
  0x20   : > { %407 = vst.msk [vmem:[#allocation2 + $0xa0] sm:$0xff] %vm386_vm0, %v19088_v2  ;;  %408 = vst.msk [vmem:[#allocation2 + $0xa8] sm:$0xff] %vm386_vm0, %v19088_v2  ;;  %v557_v10 = vld [vmem:[#allocation2 + $0x1] sm:$0xff]  ;;  %v558_v11 = vld [vmem:[#allocation2 + $0x9] sm:$0xff] }
  0x21   : > { %409 = vst.msk [vmem:[#allocation2 + $0xb0] sm:$0xff] %vm386_vm0, %v19088_v2  ;;  %410 = vst.msk [vmem:[#allocation2 + $0xb8] sm:$0xff] %vm386_vm0, %v19088_v2  ;;  %v19313_v12 = vld [vmem:[%s19280_s29 + $0x10] sm:$0xff]  ;;  %v589_v13 = vpack.c.bf16 %v558_v11, %v557_v10  ;;  %v19316_v14 = vld [vmem:[%s19280_s29 + $0x18] sm:$0xff]  ;;  %p19028_p12 = pnand %p19027_p11, %p19194_p5 }
  0x22   : > { %411 = vst.msk [vmem:[#allocation2 + $0xc0] sm:$0xff] %vm386_vm0, %v19088_v2  ;;  %412 = vst.msk [vmem:[#allocation2 + $0xc8] sm:$0xff] %vm386_vm0, %v19088_v2  ;;  %v19321_v15 = vld [vmem:[%s19280_s29 + $0x20] sm:$0xff]  ;;  %v19324_v16 = vld [vmem:[%s19280_s29 + $0x28] sm:$0xff] }
  0x23   : > { %413 = vst.msk [vmem:[#allocation2 + $0xd0] sm:$0xff] %vm386_vm0, %v19088_v2  ;;  %414 = vst.msk [vmem:[#allocation2 + $0xd8] sm:$0xff] %vm386_vm0, %v19088_v2  ;;  %v19333_v17 = vld [vmem:[%s19280_s29 + $0x90] sm:$0xff]  ;;  %v19336_v18 = vld [vmem:[%s19280_s29 + $0x98] sm:$0xff]  ;;  %17225 = vmatprep.mubr.msk.bf16.mxu0 %vm474_vm1, %v589_v13  ;;  %p19029_p13 = pneg %p19028_p12 }
  0x24   : > { %415 = vst.msk [vmem:[#allocation2 + $0xe0] sm:$0xff] %vm386_vm0, %v19088_v2  ;;  %416 = vst.msk [vmem:[#allocation2 + $0xe8] sm:$0xff] %vm386_vm0, %v19088_v2  ;;  %v19339_v19 = vld [vmem:[%s19280_s29 + $0xa0] sm:$0xff]  ;;  %v19347_v20 = vld [vmem:[%s19280_s29 + $0xa8] sm:$0xff] }
  0x25   : > { %417 = vst.msk [vmem:[#allocation2 + $0xf0] sm:$0xff] %vm386_vm0, %v19088_v2  ;;  %418 = vst.msk [vmem:[#allocation2 + $0xf8] sm:$0xff] %vm386_vm0, %v19088_v2  ;;  %v19352_v21 = vld [vmem:[%s19280_s29 + $0x30] sm:$0xff]  ;;  %v19355_v22 = vld [vmem:[%s19280_s29 + $0x38] sm:$0xff] }
  0x26   : > { %419 = vst.msk [vmem:[#allocation2 + $0x100] sm:$0xff] %vm386_vm0, %v19088_v2  ;;  %420 = vst.msk [vmem:[#allocation2 + $0x108] sm:$0xff] %vm386_vm0, %v19088_v2  ;;  %v19364_v23 = vld [vmem:[%s19280_s29 + $0x40] sm:$0xff]  ;;  %v19367_v24 = vld [vmem:[%s19280_s29 + $0x48] sm:$0xff] }
  0x27   : > { %421 = vst.msk [vmem:[#allocation2 + $0x110] sm:$0xff] %vm386_vm0, %v19088_v2  ;;  %422 = vst.msk [vmem:[#allocation2 + $0x118] sm:$0xff] %vm386_vm0, %v19088_v2  ;;  %v19370_v25 = vld [vmem:[%s19280_s29 + $0xb0] sm:$0xff]  ;;  %v19377_v26 = vld [vmem:[%s19280_s29 + $0xb8] sm:$0xff] }
  0x28   : > { %423 = vst.msk [vmem:[#allocation2 + $0x120] sm:$0xff] %vm386_vm0, %v19088_v2  ;;  %424 = vst.msk [vmem:[#allocation2 + $0x128] sm:$0xff] %vm386_vm0, %v19088_v2  ;;  %v19382_v27 = vld [vmem:[%s19280_s29 + $0xc0] sm:$0xff]  ;;  %v19385_v28 = vld [vmem:[%s19280_s29 + $0xc8] sm:$0xff] }
  0x29   : > { %425 = vst.msk [vmem:[#allocation2 + $0x130] sm:$0xff] %vm386_vm0, %v19088_v2  ;;  %426 = vst.msk [vmem:[#allocation2 + $0x138] sm:$0xff] %vm386_vm0, %v19088_v2  ;;  %v19405_v40 = vld [vmem:[%s19280_s29 + $0x50] sm:$0xff]  ;;  %v19408_v41 = vld [vmem:[%s19280_s29 + $0x58] sm:$0xff] }
  0x2a   : > { %427 = vst.msk [vmem:[#allocation2 + $0x140] sm:$0xff] %vm386_vm0, %v19088_v2  ;;  %428 = vst.msk [vmem:[#allocation2 + $0x148] sm:$0xff] %vm386_vm0, %v19088_v2  ;;  %v19442_v58 = vld [vmem:[%s19280_s29 + $0x60] sm:$0xff]  ;;  %v19445_v59 = vld [vmem:[%s19280_s29 + $0x68] sm:$0xff] }
  0x2b   : > { %429 = vst.msk [vmem:[#allocation2 + $0x150] sm:$0xff] %vm386_vm0, %v19088_v2  ;;  %430 = vst.msk [vmem:[#allocation2 + $0x158] sm:$0xff] %vm386_vm0, %v19088_v2  ;;  %v19448_v60 = vld [vmem:[%s19280_s29 + $0xd0] sm:$0xff]  ;;  %v19457_v62 = vld [vmem:[%s19280_s29 + $0xd8] sm:$0xff] }
  0x2c   : > { %431 = vst.msk [vmem:[#allocation2 + $0x160] sm:$0xff] %vm386_vm0, %v19088_v2  ;;  %432 = vst.msk [vmem:[#allocation2 + $0x168] sm:$0xff] %vm386_vm0, %v19088_v2  ;;  %v19462_v63 = vld [vmem:[%s19280_s29 + $0xe0] sm:$0xff]  ;;  %v19465_v0 = vld [vmem:[%s19280_s29 + $0xe8] sm:$0xff] }
  0x2d   : > { %433 = vst.msk [vmem:[#allocation2 + $0x170] sm:$0xff] %vm386_vm0, %v19088_v2  ;;  %434 = vst.msk [vmem:[#allocation2 + $0x178] sm:$0xff] %vm386_vm0, %v19088_v2 }
  0x2e   : > { %435 = vst.msk [vmem:[#allocation2 + $0x180] sm:$0xff] %vm386_vm0, %v19088_v2  ;;  %436 = vst.msk [vmem:[#allocation2 + $0x188] sm:$0xff] %vm386_vm0, %v19088_v2 }
  0x2f   : > { %437 = vst.msk [vmem:[#allocation2 + $0x190] sm:$0xff] %vm386_vm0, %v19088_v2  ;;  %438 = vst.msk [vmem:[#allocation2 + $0x198] sm:$0xff] %vm386_vm0, %v19088_v2 }
  0x30   : > { %439 = vst.msk [vmem:[#allocation2 + $0x1a0] sm:$0xff] %vm386_vm0, %v19088_v2  ;;  %440 = vst.msk [vmem:[#allocation2 + $0x1a8] sm:$0xff] %vm386_vm0, %v19088_v2 }
  0x31   : > { %24935 = vst [vmem:[#allocation6_spill] sm:$0xff] %v19283_v4  ;;  %24936 = vst [vmem:[#allocation7_spill] sm:$0xff] %v19286_v5 }
  0x32   : > { %24937 = vst [vmem:[#allocation8_spill] sm:$0xff] %v19289_v6  ;;  %475 = vst.msk [vmem:[#allocation2 + $0x19] sm:$0xff] %vm474_vm1, %v19283_v4 }
  0x33   : > { %476 = vst.msk [vmem:[#allocation2 + $0x21] sm:$0xff] %vm474_vm1, %v19286_v5  ;;  %24938 = vst [vmem:[#allocation9_spill] sm:$0xff] %v19296_v7 }
  0x34   : > { %489 = vst.msk [vmem:[#allocation2 + $0xc1] sm:$0xff] %vm474_vm1, %v19289_v6  ;;  %24939 = vst [vmem:[#allocation10_spill] sm:$0xff] %v19301_v8 }
  0x35   : > { %24940 = vst [vmem:[#allocation11_spill] sm:$0xff] %v19304_v9  ;;  %490 = vst.msk [vmem:[#allocation2 + $0xc9] sm:$0xff] %vm474_vm1, %v19296_v7 }
  0x36   : > { %491 = vst.msk [vmem:[#allocation2 + $0xd9] sm:$0xff] %vm474_vm1, %v19301_v8  ;;  %492 = vst.msk [vmem:[#allocation2 + $0xe1] sm:$0xff] %vm474_vm1, %v19304_v9 }
  0x37   : > { %24941 = vst [vmem:[#allocation12_spill] sm:$0xff] %v19313_v12  ;;  %24942 = vst [vmem:[#allocation13_spill] sm:$0xff] %v19316_v14 }
  0x38   : > { %477 = vst.msk [vmem:[#allocation2 + $0x31] sm:$0xff] %vm474_vm1, %v19313_v12  ;;  %24943 = vst [vmem:[#allocation14_spill] sm:$0xff] %v19321_v15 }
  0x39   : > { %24944 = vst [vmem:[#allocation15_spill] sm:$0xff] %v19324_v16  ;;  %478 = vst.msk [vmem:[#allocation2 + $0x39] sm:$0xff] %vm474_vm1, %v19316_v14  ;;  %v559_v30 = vld [vmem:[#allocation2 + $0x19] sm:$0xff] }
  0x3a   : > { %479 = vst.msk [vmem:[#allocation2 + $0x49] sm:$0xff] %vm474_vm1, %v19321_v15  ;;  %480 = vst.msk [vmem:[#allocation2 + $0x51] sm:$0xff] %vm474_vm1, %v19324_v16  ;;  %v560_v31 = vld [vmem:[#allocation2 + $0x21] sm:$0xff] }
  0x3b   : > { %24945 = vst [vmem:[#allocation16_spill] sm:$0xff] %v19333_v17  ;;  %24946 = vst [vmem:[#allocation17_spill] sm:$0xff] %v19336_v18  ;;  %v573_v32 = vld [vmem:[#allocation2 + $0xc1] sm:$0xff]  ;;  %v19398_v33 = vpack.c.bf16 %v560_v31, %v559_v30 }
  0x3c   : > { %24947 = vst [vmem:[#allocation18_spill] sm:$0xff] %v19339_v19  ;;  %493 = vst.msk [vmem:[#allocation2 + $0xf1] sm:$0xff] %vm474_vm1, %v19333_v17  ;;  %v574_v34 = vld [vmem:[#allocation2 + $0xc9] sm:$0xff] }
  0x3d   : > { %494 = vst.msk [vmem:[#allocation2 + $0xf9] sm:$0xff] %vm474_vm1, %v19336_v18  ;;  %24948 = vst [vmem:[#allocation19_spill] sm:$0xff] %v19347_v20  ;;  %v575_v35 = vld [vmem:[#allocation2 + $0xd9] sm:$0xff]  ;;  %v576_v36 = vld [vmem:[#allocation2 + $0xe1] sm:$0xff]  ;;  %v19400_v37 = vpack.c.bf16 %v574_v34, %v573_v32  ;;  %17226 = vmatmul.mubr.msk.bf16.vlgmr.msra.gmra.mxu0 %vm474_vm1, %v19398_v33 }
  0x3e   : > { %495 = vst.msk [vmem:[#allocation2 + $0x109] sm:$0xff] %vm474_vm1, %v19339_v19  ;;  %24949 = vst [vmem:[#allocation20_spill] sm:$0xff] %v19352_v21  ;;  %v19402_v38 = vpack.c.bf16 %v576_v36, %v575_v35  ;;  %17292 = vmatpush3.bf16.msra.mxu0 %v19273_v3  ;;  %v525_v18 = vld [vmem:[#allocation2 + $0xd8] sm:$0xff]  ;;  %v526_v8 = vld [vmem:[#allocation2 + $0xe0] sm:$0xff] }
  0x3f   : > { %24950 = vst [vmem:[#allocation21_spill] sm:$0xff] %v19355_v22  ;;  %496 = vst.msk [vmem:[#allocation2 + $0x111] sm:$0xff] %vm474_vm1, %v19347_v20  ;;  %v561_v39 = vld [vmem:[#allocation2 + $0x31] sm:$0xff]  ;;  %17241 = vmatprep.mubr.msk.bf16.mxu1 %vm474_vm1, %v19400_v37  ;;  %17359 = vmatprep.subr.bf16.mxu0 %v19390_v29 }
  0x40   : > { %481 = vst.msk [vmem:[#allocation2 + $0x61] sm:$0xff] %vm474_vm1, %v19352_v21  ;;  %482 = vst.msk [vmem:[#allocation2 + $0x69] sm:$0xff] %vm474_vm1, %v19355_v22  ;;  %v562_v42 = vld [vmem:[#allocation2 + $0x39] sm:$0xff]  ;;  %17242 = vmatmul.mubr.msk.bf16.vlgmr.msra.gmra.mxu1 %vm474_vm1, %v19402_v38  ;;  %v1055_v20 = vld [vmem:[#allocation2 + $0xca] sm:$0xff] }
  0x41   : > { %24951 = vst [vmem:[#allocation22_spill] sm:$0xff] %v19364_v23  ;;  %24952 = vst [vmem:[#allocation23_spill] sm:$0xff] %v19367_v24  ;;  %v563_v43 = vld [vmem:[#allocation2 + $0x49] sm:$0xff]  ;;  %v19424_v45 = vpack.c.bf16 %v562_v42, %v561_v39  ;;  %v564_v46 = vld [vmem:[#allocation2 + $0x51] sm:$0xff]  ;;  %17258 = vmatpush3.bf16.msra.mxu1 %v19211_v1 }
  0x42   : > { %24953 = vst [vmem:[#allocation24_spill] sm:$0xff] %v19370_v25  ;;  %483 = vst.msk [vmem:[#allocation2 + $0x79] sm:$0xff] %vm474_vm1, %v19364_v23  ;;  %v19434_v54 = vpack.c.bf16 %v564_v46, %v563_v43  ;;  %17325 = vmatprep.subr.bf16.mxu1 %v19419_v44  ;;  %v1038_v46 = vld [vmem:[#allocation2 + $0x2] sm:$0xff] }
  0x43   : > { %484 = vst.msk [vmem:[#allocation2 + $0x81] sm:$0xff] %vm474_vm1, %v19367_v24  ;;  %24954 = vst [vmem:[#allocation25_spill] sm:$0xff] %v19377_v26  ;;  %v577_v47 = vld [vmem:[#allocation2 + $0xf1] sm:$0xff]  ;;  %17229 = vmatprep.mubr.msk.bf16.mxu0 %vm474_vm1, %v19424_v45 }
  0x44   : > { %497 = vst.msk [vmem:[#allocation2 + $0x121] sm:$0xff] %vm474_vm1, %v19370_v25  ;;  %24955 = vst [vmem:[#allocation26_spill] sm:$0xff] %v19382_v27  ;;  %v578_v48 = vld [vmem:[#allocation2 + $0xf9] sm:$0xff] }
  0x45   : > { %24956 = vst [vmem:[#allocation27_spill] sm:$0xff] %v19385_v28  ;;  %498 = vst.msk [vmem:[#allocation2 + $0x129] sm:$0xff] %vm474_vm1, %v19377_v26  ;;  %v19428_v49 = vpack.c.bf16 %v578_v48, %v577_v47  ;;  %v579_v52 = vld [vmem:[#allocation2 + $0x109] sm:$0xff]  ;;  %17230 = vmatmul.mubr.msk.bf16.gmra.mxu0 %vm474_vm1, %v19434_v54  ;;  %v1058_v25 = vld [vmem:[#allocation2 + $0xf2] sm:$0xff] }
  0x46   : > { %499 = vst.msk [vmem:[#allocation2 + $0x139] sm:$0xff] %vm474_vm1, %v19382_v27  ;;  %500 = vst.msk [vmem:[#allocation2 + $0x141] sm:$0xff] %vm474_vm1, %v19385_v28  ;;  %v580_v53 = vld [vmem:[#allocation2 + $0x111] sm:$0xff]  ;;  %v1059_v9 = vld [vmem:[#allocation2 + $0xfa] sm:$0xff] }
  0x47   : > { %24957 = vst [vmem:[#allocation28_spill] sm:$0xff] %v19405_v40  ;;  %24958 = vst [vmem:[#allocation29_spill] sm:$0xff] %v19408_v41  ;;  %v565_v50 = vld [vmem:[#allocation2 + $0x61] sm:$0xff]  ;;  %v566_v51 = vld [vmem:[#allocation2 + $0x69] sm:$0xff]  ;;  %17245 = vmatprep.mubr.msk.bf16.mxu1 %vm474_vm1, %v19428_v49  ;;  %v19450_v61 = vpack.c.bf16 %v580_v53, %v579_v52 }
  0x48   : > { %485 = vst.msk [vmem:[#allocation2 + $0x91] sm:$0xff] %vm474_vm1, %v19405_v40  ;;  %486 = vst.msk [vmem:[#allocation2 + $0x99] sm:$0xff] %vm474_vm1, %v19408_v41  ;;  %v19439_v57 = vpack.c.bf16 %v566_v51, %v565_v50  ;;  %v1039_v47 = vld [vmem:[#allocation2 + $0xa] sm:$0xff]  ;;  %v507_v52 = vld [vmem:[#allocation2] sm:$0xff] }
  0x49   : > { %24959 = vst [vmem:[#allocation30_spill] sm:$0xff] %v19442_v58  ;;  %24960 = vst [vmem:[#allocation31_spill] sm:$0xff] %v19445_v59  ;;  %v567_v2 = vld [vmem:[#allocation2 + $0x79] sm:$0xff]  ;;  %17246 = vmatmul.mubr.msk.bf16.gmra.mxu1 %vm474_vm1, %v19450_v61  ;;  %v508_v53 = vld [vmem:[#allocation2 + $0x8] sm:$0xff] }
  0x4a   : > { %24961 = vst [vmem:[#allocation32_spill] sm:$0xff] %v19448_v60  ;;  %487 = vst.msk [vmem:[#allocation2 + $0xa9] sm:$0xff] %vm474_vm1, %v19442_v58  ;;  %17233 = vmatprep.mubr.msk.bf16.mxu0 %vm474_vm1, %v19439_v57  ;;  %v568_v3 = vld [vmem:[#allocation2 + $0x81] sm:$0xff]  ;;  %v530_v58 = vld [vmem:[#allocation2 + $0x110] sm:$0xff] }
  0x4b   : > { %v581_v55 = vld [vmem:[#allocation2 + $0x121] sm:$0xff]  ;;  %488 = vst.msk [vmem:[#allocation2 + $0xb1] sm:$0xff] %vm474_vm1, %v19445_v59  ;;  %24962 = vst [vmem:[#allocation33_spill] sm:$0xff] %v19457_v62  ;;  %v19483_v31 = vpack.c.bf16 %v568_v3, %v567_v2  ;;  %v539_v2 = vpack.c.bf16 %v508_v53, %v507_v52  ;;  %v1044_v52 = vld [vmem:[#allocation2 + $0x4a] sm:$0xff] }
  0x4c   : > { %v582_v56 = vld [vmem:[#allocation2 + $0x129] sm:$0xff]  ;;  %501 = vst.msk [vmem:[#allocation2 + $0x151] sm:$0xff] %vm474_vm1, %v19448_v60  ;;  %24963 = vst [vmem:[#allocation34_spill] sm:$0xff] %v19462_v63  ;;  %v1040_v3 = vld [vmem:[#allocation2 + $0x1a] sm:$0xff] }
  0x4d   : > { %24964 = vst [vmem:[#allocation35_spill] sm:$0xff] %v19465_v0  ;;  %v19467_v1 = vpack.c.bf16 %v582_v56, %v581_v55  ;;  %502 = vst.msk [vmem:[#allocation2 + $0x159] sm:$0xff] %vm474_vm1, %v19457_v62  ;;  %v583_v13 = vld [vmem:[#allocation2 + $0x139] sm:$0xff]  ;;  %v584_v30 = vld [vmem:[#allocation2 + $0x141] sm:$0xff]  ;;  %17234 = vmatmul.mubr.msk.bf16.gmra.mxu0 %vm474_vm1, %v19483_v31  ;;  %v1070_v55 = vpack.c.bf16 %v1039_v47, %v1038_v46 }
  0x4e   : > { %503 = vst.msk [vmem:[#allocation2 + $0x169] sm:$0xff] %vm474_vm1, %v19462_v63  ;;  %504 = vst.msk [vmem:[#allocation2 + $0x171] sm:$0xff] %vm474_vm1, %v19465_v0  ;;  %v19487_v35 = vpack.c.bf16 %v584_v30, %v583_v13  ;;  %v1043_v13 = vld [vmem:[#allocation2 + $0x3a] sm:$0xff]  ;;  %v1045_v53 = vld [vmem:[#allocation2 + $0x52] sm:$0xff] }
  0x4f   : > { %v569_v10 = vld [vmem:[#allocation2 + $0x91] sm:$0xff]  ;;  %v570_v11 = vld [vmem:[#allocation2 + $0x99] sm:$0xff]  ;;  %17249 = vmatprep.mubr.msk.bf16.mxu1 %vm474_vm1, %v19467_v1  ;;  %v1054_v60 = vld [vmem:[#allocation2 + $0xc2] sm:$0xff] }
  0x50   : > { %v19485_v32 = vpack.c.bf16 %v570_v11, %v569_v10  ;;  %v1041_v10 = vld [vmem:[#allocation2 + $0x22] sm:$0xff]  ;;  %v1042_v11 = vld [vmem:[#allocation2 + $0x32] sm:$0xff]  ;;  %v1048_v63 = vld [vmem:[#allocation2 + $0x7a] sm:$0xff] }
  0x51   : > { %v571_v42 = vld [vmem:[#allocation2 + $0xa9] sm:$0xff]  ;;  %17250 = vmatmul.mubr.msk.bf16.gmra.mxu1 %vm474_vm1, %v19487_v35  ;;  %v509_v30 = vld [vmem:[#allocation2 + $0x18] sm:$0xff]  ;;  %v19511_v46 = vpack.c.bf16 %v1043_v13, %v1042_v11  ;;  %v534_v23 = vld [vmem:[#allocation2 + $0x140] sm:$0xff] }
  0x52   : > { %17237 = vmatprep.mubr.msk.bf16.mxu0 %vm474_vm1, %v19485_v32  ;;  %v572_v43 = vld [vmem:[#allocation2 + $0xb1] sm:$0xff]  ;;  %v513_v13 = vld [vmem:[#allocation2 + $0x48] sm:$0xff]  ;;  %v1051_v28 = vld [vmem:[#allocation2 + $0x9a] sm:$0xff] }
  0x53   : > { %v585_v34 = vld [vmem:[#allocation2 + $0x151] sm:$0xff]  ;;  %v19499_v51 = vpack.c.bf16 %v572_v43, %v571_v42  ;;  %v521_v26 = vld [vmem:[#allocation2 + $0xa8] sm:$0xff]  ;;  %v2535_v22 = vld [vmem:[#allocation2 + $0x79] sm:$0xff] }
  0x54   : > { %v586_v36 = vld [vmem:[#allocation2 + $0x159] sm:$0xff]  ;;  %v511_v42 = vld [vmem:[#allocation2 + $0x30] sm:$0xff]  ;;  %v1062_v17 = vld [vmem:[#allocation2 + $0x122] sm:$0xff] }
  0x55   : > { %v19489_v39 = vpack.c.bf16 %v586_v36, %v585_v34  ;;  %v587_v48 = vld [vmem:[#allocation2 + $0x169] sm:$0xff]  ;;  %v588_v50 = vld [vmem:[#allocation2 + $0x171] sm:$0xff]  ;;  %17238 = vmatmul.mubr.msk.bf16.gmra.mxu0 %vm474_vm1, %v19499_v51  ;;  %v510_v34 = vld [vmem:[#allocation2 + $0x20] sm:$0xff]  ;;  %v19509_v36 = vpack.c.bf16 %v1041_v10, %v1040_v3 }
  0x56   : > { %v19501_v56 = vpack.c.bf16 %v588_v50, %v587_v48  ;;  %17293 = vmatprep.mubr.msk.bf16.mxu0 %vm474_vm1, %v1070_v55  ;;  %v512_v43 = vld [vmem:[#allocation2 + $0x38] sm:$0xff]  ;;  %v19513_v47 = vpack.c.bf16 %v510_v34, %v509_v30  ;;  %v19518_v48 = vld [vmem:[%s24888_s1 + $0x28] sm:$0xff]   ;;  %v19525_v55 = vld [vmem:[%s24888_s1 + $0x30] sm:$0xff]  }
  0x57   : > { %17253 = vmatprep.mubr.msk.bf16.mxu1 %vm474_vm1, %v19489_v39  ;;  %v19520_v50 = vpack.c.bf16 %v512_v43, %v511_v42  ;;  %v19531_v3 = vld [vmem:[%s19280_s29 + $0xf8] sm:$0xff]  ;;  %v1046_v10 = vld [vmem:[#allocation2 + $0x62] sm:$0xff]  ;;  %v1047_v11 = vld [vmem:[#allocation2 + $0x6a] sm:$0xff]  ;;  %v19548_v43 = vpack.c.bf16 %v1045_v53, %v1044_v52 }
  0x58   : > { %24966 = vst [vmem:[#allocation37_spill] sm:$0xff] %v19531_v3  ;;  %506 = vst.msk [vmem:[#allocation2 + $0x189] sm:$0xff] %vm474_vm1, %v19531_v3  ;;  %v514_v30 = vld [vmem:[#allocation2 + $0x50] sm:$0xff]  ;;  %v515_v34 = vld [vmem:[#allocation2 + $0x60] sm:$0xff] }
  0x59   : > { %17254 = vmatmul.mubr.msk.bf16.gmra.mxu1 %vm474_vm1, %v19501_v56  ;;  %v516_v42 = vld [vmem:[#allocation2 + $0x68] sm:$0xff]  ;;  %v19553_v0 = vpack.c.bf16 %v514_v30, %v513_v13  ;;  %v517_v52 = vld [vmem:[#allocation2 + $0x78] sm:$0xff]  ;;  %v518_v53 = vld [vmem:[#allocation2 + $0x80] sm:$0xff] }
  0x5a   : > { %17259 = vmatprep.mubr.msk.bf16.mxu1 %vm474_vm1, %v539_v2  ;;  %v19528_v2 = vld [vmem:[%s19280_s29 + $0xf0] sm:$0xff]  ;;  %v19555_v3 = vpack.c.bf16 %v516_v42, %v515_v34  ;;  %v19569_v34 = vpack.c.bf16 %v518_v53, %v517_v52  ;;  %v529_v7 = vld [vmem:[#allocation2 + $0x108] sm:$0xff]  ;;  %v1067_v24 = vld [vmem:[#allocation2 + $0x15a] sm:$0xff]  ;;  %s16403_s29 = sshll.u32 %s19177_s21, 12  ;;  %s24847_s21 = scalar_lea.sflag [#allocation4], %s377_s15 }
  0x5b   : > { %24965 = vst [vmem:[#allocation36_spill] sm:$0xff] %v19528_v2  ;;  %505 = vst.msk [vmem:[#allocation2 + $0x181] sm:$0xff] %vm474_vm1, %v19528_v2  ;;  %v1049_v2 = vld [vmem:[#allocation2 + $0x82] sm:$0xff]  ;;  %v1052_v62 = vld [vmem:[#allocation2 + $0xaa] sm:$0xff] }
  0x5c   : > { %v19565_v13 = vpack.c.bf16 %v1049_v2, %v1048_v63  ;;  %v1053_v27 = vld [vmem:[#allocation2 + $0xb2] sm:$0xff]  ;;  %v524_v63 = vld [vmem:[#allocation2 + $0xc8] sm:$0xff] }
  0x5d   : > { %17294 = vmatmul.mubr.msk.bf16.vlgmr.msra.gmra.mxu0 %vm474_vm1, %v19509_v36  ;;  %v522_v19 = vld [vmem:[#allocation2 + $0xb0] sm:$0xff]  ;;  %v19581_v2 = vpack.c.bf16 %v1053_v27, %v1052_v62  ;;  %v19599_v27 = vpack.c.bf16 %v1059_v9, %v1058_v25  ;;  %v531_v9 = vld [vmem:[#allocation2 + $0x120] sm:$0xff]  ;;  %v533_v41 = vld [vmem:[#allocation2 + $0x138] sm:$0xff] }
  0x5e   : > { %17360 = vmatpush3.bf16.msra.mxu0 %v19390_v29  ;;  %17297 = vmatprep.mubr.msk.bf16.mxu0 %vm474_vm1, %v19511_v46  ;;  %v19551_v29 = vpack.c.bf16 %v1047_v11, %v1046_v10  ;;  %v519_v10 = vld [vmem:[#allocation2 + $0x90] sm:$0xff]  ;;  %v520_v11 = vld [vmem:[#allocation2 + $0x98] sm:$0xff]  ;;  %v19585_v52 = vpack.c.bf16 %v522_v19, %v521_v26  ;;  %v537_v40 = vld [vmem:[#allocation2 + $0x168] sm:$0xff] }
  0x5f   : > { %17427 = vmatprep.subr.bf16.mxu0 %v19525_v55  ;;  %v19571_v42 = vpack.c.bf16 %v520_v11, %v519_v10  ;;  %v1056_v10 = vld [vmem:[#allocation2 + $0xda] sm:$0xff]  ;;  %v1057_v11 = vld [vmem:[#allocation2 + $0xe2] sm:$0xff]  ;;  %v1063_v59 = vld [vmem:[#allocation2 + $0x12a] sm:$0xff] }
  0x60   : > { %v528_v19 = vld [vmem:[#allocation2 + $0xf8] sm:$0xff]  ;;  %v19597_v26 = vpack.c.bf16 %v1057_v11, %v1056_v10  ;;  %v19615_v25 = vpack.c.bf16 %v1063_v59, %v1062_v17  ;;  %v19617_v10 = vpack.c.bf16 %v530_v58, %v529_v7  ;;  %v535_v17 = vld [vmem:[#allocation2 + $0x150] sm:$0xff] }
  0x61   : > { %17260 = vmatmul.mubr.msk.bf16.vlgmr.msra.gmra.mxu1 %vm474_vm1, %v19513_v47  ;;  %v1066_v6 = vld [vmem:[#allocation2 + $0x152] sm:$0xff] }
  0x62   : > { %17326 = vmatpush3.bf16.msra.mxu1 %v19419_v44  ;;  %17263 = vmatprep.mubr.msk.bf16.mxu1 %vm474_vm1, %v19520_v50  ;;  %v1050_v44 = vld [vmem:[#allocation2 + $0x92] sm:$0xff]  ;;  %v19631_v59 = vpack.c.bf16 %v1067_v24, %v1066_v6  ;;  %v18935_v24 = vld [vmem:[%s24888_s1 + $0x40] sm:$0xff]  }
  0x63   : > { %17393 = vmatprep.subr.bf16.mxu1 %v19518_v48  ;;  %v19567_v30 = vpack.c.bf16 %v1051_v28, %v1050_v44  ;;  %v523_v28 = vld [vmem:[#allocation2 + $0xc0] sm:$0xff]  ;;  %v19583_v44 = vpack.c.bf16 %v1055_v20, %v1054_v60  ;;  %v527_v20 = vld [vmem:[#allocation2 + $0xf0] sm:$0xff]  ;;  %v19601_v60 = vpack.c.bf16 %v526_v8, %v525_v18  ;;  %v532_v8 = vld [vmem:[#allocation2 + $0x128] sm:$0xff] }
  0x64   : > { %v19587_v53 = vpack.c.bf16 %v524_v63, %v523_v28  ;;  %v19603_v62 = vpack.c.bf16 %v528_v19, %v527_v20  ;;  %v1060_v28 = vld [vmem:[#allocation2 + $0x10a] sm:$0xff]  ;;  %v1061_v63 = vld [vmem:[#allocation2 + $0x112] sm:$0xff]  ;;  %v19619_v11 = vpack.c.bf16 %v532_v8, %v531_v9  ;;  %v1064_v20 = vld [vmem:[#allocation2 + $0x13a] sm:$0xff] }
  0x65   : > { %17298 = vmatmul.mubr.msk.bf16.gmra.mxu0 %vm474_vm1, %v19548_v43  ;;  %v19613_v18 = vpack.c.bf16 %v1061_v63, %v1060_v28  ;;  %v1065_v19 = vld [vmem:[#allocation2 + $0x142] sm:$0xff]  ;;  %v536_v7 = vld [vmem:[#allocation2 + $0x158] sm:$0xff]  ;;  %v19633_v28 = vpack.c.bf16 %v534_v23, %v533_v41  ;;  %v1068_v9 = vld [vmem:[#allocation2 + $0x16a] sm:$0xff] }
  0x66   : > { %17301 = vmatprep.mubr.msk.bf16.mxu0 %vm474_vm1, %v19551_v29  ;;  %v19629_v58 = vpack.c.bf16 %v1065_v19, %v1064_v20  ;;  %v19635_v63 = vpack.c.bf16 %v536_v7, %v535_v17  ;;  %v1069_v8 = vld [vmem:[#allocation2 + $0x172] sm:$0xff] }
  0x67   : > { %v538_v16 = vld [vmem:[#allocation2 + $0x170] sm:$0xff]  ;;  %v19645_v6 = vpack.c.bf16 %v1069_v8, %v1068_v9  ;;  %v2530_v19 = vld [vmem:[#allocation2 + $0x39] sm:$0xff] }
  0x68   : > { %v19647_v23 = vpack.c.bf16 %v538_v16, %v537_v40  ;;  %v18934_v16 = vld [vmem:[%s24888_s1 + $0x38] sm:$0xff]   ;;  %v1367_v40 = vld [vmem:[#allocation2 + $0x188] sm:$0xff] }
  0x69   : > { %17264 = vmatmul.mubr.msk.bf16.gmra.mxu1 %vm474_vm1, %v19553_v0  ;;  %v2529_v20 = vld [vmem:[#allocation2 + $0x31] sm:$0xff]  ;;  %v2538_v15 = vld [vmem:[#allocation2 + $0x99] sm:$0xff] }
  0x6a   : > { %17267 = vmatprep.mubr.msk.bf16.mxu1 %vm474_vm1, %v19555_v3 }
  0x6d   : > { %17302 = vmatmul.mubr.msk.bf16.gmra.mxu0 %vm474_vm1, %v19565_v13 }
  0x6e   : > { %17305 = vmatprep.mubr.msk.bf16.mxu0 %vm474_vm1, %v19567_v30 }
  0x71   : > { %17268 = vmatmul.mubr.msk.bf16.gmra.mxu1 %vm474_vm1, %v19569_v34 }
  0x72   : > { %17271 = vmatprep.mubr.msk.bf16.mxu1 %vm474_vm1, %v19571_v42 }
  0x75   : > { %17306 = vmatmul.mubr.msk.bf16.gmra.mxu0 %vm474_vm1, %v19581_v2 }
  0x76   : > { %17309 = vmatprep.mubr.msk.bf16.mxu0 %vm474_vm1, %v19583_v44 }
  0x79   : > { %17272 = vmatmul.mubr.msk.bf16.gmra.mxu1 %vm474_vm1, %v19585_v52 }
  0x7a   : > { %17275 = vmatprep.mubr.msk.bf16.mxu1 %vm474_vm1, %v19587_v53 }
  0x7d   : > { %17310 = vmatmul.mubr.msk.bf16.gmra.mxu0 %vm474_vm1, %v19597_v26 }
  0x7e   : > { %17313 = vmatprep.mubr.msk.bf16.mxu0 %vm474_vm1, %v19599_v27 }
  0x81   : > { %17276 = vmatmul.mubr.msk.bf16.gmra.mxu1 %vm474_vm1, %v19601_v60 }
  0x82   : > { %17279 = vmatprep.mubr.msk.bf16.mxu1 %vm474_vm1, %v19603_v62 }
  0x85   : > { %17314 = vmatmul.mubr.msk.bf16.gmra.mxu0 %vm474_vm1, %v19613_v18 }
  0x86   : > { %17317 = vmatprep.mubr.msk.bf16.mxu0 %vm474_vm1, %v19615_v25 }
  0x89   : > { %17280 = vmatmul.mubr.msk.bf16.gmra.mxu1 %vm474_vm1, %v19617_v10 }
  0x8a   : > { %17283 = vmatprep.mubr.msk.bf16.mxu1 %vm474_vm1, %v19619_v11 }
  0x8d   : > { %17318 = vmatmul.mubr.msk.bf16.gmra.mxu0 %vm474_vm1, %v19629_v58 }
  0x8e   : > { %17321 = vmatprep.mubr.msk.bf16.mxu0 %vm474_vm1, %v19631_v59 }
  0x91   : > { %17284 = vmatmul.mubr.msk.bf16.gmra.mxu1 %vm474_vm1, %v19633_v28 }
  0x92   : > { %17287 = vmatprep.mubr.msk.bf16.mxu1 %vm474_vm1, %v19635_v63 }
  0x95   : > { %17322 = vmatmul.mubr.msk.bf16.gmra.mxu0 %vm474_vm1, %v19645_v6 }
  0x96   : > { %17361 = vmatprep.mubr.msk.bf16.mxu0 %vm474_vm1, %v19398_v33  ;;  %v1664_v33 = vld [vmem:[#allocation2 + $0x181] sm:$0xff] }
  0x99   : > { %17288 = vmatmul.mubr.msk.bf16.gmra.mxu1 %vm474_vm1, %v19647_v23 }
  0x9a   : > { %17327 = vmatprep.mubr.msk.bf16.mxu1 %vm474_vm1, %v19513_v47 }
  0x9d   : > { %17362 = vmatmul.mubr.msk.bf16.vlgmr.msra.gmra.mxu0 %vm474_vm1, %v19424_v45 }
  0x9e   : > { %17428 = vmatpush3.bf16.msra.mxu0 %v19525_v55  ;;  %17365 = vmatprep.mubr.msk.bf16.mxu0 %vm474_vm1, %v19434_v54 }
  0x9f   : > { %17495 = vmatprep.subr.bf16.mxu0 %v18935_v24 }
  0xa1   : > { %17328 = vmatmul.mubr.msk.bf16.vlgmr.msra.gmra.mxu1 %vm474_vm1, %v19520_v50 }
  0xa2   : > { %17394 = vmatpush3.bf16.msra.mxu1 %v19518_v48  ;;  %17331 = vmatprep.mubr.msk.bf16.mxu1 %vm474_vm1, %v19553_v0 }
  0xa3   : > { %17461 = vmatprep.subr.bf16.mxu1 %v18934_v16 }
  0xa5   : > { %17366 = vmatmul.mubr.msk.bf16.gmra.mxu0 %vm474_vm1, %v19439_v57 }
  0xa6   : > { %17369 = vmatprep.mubr.msk.bf16.mxu0 %vm474_vm1, %v19483_v31 }
  0xa9   : > { %17332 = vmatmul.mubr.msk.bf16.gmra.mxu1 %vm474_vm1, %v19555_v3 }
  0xaa   : > { %17335 = vmatprep.mubr.msk.bf16.mxu1 %vm474_vm1, %v19569_v34 }
  0xad   : > { %17370 = vmatmul.mubr.msk.bf16.gmra.mxu0 %vm474_vm1, %v19485_v32 }
  0xae   : > { %17373 = vmatprep.mubr.msk.bf16.mxu0 %vm474_vm1, %v19499_v51 }
  0xb1   : > { %17336 = vmatmul.mubr.msk.bf16.gmra.mxu1 %vm474_vm1, %v19571_v42 }
  0xb2   : > { %17339 = vmatprep.mubr.msk.bf16.mxu1 %vm474_vm1, %v19585_v52 }
  0xb5   : > { %17374 = vmatmul.mubr.msk.bf16.gmra.mxu0 %vm474_vm1, %v19400_v37  ;;  %v1665_v37 = vld [vmem:[#allocation2 + $0x189] sm:$0xff] }
  0xb6   : > { %17377 = vmatprep.mubr.msk.bf16.mxu0 %vm474_vm1, %v19402_v38  ;;  %v1366_v38 = vld [vmem:[#allocation2 + $0x180] sm:$0xff]  ;;  %v19721_v41 = vpack.c.bf16 %v1665_v37, %v1664_v33  ;;  %v2532_v33 = vld [vmem:[#allocation2 + $0x51] sm:$0xff] }
  0xb7   : > { %v1383_v45 = vpack.c.bf16 %v1367_v40, %v1366_v38  ;;  %v2533_v40 = vld [vmem:[#allocation2 + $0x61] sm:$0xff] }
  0xb9   : > { %17340 = vmatmul.mubr.msk.bf16.gmra.mxu1 %vm474_vm1, %v19587_v53 }
  0xba   : > { %17343 = vmatprep.mubr.msk.bf16.mxu1 %vm474_vm1, %v19601_v60 }
  0xbd   : > { %17378 = vmatmul.mubr.msk.bf16.gmra.mxu0 %vm474_vm1, %v19428_v49 }
  0xbe   : > { %17381 = vmatprep.mubr.msk.bf16.mxu0 %vm474_vm1, %v19450_v61 }
  0xc1   : > { %17344 = vmatmul.mubr.msk.bf16.gmra.mxu1 %vm474_vm1, %v19603_v62 }
  0xc2   : > { %17347 = vmatprep.mubr.msk.bf16.mxu1 %vm474_vm1, %v19617_v10 }
  0xc5   : > { %17382 = vmatmul.mubr.msk.bf16.gmra.mxu0 %vm474_vm1, %v19467_v1 }
  0xc6   : > { %17385 = vmatprep.mubr.msk.bf16.mxu0 %vm474_vm1, %v19487_v35 }
  0xc9   : > { %17348 = vmatmul.mubr.msk.bf16.gmra.mxu1 %vm474_vm1, %v19619_v11 }
  0xca   : > { %17351 = vmatprep.mubr.msk.bf16.mxu1 %vm474_vm1, %v19633_v28 }
  0xcd   : > { %17386 = vmatmul.mubr.msk.bf16.gmra.mxu0 %vm474_vm1, %v19489_v39 }
  0xce   : > { %17389 = vmatprep.mubr.msk.bf16.mxu0 %vm474_vm1, %v19501_v56 }
  0xd1   : > { %17352 = vmatmul.mubr.msk.bf16.gmra.mxu1 %vm474_vm1, %v19635_v63 }
  0xd2   : > { %17355 = vmatprep.mubr.msk.bf16.mxu1 %vm474_vm1, %v19647_v23 }
  0xd5   : > { %17390 = vmatmul.mubr.msk.bf16.gmra.mxu0 %vm474_vm1, %v19721_v41 }
  0xd6   : > { %17429 = vmatprep.mubr.msk.bf16.mxu0 %vm474_vm1, %v19520_v50 }
  0xd9   : > { %17356 = vmatmul.mubr.msk.bf16.gmra.mxu1 %vm474_vm1, %v1383_v45 }
  0xda   : > { %17395 = vmatprep.mubr.msk.bf16.mxu1 %vm474_vm1, %v19509_v36 }
  0xdd   : > { %17430 = vmatmul.mubr.msk.bf16.vlgmr.msra.gmra.mxu0 %vm474_vm1, %v19553_v0 }
  0xde   : > { %17496 = vmatpush3.bf16.msra.mxu0 %v18935_v24  ;;  %17433 = vmatprep.mubr.msk.bf16.mxu0 %vm474_vm1, %v19555_v3  ;;  %v2261_v3 = vld [vmem:[#allocation2 + $0x198] sm:$0xff] }
  0xe1   : > { %17396 = vmatmul.mubr.msk.bf16.vlgmr.msra.gmra.mxu1 %vm474_vm1, %v19511_v46 }
  0xe2   : > { %17462 = vmatpush3.bf16.msra.mxu1 %v18934_v16  ;;  %17399 = vmatprep.mubr.msk.bf16.mxu1 %vm474_vm1, %v19548_v43  ;;  %v2531_v16 = vld [vmem:[#allocation2 + $0x49] sm:$0xff] }
  0xe5   : > { %17434 = vmatmul.mubr.msk.bf16.gmra.mxu0 %vm474_vm1, %v19569_v34  ;;  %v2262_v34 = vld [vmem:[#allocation2 + $0x1a0] sm:$0xff] }
  0xe6   : > { %17437 = vmatprep.mubr.msk.bf16.mxu0 %vm474_vm1, %v19571_v42 }
  0xe9   : > { %17400 = vmatmul.mubr.msk.bf16.gmra.mxu1 %vm474_vm1, %v19551_v29 }
  0xea   : > { %17403 = vmatprep.mubr.msk.bf16.mxu1 %vm474_vm1, %v19565_v13 }
  0xed   : > { %17438 = vmatmul.mubr.msk.bf16.gmra.mxu0 %vm474_vm1, %v19585_v52 }
  0xee   : > { %17441 = vmatprep.mubr.msk.bf16.mxu0 %vm474_vm1, %v19587_v53  ;;  %v1962_v53 = vld [vmem:[#allocation2 + $0x182] sm:$0xff] }
  0xf1   : > { %17404 = vmatmul.mubr.msk.bf16.gmra.mxu1 %vm474_vm1, %v19567_v30 }
  0xf2   : > { %17407 = vmatprep.mubr.msk.bf16.mxu1 %vm474_vm1, %v19581_v2 }
  0xf5   : > { %17442 = vmatmul.mubr.msk.bf16.gmra.mxu0 %vm474_vm1, %v19601_v60  ;;  %v1963_v60 = vld [vmem:[#allocation2 + $0x18a] sm:$0xff] }
  0xf6   : > { %17445 = vmatprep.mubr.msk.bf16.mxu0 %vm474_vm1, %v19603_v62 }
  0xf9   : > { %17408 = vmatmul.mubr.msk.bf16.gmra.mxu1 %vm474_vm1, %v19583_v44 }
  0xfa   : > { %17411 = vmatprep.mubr.msk.bf16.mxu1 %vm474_vm1, %v19597_v26 }
  0xfd   : > { %v19762_v49 = vpop.f32.mrf.mxu0  ;;  %17446 = vmatmul.mubr.msk.bf16.gmra.mxu0 %vm474_vm1, %v19617_v10 }
  0xfe   : > { %17449 = vmatprep.mubr.msk.bf16.mxu0 %vm474_vm1, %v19619_v11  ;;  %v2278_v11 = vpack.c.bf16 %v2262_v34, %v2261_v3  ;;  %v2562_v34 = vpack.c.bf16 %v2532_v33, %v2531_v16  ;;  %v2536_v16 = vld [vmem:[#allocation2 + $0x81] sm:$0xff] }
  0xff   : > { %v19772_v57 = vpop.f32.mrf.mxu0  ;;  %v2564_v14 = vpack.c.bf16 %v2536_v16, %v2535_v22 }
 0x100   : > { %v19768_v54 = vpop.f32.mrf.mxu1 }
 0x101   : > { %17412 = vmatmul.mubr.msk.bf16.gmra.mxu1 %vm474_vm1, %v19599_v27  ;;  %v19778_v0 = vpop.f32.mrf.mxu0 }
 0x102   : > { %17415 = vmatprep.mubr.msk.bf16.mxu1 %vm474_vm1, %v19613_v18  ;;  %v19776_v61 = vpop.f32.mrf.mxu1 }
 0x103   : > { %v19782_v31 = vpop.f32.mrf.mxu0 }
 0x104   : > { %v19780_v1 = vpop.f32.mrf.mxu1 }
 0x105   : > { %v19786_v35 = vpop.f32.mrf.mxu0  ;;  %17450 = vmatmul.mubr.msk.bf16.gmra.mxu0 %vm474_vm1, %v19633_v28  ;;  %v19831_v28 = vpack.c.bf16 %v1963_v60, %v1962_v53 }
 0x106   : > { %v19784_v32 = vpop.f32.mrf.mxu1  ;;  %17453 = vmatprep.mubr.msk.bf16.mxu0 %vm474_vm1, %v19635_v63  ;;  %v2561_v63 = vpack.c.bf16 %v2530_v19, %v2529_v20 }
 0x107   : > { %v19796_v51 = vpop.f32.mrf.mxu0 }
 0x109   : > { %v19792_v39 = vpop.f32.mrf.mxu1  ;;  %17416 = vmatmul.mubr.msk.bf16.gmra.mxu1 %vm474_vm1, %v19615_v25  ;;  %v19802_v36 = vpop.f32.mrf.mxu0 }
 0x10a   : > { %17419 = vmatprep.mubr.msk.bf16.mxu1 %vm474_vm1, %v19629_v58 }
 0x10b   : > { %v19800_v56 = vpop.f32.mrf.mxu1  ;;  %v19806_v48 = vpop.f32.mrf.mxu0 }
 0x10d   : > { %v19804_v47 = vpop.f32.mrf.mxu1  ;;  %v19810_v55 = vpop.f32.mrf.mxu0  ;;  %17454 = vmatmul.mubr.msk.bf16.gmra.mxu0 %vm474_vm1, %v19647_v23 }
 0x10e   : > { %17457 = vmatprep.mubr.msk.bf16.mxu0 %vm474_vm1, %v1383_v45  ;;  %v2534_v45 = vld [vmem:[#allocation2 + $0x69] sm:$0xff] }
 0x10f   : > { %v19808_v50 = vpop.f32.mrf.mxu1  ;;  %v19819_v52 = vpop.f32.mrf.mxu0  ;;  %v2563_v53 = vpack.c.bf16 %v2534_v45, %v2533_v40  ;;  %v2537_v45 = vld [vmem:[#allocation2 + $0x91] sm:$0xff] }
 0x110   : > { %24967 = vst [vmem:[#allocation38_spill] sm:$0xff] %v19808_v50  ;;  %v2565_v4 = vpack.c.bf16 %v2538_v15, %v2537_v45  ;;  %v2539_v15 = vld [vmem:[#allocation2 + $0xa9] sm:$0xff] }
 0x111   : > { %v19815_v42 = vpop.f32.mrf.mxu1  ;;  %17420 = vmatmul.mubr.msk.bf16.gmra.mxu1 %vm474_vm1, %v19631_v59  ;;  %v19825_v10 = vpop.f32.mrf.mxu0 }
 0x112   : > { %17423 = vmatprep.mubr.msk.bf16.mxu1 %vm474_vm1, %v19645_v6 }
 0x113   : > { %v19823_v62 = vpop.f32.mrf.mxu1  ;;  %v19829_v7 = vpop.f32.mrf.mxu0 }
 0x115   : > { %v19827_v17 = vpop.f32.mrf.mxu1  ;;  %v19835_v8 = vpop.f32.mrf.mxu0  ;;  %17458 = vmatmul.mubr.msk.bf16.gmra.mxu0 %vm474_vm1, %v2278_v11 }
 0x116   : > { %17497 = vmatprep.mubr.msk.bf16.mxu0 %vm474_vm1, %v19511_v46 }
 0x117   : > { %v19833_v9 = vpop.f32.mrf.mxu1  ;;  %v19844_v24 = vpop.f32.mrf.mxu0 }
 0x118   : > { %24968 = vst [vmem:[#allocation39_spill] sm:$0xff] %v19833_v9 }
 0x119   : > { %v19840_v23 = vpop.f32.mrf.mxu1  ;;  %17424 = vmatmul.mubr.msk.bf16.gmra.mxu1 %vm474_vm1, %v19831_v28  ;;  %v19849_v38 = vpop.f32.mrf.mxu0 }
 0x11a   : > { %17463 = vmatprep.mubr.msk.bf16.mxu1 %vm474_vm1, %v2561_v63 }
 0x11b   : > { %v19847_v37 = vpop.f32.mrf.mxu1  ;;  %v19853_v46 = vpop.f32.mrf.mxu0 }
 0x11d   : > { %v19851_v3 = vpop.f32.mrf.mxu1  ;;  %v17295_v11 = vpop.f32.mrf.mxu0  ;;  %17498 = vmatmul.mubr.msk.bf16.vlgmr.msra.gmra.mxu0 %vm474_vm1, %v19548_v43 }
 0x11e   : > { %17501 = vmatprep.mubr.msk.bf16.mxu0 %vm474_vm1, %v19551_v29 }
 0x11f   : > { %v19855_v60 = vpop.f32.mrf.mxu1  ;;  %v1177_v19 = vpop.f32.mrf.mxu0 }
 0x120   : > { %24969 = vst [vmem:[#allocation40_spill] sm:$0xff] %v19855_v60 }
 0x121   : > { %v17261_v20 = vpop.f32.mrf.mxu1  ;;  %17464 = vmatmul.mubr.msk.bf16.vlgmr.msra.gmra.mxu1 %vm474_vm1, %v2562_v34  ;;  %v17296_v40 = vpop.f32.mrf.mxu0 }
 0x122   : > { %v920_v63 = vadd.f32 %v17261_v20, %v19762_v49  ;;  %17467 = vmatprep.mubr.msk.bf16.mxu1 %vm474_vm1, %v2563_v53 }
 0x123   : > { %v911_v33 = vpop.f32.mrf.mxu1  ;;  %v1180_v29 = vpop.f32.mrf.mxu0 }
 0x124   : > { %v912_v21 = vadd.f32 %v911_v33, %v19772_v57  ;;  %v19865_v43 = vadd.f32 %v17295_v11, %v920_v63  ;;  %v2542_v63 = vld [vmem:[#allocation2 + $0xc9] sm:$0xff] }
 0x125   : > { %v17262_v5 = vpop.f32.mrf.mxu1  ;;  %v17299_v53 = vpop.f32.mrf.mxu0  ;;  %17502 = vmatmul.mubr.msk.bf16.gmra.mxu0 %vm474_vm1, %v19565_v13 }
 0x126   : > { %v923_v34 = vadd.f32 %v17262_v5, %v19778_v0  ;;  %v19868_v12 = vadd.f32 %v1177_v19, %v912_v21  ;;  %17505 = vmatprep.mubr.msk.bf16.mxu0 %vm474_vm1, %v19567_v30  ;;  %v2540_v21 = vld [vmem:[#allocation2 + $0xb1] sm:$0xff] }
 0x127   : > { %v914_v49 = vpop.f32.mrf.mxu1  ;;  %v1193_v22 = vpop.f32.mrf.mxu0 }
 0x128   : > { %v915_v20 = vadd.f32 %v914_v49, %v19782_v31  ;;  %v19875_v57 = vadd.f32 %v17296_v40, %v923_v34  ;;  %v2541_v31 = vld [vmem:[#allocation2 + $0xc1] sm:$0xff] }
 0x129   : > { %v17265_v11 = vpop.f32.mrf.mxu1  ;;  %17468 = vmatmul.mubr.msk.bf16.gmra.mxu1 %vm474_vm1, %v2564_v14  ;;  %v17300_v19 = vpop.f32.mrf.mxu0  ;;  %v2566_v14 = vpack.c.bf16 %v2540_v21, %v2539_v15  ;;  %v2546_v21 = vld [vmem:[#allocation2 + $0xf9] sm:$0xff] }
 0x12a   : > { %v936_v5 = vadd.f32 %v17265_v11, %v19786_v35  ;;  %17471 = vmatprep.mubr.msk.bf16.mxu1 %vm474_vm1, %v2565_v4  ;;  %v19880_v0 = vadd.f32 %v1180_v29, %v915_v20  ;;  %v2567_v35 = vpack.c.bf16 %v2542_v63, %v2541_v31  ;;  %v2543_v11 = vld [vmem:[#allocation2 + $0xd9] sm:$0xff] }
 0x12b   : > { %v927_v13 = vpop.f32.mrf.mxu1  ;;  %v1196_v40 = vpop.f32.mrf.mxu0 }
 0x12c   : > { %v928_v30 = vadd.f32 %v927_v13, %v19796_v51  ;;  %v19883_v16 = vadd.f32 %v17299_v53, %v936_v5 }
 0x12d   : > { %v17266_v33 = vpop.f32.mrf.mxu1  ;;  %v17303_v49 = vpop.f32.mrf.mxu0  ;;  %17506 = vmatmul.mubr.msk.bf16.gmra.mxu0 %vm474_vm1, %v19581_v2 }
 0x12e   : > { %v939_v45 = vadd.f32 %v17266_v33, %v19802_v36  ;;  %v19886_v34 = vadd.f32 %v1193_v22, %v928_v30  ;;  %17509 = vmatprep.mubr.msk.bf16.mxu0 %vm474_vm1, %v19583_v44  ;;  %v2544_v22 = vld [vmem:[#allocation2 + $0xe1] sm:$0xff] }
 0x12f   : > { %v930_v4 = vpop.f32.mrf.mxu1  ;;  %v1209_v20 = vpop.f32.mrf.mxu0  ;;  %v2568_v63 = vpack.c.bf16 %v2544_v22, %v2543_v11 }
 0x130   : > { %v931_v29 = vadd.f32 %v930_v4, %v19806_v48  ;;  %v19893_v51 = vadd.f32 %v17300_v19, %v939_v45  ;;  %v2545_v48 = vld [vmem:[#allocation2 + $0xf1] sm:$0xff] }
 0x131   : > { %v17269_v53 = vpop.f32.mrf.mxu1  ;;  %17472 = vmatmul.mubr.msk.bf16.gmra.mxu1 %vm474_vm1, %v2566_v14  ;;  %v17304_v15 = vpop.f32.mrf.mxu0 }
 0x132   : > { %v952_v36 = vadd.f32 %v17269_v53, %v19810_v55  ;;  %17475 = vmatprep.mubr.msk.bf16.mxu1 %vm474_vm1, %v2567_v35  ;;  %v19898_v5 = vadd.f32 %v1196_v40, %v931_v29  ;;  %v2569_v55 = vpack.c.bf16 %v2546_v21, %v2545_v48  ;;  %v2548_v29 = vld [vmem:[#allocation2 + $0x111] sm:$0xff] }
 0x133   : > { %v943_v2 = vpop.f32.mrf.mxu1  ;;  %v1212_v31 = vpop.f32.mrf.mxu0 }
 0x134   : > { %v944_v44 = vadd.f32 %v943_v2, %v19819_v52  ;;  %v19901_v13 = vadd.f32 %v17303_v49, %v952_v36  ;;  %v2547_v49 = vld [vmem:[#allocation2 + $0x109] sm:$0xff] }
 0x135   : > { %v17270_v19 = vpop.f32.mrf.mxu1  ;;  %v17307_v45 = vpop.f32.mrf.mxu0  ;;  %17510 = vmatmul.mubr.msk.bf16.gmra.mxu0 %vm474_vm1, %v19597_v26  ;;  %v2550_v36 = vld [vmem:[#allocation2 + $0x129] sm:$0xff] }
 0x136   : > { %v955_v30 = vadd.f32 %v17270_v19, %v19825_v10  ;;  %v19904_v33 = vadd.f32 %v1209_v20, %v944_v44  ;;  %17513 = vmatprep.mubr.msk.bf16.mxu0 %vm474_vm1, %v19599_v27 }
 0x137   : > { %v946_v14 = vpop.f32.mrf.mxu1  ;;  %v1225_v4 = vpop.f32.mrf.mxu0 }
 0x138   : > { %v947_v40 = vadd.f32 %v946_v14, %v19829_v7  ;;  %v19911_v52 = vadd.f32 %v17304_v15, %v955_v30  ;;  %v2549_v7 = vld [vmem:[#allocation2 + $0x121] sm:$0xff]  ;;  %v2570_v15 = vpack.c.bf16 %v2548_v29, %v2547_v49 }
 0x139   : > { %v17273_v35 = vpop.f32.mrf.mxu1  ;;  %17476 = vmatmul.mubr.msk.bf16.gmra.mxu1 %vm474_vm1, %v2568_v63  ;;  %v17308_v20 = vpop.f32.mrf.mxu0  ;;  %v2552_v14 = vld [vmem:[#allocation2 + $0x141] sm:$0xff] }
 0x13a   : > { %v968_v10 = vadd.f32 %v17273_v35, %v19835_v8  ;;  %17479 = vmatprep.mubr.msk.bf16.mxu1 %vm474_vm1, %v2569_v55  ;;  %v19916_v53 = vadd.f32 %v1212_v31, %v947_v40  ;;  %v2571_v8 = vpack.c.bf16 %v2550_v36, %v2549_v7  ;;  %v2551_v55 = vld [vmem:[#allocation2 + $0x139] sm:$0xff] }
 0x13b   : > { %v959_v26 = vpop.f32.mrf.mxu1  ;;  %v1228_v2 = vpop.f32.mrf.mxu0  ;;  %v2554_v35 = vld [vmem:[#allocation2 + $0x159] sm:$0xff]  ;;  %v2572_v29 = vpack.c.bf16 %v2552_v14, %v2551_v55  ;;  %v2858_v55 = vld [vmem:[#allocation2 + $0x1a2] sm:$0xff] }
 0x13c   : > { %v960_v27 = vadd.f32 %v959_v26, %v19844_v24  ;;  %v19919_v11 = vadd.f32 %v17307_v45, %v968_v10 }
 0x13d   : > { %v17274_v22 = vpop.f32.mrf.mxu1  ;;  %v17311_v19 = vpop.f32.mrf.mxu0  ;;  %17514 = vmatmul.mubr.msk.bf16.gmra.mxu0 %vm474_vm1, %v19613_v18 }
 0x13e   : > { %v971_v48 = vadd.f32 %v17274_v22, %v19849_v38  ;;  %v19922_v21 = vadd.f32 %v1225_v4, %v960_v27  ;;  %17517 = vmatprep.mubr.msk.bf16.mxu0 %vm474_vm1, %v19615_v25 }
 0x13f   : > { %v962_v44 = vpop.f32.mrf.mxu1  ;;  %v1241_v30 = vpop.f32.mrf.mxu0 }
 0x140   : > { %v963_v31 = vadd.f32 %v962_v44, %v19853_v46  ;;  %v19929_v24 = vadd.f32 %v17308_v20, %v971_v48  ;;  %v2553_v46 = vld [vmem:[#allocation2 + $0x151] sm:$0xff] }
 0x141   : > { %v17277_v63 = vpop.f32.mrf.mxu1  ;;  %17480 = vmatmul.mubr.msk.bf16.gmra.mxu1 %vm474_vm1, %v2570_v15  ;;  %v17312_v40 = vpop.f32.mrf.mxu0  ;;  %v2573_v26 = vpack.c.bf16 %v2554_v35, %v2553_v46  ;;  %v2556_v15 = vld [vmem:[#allocation2 + $0x171] sm:$0xff]  ;;  %v2559_v46 = vld [vmem:[#allocation2 + $0x199] sm:$0xff]  ;;  %v2560_v35 = vld [vmem:[#allocation2 + $0x1a1] sm:$0xff] }
 0x142   : > { %v984_v38 = vadd.f32 %v17277_v63, %v19768_v54  ;;  %17483 = vmatprep.mubr.msk.bf16.mxu1 %vm474_vm1, %v2571_v8  ;;  %v19934_v45 = vadd.f32 %v1228_v2, %v963_v31  ;;  %v2555_v2 = vld [vmem:[#allocation2 + $0x169] sm:$0xff] }
 0x143   : > { %v975_v18 = vpop.f32.mrf.mxu1  ;;  %v19939_v49 = vpop.f32.mrf.mxu0  ;;  %v2574_v31 = vpack.c.bf16 %v2556_v15, %v2555_v2 }
 0x144   : > { %v976_v25 = vadd.f32 %v975_v18, %v19776_v61  ;;  %v19937_v4 = vadd.f32 %v17311_v19, %v984_v38 }
 0x145   : > { %v17278_v10 = vpop.f32.mrf.mxu1  ;;  %v17315_v36 = vpop.f32.mrf.mxu0  ;;  %17518 = vmatmul.mubr.msk.bf16.gmra.mxu0 %vm474_vm1, %v19629_v58 }
 0x146   : > { %v987_v54 = vadd.f32 %v17278_v10, %v19780_v1  ;;  %v19942_v20 = vadd.f32 %v1241_v30, %v976_v25  ;;  %17521 = vmatprep.mubr.msk.bf16.mxu0 %vm474_vm1, %v19631_v59 }
 0x147   : > { %v19944_v7 = vpop.f32.mrf.mxu1  ;;  %v1257_v22 = vpop.f32.mrf.mxu0 }
 0x148   : > { %v19950_v61 = vadd.f32 %v17312_v40, %v987_v54 }
 0x149   : > { %v17281_v27 = vpop.f32.mrf.mxu1  ;;  %17484 = vmatmul.mubr.msk.bf16.gmra.mxu1 %vm474_vm1, %v2572_v29  ;;  %v17316_v8 = vpop.f32.mrf.mxu0 }
 0x14a   : > { %v1000_v1 = vadd.f32 %v17281_v27, %v19792_v39  ;;  %17487 = vmatprep.mubr.msk.bf16.mxu1 %vm474_vm1, %v2573_v26 }
 0x14b   : > { %v991_v48 = vpop.f32.mrf.mxu1  ;;  %v19958_v59 = vpop.f32.mrf.mxu0 }
 0x14c   : > { %v992_v44 = vadd.f32 %v991_v48, %v19800_v56  ;;  %v19956_v58 = vadd.f32 %v17315_v36, %v1000_v1  ;;  %24970 = vst [vmem:[#allocation41_spill] sm:$0xff] %v19958_v59  ;;  %v2857_v56 = vld [vmem:[#allocation2 + $0x19a] sm:$0xff]  ;;  %v2576_v36 = vpack.c.bf16 %v2560_v35, %v2559_v46 }
 0x14d   : > { %v17282_v19 = vpop.f32.mrf.mxu1  ;;  %v17319_v39 = vpop.f32.mrf.mxu0  ;;  %17522 = vmatmul.mubr.msk.bf16.gmra.mxu0 %vm474_vm1, %v19645_v6  ;;  %v2874_v10 = vpack.c.bf16 %v2858_v55, %v2857_v56 }
 0x14e   : > { %v1003_v63 = vadd.f32 %v17282_v19, %v19804_v47  ;;  %v19961_v30 = vadd.f32 %v1257_v22, %v992_v44  ;;  %17525 = vmatprep.mubr.msk.bf16.mxu0 %vm474_vm1, %v19831_v28 }
 0x14f   : > { %v19963_v38 = vpop.f32.mrf.mxu1  ;;  %v1273_v40 = vpop.f32.mrf.mxu0 }
 0x150   : > { %24971 = vst [vmem:[#allocation42_spill] sm:$0xff] %v19963_v38  ;;  %v19969_v14 = vadd.f32 %v17316_v8, %v1003_v63 }
 0x151   : > { %v17285_v18 = vpop.f32.mrf.mxu1  ;;  %17488 = vmatmul.mubr.msk.bf16.gmra.mxu1 %vm474_vm1, %v2574_v31  ;;  %v17320_v6 = vpop.f32.mrf.mxu0 }
 0x152   : > { %v1016_v47 = vadd.f32 %v17285_v18, %v19815_v42  ;;  %17491 = vmatprep.mubr.msk.bf16.mxu1 %vm474_vm1, %v19721_v41 }
 0x153   : > { %v1007_v25 = vpop.f32.mrf.mxu1  ;;  %v19978_v26 = vpop.f32.mrf.mxu0 }
 0x154   : > { %v1008_v28 = vadd.f32 %v1007_v25, %v19823_v62  ;;  %v19976_v29 = vadd.f32 %v17319_v39, %v1016_v47  ;;  %24972 = vst [vmem:[#allocation43_spill] sm:$0xff] %v19978_v26 }
 0x155   : > { %v17286_v54 = vpop.f32.mrf.mxu1  ;;  %v17323_v41 = vpop.f32.mrf.mxu0  ;;  %17526 = vmatmul.mubr.msk.bf16.gmra.mxu0 %vm474_vm1, %v2874_v10 }
 0x156   : > { %v1019_v27 = vadd.f32 %v17286_v54, %v19827_v17  ;;  %v19981_v22 = vadd.f32 %v1273_v40, %v1008_v28 }
 0x157   : > { %v19983_v42 = vpop.f32.mrf.mxu1  ;;  %v1289_v62 = vpop.f32.mrf.mxu0 }
 0x158   : > { %24973 = vst [vmem:[#allocation44_spill] sm:$0xff] %v19983_v42  ;;  %v19986_v1 = vadd.f32 %v17320_v6, %v1019_v27 }
 0x159   : > { %v17289_v2 = vpop.f32.mrf.mxu1  ;;  %17492 = vmatmul.mubr.msk.bf16.gmra.mxu1 %vm474_vm1, %v2576_v36  ;;  %v17324_v8 = vpop.f32.mrf.mxu0 }
 0x15a   : > { %v1032_v15 = vadd.f32 %v17289_v2, %v19840_v23 }
 0x15b   : > { %v1023_v48 = vpop.f32.mrf.mxu1  ;;  %v19993_v31 = vpop.f32.mrf.mxu0 }
 0x15c   : > { %v1024_v44 = vadd.f32 %v1023_v48, %v19847_v37  ;;  %v19991_v17 = vadd.f32 %v17323_v41, %v1032_v15  ;;  %24974 = vst [vmem:[#allocation45_spill] sm:$0xff] %v19993_v31 }
 0x15d   : > { %v17290_v19 = vpop.f32.mrf.mxu1  ;;  %v17363_v55 = vpop.f32.mrf.mxu0 }
 0x15e   : > { %v1035_v63 = vadd.f32 %v17290_v19, %v19851_v3  ;;  %v19996_v39 = vadd.f32 %v1289_v62, %v1024_v44 }
 0x15f   : > { %v19998_v56 = vpop.f32.mrf.mxu1  ;;  %v1773_v23 = vpop.f32.mrf.mxu0 }
 0x160   : > { %24975 = vst [vmem:[#allocation46_spill] sm:$0xff] %v19998_v56  ;;  %v20000_v18 = vadd.f32 %v17324_v8, %v1035_v63 }
 0x161   : > { %v17329_v40 = vpop.f32.mrf.mxu1  ;;  %v17364_v37 = vpop.f32.mrf.mxu0 }
 0x162   : > { %v1604_v47 = vadd.f32 %v17329_v40, %v19865_v43 }
 0x163   : > { %v1475_v46 = vpop.f32.mrf.mxu1  ;;  %v20006_v10 = vpop.f32.mrf.mxu0 }
 0x164   : > { %v1602_v35 = vadd.f32 %v1475_v46, %v19868_v12  ;;  %v20004_v25 = vadd.f32 %v17363_v55, %v1604_v47 }
 0x165   : > { %v17330_v6 = vpop.f32.mrf.mxu1  ;;  %v17367_v36 = vpop.f32.mrf.mxu0 }
 0x166   : > { %v1605_v3 = vadd.f32 %v17330_v6, %v19875_v57  ;;  %v20009_v28 = vadd.f32 %v1773_v23, %v1602_v35 }
 0x167   : > { %v20011_v54 = vpop.f32.mrf.mxu1  ;;  %v1789_v43 = vpop.f32.mrf.mxu0 }
 0x168   : > { %v20013_v27 = vadd.f32 %v17364_v37, %v1605_v3 }
 0x169   : > { %v17333_v41 = vpop.f32.mrf.mxu1  ;;  %v17368_v12 = vpop.f32.mrf.mxu0 }
 0x16a   : > { %v1608_v2 = vadd.f32 %v17333_v41, %v19883_v16 }
 0x16b   : > { %v1491_v62 = vpop.f32.mrf.mxu1  ;;  %v20019_v44 = vpop.f32.mrf.mxu0 }
 0x16c   : > { %v1606_v15 = vadd.f32 %v1491_v62, %v19886_v34  ;;  %v20017_v48 = vadd.f32 %v17367_v36, %v1608_v2 }
 0x16d   : > { %v17334_v8 = vpop.f32.mrf.mxu1  ;;  %v17371_v55 = vpop.f32.mrf.mxu0 }
 0x16e   : > { %v1609_v57 = vadd.f32 %v17334_v8, %v19893_v51  ;;  %v20022_v19 = vadd.f32 %v1789_v43, %v1606_v15 }
 0x16f   : > { %v20024_v63 = vpop.f32.mrf.mxu1  ;;  %v1805_v16 = vpop.f32.mrf.mxu0 }
 0x170   : > { %v20026_v40 = vadd.f32 %v17368_v12, %v1609_v57 }
 0x171   : > { %v17337_v23 = vpop.f32.mrf.mxu1  ;;  %v17372_v34 = vpop.f32.mrf.mxu0 }
 0x172   : > { %v1612_v47 = vadd.f32 %v17337_v23, %v19901_v13 }
 0x173   : > { %v1507_v46 = vpop.f32.mrf.mxu1  ;;  %v20032_v3 = vpop.f32.mrf.mxu0 }
 0x174   : > { %v1610_v37 = vadd.f32 %v1507_v46, %v19904_v33  ;;  %v20030_v35 = vadd.f32 %v17371_v55, %v1612_v47 }
 0x175   : > { %v17338_v6 = vpop.f32.mrf.mxu1  ;;  %v17375_v43 = vpop.f32.mrf.mxu0 }
 0x176   : > { %v1613_v51 = vadd.f32 %v17338_v6, %v19911_v52  ;;  %v20035_v36 = vadd.f32 %v1805_v16, %v1610_v37 }
 0x177   : > { %v20037_v41 = vpop.f32.mrf.mxu1  ;;  %v1821_v13 = vpop.f32.mrf.mxu0 }
 0x178   : > { %v20039_v2 = vadd.f32 %v17372_v34, %v1613_v51 }
 0x179   : > { %v17341_v62 = vpop.f32.mrf.mxu1  ;;  %v17376_v33 = vpop.f32.mrf.mxu0 }
 0x17a   : > { %v1616_v12 = vadd.f32 %v17341_v62, %v19919_v11 }
 0x17b   : > { %v1523_v15 = vpop.f32.mrf.mxu1  ;;  %v20045_v23 = vpop.f32.mrf.mxu0 }
 0x17c   : > { %v1614_v8 = vadd.f32 %v1523_v15, %v19922_v21  ;;  %v20043_v57 = vadd.f32 %v17375_v43, %v1616_v12 }
 0x17d   : > { %v17342_v55 = vpop.f32.mrf.mxu1  ;;  %v17379_v46 = vpop.f32.mrf.mxu0 }
 0x17e   : > { %v1617_v52 = vadd.f32 %v17342_v55, %v19929_v24  ;;  %v20048_v16 = vadd.f32 %v1821_v13, %v1614_v8 }
 0x17f   : > { %v20050_v47 = vpop.f32.mrf.mxu1  ;;  %v1837_v11 = vpop.f32.mrf.mxu0 }
 0x180   : > { %v20052_v34 = vadd.f32 %v17376_v33, %v1617_v52 }
 0x181   : > { %v17345_v37 = vpop.f32.mrf.mxu1  ;;  %v17380_v21 = vpop.f32.mrf.mxu0 }
 0x182   : > { %v1620_v6 = vadd.f32 %v17345_v37, %v19937_v4 }
 0x183   : > { %v1539_v51 = vpop.f32.mrf.mxu1  ;;  %v20058_v15 = vpop.f32.mrf.mxu0 }
 0x184   : > { %v1618_v43 = vadd.f32 %v1539_v51, %v19942_v20  ;;  %v20056_v62 = vadd.f32 %v17379_v46, %v1620_v6  ;;  %24976 = vst [vmem:[#allocation47_spill] sm:$0xff] %v20058_v15 }
 0x185   : > { %v17346_v12 = vpop.f32.mrf.mxu1  ;;  %v17383_v33 = vpop.f32.mrf.mxu0 }
 0x186   : > { %v1621_v24 = vadd.f32 %v17346_v12, %v19950_v61  ;;  %v20061_v13 = vadd.f32 %v1837_v11, %v1618_v43 }
 0x187   : > { %v20063_v8 = vpop.f32.mrf.mxu1  ;;  %v1853_v4 = vpop.f32.mrf.mxu0 }
 0x188   : > { %24977 = vst [vmem:[#allocation48_spill] sm:$0xff] %v20061_v13  ;;  %24978 = vst [vmem:[#allocation49_spill] sm:$0xff] %v20063_v8  ;;  %v20065_v55 = vadd.f32 %v17380_v21, %v1621_v24 }
 0x189   : > { %v17349_v52 = vpop.f32.mrf.mxu1  ;;  %v17384_v20 = vpop.f32.mrf.mxu0 }
 0x18a   : > { %v1624_v37 = vadd.f32 %v17349_v52, %v19956_v58 }
 0x18b   : > { %v1555_v31 = vpop.f32.mrf.mxu1  ;;  %v20071_v56 = vpop.f32.mrf.mxu0 }
 0x18c   : > { %v1622_v46 = vadd.f32 %v1555_v31, %v19961_v30  ;;  %v20069_v6 = vadd.f32 %v17383_v33, %v1624_v37  ;;  %24979 = vst [vmem:[#allocation50_spill] sm:$0xff] %v20071_v56 }
 0x18d   : > { %v17350_v51 = vpop.f32.mrf.mxu1  ;;  %v17387_v21 = vpop.f32.mrf.mxu0 }
 0x18e   : > { %v1625_v61 = vadd.f32 %v17350_v51, %v19969_v14  ;;  %v20074_v11 = vadd.f32 %v1853_v4, %v1622_v46 }
 0x18f   : > { %v20076_v43 = vpop.f32.mrf.mxu1  ;;  %v1869_v58 = vpop.f32.mrf.mxu0 }
 0x190   : > { %24980 = vst [vmem:[#allocation51_spill] sm:$0xff] %v20074_v11  ;;  %24981 = vst [vmem:[#allocation52_spill] sm:$0xff] %v20076_v43  ;;  %v20078_v12 = vadd.f32 %v17384_v20, %v1625_v61 }
 0x191   : > { %v17353_v24 = vpop.f32.mrf.mxu1  ;;  %v17388_v30 = vpop.f32.mrf.mxu0 }
 0x192   : > { %v1628_v52 = vadd.f32 %v17353_v24, %v19976_v29 }
 0x193   : > { %v1571_v60 = vpop.f32.mrf.mxu1  ;;  %v20084_v56 = vpop.f32.mrf.mxu0 }
 0x194   : > { %v1626_v31 = vadd.f32 %v1571_v60, %v19981_v22  ;;  %v20082_v33 = vadd.f32 %v17387_v21, %v1628_v52  ;;  %24982 = vst [vmem:[#allocation53_spill] sm:$0xff] %v20084_v56 }
 0x195   : > { %v17354_v37 = vpop.f32.mrf.mxu1  ;;  %v17391_v20 = vpop.f32.mrf.mxu0 }
 0x196   : > { %v1629_v14 = vadd.f32 %v17354_v37, %v19986_v1  ;;  %v20087_v4 = vadd.f32 %v1869_v58, %v1626_v31 }
 0x197   : > { %v20089_v46 = vpop.f32.mrf.mxu1  ;;  %v1885_v29 = vpop.f32.mrf.mxu0 }
 0x198   : > { %24983 = vst [vmem:[#allocation54_spill] sm:$0xff] %v20087_v4  ;;  %24984 = vst [vmem:[#allocation55_spill] sm:$0xff] %v20089_v46  ;;  %v20091_v51 = vadd.f32 %v17388_v30, %v1629_v14 }
 0x199   : > { %v17357_v61 = vpop.f32.mrf.mxu1  ;;  %v17392_v60 = vpop.f32.mrf.mxu0 }
 0x19a   : > { %v1632_v24 = vadd.f32 %v17357_v61, %v19991_v17 }
 0x19b   : > { %v1587_v11 = vpop.f32.mrf.mxu1  ;;  %v20097_v56 = vpop.f32.mrf.mxu0 }
 0x19c   : > { %v1630_v22 = vadd.f32 %v1587_v11, %v19996_v39  ;;  %v20095_v21 = vadd.f32 %v17391_v20, %v1632_v24  ;;  %24985 = vst [vmem:[#allocation56_spill] sm:$0xff] %v20097_v56 }
 0x19d   : > { %v17358_v52 = vpop.f32.mrf.mxu1  ;;  %v20104_v30 = vpop.f32.mrf.mxu0 }
 0x19e   : > { %v1633_v1 = vadd.f32 %v17358_v52, %v20000_v18  ;;  %v20100_v58 = vadd.f32 %v1885_v29, %v1630_v22  ;;  %v18936_v52 = vld [vmem:[%s24890_s3 + $0x14] ss:$0 sps:$4 sm:$0xff]  }
 0x19f   : > { %v20102_v31 = vpop.f32.mrf.mxu1  ;;  %v20110_v14 = vpop.f32.mrf.mxu0  ;;  %18863 = vmatprep.subr.msk.bf16.mxu1 %vm3582_vm2, %v18936_v52  ;;  %v3584_v26 = vsel %vm3582_vm2, %v18936_v52, 0 }
 0x1a0   : > { %24986 = vst [vmem:[#allocation57_spill] sm:$0xff] %v20100_v58  ;;  %24987 = vst [vmem:[#allocation58_spill] sm:$0xff] %v20102_v31  ;;  %v20106_v37 = vadd.f32 %v17392_v60, %v1633_v1  ;;  %17530 = vmatpush3.bf16.msra.mxu1 %v3584_v26 }
 0x1a1   : > { %v20108_v17 = vpop.f32.mrf.mxu1  ;;  %v20114_v11 = vpop.f32.mrf.mxu0 }
 0x1a3   : > { %v20112_v39 = vpop.f32.mrf.mxu1  ;;  %v20118_v61 = vpop.f32.mrf.mxu0 }
 0x1a5   : > { %v20116_v20 = vpop.f32.mrf.mxu1  ;;  %v17435_v29 = vpop.f32.mrf.mxu0 }
 0x1a7   : > { %v20120_v18 = vpop.f32.mrf.mxu1  ;;  %v20122_v22 = vpop.f32.mrf.mxu0 }
 0x1a9   : > { %v17401_v24 = vpop.f32.mrf.mxu1  ;;  %v17436_v56 = vpop.f32.mrf.mxu0 }
 0x1aa   : > { %v2204_v60 = vadd.f32 %v17401_v24, %v20017_v48  ;;  %v18937_v48 = vld [vmem:[%s24890_s3 + $0xc] sm:$0xff]  }
 0x1ab   : > { %v20128_v1 = vpop.f32.mrf.mxu1  ;;  %v20133_v4 = vpop.f32.mrf.mxu0  ;;  %17531 = vmatprep.subr.bf16.mxu1 %v18937_v48 }
 0x1ac   : > { %v20130_v58 = vadd.f32 %v17435_v29, %v2204_v60  ;;  %17532 = vmatpush3.bf16.msra.mxu1 %v18937_v48 }
 0x1ad   : > { %v17402_v31 = vpop.f32.mrf.mxu1  ;;  %v17439_v43 = vpop.f32.mrf.mxu0 }
 0x1ae   : > { %v2205_v46 = vadd.f32 %v17402_v31, %v20026_v40 }
 0x1af   : > { %v20140_v24 = vpop.f32.mrf.mxu1  ;;  %v20144_v60 = vpop.f32.mrf.mxu0 }
 0x1b0   : > { %v20142_v42 = vadd.f32 %v17436_v56, %v2205_v46 }
 0x1b1   : > { %v17405_v29 = vpop.f32.mrf.mxu1  ;;  %v17440_v40 = vpop.f32.mrf.mxu0 }
 0x1b2   : > { %v2208_v9 = vadd.f32 %v17405_v29, %v20030_v35 }
 0x1b3   : > { %v20147_v13 = vpop.f32.mrf.mxu1  ;;  %v20151_v15 = vpop.f32.mrf.mxu0 }
 0x1b4   : > { %v20149_v31 = vadd.f32 %v17439_v43, %v2208_v9  ;;  %24988 = vst [vmem:[#allocation59_spill] sm:$0xff] %v20151_v15 }
 0x1b5   : > { %v17406_v52 = vpop.f32.mrf.mxu1  ;;  %v17443_v56 = vpop.f32.mrf.mxu0 }
 0x1b6   : > { %v2209_v59 = vadd.f32 %v17406_v52, %v20039_v2 }
 0x1b7   : > { %v20154_v26 = vpop.f32.mrf.mxu1  ;;  %v20158_v38 = vpop.f32.mrf.mxu0 }
 0x1b8   : > { %v20156_v46 = vadd.f32 %v17440_v40, %v2209_v59  ;;  %24990 = vst [vmem:[#allocation61_spill] sm:$0xff] %v20158_v38 }
 0x1b9   : > { %v17409_v8 = vpop.f32.mrf.mxu1  ;;  %v17444_v48 = vpop.f32.mrf.mxu0 }
 0x1ba   : > { %24989 = vst [vmem:[#allocation60_spill] sm:$0xff] %v20156_v46  ;;  %v2212_v35 = vadd.f32 %v17409_v8, %v20043_v57 }
 0x1bb   : > { %v20161_v29 = vpop.f32.mrf.mxu1  ;;  %v20165_v50 = vpop.f32.mrf.mxu0 }
 0x1bc   : > { %v20163_v9 = vadd.f32 %v17443_v56, %v2212_v35  ;;  %24992 = vst [vmem:[#allocation63_spill] sm:$0xff] %v20165_v50 }
 0x1bd   : > { %v17410_v43 = vpop.f32.mrf.mxu1  ;;  %v17447_v15 = vpop.f32.mrf.mxu0 }
 0x1be   : > { %24991 = vst [vmem:[#allocation62_spill] sm:$0xff] %v20163_v9  ;;  %v2213_v2 = vadd.f32 %v17410_v43, %v20052_v34 }
 0x1bf   : > { %v20168_v52 = vpop.f32.mrf.mxu1  ;;  %v20172_v46 = vpop.f32.mrf.mxu0 }
 0x1c0   : > { %v20170_v59 = vadd.f32 %v17444_v48, %v2213_v2  ;;  %24994 = vst [vmem:[#allocation65_spill] sm:$0xff] %v20172_v46 }
 0x1c1   : > { %v17413_v40 = vpop.f32.mrf.mxu1  ;;  %v17448_v38 = vpop.f32.mrf.mxu0 }
 0x1c2   : > { %24993 = vst [vmem:[#allocation64_spill] sm:$0xff] %v20170_v59  ;;  %v2216_v57 = vadd.f32 %v17413_v40, %v20056_v62 }
 0x1c3   : > { %v20175_v8 = vpop.f32.mrf.mxu1  ;;  %v20179_v9 = vpop.f32.mrf.mxu0 }
 0x1c4   : > { %v20177_v56 = vadd.f32 %v17447_v15, %v2216_v57  ;;  %24996 = vst [vmem:[#allocation67_spill] sm:$0xff] %v20179_v9 }
 0x1c5   : > { %v17414_v35 = vpop.f32.mrf.mxu1  ;;  %v17451_v50 = vpop.f32.mrf.mxu0 }
 0x1c6   : > { %24995 = vst [vmem:[#allocation66_spill] sm:$0xff] %v20177_v56  ;;  %v2217_v34 = vadd.f32 %v17414_v35, %v20065_v55 }
 0x1c7   : > { %v20182_v43 = vpop.f32.mrf.mxu1  ;;  %v20186_v59 = vpop.f32.mrf.mxu0 }
 0x1c8   : > { %v20184_v48 = vadd.f32 %v17448_v38, %v2217_v34  ;;  %24998 = vst [vmem:[#allocation69_spill] sm:$0xff] %v20186_v59 }
 0x1c9   : > { %v17417_v2 = vpop.f32.mrf.mxu1  ;;  %v17452_v46 = vpop.f32.mrf.mxu0 }
 0x1ca   : > { %24997 = vst [vmem:[#allocation68_spill] sm:$0xff] %v20184_v48  ;;  %v2220_v62 = vadd.f32 %v17417_v2, %v20069_v6 }
 0x1cb   : > { %v20189_v40 = vpop.f32.mrf.mxu1  ;;  %v20193_v56 = vpop.f32.mrf.mxu0 }
 0x1cc   : > { %v20191_v15 = vadd.f32 %v17451_v50, %v2220_v62  ;;  %25000 = vst [vmem:[#allocation71_spill] sm:$0xff] %v20193_v56 }
 0x1cd   : > { %v17418_v57 = vpop.f32.mrf.mxu1  ;;  %v17455_v9 = vpop.f32.mrf.mxu0 }
 0x1ce   : > { %24999 = vst [vmem:[#allocation70_spill] sm:$0xff] %v20191_v15  ;;  %v2221_v55 = vadd.f32 %v17418_v57, %v20078_v12 }
 0x1cf   : > { %v20196_v35 = vpop.f32.mrf.mxu1  ;;  %v20200_v48 = vpop.f32.mrf.mxu0 }
 0x1d0   : > { %v20198_v38 = vadd.f32 %v17452_v46, %v2221_v55  ;;  %25002 = vst [vmem:[#allocation73_spill] sm:$0xff] %v20200_v48 }
 0x1d1   : > { %v17421_v34 = vpop.f32.mrf.mxu1  ;;  %v17456_v59 = vpop.f32.mrf.mxu0 }
 0x1d2   : > { %25001 = vst [vmem:[#allocation72_spill] sm:$0xff] %v20198_v38  ;;  %v2224_v6 = vadd.f32 %v17421_v34, %v20082_v33 }
 0x1d3   : > { %v20203_v2 = vpop.f32.mrf.mxu1  ;;  %v20207_v15 = vpop.f32.mrf.mxu0 }
 0x1d4   : > { %v20205_v50 = vadd.f32 %v17455_v9, %v2224_v6  ;;  %25003 = vst [vmem:[#allocation74_spill] sm:$0xff] %v20207_v15  ;;  %v1603_v9 = vadd.f32 %v20011_v54, %v19880_v0  ;;  %v2200_v6 = vadd.f32 %v20108_v17, %v20004_v25 }
 0x1d5   : > { %v17422_v62 = vpop.f32.mrf.mxu1  ;;  %v17459_v56 = vpop.f32.mrf.mxu0 }
 0x1d6   : > { %v2225_v12 = vadd.f32 %v17422_v62, %v20091_v51  ;;  %v1901_v0 = vadd.f32 %v20006_v10, %v1603_v9  ;;  %v2499_v25 = vadd.f32 %v20104_v30, %v2200_v6 }
 0x1d7   : > { %v20210_v57 = vpop.f32.mrf.mxu1  ;;  %v20214_v38 = vpop.f32.mrf.mxu0 }
 0x1d8   : > { %v20212_v46 = vadd.f32 %v17456_v59, %v2225_v12  ;;  %25004 = vst [vmem:[#allocation75_spill] sm:$0xff] %v20214_v38  ;;  %v2198_v59 = vadd.f32 %v20112_v39, %v20009_v28  ;;  %v2201_v38 = vadd.f32 %v20116_v20, %v20013_v27  ;;  %v20245_v27 = vld [vmem:[%s24889_s2] ss:$0 sm:$0xff] }
 0x1d9   : > { %v17425_v55 = vpop.f32.mrf.mxu1  ;;  %v17460_v48 = vpop.f32.mrf.mxu0 }
 0x1da   : > { %v2228_v33 = vadd.f32 %v17425_v55, %v20095_v21  ;;  %v2497_v28 = vadd.f32 %v20110_v14, %v2198_v59 }
 0x1db   : > { %v20217_v34 = vpop.f32.mrf.mxu1  ;;  %v20225_v15 = vpop.f32.mrf.mxu0 }
 0x1dc   : > { %v20223_v51 = vadd.f32 %v17459_v56, %v2228_v33  ;;  %25005 = vst [vmem:[#allocation76_spill] sm:$0xff] %v20225_v15  ;;  %v2199_v33 = vadd.f32 %v20120_v18, %v1901_v0  ;;  %v2202_v18 = vadd.f32 %v20128_v1, %v20022_v19  ;;  %v20261_v0 = vadd.f32 %v19944_v7, %v19784_v32 }
 0x1dd   : > { %v17426_v62 = vpop.f32.mrf.mxu1  ;;  %v17499_v55 = vpop.f32.mrf.mxu0  ;;  %v1611_v32 = vadd.f32 %v20037_v41, %v19916_v53  ;;  %v2206_v7 = vadd.f32 %v20147_v13, %v20035_v36  ;;  %v3421_v53 = vld [vmem:[#allocation2] sm:$0xff]  ;;  %v3422_v41 = vld [vmem:[#allocation2 + $0x8] sm:$0xff] }
 0x1de   : > { %v2229_v12 = vadd.f32 %v17426_v62, %v20106_v37  ;;  %v1607_v37 = vadd.f32 %v20024_v63, %v19898_v5  ;;  %v18938_v5 = vld [vmem:[%s24890_s3 + $0x8] ss:$0 sps:$4 sm:$0xff]   ;;  %v2498_v59 = vadd.f32 %v20118_v61, %v2199_v33  ;;  %v18939_v33 = vld [vmem:[%s24890_s3] sm:$0xff]  }
 0x1df   : > { %v20230_v21 = vpop.f32.mrf.mxu1  ;;  %v2966_v56 = vpop.f32.mrf.mxu0  ;;  %18864 = vmatprep.subr.msk.bf16.mxu0 %vm3582_vm2, %v18938_v5  ;;  %v3805_v19 = vsel %vm3582_vm2, %v18938_v5, 0 }
 0x1e0   : > { %v20236_v54 = vadd.f32 %v17460_v48, %v2229_v12  ;;  %v2500_v48 = vadd.f32 %v20114_v11, %v2201_v38  ;;  %17566 = vmatpush3.bf16.msra.mxu0 %v3805_v19 }
 0x1e1   : > { %v17465_v17 = vpop.f32.mrf.mxu1  ;;  %v17500_v39 = vpop.f32.mrf.mxu0  ;;  %17567 = vmatprep.subr.bf16.mxu0 %v18939_v33 }
 0x1e2   : > { %v2797_v15 = vadd.f32 %v17465_v17, %v2499_v25 }
 0x1e3   : > { %v2668_v10 = vpop.f32.mrf.mxu1  ;;  %v2969_v6 = vpop.f32.mrf.mxu0 }
 0x1e4   : > { %v3095_v30 = vadd.f32 %v17499_v55, %v2797_v15  ;;  %v2795_v20 = vadd.f32 %v2668_v10, %v2497_v28  ;;  %v1905_v15 = vadd.f32 %v20019_v44, %v1607_v37  ;;  %17568 = vmatpush3.bf16.msra.mxu0 %v18939_v33 }
 0x1e5   : > { %v17466_v9 = vpop.f32.mrf.mxu1  ;;  %v17503_v55 = vpop.f32.mrf.mxu0 }
 0x1e6   : > { %v3134_v63 = vadd.f32 %v20245_v27, %v3095_v30  ;;  %v3093_v14 = vadd.f32 %v2966_v56, %v2795_v20  ;;  %v2798_v62 = vadd.f32 %v17466_v9, %v2500_v48  ;;  %v2203_v61 = vadd.f32 %v20140_v24, %v1905_v15  ;;  %v3472_v20 = vld [vmem:[#allocation2 + $0x1] sm:$0xff]  ;;  %v3473_v48 = vld [vmem:[#allocation2 + $0x9] sm:$0xff] }
 0x1e7   : > { %v2671_v12 = vpop.f32.mrf.mxu1  ;;  %v2982_v44 = vpop.f32.mrf.mxu0  ;;  %v2501_v56 = vadd.f32 %v20122_v22, %v2202_v18 }
 0x1e8   : > { %v3132_v11 = vadd.f32 %v20245_v27, %v3093_v14  ;;  %v3096_v1 = vadd.f32 %v17500_v39, %v2798_v62  ;;  %v2796_v38 = vadd.f32 %v2671_v12, %v2498_v59  ;;  %vm3166_vm3 = vcmp.ge.f32.partialorder %v3134_v63, 0.0  ;;  %v20280_v14 = vld [vmem:[%s24890_s3 + $0x20] ss:$0 sps:$4 sm:$0xff]  }
 0x1e9   : > { %v17469_v25 = vpop.f32.mrf.mxu1  ;;  %v3198_v17 = vmul.f32 0.2, %v3134_v63  ;;  %v17504_v30 = vpop.f32.mrf.mxu0  ;;  %v2502_v15 = vadd.f32 %v20133_v4, %v2203_v61  ;;  %v1615_v12 = vadd.f32 %v20050_v47, %v19934_v45  ;;  %18865 = vmatprep.subr.msk.bf16.mxu1 %vm3582_vm2, %v20280_v14 }
 0x1ea   : > { %v3135_v28 = vadd.f32 %v20245_v27, %v3096_v1  ;;  %v3094_v37 = vadd.f32 %v2969_v6, %v2796_v38  ;;  %v2801_v10 = vadd.f32 %v17469_v25, %v20130_v58  ;;  %vm3164_vm4 = vcmp.ge.f32.partialorder %v3132_v11, 0.0 }
 0x1eb   : > { %v3230_v24 = vsel %vm3166_vm3, %v3134_v63, %v3198_v17  ;;  %v2684_v39 = vpop.f32.mrf.mxu1  ;;  %v3196_v22 = vmul.f32 0.2, %v3132_v11  ;;  %v2985_v13 = vpop.f32.mrf.mxu0  ;;  %v3504_v63 = vpack.c.bf16 %v3473_v48, %v3472_v20  ;;  %v3453_v38 = vpack.c.bf16 %v3422_v41, %v3421_v53  ;;  %v25010_v41 = vld [vmem:[#allocation49_spill] sm:$0xff] }
 0x1ec   : > { %v3133_v18 = vadd.f32 %v20245_v27, %v3094_v37  ;;  %v3099_v9 = vadd.f32 %v17503_v55, %v2801_v10  ;;  %3296 = vrot.lane.b32.xlu1 %v3230_v24, %s19089_s13  ;;  %v2799_v58 = vadd.f32 %v2684_v39, %v2501_v56  ;;  %vm3167_vm5 = vcmp.ge.f32.partialorder %v3135_v28, 0.0 }
 0x1ed   : > { %v17470_v6 = vpop.f32.mrf.mxu1  ;;  %v3228_v36 = vsel %vm3164_vm4, %v3132_v11, %v3196_v22  ;;  %v3199_v5 = vmul.f32 0.2, %v3135_v28  ;;  %v17507_v11 = vpop.f32.mrf.mxu0  ;;  %17533 = vmatprep.mubr.msk.bf16.mxu1 %vm3533_vm6, %v3504_v63  ;;  %v2505_v56 = vadd.f32 %v20144_v60, %v2206_v7  ;;  %17569 = vmatprep.mubr.msk.bf16.mxu0 %vm3533_vm6, %v3453_v38  ;;  %v1321_v37 = vadd.f32 %v19939_v49, %v20261_v0  ;;  %v25006_v0 = vld [vmem:[#allocation60_spill] sm:$0xff] }
 0x1ee   : > { %v3097_v62 = vadd.f32 %v2982_v44, %v2799_v58  ;;  %v2802_v59 = vadd.f32 %v17470_v6, %v20142_v42  ;;  %3292 = vrot.lane.b32.xlu0 %v3228_v36, %s19089_s13  ;;  %vm3165_vm7 = vcmp.ge.f32.partialorder %v3133_v18, 0.0  ;;  %v3197_v1 = vmul.f32 0.2, %v3133_v18 }
 0x1ef   : > { %v3231_v55 = vsel %vm3167_vm5, %v3135_v28, %v3199_v5  ;;  %v2687_v19 = vpop.f32.mrf.mxu1  ;;  %v1909_v42 = vadd.f32 %v20032_v3, %v1611_v32  ;;  %v3138_v25 = vadd.f32 %v20245_v27, %v3099_v9  ;;  %v2998_v17 = vpop.f32.mrf.mxu0  ;;  %v1913_v10 = vadd.f32 %v20045_v23, %v1615_v12  ;;  %v25007_v9 = vld [vmem:[#allocation59_spill] sm:$0xff]  ;;  %v25011_v12 = vld [vmem:[#allocation61_spill] sm:$0xff] }
 0x1f0   : > { %v3136_v4 = vadd.f32 %v20245_v27, %v3097_v62  ;;  %3298 = vrot.lane.b32.xlu1 %v3231_v55, %s19089_s13  ;;  %v2800_v45 = vadd.f32 %v2687_v19, %v2502_v15  ;;  %v3100_v47 = vadd.f32 %v17504_v30, %v2802_v59  ;;  %v3229_v44 = vsel %vm3165_vm7, %v3133_v18, %v3197_v1 }
 0x1f1   : > { %v17473_v61 = vpop.f32.mrf.mxu1  ;;  %v2207_v33 = vadd.f32 %v20154_v26, %v1909_v42  ;;  %v17508_v24 = vpop.f32.mrf.mxu0  ;;  %v2210_v60 = vadd.f32 %v20161_v29, %v20048_v16  ;;  %v3202_v30 = vmul.f32 0.2, %v3138_v25  ;;  %vm3170_vm9 = vcmp.ge.f32.partialorder %v3138_v25, 0.0  ;;  %v25008_v16 = vld [vmem:[#allocation38_spill] sm:$0xff] }
 0x1f2   : > { %v3098_v28 = vadd.f32 %v2985_v13, %v2800_v45  ;;  %v2805_v3 = vadd.f32 %v17473_v61, %v20149_v31  ;;  %3294 = vrot.lane.b32.xlu0 %v3229_v44, %s19089_s13  ;;  %vm3168_vm8 = vcmp.ge.f32.partialorder %v3136_v4, 0.0  ;;  %v3200_v39 = vmul.f32 0.2, %v3136_v4  ;;  %v25009_v29 = vld [vmem:[#allocation42_spill] sm:$0xff]  ;;  %v25014_v44 = vld [vmem:[#allocation47_spill] sm:$0xff] }
 0x1f3   : > { %v2700_v32 = vpop.f32.mrf.mxu1  ;;  %v3139_v31 = vadd.f32 %v20245_v27, %v3100_v47  ;;  %v3001_v18 = vpop.f32.mrf.mxu0  ;;  %v2506_v58 = vadd.f32 %v25007_v9, %v2207_v33  ;;  %v995_v53 = vadd.f32 %v25009_v29, %v25008_v16  ;;  %v1619_v6 = vadd.f32 %v25010_v41, %v1321_v37  ;;  %v25012_v47 = vld [vmem:[#allocation62_spill] sm:$0xff] }
 0x1f4   : > { %v3137_v7 = vadd.f32 %v20245_v27, %v3098_v28  ;;  %v2803_v26 = vadd.f32 %v2700_v32, %v2505_v56  ;;  %v3103_v22 = vadd.f32 %v17507_v11, %v2805_v3  ;;  %v3232_v48 = vsel %vm3168_vm8, %v3136_v4, %v3200_v39  ;;  %v25015_v3 = vld [vmem:[#allocation63_spill] sm:$0xff] }
 0x1f5   : > { %v17474_v20 = vpop.f32.mrf.mxu1  ;;  %v2211_v36 = vadd.f32 %v20168_v52, %v1913_v10  ;;  %v17511_v5 = vpop.f32.mrf.mxu0  ;;  %v3234_v15 = vsel %vm3170_vm9, %v3138_v25, %v3202_v30  ;;  %v2509_v55 = vadd.f32 %v25011_v12, %v2210_v60  ;;  %v3203_v4 = vmul.f32 0.2, %v3139_v31  ;;  %v25013_v52 = vld [vmem:[#allocation41_spill] sm:$0xff]  ;;  %v25016_v10 = vld [vmem:[#allocation48_spill] sm:$0xff] }
 0x1f6   : > { %v3101_v49 = vadd.f32 %v2998_v17, %v2803_v26  ;;  %v2806_v23 = vadd.f32 %v17474_v20, %v25006_v0  ;;  %3300 = vrot.lane.b32.xlu0 %v3232_v48, %s19089_s13  ;;  %vm3169_vm10 = vcmp.ge.f32.partialorder %v3137_v7, 0.0  ;;  %v3201_v63 = vmul.f32 0.2, %v3137_v7  ;;  %v25021_v12 = vld [vmem:[#allocation65_spill] sm:$0xff] }
 0x1f7   : > { %v2703_v13 = vpop.f32.mrf.mxu1  ;;  %v3142_v19 = vadd.f32 %v20245_v27, %v3103_v22  ;;  %v3014_v42 = vpop.f32.mrf.mxu0  ;;  %vm3171_vm11 = vcmp.ge.f32.partialorder %v3139_v31, 0.0  ;;  %v1325_v25 = vadd.f32 %v25013_v52, %v995_v53  ;;  %v1917_v17 = vadd.f32 %v25014_v44, %v1619_v6 }
 0x1f8   : > { %v3140_v62 = vadd.f32 %v20245_v27, %v3101_v49  ;;  %v2804_v59 = vadd.f32 %v2703_v13, %v2506_v58  ;;  %v3104_v11 = vadd.f32 %v17508_v24, %v2806_v23  ;;  %v3233_v38 = vsel %vm3169_vm10, %v3137_v7, %v3201_v63  ;;  %v25017_v49 = vld [vmem:[#allocation64_spill] sm:$0xff] }
 0x1f9   : > { %v17477_v1 = vpop.f32.mrf.mxu1  ;;  %3302 = vrot.lane.b32.xlu1 %v3233_v38, %s19089_s13  ;;  %v17512_v33 = vpop.f32.mrf.mxu0  ;;  %v2510_v37 = vadd.f32 %v25015_v3, %v2211_v36  ;;  %v2214_v32 = vadd.f32 %v20175_v8, %v25016_v10  ;;  %v3235_v30 = vsel %vm3171_vm11, %v3139_v31, %v3203_v4  ;;  %v3206_v48 = vmul.f32 0.2, %v3142_v19  ;;  %v25018_v8 = vld [vmem:[#allocation39_spill] sm:$0xff]  ;;  %v25019_v23 = vld [vmem:[#allocation44_spill] sm:$0xff]  ;;  %v25022_v38 = vld [vmem:[#allocation66_spill] sm:$0xff] }
 0x1fa   : > { %v3102_v45 = vadd.f32 %v3001_v18, %v2804_v59  ;;  %v2809_v61 = vadd.f32 %v17477_v1, %v25012_v47  ;;  %3304 = vrot.lane.b32.xlu0 %v3234_v15, %s19089_s13  ;;  %vm3172_vm12 = vcmp.ge.f32.partialorder %v3140_v62, 0.0  ;;  %v3204_v28 = vmul.f32 0.2, %v3140_v62  ;;  %v25020_v58 = vld [vmem:[#allocation52_spill] sm:$0xff] }
 0x1fb   : > { %v2716_v56 = vpop.f32.mrf.mxu1  ;;  %v3143_v7 = vadd.f32 %v20245_v27, %v3104_v11  ;;  %v3017_v20 = vpop.f32.mrf.mxu0  ;;  %vm3174_vm14 = vcmp.ge.f32.partialorder %v3142_v19, 0.0  ;;  %v1011_v9 = vadd.f32 %v25019_v23, %v25018_v8  ;;  %v1623_v16 = vadd.f32 %v25020_v58, %v1325_v25  ;;  %v25025_v25 = vld [vmem:[#allocation67_spill] sm:$0xff] }
 0x1fc   : > { %v3141_v24 = vadd.f32 %v20245_v27, %v3102_v45  ;;  %v3107_v39 = vadd.f32 %v17511_v5, %v2809_v61  ;;  %v2807_v60 = vadd.f32 %v2716_v56, %v2509_v55  ;;  %v3236_v22 = vsel %vm3172_vm12, %v3140_v62, %v3204_v28  ;;  %v25024_v45 = vld [vmem:[#allocation50_spill] sm:$0xff] }
 0x1fd   : > { %v17478_v26 = vpop.f32.mrf.mxu1  ;;  %3306 = vrot.lane.b32.xlu1 %v3235_v30, %s19089_s13  ;;  %v2215_v29 = vadd.f32 %v20182_v43, %v1917_v17  ;;  %v17515_v53 = vpop.f32.mrf.mxu0  ;;  %v3238_v59 = vsel %vm3174_vm14, %v3142_v19, %v3206_v48  ;;  %v2513_v55 = vadd.f32 %v25021_v12, %v2214_v32  ;;  %v3207_v11 = vmul.f32 0.2, %v3143_v7  ;;  %v25023_v43 = vld [vmem:[#allocation43_spill] sm:$0xff]  ;;  %v25027_v30 = vld [vmem:[#allocation68_spill] sm:$0xff]  ;;  %v25034_v12 = vld [vmem:[#allocation53_spill] sm:$0xff] }
 0x1fe   : > { %v3105_v18 = vadd.f32 %v3014_v42, %v2807_v60  ;;  %v2810_v0 = vadd.f32 %v17478_v26, %v25017_v49  ;;  %3308 = vrot.lane.b32.xlu0 %v3236_v22, %s19089_s13  ;;  %vm3173_vm13 = vcmp.ge.f32.partialorder %v3141_v24, 0.0  ;;  %v3205_v41 = vmul.f32 0.2, %v3141_v24 }
 0x1ff   : > { %v2719_v31 = vpop.f32.mrf.mxu1  ;;  %v3146_v6 = vadd.f32 %v20245_v27, %v3107_v39  ;;  %v3030_v15 = vpop.f32.mrf.mxu0  ;;  %vm3175_vm15 = vcmp.ge.f32.partialorder %v3143_v7, 0.0  ;;  %v1329_v4 = vadd.f32 %v25023_v43, %v1011_v9  ;;  %v1921_v47 = vadd.f32 %v25024_v45, %v1623_v16  ;;  %v25026_v39 = vld [vmem:[#allocation51_spill] sm:$0xff] }
 0x200   : > { %v3144_v36 = vadd.f32 %v20245_v27, %v3105_v18  ;;  %v3108_v13 = vadd.f32 %v17512_v33, %v2810_v0  ;;  %v2808_v5 = vadd.f32 %v2719_v31, %v2510_v37  ;;  %v3237_v62 = vsel %vm3173_vm13, %v3141_v24, %v3205_v41  ;;  %v25035_v45 = vld [vmem:[#allocation71_spill] sm:$0xff] }
 0x201   : > { %v17481_v63 = vpop.f32.mrf.mxu1  ;;  %3310 = vrot.lane.b32.xlu1 %v3237_v62, %s19089_s13  ;;  %v17516_v52 = vpop.f32.mrf.mxu0  ;;  %v2514_v44 = vadd.f32 %v25025_v25, %v2215_v29  ;;  %v3210_v28 = vmul.f32 0.2, %v3146_v6  ;;  %v3239_v10 = vsel %vm3175_vm15, %v3143_v7, %v3207_v11  ;;  %vm3178_vm4 = vcmp.ge.f32.partialorder %v3146_v6, 0.0 }
 0x202   : > { %v3106_v1 = vadd.f32 %v3017_v20, %v2808_v5  ;;  %v2813_v42 = vadd.f32 %v17481_v63, %v25022_v38  ;;  %3312 = vrot.lane.b32.xlu0 %v3238_v59, %s19089_s13  ;;  %vm3176_vm3 = vcmp.ge.f32.partialorder %v3144_v36, 0.0  ;;  %v3208_v19 = vmul.f32 0.2, %v3144_v36  ;;  %v25028_v20 = vld [vmem:[#allocation55_spill] sm:$0xff]  ;;  %v25031_v63 = vld [vmem:[#allocation40_spill] sm:$0xff]  ;;  %v25033_v59 = vld [vmem:[#allocation54_spill] sm:$0xff] }
 0x203   : > { %v2732_v61 = vpop.f32.mrf.mxu1  ;;  %v3147_v17 = vadd.f32 %v20245_v27, %v3108_v13  ;;  %v3033_v24 = vpop.f32.mrf.mxu0  ;;  %v2218_v60 = vadd.f32 %v20189_v40, %v25026_v39  ;;  %v1627_v48 = vadd.f32 %v25028_v20, %v1329_v4  ;;  %v2219_v18 = vadd.f32 %v20196_v35, %v1921_v47  ;;  %v25030_v35 = vld [vmem:[#allocation69_spill] sm:$0xff] }
 0x204   : > { %v3145_v56 = vadd.f32 %v20245_v27, %v3106_v1  ;;  %v2811_v33 = vadd.f32 %v2732_v61, %v2513_v55  ;;  %v3111_v3 = vadd.f32 %v17515_v53, %v2813_v42  ;;  %v3240_v32 = vsel %vm3176_vm3, %v3144_v36, %v3208_v19  ;;  %v25029_v36 = vld [vmem:[#allocation70_spill] sm:$0xff] }
 0x205   : > { %v17482_v37 = vpop.f32.mrf.mxu1  ;;  %3314 = vrot.lane.b32.xlu1 %v3239_v10, %s19089_s13  ;;  %v17519_v7 = vpop.f32.mrf.mxu0  ;;  %v3242_v9 = vsel %vm3178_vm4, %v3146_v6, %v3210_v28  ;;  %v3211_v40 = vmul.f32 0.2, %v3147_v17  ;;  %vm3179_vm7 = vcmp.ge.f32.partialorder %v3147_v17, 0.0  ;;  %v2517_v5 = vadd.f32 %v25030_v35, %v2218_v60  ;;  %v25032_v6 = vld [vmem:[#allocation46_spill] sm:$0xff] }
 0x206   : > { %v3109_v26 = vadd.f32 %v3030_v15, %v2811_v33  ;;  %v2814_v22 = vadd.f32 %v17482_v37, %v25027_v30  ;;  %3316 = vrot.lane.b32.xlu0 %v3240_v32, %s19089_s13  ;;  %vm3177_vm5 = vcmp.ge.f32.partialorder %v3145_v56, 0.0  ;;  %v3209_v0 = vmul.f32 0.2, %v3145_v56 }
 0x207   : > { %v2735_v49 = vpop.f32.mrf.mxu1  ;;  %v3150_v58 = vadd.f32 %v20245_v27, %v3111_v3  ;;  %v3046_v53 = vpop.f32.mrf.mxu0  ;;  %v1027_v62 = vadd.f32 %v25032_v6, %v25031_v63  ;;  %v2222_v15 = vadd.f32 %v20203_v2, %v25033_v59  ;;  %v1925_v55 = vadd.f32 %v25034_v12, %v1627_v48  ;;  %v25036_v2 = vld [vmem:[#allocation72_spill] sm:$0xff]  ;;  %v25037_v3 = vld [vmem:[#allocation45_spill] sm:$0xff]  ;;  %v25041_v6 = vld [vmem:[#allocation74_spill] sm:$0xff] }
 0x208   : > { %v3148_v8 = vadd.f32 %v20245_v27, %v3109_v26  ;;  %v2812_v23 = vadd.f32 %v2735_v49, %v2514_v44  ;;  %v3112_v16 = vadd.f32 %v17516_v52, %v2814_v22  ;;  %v3241_v31 = vsel %vm3177_vm5, %v3145_v56, %v3209_v0 }
 0x209   : > { %v17485_v29 = vpop.f32.mrf.mxu1  ;;  %3318 = vrot.lane.b32.xlu1 %v3241_v31, %s19089_s13  ;;  %v17520_v1 = vpop.f32.mrf.mxu0  ;;  %v3243_v4 = vsel %vm3179_vm7, %v3147_v17, %v3211_v40  ;;  %v2518_v47 = vadd.f32 %v25035_v45, %v2219_v18  ;;  %v3214_v56 = vmul.f32 0.2, %v3150_v58  ;;  %vm3182_vm10 = vcmp.ge.f32.partialorder %v3150_v58, 0.0  ;;  %v25040_v40 = vld [vmem:[#allocation57_spill] sm:$0xff] }
 0x20a   : > { %v3110_v41 = vadd.f32 %v3033_v24, %v2812_v23  ;;  %v2817_v13 = vadd.f32 %v17485_v29, %v25029_v36  ;;  %3320 = vrot.lane.b32.xlu0 %v3242_v9, %s19089_s13  ;;  %vm3180_vm8 = vcmp.ge.f32.partialorder %v3148_v8, 0.0  ;;  %v3212_v38 = vmul.f32 0.2, %v3148_v8  ;;  %v25038_v24 = vld [vmem:[#allocation73_spill] sm:$0xff] }
 0x20b   : > { %v2748_v11 = vpop.f32.mrf.mxu1  ;;  %v3151_v61 = vadd.f32 %v20245_v27, %v3112_v16  ;;  %v3049_v44 = vpop.f32.mrf.mxu0  ;;  %v1333_v17 = vadd.f32 %v25037_v3, %v1027_v62  ;;  %v2521_v39 = vadd.f32 %v25038_v24, %v2222_v15  ;;  %v2223_v60 = vadd.f32 %v20210_v57, %v1925_v55  ;;  %v25039_v57 = vld [vmem:[#allocation58_spill] sm:$0xff] }
 0x20c   : > { %v3149_v42 = vadd.f32 %v20245_v27, %v3110_v41  ;;  %v2815_v43 = vadd.f32 %v2748_v11, %v2517_v5  ;;  %v3115_v52 = vadd.f32 %v17519_v7, %v2817_v13  ;;  %v3244_v25 = vsel %vm3180_vm8, %v3148_v8, %v3212_v38 }
 0x20d   : > { %v17486_v19 = vpop.f32.mrf.mxu1  ;;  %3322 = vrot.lane.b32.xlu1 %v3243_v4, %s19089_s13  ;;  %v17523_v10 = vpop.f32.mrf.mxu0  ;;  %v3246_v49 = vsel %vm3182_vm10, %v3150_v58, %v3214_v56  ;;  %v3215_v0 = vmul.f32 0.2, %v3151_v61  ;;  %vm3183_vm11 = vcmp.ge.f32.partialorder %v3151_v61, 0.0  ;;  %v1631_v9 = vadd.f32 %v25039_v57, %v1333_v17 }
 0x20e   : > { %v3113_v33 = vadd.f32 %v3046_v53, %v2815_v43  ;;  %v2818_v28 = vadd.f32 %v17486_v19, %v25036_v2  ;;  %3324 = vrot.lane.b32.xlu0 %v3244_v25, %s19089_s13  ;;  %vm3181_vm9 = vcmp.ge.f32.partialorder %v3149_v42, 0.0  ;;  %v3213_v32 = vmul.f32 0.2, %v3149_v42 }
 0x20f   : > { %v2751_v37 = vpop.f32.mrf.mxu1  ;;  %v3154_v20 = vadd.f32 %v20245_v27, %v3115_v52  ;;  %v3062_v7 = vpop.f32.mrf.mxu0  ;;  %v2226_v16 = vadd.f32 %v20217_v34, %v25040_v40  ;;  %v3247_v35 = vsel %vm3183_vm11, %v3151_v61, %v3215_v0  ;;  %v2522_v62 = vadd.f32 %v25041_v6, %v2223_v60  ;;  %v25042_v34 = vld [vmem:[#allocation56_spill] sm:$0xff] }
 0x210   : > { %v3152_v26 = vadd.f32 %v20245_v27, %v3113_v33  ;;  %v3116_v30 = vadd.f32 %v17520_v1, %v2818_v28  ;;  %v2816_v22 = vadd.f32 %v2751_v37, %v2518_v47  ;;  %v3245_v18 = vsel %vm3181_vm9, %v3149_v42, %v3213_v32  ;;  %v25043_v42 = vld [vmem:[#allocation75_spill] sm:$0xff] }
 0x211   : > { %v17489_v48 = vpop.f32.mrf.mxu1  ;;  %3326 = vrot.lane.b32.xlu1 %v3245_v18, %s19089_s13  ;;  %v17524_v31 = vpop.f32.mrf.mxu0  ;;  %v3218_v59 = vmul.f32 0.2, %v3154_v20  ;;  %vm3186_vm14 = vcmp.ge.f32.partialorder %v3154_v20, 0.0  ;;  %v1929_v55 = vadd.f32 %v25042_v34, %v1631_v9  ;;  %v2525_v43 = vadd.f32 %v25043_v42, %v2226_v16 }
 0x212   : > { %v3114_v8 = vadd.f32 %v3049_v44, %v2816_v22  ;;  %v2821_v23 = vadd.f32 %v17489_v48, %v20205_v50  ;;  %3328 = vrot.lane.b32.xlu0 %v3246_v49, %s19089_s13  ;;  %vm3184_vm12 = vcmp.ge.f32.partialorder %v3152_v26, 0.0  ;;  %v3216_v53 = vmul.f32 0.2, %v3152_v26  ;;  %v25044_v22 = vld [vmem:[#allocation76_spill] sm:$0xff] }
 0x213   : > { %v2764_v29 = vpop.f32.mrf.mxu1  ;;  %v3155_v58 = vadd.f32 %v20245_v27, %v3116_v30  ;;  %v3065_v63 = vpop.f32.mrf.mxu0  ;;  %v3250_v25 = vsel %vm3186_vm14, %v3154_v20, %v3218_v59  ;;  %v2227_v56 = vadd.f32 %v20230_v21, %v1929_v55  ;;  %vm6516_vm14 = vcmask 261120  }
 0x214   : > { %v3153_v41 = vadd.f32 %v20245_v27, %v3114_v8  ;;  %v3119_v36 = vadd.f32 %v17523_v10, %v2821_v23  ;;  %v2819_v50 = vadd.f32 %v2764_v29, %v2521_v39  ;;  %v3248_v5 = vsel %vm3184_vm12, %v3152_v26, %v3216_v53 }
 0x215   : > { %v17490_v13 = vpop.f32.mrf.mxu1  ;;  %3330 = vrot.lane.b32.xlu1 %v3247_v35, %s19089_s13  ;;  %v17527_v1 = vpop.f32.mrf.mxu0  ;;  %v3219_v61 = vmul.f32 0.2, %v3155_v58  ;;  %vm3187_vm15 = vcmp.ge.f32.partialorder %v3155_v58, 0.0  ;;  %v2526_v20 = vadd.f32 %v25044_v22, %v2227_v56  ;;  %vm3388_vm12 = vcmask 195712  }
 0x216   : > { %v3117_v15 = vadd.f32 %v3062_v7, %v2819_v50  ;;  %v2822_v12 = vadd.f32 %v17490_v13, %v20212_v46  ;;  %3332 = vrot.lane.b32.xlu0 %v3248_v5, %s19089_s13  ;;  %vm3185_vm13 = vcmp.ge.f32.partialorder %v3153_v41, 0.0  ;;  %v3217_v38 = vmul.f32 0.2, %v3153_v41  ;;  %v18942_v50 = vld [vmem:[%s24890_s3 + $0x2c] ss:$0 sps:$4 sm:$0xff]  }
 0x217   : > { %v2767_v11 = vpop.f32.mrf.mxu1  ;;  %v3158_v4 = vadd.f32 %v20245_v27, %v3119_v36  ;;  %v3078_v44 = vpop.f32.mrf.mxu0  ;;  %v3251_v10 = vsel %vm3187_vm15, %v3155_v58, %v3219_v61  ;;  %18866 = vmatprep.subr.msk.bf16.mxu0 %vm3582_vm2, %v18942_v50 }
 0x218   : > { %v3156_v45 = vadd.f32 %v20245_v27, %v3117_v15  ;;  %v2820_v47 = vadd.f32 %v2767_v11, %v2522_v62  ;;  %v3120_v46 = vadd.f32 %v17524_v31, %v2822_v12  ;;  %v3249_v19 = vsel %vm3185_vm13, %v3153_v41, %v3217_v38 }
 0x219   : > { %v17493_v52 = vpop.f32.mrf.mxu1  ;;  %3334 = vrot.lane.b32.xlu1 %v3249_v19, %s19089_s13  ;;  %v3222_v32 = vmul.f32 0.2, %v3158_v4  ;;  %v17528_v60 = vpop.f32.mrf.mxu0  ;;  %vm3190_vm4 = vcmp.ge.f32.partialorder %v3158_v4, 0.0 }
 0x21a   : > { %v3118_v33 = vadd.f32 %v3065_v63, %v2820_v47  ;;  %v2825_v2 = vadd.f32 %v17493_v52, %v20223_v51  ;;  %3336 = vrot.lane.b32.xlu0 %v3250_v25, %s19089_s13  ;;  %vm3188_vm3 = vcmp.ge.f32.partialorder %v3156_v45, 0.0  ;;  %v3220_v3 = vmul.f32 0.2, %v3156_v45 }
 0x21b   : > { %v2780_v28 = vpop.f32.mrf.mxu1  ;;  %v3159_v24 = vadd.f32 %v20245_v27, %v3120_v46  ;;  %v3254_v8 = vsel %vm3190_vm4, %v3158_v4, %v3222_v32  ;;  %v3081_v57 = vpop.f32.mrf.mxu0  ;;  %v4078_v47 = vsel %vm3582_vm2, %v20280_v14, 0  ;;  %v18941_v46 = vld [vmem:[%s24890_s3 + $0x18] sm:$0xff]   ;;  %v18943_v14 = vld [vmem:[%s24890_s3 + $0x24] sm:$0xff]  }
 0x21c   : > { %v3157_v17 = vadd.f32 %v20245_v27, %v3118_v33  ;;  %v2823_v37 = vadd.f32 %v2780_v28, %v2525_v43  ;;  %v3123_v39 = vadd.f32 %v17527_v1, %v2825_v2  ;;  %v3252_v26 = vsel %vm3188_vm3, %v3156_v45, %v3220_v3  ;;  %v20453_v2 = vld [vmem:[%s24890_s3 + $0x38] ss:$0 sps:$4 sm:$0xff]   ;;  %v20458_v3 = vld [vmem:[%s24890_s3 + $0x44] ss:$0 sps:$4 sm:$0xff]  }
 0x21d   : > { %v17494_v21 = vpop.f32.mrf.mxu1  ;;  %3338 = vrot.lane.b32.xlu1 %v3251_v10, %s19089_s13  ;;  %vm3191_vm7 = vcmp.ge.f32.partialorder %v3159_v24, 0.0 }
 0x21e   : > { %v3121_v51 = vadd.f32 %v3078_v44, %v2823_v37  ;;  %v2826_v30 = vadd.f32 %v17494_v21, %v20236_v54  ;;  %3340 = vrot.lane.b32.xlu0 %v3252_v26, %s19089_s13  ;;  %vm3189_vm5 = vcmp.ge.f32.partialorder %v3157_v17, 0.0  ;;  %v3221_v18 = vmul.f32 0.2, %v3157_v17 }
 0x21f   : > { %v2783_v48 = vpop.f32.mrf.mxu1  ;;  %v3162_v23 = vadd.f32 %v20245_v27, %v3123_v39  ;;  %v3223_v54 = vmul.f32 0.2, %v3159_v24  ;;  %v4383_v44 = vsel %vm3582_vm2, %v18942_v50, 0 }
 0x220   : > { %v3160_v49 = vadd.f32 %v20245_v27, %v3121_v51  ;;  %v3124_v7 = vadd.f32 %v17528_v60, %v2826_v30  ;;  %v2824_v0 = vadd.f32 %v2783_v48, %v2526_v20  ;;  %v3253_v9 = vsel %vm3189_vm5, %v3157_v17, %v3221_v18 }
 0x221   : > { %3342 = vrot.lane.b32.xlu1 %v3253_v9, %s19089_s13  ;;  %v3255_v58 = vsel %vm3191_vm7, %v3159_v24, %v3223_v54  ;;  %v3226_v41 = vmul.f32 0.2, %v3162_v23  ;;  %vm3194_vm10 = vcmp.ge.f32.partialorder %v3162_v23, 0.0 }
 0x222   : > { %v3163_v40 = vadd.f32 %v20245_v27, %v3124_v7  ;;  %v3122_v16 = vadd.f32 %v3081_v57, %v2824_v0  ;;  %3344 = vrot.lane.b32.xlu0 %v3254_v8, %s19089_s13  ;;  %vm3192_vm8 = vcmp.ge.f32.partialorder %v3160_v49, 0.0  ;;  %v3224_v29 = vmul.f32 0.2, %v3160_v49 }
 0x223   : > { %v3258_v35 = vsel %vm3194_vm10, %v3162_v23, %v3226_v41 }
 0x224   : > { %v3161_v31 = vadd.f32 %v20245_v27, %v3122_v16  ;;  %v3256_v53 = vsel %vm3192_vm8, %v3160_v49, %v3224_v29  ;;  %v3227_v5 = vmul.f32 0.2, %v3163_v40  ;;  %vm3195_vm11 = vcmp.ge.f32.partialorder %v3163_v40, 0.0 }
 0x225   : > { %3346 = vrot.lane.b32.xlu1 %v3255_v58, %s19089_s13 }
 0x226   : > { %3348 = vrot.lane.b32.xlu0 %v3256_v53, %s19089_s13  ;;  %vm3193_vm9 = vcmp.ge.f32.partialorder %v3161_v31, 0.0  ;;  %v3225_v36 = vmul.f32 0.2, %v3161_v31  ;;  %v3259_v27 = vsel %vm3195_vm11, %v3163_v40, %v3227_v5 }
 0x228   : > { %v3257_v13 = vsel %vm3193_vm9, %v3161_v31, %v3225_v36 }
 0x229   : > { %3350 = vrot.lane.b32.xlu1 %v3257_v13, %s19089_s13 }
 0x22a   : > { %3352 = vrot.lane.b32.xlu0 %v3258_v35, %s19089_s13 }
 0x22d   : > { %3354 = vrot.lane.b32.xlu1 %v3259_v27, %s19089_s13 }
 0x25e   : > { %v3297_v63 = vpop.permute.xlu1 %3296 }
 0x25f   : > { %3391 = vst.msk [vmem:[#allocation2 + $0x31] sm:$0xff] %vm3388_vm12, %v3297_v63 }
 0x260   : > { %v3293_v6 = vpop.permute.xlu0 %3292 }
 0x261   : > { %3389 = vst.msk [vmem:[#allocation2 + $0x19] sm:$0xff] %vm3388_vm12, %v3293_v6 }
 0x262   : > { %v3299_v62 = vpop.permute.xlu1 %3298 }
 0x263   : > { %3392 = vst.msk [vmem:[#allocation2 + $0x39] sm:$0xff] %vm3388_vm12, %v3299_v62 }
 0x264   : > { %v3295_v59 = vpop.permute.xlu0 %3294 }
 0x265   : > { %3390 = vst.msk [vmem:[#allocation2 + $0x21] sm:$0xff] %vm3388_vm12, %v3295_v59 }
 0x266   : > { %v3476_v61 = vld [vmem:[#allocation2 + $0x31] sm:$0xff] }
 0x267   : > { %v3425_v19 = vld [vmem:[#allocation2 + $0x30] sm:$0xff] }
 0x268   : > { %v3301_v15 = vpop.permute.xlu0 %3300  ;;  %v3474_v12 = vld [vmem:[#allocation2 + $0x19] sm:$0xff] }
 0x269   : > { %3393 = vst.msk [vmem:[#allocation2 + $0x49] sm:$0xff] %vm3388_vm12, %v3301_v15  ;;  %v3423_v34 = vld [vmem:[#allocation2 + $0x18] sm:$0xff] }
 0x26a   : > { %v3477_v55 = vld [vmem:[#allocation2 + $0x39] sm:$0xff] }
 0x26b   : > { %v3303_v11 = vpop.permute.xlu1 %3302  ;;  %v3426_v43 = vld [vmem:[#allocation2 + $0x38] sm:$0xff]  ;;  %v20432_v52 = vpack.c.bf16 %v3477_v55, %v3476_v61 }
 0x26c   : > { %v3305_v1 = vpop.permute.xlu0 %3304  ;;  %v3475_v38 = vld [vmem:[#allocation2 + $0x21] sm:$0xff]  ;;  %3394 = vst.msk [vmem:[#allocation2 + $0x51] sm:$0xff] %vm3388_vm12, %v3303_v11  ;;  %v20438_v25 = vpack.c.bf16 %v3426_v43, %v3425_v19 }
 0x26d   : > { %v3424_v42 = vld [vmem:[#allocation2 + $0x20] sm:$0xff]  ;;  %3395 = vst.msk [vmem:[#allocation2 + $0x61] sm:$0xff] %vm3388_vm12, %v3305_v1  ;;  %v20423_v4 = vpack.c.bf16 %v3475_v38, %v3474_v12 }
 0x26e   : > { %v20425_v45 = vpack.c.bf16 %v3424_v42, %v3423_v34 }
 0x26f   : > { %17534 = vmatmul.mubr.msk.bf16.vlgmr.msra.gmra.mxu1 %vm3533_vm6, %v20423_v4  ;;  %v3307_v56 = vpop.permute.xlu1 %3306 }
 0x270   : > { %17570 = vmatmul.mubr.msk.bf16.vlgmr.msra.gmra.mxu0 %vm3533_vm6, %v20425_v45  ;;  %17602 = vmatpush3.bf16.msra.mxu1 %v4078_v47  ;;  %v3309_v33 = vpop.permute.xlu0 %3308  ;;  %3396 = vst.msk [vmem:[#allocation2 + $0x69] sm:$0xff] %vm3388_vm12, %v3307_v56  ;;  %v3478_v28 = vld [vmem:[#allocation2 + $0x49] sm:$0xff] }
 0x271   : > { %17537 = vmatprep.mubr.msk.bf16.mxu1 %vm3533_vm6, %v20432_v52  ;;  %17573 = vmatprep.mubr.msk.bf16.mxu0 %vm3533_vm6, %v20438_v25  ;;  %3397 = vst.msk [vmem:[#allocation2 + $0x79] sm:$0xff] %vm3388_vm12, %v3309_v33  ;;  %v3427_v32 = vld [vmem:[#allocation2 + $0x48] sm:$0xff] }
 0x272   : > { %17603 = vmatprep.subr.bf16.mxu1 %v18941_v46  ;;  %17638 = vmatpush3.bf16.msra.mxu0 %v4383_v44 }
 0x273   : > { %17639 = vmatprep.subr.bf16.mxu0 %v18943_v14  ;;  %v3311_v17 = vpop.permute.xlu1 %3310  ;;  %v3479_v10 = vld [vmem:[#allocation2 + $0x51] sm:$0xff] }
 0x274   : > { %v3313_v37 = vpop.permute.xlu0 %3312  ;;  %v3428_v24 = vld [vmem:[#allocation2 + $0x50] sm:$0xff]  ;;  %17604 = vmatpush3.bf16.msra.mxu1 %v18941_v46  ;;  %3398 = vst.msk [vmem:[#allocation2 + $0x81] sm:$0xff] %vm3388_vm12, %v3311_v17  ;;  %v20462_v39 = vpack.c.bf16 %v3479_v10, %v3478_v28  ;;  %v3480_v21 = vld [vmem:[#allocation2 + $0x61] sm:$0xff] }
 0x275   : > { %3399 = vst.msk [vmem:[#allocation2 + $0x91] sm:$0xff] %vm3388_vm12, %v3313_v37  ;;  %v20464_v60 = vpack.c.bf16 %v3428_v24, %v3427_v32  ;;  %18867 = vmatprep.subr.msk.bf16.mxu1 %vm3582_vm2, %v20453_v2  ;;  %v3429_v22 = vld [vmem:[#allocation2 + $0x60] sm:$0xff] }
 0x276   : > { %17640 = vmatpush3.bf16.msra.mxu0 %v18943_v14 }
 0x277   : > { %17538 = vmatmul.mubr.msk.bf16.gmra.mxu1 %vm3533_vm6, %v20462_v39  ;;  %v3315_v26 = vpop.permute.xlu1 %3314  ;;  %v3481_v30 = vld [vmem:[#allocation2 + $0x69] sm:$0xff]  ;;  %18868 = vmatprep.subr.msk.bf16.mxu0 %vm3582_vm2, %v20458_v3 }
 0x278   : > { %17574 = vmatmul.mubr.msk.bf16.gmra.mxu0 %vm3533_vm6, %v20464_v60  ;;  %v3317_v51 = vpop.permute.xlu0 %3316  ;;  %v3430_v20 = vld [vmem:[#allocation2 + $0x68] sm:$0xff]  ;;  %3400 = vst.msk [vmem:[#allocation2 + $0x99] sm:$0xff] %vm3388_vm12, %v3315_v26  ;;  %v20476_v48 = vpack.c.bf16 %v3481_v30, %v3480_v21  ;;  %v3482_v49 = vld [vmem:[#allocation2 + $0x79] sm:$0xff] }
 0x279   : > { %3401 = vst.msk [vmem:[#allocation2 + $0xa9] sm:$0xff] %vm3388_vm12, %v3317_v51  ;;  %v20478_v18 = vpack.c.bf16 %v3430_v20, %v3429_v22  ;;  %v3431_v23 = vld [vmem:[#allocation2 + $0x78] sm:$0xff] }
 0x27a   : > { %17541 = vmatprep.mubr.msk.bf16.mxu1 %vm3533_vm6, %v20476_v48 }
 0x27b   : > { %17577 = vmatprep.mubr.msk.bf16.mxu0 %vm3533_vm6, %v20478_v18  ;;  %v3319_v7 = vpop.permute.xlu1 %3318  ;;  %v3483_v8 = vld [vmem:[#allocation2 + $0x81] sm:$0xff] }
 0x27c   : > { %v3321_v0 = vpop.permute.xlu0 %3320  ;;  %v3432_v57 = vld [vmem:[#allocation2 + $0x80] sm:$0xff]  ;;  %3402 = vst.msk [vmem:[#allocation2 + $0xb1] sm:$0xff] %vm3388_vm12, %v3319_v7  ;;  %v20486_v9 = vpack.c.bf16 %v3483_v8, %v3482_v49  ;;  %v3484_v40 = vld [vmem:[#allocation2 + $0x91] sm:$0xff] }
 0x27d   : > { %3403 = vst.msk [vmem:[#allocation2 + $0xc1] sm:$0xff] %vm3388_vm12, %v3321_v0  ;;  %v20488_v54 = vpack.c.bf16 %v3432_v57, %v3431_v23  ;;  %v3433_v53 = vld [vmem:[#allocation2 + $0x90] sm:$0xff] }
 0x27f   : > { %17542 = vmatmul.mubr.msk.bf16.gmra.mxu1 %vm3533_vm6, %v20486_v9  ;;  %v3323_v16 = vpop.permute.xlu1 %3322  ;;  %v3485_v31 = vld [vmem:[#allocation2 + $0x99] sm:$0xff] }
 0x280   : > { %17578 = vmatmul.mubr.msk.bf16.gmra.mxu0 %vm3533_vm6, %v20488_v54  ;;  %v3325_v29 = vpop.permute.xlu0 %3324  ;;  %v3434_v58 = vld [vmem:[#allocation2 + $0x98] sm:$0xff]  ;;  %3404 = vst.msk [vmem:[#allocation2 + $0xc9] sm:$0xff] %vm3388_vm12, %v3323_v16  ;;  %v20496_v41 = vpack.c.bf16 %v3485_v31, %v3484_v40  ;;  %v3486_v50 = vld [vmem:[#allocation2 + $0xa9] sm:$0xff] }
 0x281   : > { %3405 = vst.msk [vmem:[#allocation2 + $0xd9] sm:$0xff] %vm3388_vm12, %v3325_v29  ;;  %v20498_v36 = vpack.c.bf16 %v3434_v58, %v3433_v53  ;;  %v3435_v27 = vld [vmem:[#allocation2 + $0xa8] sm:$0xff] }
 0x282   : > { %17545 = vmatprep.mubr.msk.bf16.mxu1 %vm3533_vm6, %v20496_v41 }
 0x283   : > { %17581 = vmatprep.mubr.msk.bf16.mxu0 %vm3533_vm6, %v20498_v36  ;;  %v3327_v13 = vpop.permute.xlu1 %3326  ;;  %v3487_v5 = vld [vmem:[#allocation2 + $0xb1] sm:$0xff] }
 0x284   : > { %v3329_v35 = vpop.permute.xlu0 %3328  ;;  %v3436_v63 = vld [vmem:[#allocation2 + $0xb0] sm:$0xff]  ;;  %3406 = vst.msk [vmem:[#allocation2 + $0xe1] sm:$0xff] %vm3388_vm12, %v3327_v13  ;;  %v20506_v6 = vpack.c.bf16 %v3487_v5, %v3486_v50  ;;  %v3488_v59 = vld [vmem:[#allocation2 + $0xc1] sm:$0xff] }
 0x285   : > { %3407 = vst.msk [vmem:[#allocation2 + $0xf1] sm:$0xff] %vm3388_vm12, %v3329_v35  ;;  %v20508_v62 = vpack.c.bf16 %v3436_v63, %v3435_v27  ;;  %v3437_v55 = vld [vmem:[#allocation2 + $0xc0] sm:$0xff] }
 0x287   : > { %17546 = vmatmul.mubr.msk.bf16.gmra.mxu1 %vm3533_vm6, %v20506_v6  ;;  %v3331_v15 = vpop.permute.xlu1 %3330  ;;  %v3489_v34 = vld [vmem:[#allocation2 + $0xc9] sm:$0xff] }
 0x288   : > { %17582 = vmatmul.mubr.msk.bf16.gmra.mxu0 %vm3533_vm6, %v20508_v62  ;;  %v3333_v12 = vpop.permute.xlu0 %3332  ;;  %v3438_v11 = vld [vmem:[#allocation2 + $0xc8] sm:$0xff]  ;;  %3408 = vst.msk [vmem:[#allocation2 + $0xf9] sm:$0xff] %vm3388_vm12, %v3331_v15  ;;  %v20516_v1 = vpack.c.bf16 %v3489_v34, %v3488_v59  ;;  %v3490_v42 = vld [vmem:[#allocation2 + $0xd9] sm:$0xff] }
 0x289   : > { %3409 = vst.msk [vmem:[#allocation2 + $0x109] sm:$0xff] %vm3388_vm12, %v3333_v12  ;;  %v20518_v38 = vpack.c.bf16 %v3438_v11, %v3437_v55  ;;  %v3439_v46 = vld [vmem:[#allocation2 + $0xd8] sm:$0xff] }
 0x28a   : > { %17549 = vmatprep.mubr.msk.bf16.mxu1 %vm3533_vm6, %v20516_v1 }
 0x28b   : > { %17585 = vmatprep.mubr.msk.bf16.mxu0 %vm3533_vm6, %v20518_v38  ;;  %v3335_v43 = vpop.permute.xlu1 %3334  ;;  %v3491_v61 = vld [vmem:[#allocation2 + $0xe1] sm:$0xff] }
 0x28c   : > { %v3337_v47 = vpop.permute.xlu0 %3336  ;;  %v3440_v19 = vld [vmem:[#allocation2 + $0xe0] sm:$0xff]  ;;  %3410 = vst.msk [vmem:[#allocation2 + $0x111] sm:$0xff] %vm3388_vm12, %v3335_v43  ;;  %v20526_v44 = vpack.c.bf16 %v3491_v61, %v3490_v42  ;;  %v3492_v56 = vld [vmem:[#allocation2 + $0xf1] sm:$0xff] }
 0x28d   : > { %3411 = vst.msk [vmem:[#allocation2 + $0x121] sm:$0xff] %vm3388_vm12, %v3337_v47  ;;  %v20528_v14 = vpack.c.bf16 %v3440_v19, %v3439_v46  ;;  %v3441_v37 = vld [vmem:[#allocation2 + $0xf0] sm:$0xff]  ;;  %v3968_v43 = vld [vmem:[#allocation2 + $0x2] sm:$0xff] }
 0x28e   : > { %v3969_v47 = vld [vmem:[#allocation2 + $0xa] sm:$0xff] }
 0x28f   : > { %17550 = vmatmul.mubr.msk.bf16.gmra.mxu1 %vm3533_vm6, %v20526_v44  ;;  %v3339_v33 = vpop.permute.xlu1 %3338  ;;  %v3493_v17 = vld [vmem:[#allocation2 + $0xf9] sm:$0xff] }
 0x290   : > { %17586 = vmatmul.mubr.msk.bf16.gmra.mxu0 %vm3533_vm6, %v20528_v14  ;;  %v3341_v28 = vpop.permute.xlu0 %3340  ;;  %v3442_v10 = vld [vmem:[#allocation2 + $0xf8] sm:$0xff]  ;;  %3412 = vst.msk [vmem:[#allocation2 + $0x129] sm:$0xff] %vm3388_vm12, %v3339_v33  ;;  %v20536_v32 = vpack.c.bf16 %v3493_v17, %v3492_v56  ;;  %v3494_v21 = vld [vmem:[#allocation2 + $0x109] sm:$0xff]  ;;  %v4000_v33 = vpack.c.bf16 %v3969_v47, %v3968_v43 }
 0x291   : > { %3413 = vst.msk [vmem:[#allocation2 + $0x139] sm:$0xff] %vm3388_vm12, %v3341_v28  ;;  %v20538_v24 = vpack.c.bf16 %v3442_v10, %v3441_v37  ;;  %v3443_v22 = vld [vmem:[#allocation2 + $0x108] sm:$0xff]  ;;  %v3970_v37 = vld [vmem:[#allocation2 + $0x1a] sm:$0xff] }
 0x292   : > { %17553 = vmatprep.mubr.msk.bf16.mxu1 %vm3533_vm6, %v20536_v32  ;;  %v3971_v10 = vld [vmem:[#allocation2 + $0x22] sm:$0xff] }
 0x293   : > { %17589 = vmatprep.mubr.msk.bf16.mxu0 %vm3533_vm6, %v20538_v24  ;;  %v3343_v26 = vpop.permute.xlu1 %3342  ;;  %v3495_v30 = vld [vmem:[#allocation2 + $0x111] sm:$0xff] }
 0x294   : > { %v3345_v51 = vpop.permute.xlu0 %3344  ;;  %v3444_v20 = vld [vmem:[#allocation2 + $0x110] sm:$0xff]  ;;  %3414 = vst.msk [vmem:[#allocation2 + $0x141] sm:$0xff] %vm3388_vm12, %v3343_v26  ;;  %v20546_v49 = vpack.c.bf16 %v3495_v30, %v3494_v21  ;;  %v3496_v0 = vld [vmem:[#allocation2 + $0x121] sm:$0xff]  ;;  %v4688_v30 = vsel %vm3582_vm2, %v20453_v2, 0 }
 0x295   : > { %3415 = vst.msk [vmem:[#allocation2 + $0x151] sm:$0xff] %vm3388_vm12, %v3345_v51  ;;  %v20548_v7 = vpack.c.bf16 %v3444_v20, %v3443_v22  ;;  %v3445_v40 = vld [vmem:[#allocation2 + $0x120] sm:$0xff]  ;;  %v3972_v21 = vld [vmem:[#allocation2 + $0x32] sm:$0xff]  ;;  %v20594_v51 = vpack.c.bf16 %v3971_v10, %v3970_v37  ;;  %v20619_v2 = vld [vmem:[%s24890_s3 + $0x50] ss:$0 sps:$4 sm:$0xff]  }
 0x296   : > { %v3973_v26 = vld [vmem:[#allocation2 + $0x3a] sm:$0xff]  ;;  %v18945_v22 = vld [vmem:[%s24890_s3 + $0x30] sm:$0xff]  }
 0x297   : > { %17554 = vmatmul.mubr.msk.bf16.gmra.mxu1 %vm3533_vm6, %v20546_v49  ;;  %v3347_v8 = vpop.permute.xlu1 %3346  ;;  %v3497_v57 = vld [vmem:[#allocation2 + $0x129] sm:$0xff]  ;;  %v20601_v20 = vpack.c.bf16 %v3973_v26, %v3972_v21  ;;  %v3991_v21 = vld [vmem:[#allocation2 + $0x112] sm:$0xff] }
 0x298   : > { %17590 = vmatmul.mubr.msk.bf16.gmra.mxu0 %vm3533_vm6, %v20548_v7  ;;  %v3349_v23 = vpop.permute.xlu0 %3348  ;;  %v3446_v16 = vld [vmem:[#allocation2 + $0x128] sm:$0xff]  ;;  %3416 = vst.msk [vmem:[#allocation2 + $0x159] sm:$0xff] %vm3388_vm12, %v3347_v8  ;;  %v20556_v29 = vpack.c.bf16 %v3497_v57, %v3496_v0  ;;  %v3498_v53 = vld [vmem:[#allocation2 + $0x139] sm:$0xff] }
 0x299   : > { %3417 = vst.msk [vmem:[#allocation2 + $0x169] sm:$0xff] %vm3388_vm12, %v3349_v23  ;;  %v20558_v31 = vpack.c.bf16 %v3446_v16, %v3445_v40  ;;  %v3447_v35 = vld [vmem:[#allocation2 + $0x138] sm:$0xff]  ;;  %v3974_v8 = vld [vmem:[#allocation2 + $0x4a] sm:$0xff]  ;;  %v3992_v26 = vld [vmem:[#allocation2 + $0x122] sm:$0xff] }
 0x29a   : > { %17557 = vmatprep.mubr.msk.bf16.mxu1 %vm3533_vm6, %v20556_v29  ;;  %v18947_v0 = vld [vmem:[%s24890_s3 + $0x3c] sm:$0xff]   ;;  %v3975_v23 = vld [vmem:[#allocation2 + $0x52] sm:$0xff]  ;;  %v3977_v57 = vld [vmem:[#allocation2 + $0x6a] sm:$0xff] }
 0x29b   : > { %17593 = vmatprep.mubr.msk.bf16.mxu0 %vm3533_vm6, %v20558_v31  ;;  %v3351_v58 = vpop.permute.xlu1 %3350  ;;  %v3499_v13 = vld [vmem:[#allocation2 + $0x141] sm:$0xff]  ;;  %v20621_v40 = vpack.c.bf16 %v3975_v23, %v3974_v8  ;;  %v20628_v16 = vld [vmem:[%s24890_s3 + $0x5c] ss:$0 sps:$4 sm:$0xff]   ;;  %v3990_v10 = vld [vmem:[#allocation2 + $0x10a] sm:$0xff] }
 0x29c   : > { %v3353_v50 = vpop.permute.xlu0 %3352  ;;  %v3448_v5 = vld [vmem:[#allocation2 + $0x140] sm:$0xff]  ;;  %3418 = vst.msk [vmem:[#allocation2 + $0x171] sm:$0xff] %vm3388_vm12, %v3351_v58  ;;  %v20566_v27 = vpack.c.bf16 %v3499_v13, %v3498_v53  ;;  %v3500_v59 = vld [vmem:[#allocation2 + $0x151] sm:$0xff] }
 0x29d   : > { %3419 = vst.msk [vmem:[#allocation2 + $0x181] sm:$0xff] %vm3388_vm12, %v3353_v50  ;;  %v20568_v63 = vpack.c.bf16 %v3448_v5, %v3447_v35  ;;  %v3449_v34 = vld [vmem:[#allocation2 + $0x150] sm:$0xff]  ;;  %v3978_v58 = vld [vmem:[#allocation2 + $0x7a] sm:$0xff]  ;;  %v3979_v50 = vld [vmem:[#allocation2 + $0x82] sm:$0xff] }
 0x29e   : > { %v3980_v13 = vld [vmem:[#allocation2 + $0x92] sm:$0xff]  ;;  %v3981_v35 = vld [vmem:[#allocation2 + $0x9a] sm:$0xff]  ;;  %v20642_v5 = vpack.c.bf16 %v3979_v50, %v3978_v58  ;;  %v3995_v8 = vld [vmem:[#allocation2 + $0x142] sm:$0xff] }
 0x29f   : > { %17558 = vmatmul.mubr.msk.bf16.gmra.mxu1 %vm3533_vm6, %v20566_v27  ;;  %v3355_v15 = vpop.permute.xlu1 %3354  ;;  %v3501_v12 = vld [vmem:[#allocation2 + $0x159] sm:$0xff] }
 0x2a0   : > { %17594 = vmatmul.mubr.msk.bf16.gmra.mxu0 %vm3533_vm6, %v20568_v63  ;;  %v3450_v55 = vld [vmem:[#allocation2 + $0x158] sm:$0xff]  ;;  %3420 = vst.msk [vmem:[#allocation2 + $0x189] sm:$0xff] %vm3388_vm12, %v3355_v15  ;;  %v20575_v11 = vpack.c.bf16 %v3501_v12, %v3500_v59  ;;  %v3502_v61 = vld [vmem:[#allocation2 + $0x169] sm:$0xff]  ;;  %v20644_v59 = vpack.c.bf16 %v3981_v35, %v3980_v13 }
 0x2a1   : > { %v20577_v42 = vpack.c.bf16 %v3450_v55, %v3449_v34  ;;  %v3451_v19 = vld [vmem:[#allocation2 + $0x168] sm:$0xff]  ;;  %v3983_v12 = vld [vmem:[#allocation2 + $0xb2] sm:$0xff] }
 0x2a2   : > { %17561 = vmatprep.mubr.msk.bf16.mxu1 %vm3533_vm6, %v20575_v11  ;;  %v3982_v15 = vld [vmem:[#allocation2 + $0xaa] sm:$0xff]  ;;  %v3984_v34 = vld [vmem:[#allocation2 + $0xc2] sm:$0xff]  ;;  %v3996_v23 = vld [vmem:[#allocation2 + $0x152] sm:$0xff] }
 0x2a3   : > { %17597 = vmatprep.mubr.msk.bf16.mxu0 %vm3533_vm6, %v20577_v42  ;;  %v3503_v46 = vld [vmem:[#allocation2 + $0x171] sm:$0xff]  ;;  %v20654_v43 = vpack.c.bf16 %v3983_v12, %v3982_v15 }
 0x2a4   : > { %v3452_v56 = vld [vmem:[#allocation2 + $0x170] sm:$0xff]  ;;  %v20583_v28 = vpack.c.bf16 %v3503_v46, %v3502_v61  ;;  %v3986_v61 = vld [vmem:[#allocation2 + $0xda] sm:$0xff]  ;;  %v3987_v46 = vld [vmem:[#allocation2 + $0xe2] sm:$0xff] }
 0x2a5   : > { %v20585_v17 = vpack.c.bf16 %v3452_v56, %v3451_v19  ;;  %v3985_v55 = vld [vmem:[#allocation2 + $0xca] sm:$0xff]  ;;  %v3988_v19 = vld [vmem:[#allocation2 + $0xf2] sm:$0xff]  ;;  %v3989_v56 = vld [vmem:[#allocation2 + $0xfa] sm:$0xff] }
 0x2a6   : > { %v20656_v47 = vpack.c.bf16 %v3985_v55, %v3984_v34  ;;  %v20668_v37 = vpack.c.bf16 %v3989_v56, %v3988_v19  ;;  %v3998_v50 = vld [vmem:[#allocation2 + $0x16a] sm:$0xff]  ;;  %v3999_v13 = vld [vmem:[#allocation2 + $0x172] sm:$0xff]  ;;  %v4303_v15 = vld [vmem:[#allocation2 + $0x180] sm:$0xff]  ;;  %v5298_v55 = vsel %vm3582_vm2, %v20619_v2, 0 }
 0x2a7   : > { %17562 = vmatmul.mubr.msk.bf16.gmra.mxu1 %vm3533_vm6, %v20583_v28  ;;  %v4304_v35 = vld [vmem:[#allocation2 + $0x188] sm:$0xff]  ;;  %v4015_v12 = vpack.c.bf16 %v3999_v13, %v3998_v50  ;;  %v18953_v56 = vld [vmem:[%s24890_s3 + $0x60] sm:$0xff]  }
 0x2a8   : > { %17598 = vmatmul.mubr.msk.bf16.gmra.mxu0 %vm3533_vm6, %v20585_v17  ;;  %17605 = vmatprep.mubr.msk.bf16.mxu1 %vm3533_vm6, %v4000_v33  ;;  %v20666_v33 = vpack.c.bf16 %v3987_v46, %v3986_v61  ;;  %v20690_v34 = vpack.c.bf16 %v4304_v35, %v4303_v15  ;;  %v18949_v61 = vld [vmem:[%s24890_s3 + $0x48] sm:$0xff]   ;;  %v5603_v46 = vsel %vm3582_vm2, %v20628_v16, 0 }
 0x2a9   : > { %17641 = vmatprep.mubr.msk.bf16.mxu0 %vm3533_vm6, %v20425_v45  ;;  %v4993_v45 = vsel %vm3582_vm2, %v20458_v3, 0  ;;  %v3976_v3 = vld [vmem:[#allocation2 + $0x62] sm:$0xff] }
 0x2aa   : > { %v20630_v53 = vpack.c.bf16 %v3977_v57, %v3976_v3  ;;  %v3997_v3 = vld [vmem:[#allocation2 + $0x15a] sm:$0xff] }
 0x2ab   : > { %v4014_v58 = vpack.c.bf16 %v3997_v3, %v3996_v23 }
 0x2af   : > { %17606 = vmatmul.mubr.msk.bf16.vlgmr.msra.gmra.mxu1 %vm3533_vm6, %v20594_v51 }
 0x2b0   : > { %17642 = vmatmul.mubr.msk.bf16.vlgmr.msra.gmra.mxu0 %vm3533_vm6, %v20438_v25  ;;  %17674 = vmatpush3.bf16.msra.mxu1 %v4688_v30  ;;  %v3993_v30 = vld [vmem:[#allocation2 + $0x12a] sm:$0xff] }
 0x2b1   : > { %17609 = vmatprep.mubr.msk.bf16.mxu1 %vm3533_vm6, %v20601_v20  ;;  %17645 = vmatprep.mubr.msk.bf16.mxu0 %vm3533_vm6, %v20464_v60 }
 0x2b2   : > { %17675 = vmatprep.subr.bf16.mxu1 %v18945_v22  ;;  %17710 = vmatpush3.bf16.msra.mxu0 %v4993_v45  ;;  %v4012_v45 = vpack.c.bf16 %v3993_v30, %v3992_v26 }
 0x2b3   : > { %17711 = vmatprep.subr.bf16.mxu0 %v18947_v0 }
 0x2b4   : > { %17676 = vmatpush3.bf16.msra.mxu1 %v18945_v22  ;;  %v4011_v22 = vpack.c.bf16 %v3991_v21, %v3990_v10 }
 0x2b5   : > { %18869 = vmatprep.subr.msk.bf16.mxu1 %vm3582_vm2, %v20619_v2  ;;  %v4609_v2 = vld [vmem:[#allocation2 + $0x189] sm:$0xff] }
 0x2b6   : > { %17712 = vmatpush3.bf16.msra.mxu0 %v18947_v0  ;;  %v3994_v0 = vld [vmem:[#allocation2 + $0x13a] sm:$0xff] }
 0x2b7   : > { %17610 = vmatmul.mubr.msk.bf16.gmra.mxu1 %vm3533_vm6, %v20621_v40  ;;  %18870 = vmatprep.subr.msk.bf16.mxu0 %vm3582_vm2, %v20628_v16  ;;  %v4013_v57 = vpack.c.bf16 %v3995_v8, %v3994_v0  ;;  %v4913_v16 = vld [vmem:[#allocation2 + $0x182] sm:$0xff] }
 0x2b8   : > { %17646 = vmatmul.mubr.msk.bf16.gmra.mxu0 %vm3533_vm6, %v20478_v18  ;;  %17613 = vmatprep.mubr.msk.bf16.mxu1 %vm3533_vm6, %v20630_v53 }
 0x2b9   : > { %17649 = vmatprep.mubr.msk.bf16.mxu0 %vm3533_vm6, %v20488_v54 }
 0x2bf   : > { %17614 = vmatmul.mubr.msk.bf16.gmra.mxu1 %vm3533_vm6, %v20642_v5 }
 0x2c0   : > { %17650 = vmatmul.mubr.msk.bf16.gmra.mxu0 %vm3533_vm6, %v20498_v36  ;;  %17617 = vmatprep.mubr.msk.bf16.mxu1 %vm3533_vm6, %v20644_v59 }
 0x2c1   : > { %17653 = vmatprep.mubr.msk.bf16.mxu0 %vm3533_vm6, %v20508_v62 }
 0x2c7   : > { %17618 = vmatmul.mubr.msk.bf16.gmra.mxu1 %vm3533_vm6, %v20654_v43 }
 0x2c8   : > { %17654 = vmatmul.mubr.msk.bf16.gmra.mxu0 %vm3533_vm6, %v20518_v38  ;;  %17621 = vmatprep.mubr.msk.bf16.mxu1 %vm3533_vm6, %v20656_v47 }
 0x2c9   : > { %17657 = vmatprep.mubr.msk.bf16.mxu0 %vm3533_vm6, %v20528_v14 }
 0x2cf   : > { %17622 = vmatmul.mubr.msk.bf16.gmra.mxu1 %vm3533_vm6, %v20666_v33 }
 0x2d0   : > { %17658 = vmatmul.mubr.msk.bf16.gmra.mxu0 %vm3533_vm6, %v20538_v24  ;;  %17625 = vmatprep.mubr.msk.bf16.mxu1 %vm3533_vm6, %v20668_v37 }
 0x2d1   : > { %17661 = vmatprep.mubr.msk.bf16.mxu0 %vm3533_vm6, %v20548_v7 }
 0x2d7   : > { %17626 = vmatmul.mubr.msk.bf16.gmra.mxu1 %vm3533_vm6, %v4011_v22 }
 0x2d8   : > { %17662 = vmatmul.mubr.msk.bf16.gmra.mxu0 %vm3533_vm6, %v20558_v31  ;;  %17629 = vmatprep.mubr.msk.bf16.mxu1 %vm3533_vm6, %v4012_v45 }
 0x2d9   : > { %17665 = vmatprep.mubr.msk.bf16.mxu0 %vm3533_vm6, %v20568_v63 }
 0x2df   : > { %17630 = vmatmul.mubr.msk.bf16.gmra.mxu1 %vm3533_vm6, %v4013_v57 }
 0x2e0   : > { %17666 = vmatmul.mubr.msk.bf16.gmra.mxu0 %vm3533_vm6, %v20577_v42  ;;  %17633 = vmatprep.mubr.msk.bf16.mxu1 %vm3533_vm6, %v4014_v58 }
 0x2e1   : > { %17669 = vmatprep.mubr.msk.bf16.mxu0 %vm3533_vm6, %v20585_v17 }
 0x2e7   : > { %17634 = vmatmul.mubr.msk.bf16.gmra.mxu1 %vm3533_vm6, %v4015_v12 }
 0x2e8   : > { %17670 = vmatmul.mubr.msk.bf16.gmra.mxu0 %vm3533_vm6, %v20690_v34  ;;  %17677 = vmatprep.mubr.msk.bf16.mxu1 %vm3533_vm6, %v20423_v4  ;;  %v18951_v4 = vld [vmem:[%s24890_s3 + $0x54] sm:$0xff]  }
 0x2e9   : > { %17713 = vmatprep.mubr.msk.bf16.mxu0 %vm3533_vm6, %v20594_v51  ;;  %v18952_v51 = vld [vmem:[%s24890_s3 + $0x68] ss:$0 sps:$4 sm:$0xff]  }
 0x2ea   : > { %v5908_v19 = vsel %vm3582_vm2, %v18952_v51, 0 }
 0x2ef   : > { %17678 = vmatmul.mubr.msk.bf16.vlgmr.msra.gmra.mxu1 %vm3533_vm6, %v20432_v52 }
 0x2f0   : > { %17714 = vmatmul.mubr.msk.bf16.vlgmr.msra.gmra.mxu0 %vm3533_vm6, %v20601_v20  ;;  %17746 = vmatpush3.bf16.msra.mxu1 %v5298_v55 }
 0x2f1   : > { %17681 = vmatprep.mubr.msk.bf16.mxu1 %vm3533_vm6, %v20462_v39  ;;  %17717 = vmatprep.mubr.msk.bf16.mxu0 %vm3533_vm6, %v20621_v40 }
 0x2f2   : > { %17747 = vmatprep.subr.bf16.mxu1 %v18949_v61  ;;  %17782 = vmatpush3.bf16.msra.mxu0 %v5603_v46 }
 0x2f3   : > { %17783 = vmatprep.subr.bf16.mxu0 %v18951_v4 }
 0x2f4   : > { %17748 = vmatpush3.bf16.msra.mxu1 %v18949_v61 }
 0x2f5   : > { %18871 = vmatprep.subr.msk.bf16.mxu1 %vm3582_vm2, %v18952_v51 }
 0x2f6   : > { %17784 = vmatpush3.bf16.msra.mxu0 %v18951_v4 }
 0x2f7   : > { %17682 = vmatmul.mubr.msk.bf16.gmra.mxu1 %vm3533_vm6, %v20476_v48 }
 0x2f8   : > { %17718 = vmatmul.mubr.msk.bf16.gmra.mxu0 %vm3533_vm6, %v20630_v53  ;;  %17685 = vmatprep.mubr.msk.bf16.mxu1 %vm3533_vm6, %v20486_v9 }
 0x2f9   : > { %17721 = vmatprep.mubr.msk.bf16.mxu0 %vm3533_vm6, %v20642_v5  ;;  %v4914_v5 = vld [vmem:[#allocation2 + $0x18a] sm:$0xff] }
 0x2ff   : > { %17686 = vmatmul.mubr.msk.bf16.gmra.mxu1 %vm3533_vm6, %v20496_v41 }
 0x300   : > { %17722 = vmatmul.mubr.msk.bf16.gmra.mxu0 %vm3533_vm6, %v20644_v59  ;;  %17689 = vmatprep.mubr.msk.bf16.mxu1 %vm3533_vm6, %v20506_v6  ;;  %v4608_v59 = vld [vmem:[#allocation2 + $0x181] sm:$0xff] }
 0x301   : > { %17725 = vmatprep.mubr.msk.bf16.mxu0 %vm3533_vm6, %v20654_v43  ;;  %v20764_v43 = vpack.c.bf16 %v4609_v2, %v4608_v59 }
 0x307   : > { %17690 = vmatmul.mubr.msk.bf16.gmra.mxu1 %vm3533_vm6, %v20516_v1 }
 0x308   : > { %17726 = vmatmul.mubr.msk.bf16.gmra.mxu0 %vm3533_vm6, %v20656_v47  ;;  %17693 = vmatprep.mubr.msk.bf16.mxu1 %vm3533_vm6, %v20526_v44  ;;  %v20766_v47 = vpack.c.bf16 %v4914_v5, %v4913_v16 }
 0x309   : > { %17729 = vmatprep.mubr.msk.bf16.mxu0 %vm3533_vm6, %v20666_v33 }
 0x30f   : > { %17694 = vmatmul.mubr.msk.bf16.gmra.mxu1 %vm3533_vm6, %v20536_v32 }
 0x310   : > { %17730 = vmatmul.mubr.msk.bf16.gmra.mxu0 %vm3533_vm6, %v20668_v37  ;;  %17697 = vmatprep.mubr.msk.bf16.mxu1 %vm3533_vm6, %v20546_v49 }
 0x311   : > { %17733 = vmatprep.mubr.msk.bf16.mxu0 %vm3533_vm6, %v4011_v22 }
 0x317   : > { %17698 = vmatmul.mubr.msk.bf16.gmra.mxu1 %vm3533_vm6, %v20556_v29 }
 0x318   : > { %17734 = vmatmul.mubr.msk.bf16.gmra.mxu0 %vm3533_vm6, %v4012_v45  ;;  %17701 = vmatprep.mubr.msk.bf16.mxu1 %vm3533_vm6, %v20566_v27 }
 0x319   : > { %17737 = vmatprep.mubr.msk.bf16.mxu0 %vm3533_vm6, %v4013_v57 }
 0x31f   : > { %17702 = vmatmul.mubr.msk.bf16.gmra.mxu1 %vm3533_vm6, %v20575_v11 }
 0x320   : > { %17738 = vmatmul.mubr.msk.bf16.gmra.mxu0 %vm3533_vm6, %v4014_v58  ;;  %17705 = vmatprep.mubr.msk.bf16.mxu1 %vm3533_vm6, %v20583_v28 }
 0x321   : > { %17741 = vmatprep.mubr.msk.bf16.mxu0 %vm3533_vm6, %v4015_v12 }
 0x327   : > { %17706 = vmatmul.mubr.msk.bf16.gmra.mxu1 %vm3533_vm6, %v20764_v43 }
 0x328   : > { %17742 = vmatmul.mubr.msk.bf16.gmra.mxu0 %vm3533_vm6, %v20766_v47  ;;  %17749 = vmatprep.mubr.msk.bf16.mxu1 %vm3533_vm6, %v20438_v25 }
 0x329   : > { %17785 = vmatprep.mubr.msk.bf16.mxu0 %vm3533_vm6, %v20432_v52 }
 0x32f   : > { %v17535_v33 = vpop.f32.mrf.mxu1  ;;  %17750 = vmatmul.mubr.msk.bf16.vlgmr.msra.gmra.mxu1 %vm3533_vm6, %v20464_v60 }
 0x330   : > { %v17571_v37 = vpop.f32.mrf.mxu0  ;;  %17786 = vmatmul.mubr.msk.bf16.vlgmr.msra.gmra.mxu0 %vm3533_vm6, %v20462_v39  ;;  %17818 = vmatpush3.bf16.msra.mxu1 %v5908_v19 }
 0x331   : > { %v20784_v10 = vadd.f32 %v17571_v37, %v17535_v33  ;;  %17753 = vmatprep.mubr.msk.bf16.mxu1 %vm3533_vm6, %v20478_v18  ;;  %17789 = vmatprep.mubr.msk.bf16.mxu0 %vm3533_vm6, %v20476_v48  ;;  %v3620_v52 = vpop.f32.mrf.mxu1 }
 0x332   : > { %v3841_v25 = vpop.f32.mrf.mxu0  ;;  %17819 = vmatprep.subr.bf16.mxu1 %v18953_v56 }
 0x333   : > { %v20790_v21 = vadd.f32 %v3841_v25, %v3620_v52  ;;  %v17536_v26 = vpop.f32.mrf.mxu1 }
 0x334   : > { %v17572_v30 = vpop.f32.mrf.mxu0  ;;  %17820 = vmatpush3.bf16.msra.mxu1 %v18953_v56 }
 0x335   : > { %v20792_v60 = vadd.f32 %v17572_v30, %v17536_v26  ;;  %v3623_v39 = vpop.f32.mrf.mxu1 }
 0x336   : > { %v3844_v22 = vpop.f32.mrf.mxu0 }
 0x337   : > { %v20794_v45 = vadd.f32 %v3844_v22, %v3623_v39  ;;  %v17539_v0 = vpop.f32.mrf.mxu1  ;;  %17754 = vmatmul.mubr.msk.bf16.gmra.mxu1 %vm3533_vm6, %v20488_v54 }
 0x338   : > { %v17575_v8 = vpop.f32.mrf.mxu0  ;;  %17790 = vmatmul.mubr.msk.bf16.gmra.mxu0 %vm3533_vm6, %v20486_v9  ;;  %17757 = vmatprep.mubr.msk.bf16.mxu1 %vm3533_vm6, %v20498_v36 }
 0x339   : > { %v20800_v48 = vadd.f32 %v17575_v8, %v17539_v0  ;;  %17793 = vmatprep.mubr.msk.bf16.mxu0 %vm3533_vm6, %v20496_v41  ;;  %v3636_v18 = vpop.f32.mrf.mxu1 }
 0x33a   : > { %v3857_v23 = vpop.f32.mrf.mxu0 }
 0x33b   : > { %v20806_v3 = vadd.f32 %v3857_v23, %v3636_v18  ;;  %v17540_v57 = vpop.f32.mrf.mxu1 }
 0x33c   : > { %v17576_v58 = vpop.f32.mrf.mxu0 }
 0x33d   : > { %v20808_v50 = vadd.f32 %v17576_v58, %v17540_v57  ;;  %v3639_v54 = vpop.f32.mrf.mxu1 }
 0x33e   : > { %v3860_v13 = vpop.f32.mrf.mxu0 }
 0x33f   : > { %v20810_v35 = vadd.f32 %v3860_v13, %v3639_v54  ;;  %v17543_v9 = vpop.f32.mrf.mxu1  ;;  %17758 = vmatmul.mubr.msk.bf16.gmra.mxu1 %vm3533_vm6, %v20508_v62 }
 0x340   : > { %v17579_v15 = vpop.f32.mrf.mxu0  ;;  %17794 = vmatmul.mubr.msk.bf16.gmra.mxu0 %vm3533_vm6, %v20506_v6  ;;  %17761 = vmatprep.mubr.msk.bf16.mxu1 %vm3533_vm6, %v20518_v38 }
 0x341   : > { %v20816_v41 = vadd.f32 %v17579_v15, %v17543_v9  ;;  %17797 = vmatprep.mubr.msk.bf16.mxu0 %vm3533_vm6, %v20516_v1  ;;  %v3652_v36 = vpop.f32.mrf.mxu1 }
 0x342   : > { %v3873_v12 = vpop.f32.mrf.mxu0 }
 0x343   : > { %v20822_v55 = vadd.f32 %v3873_v12, %v3652_v36  ;;  %v17544_v61 = vpop.f32.mrf.mxu1  ;;  %v5219_v36 = vld [vmem:[#allocation2 + $0x1a0] sm:$0xff] }
 0x344   : > { %v17580_v46 = vpop.f32.mrf.mxu0  ;;  %v5523_v12 = vld [vmem:[#allocation2 + $0x199] sm:$0xff] }
 0x345   : > { %v20824_v4 = vadd.f32 %v17580_v46, %v17544_v61  ;;  %v3655_v62 = vpop.f32.mrf.mxu1  ;;  %v5524_v61 = vld [vmem:[#allocation2 + $0x1a1] sm:$0xff] }
 0x346   : > { %v3876_v51 = vpop.f32.mrf.mxu0 }
 0x347   : > { %v20826_v2 = vadd.f32 %v3876_v51, %v3655_v62  ;;  %v17547_v6 = vpop.f32.mrf.mxu1  ;;  %17762 = vmatmul.mubr.msk.bf16.gmra.mxu1 %vm3533_vm6, %v20528_v14 }
 0x348   : > { %v17583_v16 = vpop.f32.mrf.mxu0  ;;  %17798 = vmatmul.mubr.msk.bf16.gmra.mxu0 %vm3533_vm6, %v20526_v44  ;;  %17765 = vmatprep.mubr.msk.bf16.mxu1 %vm3533_vm6, %v20538_v24 }
 0x349   : > { %v20832_v1 = vadd.f32 %v17583_v16, %v17547_v6  ;;  %17801 = vmatprep.mubr.msk.bf16.mxu0 %vm3533_vm6, %v20536_v32  ;;  %v3668_v38 = vpop.f32.mrf.mxu1 }
 0x34a   : > { %v3889_v5 = vpop.f32.mrf.mxu0 }
 0x34b   : > { %v20838_v59 = vadd.f32 %v3889_v5, %v3668_v38  ;;  %v17548_v19 = vpop.f32.mrf.mxu1 }
 0x34c   : > { %v17584_v56 = vpop.f32.mrf.mxu0 }
 0x34d   : > { %v20840_v33 = vadd.f32 %v17584_v56, %v17548_v19  ;;  %v3671_v14 = vpop.f32.mrf.mxu1 }
 0x34e   : > { %v3892_v37 = vpop.f32.mrf.mxu0 }
 0x34f   : > { %v20842_v52 = vadd.f32 %v3892_v37, %v3671_v14  ;;  %v17551_v44 = vpop.f32.mrf.mxu1  ;;  %17766 = vmatmul.mubr.msk.bf16.gmra.mxu1 %vm3533_vm6, %v20548_v7 }
 0x350   : > { %v17587_v25 = vpop.f32.mrf.mxu0  ;;  %17802 = vmatmul.mubr.msk.bf16.gmra.mxu0 %vm3533_vm6, %v20546_v49  ;;  %17769 = vmatprep.mubr.msk.bf16.mxu1 %vm3533_vm6, %v20558_v31 }
 0x351   : > { %v20848_v32 = vadd.f32 %v17587_v25, %v17551_v44  ;;  %17805 = vmatprep.mubr.msk.bf16.mxu0 %vm3533_vm6, %v20556_v29  ;;  %v3684_v24 = vpop.f32.mrf.mxu1 }
 0x352   : > { %v3905_v26 = vpop.f32.mrf.mxu0 }
 0x353   : > { %v20854_v30 = vadd.f32 %v3905_v26, %v3684_v24  ;;  %v17552_v39 = vpop.f32.mrf.mxu1 }
 0x354   : > { %v17588_v22 = vpop.f32.mrf.mxu0 }
 0x355   : > { %v20856_v0 = vadd.f32 %v17588_v22, %v17552_v39  ;;  %v20858_v7 = vpop.f32.mrf.mxu1 }
 0x356   : > { %v20860_v8 = vpop.f32.mrf.mxu0 }
 0x357   : > { %v17555_v49 = vpop.f32.mrf.mxu1  ;;  %17770 = vmatmul.mubr.msk.bf16.gmra.mxu1 %vm3533_vm6, %v20568_v63 }
 0x358   : > { %v17591_v18 = vpop.f32.mrf.mxu0  ;;  %17806 = vmatmul.mubr.msk.bf16.gmra.mxu0 %vm3533_vm6, %v20566_v27  ;;  %17773 = vmatprep.mubr.msk.bf16.mxu1 %vm3533_vm6, %v20577_v42 }
 0x359   : > { %v20866_v29 = vadd.f32 %v17591_v18, %v17555_v49  ;;  %17809 = vmatprep.mubr.msk.bf16.mxu0 %vm3533_vm6, %v20575_v11  ;;  %v3700_v31 = vpop.f32.mrf.mxu1  ;;  %v5218_v11 = vld [vmem:[#allocation2 + $0x198] sm:$0xff] }
 0x35a   : > { %v3921_v23 = vpop.f32.mrf.mxu0  ;;  %v5235_v16 = vpack.c.bf16 %v5219_v36, %v5218_v11 }
 0x35b   : > { %v20872_v57 = vadd.f32 %v3921_v23, %v3700_v31  ;;  %v17556_v58 = vpop.f32.mrf.mxu1 }
 0x35c   : > { %v17592_v54 = vpop.f32.mrf.mxu0 }
 0x35d   : > { %v20874_v13 = vadd.f32 %v17592_v54, %v17556_v58  ;;  %v20876_v63 = vpop.f32.mrf.mxu1 }
 0x35e   : > { %v20878_v9 = vpop.f32.mrf.mxu0 }
 0x35f   : > { %v17559_v27 = vpop.f32.mrf.mxu1  ;;  %17774 = vmatmul.mubr.msk.bf16.gmra.mxu1 %vm3533_vm6, %v20585_v17 }
 0x360   : > { %v17595_v15 = vpop.f32.mrf.mxu0  ;;  %17810 = vmatmul.mubr.msk.bf16.gmra.mxu0 %vm3533_vm6, %v20583_v28  ;;  %17777 = vmatprep.mubr.msk.bf16.mxu1 %vm3533_vm6, %v20690_v34  ;;  %v5540_v28 = vpack.c.bf16 %v5524_v61, %v5523_v12  ;;  %v5806_v12 = vld [vmem:[#allocation2 + $0x92] sm:$0xff]  ;;  %v5807_v61 = vld [vmem:[#allocation2 + $0x9a] sm:$0xff] }
 0x361   : > { %v20884_v42 = vadd.f32 %v17595_v15, %v17559_v27  ;;  %17813 = vmatprep.mubr.msk.bf16.mxu0 %vm3533_vm6, %v20764_v43  ;;  %v3716_v46 = vpop.f32.mrf.mxu1  ;;  %v5804_v27 = vld [vmem:[#allocation2 + $0x7a] sm:$0xff]  ;;  %v5805_v15 = vld [vmem:[#allocation2 + $0x82] sm:$0xff] }
 0x362   : > { %v3937_v62 = vpop.f32.mrf.mxu0 }
 0x363   : > { %v20890_v51 = vadd.f32 %v3937_v62, %v3716_v46  ;;  %v17560_v17 = vpop.f32.mrf.mxu1 }
 0x364   : > { %v17596_v6 = vpop.f32.mrf.mxu0 }
 0x365   : > { %v20892_v38 = vadd.f32 %v17596_v6, %v17560_v17  ;;  %v20894_v5 = vpop.f32.mrf.mxu1 }
 0x366   : > { %v20896_v19 = vpop.f32.mrf.mxu0 }
 0x367   : > { %v17563_v34 = vpop.f32.mrf.mxu1  ;;  %17778 = vmatmul.mubr.msk.bf16.gmra.mxu1 %vm3533_vm6, %v5235_v16 }
 0x368   : > { %v17599_v56 = vpop.f32.mrf.mxu0  ;;  %17814 = vmatmul.mubr.msk.bf16.gmra.mxu0 %vm3533_vm6, %v5540_v28  ;;  %17821 = vmatprep.mubr.msk.bf16.mxu1 %vm3533_vm6, %v20601_v20 }
 0x369   : > { %v20900_v43 = vadd.f32 %v17599_v56, %v17563_v34  ;;  %v3732_v14 = vpop.f32.mrf.mxu1 }
 0x36a   : > { %v3953_v37 = vpop.f32.mrf.mxu0 }
 0x36b   : > { %v20904_v44 = vadd.f32 %v3953_v37, %v3732_v14  ;;  %v17564_v25 = vpop.f32.mrf.mxu1 }
 0x36c   : > { %v17600_v24 = vpop.f32.mrf.mxu0 }
 0x36d   : > { %v20906_v26 = vadd.f32 %v17600_v24, %v17564_v25  ;;  %v20908_v39 = vpop.f32.mrf.mxu1  ;;  %v5808_v25 = vld [vmem:[#allocation2 + $0xaa] sm:$0xff]  ;;  %v5809_v24 = vld [vmem:[#allocation2 + $0xb2] sm:$0xff] }
 0x36e   : > { %v20910_v22 = vpop.f32.mrf.mxu0 }
 0x36f   : > { %v17607_v49 = vpop.f32.mrf.mxu1  ;;  %17822 = vmatmul.mubr.msk.bf16.vlgmr.msra.gmra.mxu1 %vm3533_vm6, %v20621_v40 }
 0x370   : > { %v17643_v18 = vpop.f32.mrf.mxu0  ;;  %v4243_v31 = vadd.f32 %v17607_v49, %v20784_v10  ;;  %17825 = vmatprep.mubr.msk.bf16.mxu1 %vm3533_vm6, %v20630_v53  ;;  %v5833_v53 = vpack.c.bf16 %v5805_v15, %v5804_v27  ;;  %v5835_v27 = vpack.c.bf16 %v5809_v24, %v5808_v25 }
 0x371   : > { %v4114_v20 = vpop.f32.mrf.mxu1 }
 0x372   : > { %v4419_v23 = vpop.f32.mrf.mxu0  ;;  %v20917_v58 = vadd.f32 %v17643_v18, %v4243_v31  ;;  %v4241_v54 = vadd.f32 %v4114_v20, %v20790_v21  ;;  %v5834_v21 = vpack.c.bf16 %v5807_v61, %v5806_v12  ;;  %v5810_v18 = vld [vmem:[#allocation2 + $0xc2] sm:$0xff]  ;;  %v5811_v31 = vld [vmem:[#allocation2 + $0xca] sm:$0xff] }
 0x373   : > { %v17608_v11 = vpop.f32.mrf.mxu1 }
 0x374   : > { %v17644_v36 = vpop.f32.mrf.mxu0  ;;  %v20920_v46 = vadd.f32 %v4419_v23, %v4241_v54  ;;  %v4244_v40 = vadd.f32 %v17608_v11, %v20792_v60 }
 0x375   : > { %v4117_v10 = vpop.f32.mrf.mxu1 }
 0x376   : > { %v20923_v62 = vpop.f32.mrf.mxu0  ;;  %v20925_v17 = vadd.f32 %v17644_v36, %v4244_v40  ;;  %v20928_v6 = vadd.f32 %v4117_v10, %v20794_v45 }
 0x377   : > { %v17611_v16 = vpop.f32.mrf.mxu1  ;;  %17826 = vmatmul.mubr.msk.bf16.gmra.mxu1 %vm3533_vm6, %v5833_v53 }
 0x378   : > { %v17647_v28 = vpop.f32.mrf.mxu0  ;;  %v4247_v34 = vadd.f32 %v17611_v16, %v20800_v48  ;;  %17829 = vmatprep.mubr.msk.bf16.mxu1 %vm3533_vm6, %v5834_v21  ;;  %v5812_v21 = vld [vmem:[#allocation2 + $0xda] sm:$0xff]  ;;  %v5813_v16 = vld [vmem:[#allocation2 + $0xe2] sm:$0xff] }
 0x379   : > { %v4130_v56 = vpop.f32.mrf.mxu1  ;;  %v5837_v24 = vpack.c.bf16 %v5813_v16, %v5812_v21 }
 0x37a   : > { %v4435_v60 = vpop.f32.mrf.mxu0  ;;  %v20933_v14 = vadd.f32 %v17647_v28, %v4247_v34  ;;  %v4245_v37 = vadd.f32 %v4130_v56, %v20806_v3  ;;  %v5836_v3 = vpack.c.bf16 %v5811_v31, %v5810_v18  ;;  %v5814_v34 = vld [vmem:[#allocation2 + $0xf2] sm:$0xff]  ;;  %v5815_v56 = vld [vmem:[#allocation2 + $0xfa] sm:$0xff] }
 0x37b   : > { %v17612_v49 = vpop.f32.mrf.mxu1 }
 0x37c   : > { %v17648_v45 = vpop.f32.mrf.mxu0  ;;  %v20936_v20 = vadd.f32 %v4435_v60, %v4245_v37  ;;  %v4248_v23 = vadd.f32 %v17612_v49, %v20808_v50 }
 0x37d   : > { %v4133_v54 = vpop.f32.mrf.mxu1 }
 0x37e   : > { %v20939_v48 = vpop.f32.mrf.mxu0  ;;  %v20941_v15 = vadd.f32 %v17648_v45, %v4248_v23  ;;  %v20944_v11 = vadd.f32 %v4133_v54, %v20810_v35 }
 0x37f   : > { %v17615_v36 = vpop.f32.mrf.mxu1  ;;  %17830 = vmatmul.mubr.msk.bf16.gmra.mxu1 %vm3533_vm6, %v5835_v27 }
 0x380   : > { %v17651_v12 = vpop.f32.mrf.mxu0  ;;  %v4251_v61 = vadd.f32 %v17615_v36, %v20816_v41  ;;  %17833 = vmatprep.mubr.msk.bf16.mxu1 %vm3533_vm6, %v5836_v3  ;;  %v5816_v36 = vld [vmem:[#allocation2 + $0x10a] sm:$0xff] }
 0x381   : > { %v4146_v40 = vpop.f32.mrf.mxu1 }
 0x382   : > { %v4451_v50 = vpop.f32.mrf.mxu0  ;;  %v20949_v10 = vadd.f32 %v17651_v12, %v4251_v61  ;;  %v4249_v53 = vadd.f32 %v4146_v40, %v20822_v55  ;;  %v5838_v55 = vpack.c.bf16 %v5815_v56, %v5814_v34  ;;  %v5817_v12 = vld [vmem:[#allocation2 + $0x112] sm:$0xff]  ;;  %v5818_v40 = vld [vmem:[#allocation2 + $0x122] sm:$0xff] }
 0x383   : > { %v17616_v28 = vpop.f32.mrf.mxu1 }
 0x384   : > { %v17652_v35 = vpop.f32.mrf.mxu0  ;;  %v20952_v60 = vadd.f32 %v4451_v50, %v4249_v53  ;;  %v4252_v37 = vadd.f32 %v17616_v28, %v20824_v4  ;;  %v5819_v50 = vld [vmem:[#allocation2 + $0x12a] sm:$0xff]  ;;  %v5839_v28 = vpack.c.bf16 %v5817_v12, %v5816_v36 }
 0x385   : > { %v4149_v25 = vpop.f32.mrf.mxu1 }
 0x386   : > { %v20955_v41 = vpop.f32.mrf.mxu0  ;;  %v20957_v49 = vadd.f32 %v17652_v35, %v4252_v37  ;;  %v20960_v45 = vadd.f32 %v4149_v25, %v20826_v2 }
 0x387   : > { %v17619_v18 = vpop.f32.mrf.mxu1  ;;  %17834 = vmatmul.mubr.msk.bf16.gmra.mxu1 %vm3533_vm6, %v5837_v24 }
 0x388   : > { %v17655_v31 = vpop.f32.mrf.mxu0  ;;  %v4255_v23 = vadd.f32 %v17619_v18, %v20832_v1  ;;  %17837 = vmatprep.mubr.msk.bf16.mxu1 %vm3533_vm6, %v5838_v55 }
 0x389   : > { %v4162_v54 = vpop.f32.mrf.mxu1 }
 0x38a   : > { %v4467_v4 = vpop.f32.mrf.mxu0  ;;  %v20965_v27 = vadd.f32 %v17655_v31, %v4255_v23  ;;  %v4253_v3 = vadd.f32 %v4162_v54, %v20838_v59  ;;  %v5840_v59 = vpack.c.bf16 %v5819_v50, %v5818_v40  ;;  %v5820_v31 = vld [vmem:[#allocation2 + $0x13a] sm:$0xff]  ;;  %v5821_v23 = vld [vmem:[#allocation2 + $0x142] sm:$0xff] }
 0x38b   : > { %v17620_v61 = vpop.f32.mrf.mxu1 }
 0x38c   : > { %v17656_v2 = vpop.f32.mrf.mxu0  ;;  %v20968_v53 = vadd.f32 %v4467_v4, %v4253_v3  ;;  %v4256_v21 = vadd.f32 %v17620_v61, %v20840_v33  ;;  %v5822_v4 = vld [vmem:[#allocation2 + $0x152] sm:$0xff]  ;;  %v5823_v3 = vld [vmem:[#allocation2 + $0x15a] sm:$0xff] }
 0x38d   : > { %v4165_v16 = vpop.f32.mrf.mxu1  ;;  %v5842_v50 = vpack.c.bf16 %v5823_v3, %v5822_v4 }
 0x38e   : > { %v20971_v1 = vpop.f32.mrf.mxu0  ;;  %v20973_v35 = vadd.f32 %v17656_v2, %v4256_v21  ;;  %v20976_v34 = vadd.f32 %v4165_v16, %v20842_v52  ;;  %v5841_v2 = vpack.c.bf16 %v5821_v23, %v5820_v31 }
 0x38f   : > { %v17623_v56 = vpop.f32.mrf.mxu1  ;;  %17838 = vmatmul.mubr.msk.bf16.gmra.mxu1 %vm3533_vm6, %v5839_v28 }
 0x390   : > { %v17659_v37 = vpop.f32.mrf.mxu0  ;;  %v4259_v25 = vadd.f32 %v17623_v56, %v20848_v32  ;;  %17841 = vmatprep.mubr.msk.bf16.mxu1 %vm3533_vm6, %v5840_v59 }
 0x391   : > { %v4178_v24 = vpop.f32.mrf.mxu1 }
 0x392   : > { %v4483_v33 = vpop.f32.mrf.mxu0  ;;  %v20981_v55 = vadd.f32 %v17659_v37, %v4259_v25  ;;  %v4257_v18 = vadd.f32 %v4178_v24, %v20854_v30  ;;  %v5824_v37 = vld [vmem:[#allocation2 + $0x16a] sm:$0xff]  ;;  %v5825_v25 = vld [vmem:[#allocation2 + $0x172] sm:$0xff] }
 0x393   : > { %v17624_v54 = vpop.f32.mrf.mxu1 }
 0x394   : > { %v17660_v52 = vpop.f32.mrf.mxu0  ;;  %v20984_v36 = vadd.f32 %v4483_v33, %v4257_v18  ;;  %v4260_v12 = vadd.f32 %v17624_v54, %v20856_v0 }
 0x395   : > { %v20987_v61 = vpop.f32.mrf.mxu1 }
 0x396   : > { %v20989_v32 = vpop.f32.mrf.mxu0  ;;  %v20991_v40 = vadd.f32 %v17660_v52, %v4260_v12  ;;  %v5828_v12 = vld [vmem:[#allocation2 + $0x19a] sm:$0xff] }
 0x397   : > { %v17627_v21 = vpop.f32.mrf.mxu1  ;;  %17842 = vmatmul.mubr.msk.bf16.gmra.mxu1 %vm3533_vm6, %v5841_v2  ;;  %v5829_v2 = vld [vmem:[#allocation2 + $0x1a2] sm:$0xff] }
 0x398   : > { %v17663_v30 = vpop.f32.mrf.mxu0  ;;  %v4263_v16 = vadd.f32 %v17627_v21, %v20866_v29  ;;  %17845 = vmatprep.mubr.msk.bf16.mxu1 %vm3533_vm6, %v5842_v50  ;;  %v5843_v29 = vpack.c.bf16 %v5825_v25, %v5824_v37 }
 0x399   : > { %v4194_v28 = vpop.f32.mrf.mxu1 }
 0x39a   : > { %v4499_v59 = vpop.f32.mrf.mxu0  ;;  %v20996_v56 = vadd.f32 %v17663_v30, %v4263_v16  ;;  %v4261_v0 = vadd.f32 %v4194_v28, %v20872_v57 }
 0x39b   : > { %v17628_v24 = vpop.f32.mrf.mxu1 }
 0x39c   : > { %v17664_v33 = vpop.f32.mrf.mxu0  ;;  %v20999_v18 = vadd.f32 %v4499_v59, %v4261_v0  ;;  %v4264_v31 = vadd.f32 %v17628_v24, %v20874_v13  ;;  %v5845_v59 = vpack.c.bf16 %v5829_v2, %v5828_v12 }
 0x39d   : > { %v21002_v23 = vpop.f32.mrf.mxu1 }
 0x39e   : > { %v21004_v54 = vpop.f32.mrf.mxu0  ;;  %v21006_v52 = vadd.f32 %v17664_v33, %v4264_v31 }
 0x39f   : > { %v17631_v4 = vpop.f32.mrf.mxu1  ;;  %17846 = vmatmul.mubr.msk.bf16.gmra.mxu1 %vm3533_vm6, %v5843_v29 }
 0x3a0   : > { %v17667_v3 = vpop.f32.mrf.mxu0  ;;  %v4267_v57 = vadd.f32 %v17631_v4, %v20884_v42  ;;  %17849 = vmatprep.mubr.msk.bf16.mxu1 %vm3533_vm6, %v20766_v47 }
 0x3a1   : > { %v4210_v50 = vpop.f32.mrf.mxu1 }
 0x3a2   : > { %v4515_v13 = vpop.f32.mrf.mxu0  ;;  %v21012_v21 = vadd.f32 %v17667_v3, %v4267_v57  ;;  %v4265_v30 = vadd.f32 %v4210_v50, %v20890_v51 }
 0x3a3   : > { %v17632_v16 = vpop.f32.mrf.mxu1 }
 0x3a4   : > { %v17668_v28 = vpop.f32.mrf.mxu0  ;;  %v21015_v0 = vadd.f32 %v4515_v13, %v4265_v30  ;;  %v4268_v37 = vadd.f32 %v17632_v16, %v20892_v38 }
 0x3a5   : > { %v21018_v25 = vpop.f32.mrf.mxu1 }
 0x3a6   : > { %25045 = vst [vmem:[#allocation60_spill] sm:$0xff] %v21018_v25  ;;  %v21020_v42 = vpop.f32.mrf.mxu0  ;;  %v21022_v47 = vadd.f32 %v17668_v28, %v4268_v37 }
 0x3a7   : > { %25046 = vst [vmem:[#allocation59_spill] sm:$0xff] %v21020_v42  ;;  %v17635_v24 = vpop.f32.mrf.mxu1  ;;  %17850 = vmatmul.mubr.msk.bf16.gmra.mxu1 %vm3533_vm6, %v5845_v59 }
 0x3a8   : > { %v17671_v33 = vpop.f32.mrf.mxu0  ;;  %v4271_v31 = vadd.f32 %v17635_v24, %v20900_v43 }
 0x3a9   : > { %v4226_v51 = vpop.f32.mrf.mxu1 }
 0x3aa   : > { %v4531_v29 = vpop.f32.mrf.mxu0  ;;  %v21026_v4 = vadd.f32 %v17671_v33, %v4271_v31  ;;  %v4269_v3 = vadd.f32 %v4226_v51, %v20904_v44 }
 0x3ab   : > { %v17636_v57 = vpop.f32.mrf.mxu1 }
 0x3ac   : > { %v17672_v38 = vpop.f32.mrf.mxu0  ;;  %v21029_v12 = vadd.f32 %v4531_v29, %v4269_v3  ;;  %v4272_v2 = vadd.f32 %v17636_v57, %v20906_v26 }
 0x3ad   : > { %v21032_v50 = vpop.f32.mrf.mxu1 }
 0x3ae   : > { %25047 = vst [vmem:[#allocation38_spill] sm:$0xff] %v21032_v50  ;;  %v21034_v13 = vpop.f32.mrf.mxu0  ;;  %v21036_v30 = vadd.f32 %v17672_v38, %v4272_v2 }
 0x3af   : > { %25048 = vst [vmem:[#allocation42_spill] sm:$0xff] %v21034_v13  ;;  %v17679_v16 = vpop.f32.mrf.mxu1 }
 0x3b0   : > { %v17715_v43 = vpop.f32.mrf.mxu0  ;;  %v4853_v28 = vadd.f32 %v17679_v16, %v20917_v58 }
 0x3b1   : > { %v4724_v59 = vpop.f32.mrf.mxu1 }
 0x3b2   : > { %v21039_v37 = vpop.f32.mrf.mxu0  ;;  %v21041_v44 = vadd.f32 %v17715_v43, %v4853_v28  ;;  %v21044_v24 = vadd.f32 %v4724_v59, %v20920_v46 }
 0x3b3   : > { %v17680_v33 = vpop.f32.mrf.mxu1 }
 0x3b4   : > { %v17716_v26 = vpop.f32.mrf.mxu0  ;;  %v4854_v31 = vadd.f32 %v17680_v33, %v20925_v17 }
 0x3b5   : > { %v21047_v51 = vpop.f32.mrf.mxu1 }
 0x3b6   : > { %v21049_v29 = vpop.f32.mrf.mxu0  ;;  %v21051_v3 = vadd.f32 %v17716_v26, %v4854_v31 }
 0x3b7   : > { %v17683_v57 = vpop.f32.mrf.mxu1 }
 0x3b8   : > { %v17719_v58 = vpop.f32.mrf.mxu0  ;;  %v4857_v38 = vadd.f32 %v17683_v57, %v20933_v14 }
 0x3b9   : > { %v4740_v2 = vpop.f32.mrf.mxu1 }
 0x3ba   : > { %v21054_v16 = vpop.f32.mrf.mxu0  ;;  %v21056_v43 = vadd.f32 %v17719_v58, %v4857_v38  ;;  %v21059_v46 = vadd.f32 %v4740_v2, %v20936_v20 }
 0x3bb   : > { %v17684_v28 = vpop.f32.mrf.mxu1 }
 0x3bc   : > { %v17720_v17 = vpop.f32.mrf.mxu0  ;;  %v4858_v59 = vadd.f32 %v17684_v28, %v20941_v15 }
 0x3bd   : > { %v21062_v33 = vpop.f32.mrf.mxu1 }
 0x3be   : > { %v21064_v26 = vpop.f32.mrf.mxu0  ;;  %v21066_v31 = vadd.f32 %v17720_v17, %v4858_v59 }
 0x3bf   : > { %v17687_v13 = vpop.f32.mrf.mxu1 }
 0x3c0   : > { %v17723_v14 = vpop.f32.mrf.mxu0  ;;  %v4861_v57 = vadd.f32 %v17687_v13, %v20949_v10 }
 0x3c1   : > { %v4756_v50 = vpop.f32.mrf.mxu1 }
 0x3c2   : > { %v21069_v58 = vpop.f32.mrf.mxu0  ;;  %v21071_v38 = vadd.f32 %v17723_v14, %v4861_v57  ;;  %v21074_v20 = vadd.f32 %v4756_v50, %v20952_v60 }
 0x3c3   : > { %25049 = vst [vmem:[#allocation49_spill] sm:$0xff] %v21069_v58  ;;  %v17688_v2 = vpop.f32.mrf.mxu1 }
 0x3c4   : > { %v17724_v15 = vpop.f32.mrf.mxu0  ;;  %v4862_v28 = vadd.f32 %v17688_v2, %v20957_v49 }
 0x3c5   : > { %v21077_v42 = vpop.f32.mrf.mxu1 }
 0x3c6   : > { %25050 = vst [vmem:[#allocation61_spill] sm:$0xff] %v21077_v42  ;;  %v21079_v17 = vpop.f32.mrf.mxu0  ;;  %v21081_v59 = vadd.f32 %v17724_v15, %v4862_v28 }
 0x3c7   : > { %25051 = vst [vmem:[#allocation62_spill] sm:$0xff] %v21079_v17  ;;  %v17691_v25 = vpop.f32.mrf.mxu1 }
 0x3c8   : > { %v17727_v10 = vpop.f32.mrf.mxu0  ;;  %v4865_v13 = vadd.f32 %v17691_v25, %v20965_v27 }
 0x3c9   : > { %v4772_v58 = vpop.f32.mrf.mxu1 }
 0x3ca   : > { %v21084_v14 = vpop.f32.mrf.mxu0  ;;  %v21086_v57 = vadd.f32 %v17727_v10, %v4865_v13  ;;  %v21089_v60 = vadd.f32 %v4772_v58, %v20968_v53 }
 0x3cb   : > { %25052 = vst [vmem:[#allocation41_spill] sm:$0xff] %v21084_v14  ;;  %v17692_v50 = vpop.f32.mrf.mxu1 }
 0x3cc   : > { %25053 = vst [vmem:[#allocation47_spill] sm:$0xff] %v21089_v60  ;;  %v17728_v49 = vpop.f32.mrf.mxu0  ;;  %v4866_v2 = vadd.f32 %v17692_v50, %v20973_v35 }
 0x3cd   : > { %v21092_v42 = vpop.f32.mrf.mxu1 }
 0x3ce   : > { %25054 = vst [vmem:[#allocation63_spill] sm:$0xff] %v21092_v42  ;;  %v21094_v15 = vpop.f32.mrf.mxu0  ;;  %v21096_v28 = vadd.f32 %v17728_v49, %v4866_v2 }
 0x3cf   : > { %25055 = vst [vmem:[#allocation48_spill] sm:$0xff] %v21094_v15  ;;  %v17695_v17 = vpop.f32.mrf.mxu1 }
 0x3d0   : > { %v17731_v27 = vpop.f32.mrf.mxu0  ;;  %v4869_v25 = vadd.f32 %v17695_v17, %v20981_v55 }
 0x3d1   : > { %v4788_v14 = vpop.f32.mrf.mxu1 }
 0x3d2   : > { %v21099_v10 = vpop.f32.mrf.mxu0  ;;  %v21101_v13 = vadd.f32 %v17731_v27, %v4869_v25  ;;  %v21104_v53 = vadd.f32 %v4788_v14, %v20984_v36 }
 0x3d3   : > { %25056 = vst [vmem:[#allocation64_spill] sm:$0xff] %v21099_v10  ;;  %v17696_v58 = vpop.f32.mrf.mxu1 }
 0x3d4   : > { %25057 = vst [vmem:[#allocation39_spill] sm:$0xff] %v21104_v53  ;;  %v17732_v35 = vpop.f32.mrf.mxu0  ;;  %v4870_v50 = vadd.f32 %v17696_v58, %v20991_v40 }
 0x3d5   : > { %v21107_v42 = vpop.f32.mrf.mxu1 }
 0x3d6   : > { %25058 = vst [vmem:[#allocation44_spill] sm:$0xff] %v21107_v42  ;;  %v21109_v49 = vpop.f32.mrf.mxu0  ;;  %v21111_v2 = vadd.f32 %v17732_v35, %v4870_v50 }
 0x3d7   : > { %25059 = vst [vmem:[#allocation52_spill] sm:$0xff] %v21109_v49  ;;  %v17699_v15 = vpop.f32.mrf.mxu1 }
 0x3d8   : > { %v17735_v55 = vpop.f32.mrf.mxu0  ;;  %v4873_v17 = vadd.f32 %v17699_v15, %v20996_v56 }
 0x3d9   : > { %v4804_v10 = vpop.f32.mrf.mxu1 }
 0x3da   : > { %v21114_v27 = vpop.f32.mrf.mxu0  ;;  %v21116_v25 = vadd.f32 %v17735_v55, %v4873_v17  ;;  %v21119_v36 = vadd.f32 %v4804_v10, %v20999_v18 }
 0x3db   : > { %25060 = vst [vmem:[#allocation65_spill] sm:$0xff] %v21114_v27  ;;  %v17700_v14 = vpop.f32.mrf.mxu1 }
 0x3dc   : > { %25061 = vst [vmem:[#allocation66_spill] sm:$0xff] %v21119_v36  ;;  %v17736_v40 = vpop.f32.mrf.mxu0  ;;  %v4874_v58 = vadd.f32 %v17700_v14, %v21006_v52 }
 0x3dd   : > { %v21122_v42 = vpop.f32.mrf.mxu1 }
 0x3de   : > { %25062 = vst [vmem:[#allocation43_spill] sm:$0xff] %v21122_v42  ;;  %v21124_v35 = vpop.f32.mrf.mxu0  ;;  %v21126_v50 = vadd.f32 %v17736_v40, %v4874_v58 }
 0x3df   : > { %25063 = vst [vmem:[#allocation50_spill] sm:$0xff] %v21124_v35  ;;  %v17703_v49 = vpop.f32.mrf.mxu1 }
 0x3e0   : > { %v17739_v56 = vpop.f32.mrf.mxu0  ;;  %v4877_v15 = vadd.f32 %v17703_v49, %v21012_v21 }
 0x3e1   : > { %v4820_v27 = vpop.f32.mrf.mxu1 }
 0x3e2   : > { %v21129_v55 = vpop.f32.mrf.mxu0  ;;  %v21131_v17 = vadd.f32 %v17739_v56, %v4877_v15  ;;  %v21134_v18 = vadd.f32 %v4820_v27, %v21015_v0 }
 0x3e3   : > { %25064 = vst [vmem:[#allocation67_spill] sm:$0xff] %v21129_v55  ;;  %v17704_v10 = vpop.f32.mrf.mxu1 }
 0x3e4   : > { %25065 = vst [vmem:[#allocation51_spill] sm:$0xff] %v21134_v18  ;;  %v17740_v52 = vpop.f32.mrf.mxu0  ;;  %v4878_v14 = vadd.f32 %v17704_v10, %v21022_v47 }
 0x3e5   : > { %v21137_v42 = vpop.f32.mrf.mxu1 }
 0x3e6   : > { %25066 = vst [vmem:[#allocation68_spill] sm:$0xff] %v21137_v42  ;;  %v21139_v40 = vpop.f32.mrf.mxu0  ;;  %v21141_v58 = vadd.f32 %v17740_v52, %v4878_v14 }
 0x3e7   : > { %25067 = vst [vmem:[#allocation55_spill] sm:$0xff] %v21139_v40  ;;  %v17707_v35 = vpop.f32.mrf.mxu1 }
 0x3e8   : > { %v17743_v21 = vpop.f32.mrf.mxu0  ;;  %v4881_v49 = vadd.f32 %v17707_v35, %v21026_v4 }
 0x3e9   : > { %v4836_v55 = vpop.f32.mrf.mxu1 }
 0x3ea   : > { %v21144_v56 = vpop.f32.mrf.mxu0  ;;  %v21146_v15 = vadd.f32 %v17743_v21, %v4881_v49  ;;  %v21149_v0 = vadd.f32 %v4836_v55, %v21029_v12 }
 0x3eb   : > { %25068 = vst [vmem:[#allocation70_spill] sm:$0xff] %v21144_v56  ;;  %v17708_v27 = vpop.f32.mrf.mxu1 }
 0x3ec   : > { %25069 = vst [vmem:[#allocation69_spill] sm:$0xff] %v21149_v0  ;;  %v17744_v47 = vpop.f32.mrf.mxu0  ;;  %v4882_v10 = vadd.f32 %v17708_v27, %v21036_v30  ;;  %v18954_v27 = vld [vmem:[%s24892_s5 + $0x18] sm:$0xff]  }
 0x3ed   : > { %v21152_v42 = vpop.f32.mrf.mxu1  ;;  %17853 = vmatprep.subr.bf16.mxu0 %v18954_v27 }
 0x3ee   : > { %25070 = vst [vmem:[#allocation40_spill] sm:$0xff] %v21152_v42  ;;  %v21154_v52 = vpop.f32.mrf.mxu0  ;;  %v21156_v14 = vadd.f32 %v17744_v47, %v4882_v10  ;;  %17854 = vmatpush3.bf16.msra.mxu0 %v18954_v27 }
 0x3ef   : > { %25071 = vst [vmem:[#allocation46_spill] sm:$0xff] %v21154_v52  ;;  %v17751_v40 = vpop.f32.mrf.mxu1 }
 0x3f0   : > { %v21158_v4 = vpop.f32.mrf.mxu0  ;;  %v21161_v35 = vadd.f32 %v17751_v40, %v21041_v44 }
 0x3f1   : > { %v21163_v21 = vpop.f32.mrf.mxu1 }
 0x3f2   : > { %v21165_v12 = vpop.f32.mrf.mxu0 }
 0x3f3   : > { %v17752_v55 = vpop.f32.mrf.mxu1 }
 0x3f4   : > { %v21168_v49 = vadd.f32 %v17752_v55, %v21051_v3  ;;  %v21175_v47 = vpop.f32.mrf.mxu0  ;;  %v18955_v3 = vld [vmem:[%s24892_s5 + $0x10] sm:$0xff]  }
 0x3f5   : > { %v21170_v30 = vpop.f32.mrf.mxu1  ;;  %17855 = vmatprep.subr.bf16.mxu0 %v18955_v3 }
 0x3f6   : > { %v21185_v55 = vpop.f32.mrf.mxu0  ;;  %17856 = vmatpush3.bf16.msra.mxu0 %v18955_v3 }
 0x3f7   : > { %v17755_v10 = vpop.f32.mrf.mxu1 }
 0x3f8   : > { %v21178_v44 = vadd.f32 %v17755_v10, %v21056_v43  ;;  %v21192_v0 = vpop.f32.mrf.mxu0 }
 0x3f9   : > { %v21180_v40 = vpop.f32.mrf.mxu1 }
 0x3fa   : > { %v21199_v18 = vpop.f32.mrf.mxu0 }
 0x3fb   : > { %v17756_v52 = vpop.f32.mrf.mxu1 }
 0x3fc   : > { %v21188_v42 = vadd.f32 %v17756_v52, %v21066_v31  ;;  %v21206_v31 = vpop.f32.mrf.mxu0 }
 0x3fd   : > { %v21190_v56 = vpop.f32.mrf.mxu1 }
 0x3fe   : > { %25072 = vst [vmem:[#allocation54_spill] sm:$0xff] %v21188_v42 }
 0x3ff   : > { %v17759_v43 = vpop.f32.mrf.mxu1 }
 0x400   : > { %v21195_v27 = vadd.f32 %v17759_v43, %v21071_v38  ;;  %v21213_v38 = vpop.f32.mrf.mxu0 }
 0x401   : > { %v21197_v10 = vpop.f32.mrf.mxu1 }
 0x402   : > { %25073 = vst [vmem:[#allocation53_spill] sm:$0xff] %v21195_v27  ;;  %25074 = vst [vmem:[#allocation71_spill] sm:$0xff] %v21197_v10 }
 0x403   : > { %v17760_v36 = vpop.f32.mrf.mxu1 }
 0x404   : > { %v21202_v53 = vadd.f32 %v17760_v36, %v21081_v59  ;;  %v21220_v59 = vpop.f32.mrf.mxu0 }
 0x405   : > { %v21204_v60 = vpop.f32.mrf.mxu1 }
 0x406   : > { %25075 = vst [vmem:[#allocation72_spill] sm:$0xff] %v21202_v53  ;;  %25076 = vst [vmem:[#allocation45_spill] sm:$0xff] %v21204_v60 }
 0x407   : > { %v17763_v52 = vpop.f32.mrf.mxu1 }
 0x408   : > { %v21209_v3 = vadd.f32 %v17763_v52, %v21086_v57  ;;  %v21227_v57 = vpop.f32.mrf.mxu0 }
 0x409   : > { %v21211_v42 = vpop.f32.mrf.mxu1 }
 0x40a   : > { %25077 = vst [vmem:[#allocation73_spill] sm:$0xff] %v21209_v3  ;;  %25078 = vst [vmem:[#allocation58_spill] sm:$0xff] %v21211_v42 }
 0x40b   : > { %v17764_v43 = vpop.f32.mrf.mxu1 }
 0x40c   : > { %v21216_v27 = vadd.f32 %v17764_v43, %v21096_v28  ;;  %v21234_v28 = vpop.f32.mrf.mxu0 }
 0x40d   : > { %v21218_v10 = vpop.f32.mrf.mxu1 }
 0x40e   : > { %25079 = vst [vmem:[#allocation57_spill] sm:$0xff] %v21216_v27  ;;  %25080 = vst [vmem:[#allocation74_spill] sm:$0xff] %v21218_v10 }
 0x40f   : > { %v17767_v36 = vpop.f32.mrf.mxu1 }
 0x410   : > { %v21223_v53 = vadd.f32 %v17767_v36, %v21101_v13  ;;  %v21241_v13 = vpop.f32.mrf.mxu0 }
 0x411   : > { %v21225_v60 = vpop.f32.mrf.mxu1 }
 0x412   : > { %25081 = vst [vmem:[#allocation56_spill] sm:$0xff] %v21223_v53  ;;  %25082 = vst [vmem:[#allocation75_spill] sm:$0xff] %v21225_v60 }
 0x413   : > { %v17768_v52 = vpop.f32.mrf.mxu1 }
 0x414   : > { %v21230_v3 = vadd.f32 %v17768_v52, %v21111_v2  ;;  %v21248_v2 = vpop.f32.mrf.mxu0 }
 0x415   : > { %v21232_v42 = vpop.f32.mrf.mxu1 }
 0x416   : > { %25083 = vst [vmem:[#allocation76_spill] sm:$0xff] %v21230_v3  ;;  %25084 = vst [vmem:[#allocation77_spill] sm:$0xff] %v21232_v42 }
 0x417   : > { %v17771_v43 = vpop.f32.mrf.mxu1 }
 0x418   : > { %v21237_v27 = vadd.f32 %v17771_v43, %v21116_v25  ;;  %v21255_v25 = vpop.f32.mrf.mxu0 }
 0x419   : > { %v21239_v10 = vpop.f32.mrf.mxu1 }
 0x41a   : > { %25085 = vst [vmem:[#allocation78_spill] sm:$0xff] %v21237_v27  ;;  %25086 = vst [vmem:[#allocation79_spill] sm:$0xff] %v21239_v10 }
 0x41b   : > { %v17772_v36 = vpop.f32.mrf.mxu1 }
 0x41c   : > { %v21244_v53 = vadd.f32 %v17772_v36, %v21126_v50  ;;  %v21262_v50 = vpop.f32.mrf.mxu0 }
 0x41d   : > { %v21246_v60 = vpop.f32.mrf.mxu1 }
 0x41e   : > { %25087 = vst [vmem:[#allocation80_spill] sm:$0xff] %v21244_v53  ;;  %25088 = vst [vmem:[#allocation81_spill] sm:$0xff] %v21246_v60  ;;  %v4547_v53 = vadd.f32 %v20923_v62, %v20928_v6  ;;  %v3909_v62 = vadd.f32 %v20860_v8, %v20858_v7  ;;  %v18956_v7 = vld [vmem:[%s24892_s5 + $0x8] sm:$0xff]   ;;  %v5160_v8 = vadd.f32 %v21054_v16, %v21059_v46 }
 0x41f   : > { %v17775_v52 = vpop.f32.mrf.mxu1  ;;  %17889 = vmatprep.subr.bf16.mxu1 %v18956_v7  ;;  %v5769_v16 = vadd.f32 %v21175_v47, %v21168_v49  ;;  %v18957_v47 = vld [vmem:[%s24892_s5] sm:$0xff]  }
 0x420   : > { %v21251_v3 = vadd.f32 %v17775_v52, %v21131_v17  ;;  %v5156_v52 = vadd.f32 %v21039_v37, %v21044_v24  ;;  %v5768_v37 = vadd.f32 %v21158_v4, %v21161_v35  ;;  %v5465_v46 = vadd.f32 %v21180_v40, %v5160_v8  ;;  %17890 = vmatpush3.bf16.msra.mxu1 %v18956_v7  ;;  %v25094_v7 = vld [vmem:[#allocation54_spill] sm:$0xff] }
 0x421   : > { %v21253_v42 = vpop.f32.mrf.mxu1  ;;  %17891 = vmatprep.subr.bf16.mxu1 %v18957_v47  ;;  %v5773_v8 = vadd.f32 %v21206_v31, %v25094_v7 }
 0x422   : > { %25089 = vst [vmem:[#allocation82_spill] sm:$0xff] %v21251_v3  ;;  %v4852_v3 = vadd.f32 %v21047_v51, %v4547_v53  ;;  %v3925_v51 = vadd.f32 %v20878_v9, %v20876_v63  ;;  %v4551_v53 = vadd.f32 %v20939_v48, %v20944_v11  ;;  %v21304_v63 = vld [vmem:[%s24891_s4] ss:$0 sm:$0xff] }
 0x423   : > { %v17776_v43 = vpop.f32.mrf.mxu1 }
 0x424   : > { %v21258_v27 = vadd.f32 %v17776_v43, %v21141_v58  ;;  %v21274_v58 = vpop.f32.mrf.mxu0  ;;  %v4262_v9 = vadd.f32 %v21002_v23, %v3925_v51  ;;  %v4856_v48 = vadd.f32 %v21062_v33, %v4551_v53  ;;  %v21319_v23 = vadd.f32 %v20910_v22, %v20908_v39  ;;  %17892 = vmatpush3.bf16.msra.mxu1 %v18957_v47  ;;  %v6400_v53 = vld [vmem:[#allocation2 + $0x8] sm:$0xff] }
 0x425   : > { %v21260_v10 = vpop.f32.mrf.mxu1  ;;  %v4555_v33 = vadd.f32 %v20955_v41, %v20960_v45 }
 0x426   : > { %25090 = vst [vmem:[#allocation83_spill] sm:$0xff] %v21258_v27  ;;  %25091 = vst [vmem:[#allocation84_spill] sm:$0xff] %v21260_v10  ;;  %v5461_v27 = vadd.f32 %v21163_v21, %v5156_v52  ;;  %v21287_v24 = vpop.f32.mrf.mxu0  ;;  %v21337_v41 = vadd.f32 %v21004_v54, %v4262_v9  ;;  %v5161_v45 = vadd.f32 %v21064_v26, %v4856_v48  ;;  %v25095_v9 = vld [vmem:[#allocation71_spill] sm:$0xff] }
 0x427   : > { %v17779_v36 = vpop.f32.mrf.mxu1 }
 0x428   : > { %v21267_v60 = vadd.f32 %v17779_v36, %v21146_v15  ;;  %v5157_v15 = vadd.f32 %v21049_v29, %v4852_v3  ;;  %v5766_v29 = vadd.f32 %v21165_v12, %v5461_v27  ;;  %v21315_v12 = vpop.f32.mrf.mxu0  ;;  %v5772_v3 = vadd.f32 %v21192_v0, %v21178_v44  ;;  %v6399_v0 = vld [vmem:[#allocation2] sm:$0xff] }
 0x429   : > { %v21269_v17 = vpop.f32.mrf.mxu1  ;;  %v5466_v54 = vadd.f32 %v21190_v56, %v5161_v45  ;;  %v25093_v56 = vld [vmem:[#allocation61_spill] sm:$0xff]  ;;  %v25096_v45 = vld [vmem:[#allocation62_spill] sm:$0xff] }
 0x42a   : > { %v5462_v4 = vadd.f32 %v21170_v30, %v5157_v15  ;;  %v21345_v52 = vpop.f32.mrf.mxu0  ;;  %v6451_v15 = vld [vmem:[#allocation2 + $0x1] sm:$0xff] }
 0x42b   : > { %v17780_v43 = vpop.f32.mrf.mxu1 }
 0x42c   : > { %v21278_v10 = vadd.f32 %v17780_v43, %v21156_v14  ;;  %v4258_v14 = vadd.f32 %v20987_v61, %v3909_v62  ;;  %v21310_v61 = vadd.f32 %v20896_v19, %v20894_v5  ;;  %v21325_v5 = vadd.f32 %v20971_v1, %v20976_v34  ;;  %v25092_v1 = vld [vmem:[#allocation49_spill] sm:$0xff] }
 0x42d   : > { %v21282_v6 = vpop.f32.mrf.mxu1  ;;  %v5767_v39 = vadd.f32 %v21185_v55, %v5462_v4  ;;  %v5164_v34 = vadd.f32 %v25092_v1, %v21074_v20 }
 0x42e   : > { %v21332_v40 = vadd.f32 %v20989_v32, %v4258_v14  ;;  %v5770_v32 = vadd.f32 %v21199_v18, %v5465_v46  ;;  %v21353_v14 = vld [vmem:[%s24892_s5 + $0x28] sm:$0xff]  }
 0x42f   : > { %v17823_v21 = vpop.f32.mrf.mxu1  ;;  %v5469_v48 = vadd.f32 %v25095_v9, %v5164_v34  ;;  %17925 = vmatprep.subr.bf16.mxu0 %v21353_v14  ;;  %v25097_v34 = vld [vmem:[#allocation47_spill] sm:$0xff] }
 0x430   : > { %v6073_v35 = vadd.f32 %v17823_v21, %v5768_v37  ;;  %v6452_v37 = vld [vmem:[#allocation2 + $0x9] sm:$0xff]  ;;  %v4860_v21 = vadd.f32 %v25093_v56, %v4555_v33  ;;  %v25101_v56 = vld [vmem:[#allocation60_spill] sm:$0xff] }
 0x431   : > { %v5944_v11 = vpop.f32.mrf.mxu1  ;;  %v6483_v4 = vpack.c.bf16 %v6452_v37, %v6451_v15 }
 0x432   : > { %v6071_v30 = vadd.f32 %v5944_v11, %v5766_v29  ;;  %v6112_v19 = vadd.f32 %v21304_v63, %v6073_v35  ;;  %v6431_v35 = vpack.c.bf16 %v6400_v53, %v6399_v0  ;;  %v21360_v11 = vpop.f32.mrf.mxu0  ;;  %v5165_v1 = vadd.f32 %v25096_v45, %v4860_v21  ;;  %v25102_v21 = vld [vmem:[#allocation63_spill] sm:$0xff]  ;;  %v25107_v45 = vld [vmem:[#allocation64_spill] sm:$0xff] }
 0x433   : > { %v17824_v49 = vpop.f32.mrf.mxu1  ;;  %17857 = vmatprep.mubr.msk.bf16.mxu0 %vm6516_vm14, %v6483_v4  ;;  %v4864_v7 = vadd.f32 %v25102_v21, %v21325_v5 }
 0x434   : > { %v6110_v22 = vadd.f32 %v21304_v63, %v6071_v30  ;;  %v6074_v27 = vadd.f32 %v17824_v49, %v5769_v16  ;;  %vm6144_vm13 = vcmp.ge.f32.partialorder %v6112_v19, 0.0  ;;  %v6176_v20 = vmul.f32 0.2, %v6112_v19  ;;  %17893 = vmatprep.mubr.msk.bf16.mxu1 %vm6516_vm14, %v6431_v35 }
 0x435   : > { %v5947_v36 = vpop.f32.mrf.mxu1  ;;  %v5771_v30 = vadd.f32 %v21213_v38, %v5466_v54 }
 0x436   : > { %v6072_v55 = vadd.f32 %v5947_v36, %v5767_v39  ;;  %vm6142_vm6 = vcmp.ge.f32.partialorder %v6110_v22, 0.0  ;;  %v6174_v43 = vmul.f32 0.2, %v6110_v22  ;;  %v6113_v26 = vadd.f32 %v21304_v63, %v6074_v27  ;;  %v25099_v36 = vld [vmem:[#allocation53_spill] sm:$0xff] }
 0x437   : > { %v17827_v62 = vpop.f32.mrf.mxu1  ;;  %v6208_v49 = vsel %vm6144_vm13, %v6112_v19, %v6176_v20  ;;  %v5774_v19 = vadd.f32 %v21227_v57, %v5469_v48  ;;  %v25100_v20 = vld [vmem:[#allocation45_spill] sm:$0xff]  ;;  %v4266_v57 = vadd.f32 %v25101_v56, %v21310_v61 }
 0x438   : > { %v6111_v44 = vadd.f32 %v21304_v63, %v6072_v55  ;;  %v6077_v51 = vadd.f32 %v17827_v62, %v5772_v3  ;;  %v6206_v18 = vsel %vm6142_vm6, %v6110_v22, %v6174_v43  ;;  %v6177_v47 = vmul.f32 0.2, %v6113_v26  ;;  %v25098_v3 = vld [vmem:[#allocation41_spill] sm:$0xff]  ;;  %v21377_v43 = vpop.f32.mrf.mxu0 }
 0x439   : > { %v5960_v29 = vpop.f32.mrf.mxu1  ;;  %6270 = vrot.lane.b32.xlu0 %v6206_v18, %s19090_s14  ;;  %vm6145_vm3 = vcmp.ge.f32.partialorder %v6113_v26, 0.0  ;;  %v5168_v38 = vadd.f32 %v25098_v3, %v25097_v34  ;;  %v5470_v15 = vadd.f32 %v25100_v20, %v5165_v1  ;;  %v25108_v34 = vld [vmem:[#allocation73_spill] sm:$0xff] }
 0x43a   : > { %v6075_v16 = vadd.f32 %v5960_v29, %v5770_v32  ;;  %vm6143_vm15 = vcmp.ge.f32.partialorder %v6111_v44, 0.0  ;;  %v6175_v46 = vmul.f32 0.2, %v6111_v44  ;;  %v6116_v33 = vadd.f32 %v21304_v63, %v6077_v51  ;;  %v21391_v9 = vpop.f32.mrf.mxu0 }
 0x43b   : > { %v17828_v31 = vpop.f32.mrf.mxu1  ;;  %v5776_v32 = vadd.f32 %v21220_v59, %v25099_v36  ;;  %v5775_v61 = vadd.f32 %v21241_v13, %v5470_v15  ;;  %v5780_v3 = vadd.f32 %v21248_v2, %v25108_v34 }
 0x43c   : > { %v6114_v39 = vadd.f32 %v21304_v63, %v6075_v16  ;;  %v6078_v22 = vadd.f32 %v17828_v31, %v5773_v8  ;;  %v6207_v27 = vsel %vm6143_vm15, %v6111_v44, %v6175_v46  ;;  %v6209_v44 = vsel %vm6145_vm3, %v6113_v26, %v6177_v47  ;;  %v25103_v8 = vld [vmem:[#allocation72_spill] sm:$0xff]  ;;  %v25104_v26 = vld [vmem:[#allocation58_spill] sm:$0xff] }
 0x43d   : > { %v5963_v55 = vpop.f32.mrf.mxu1  ;;  %6274 = vrot.lane.b32.xlu0 %v6208_v49, %s19090_s14  ;;  %6272 = vrot.lane.b32.xlu1 %v6207_v27, %s19090_s14  ;;  %v6180_v51 = vmul.f32 0.2, %v6116_v33  ;;  %vm6148_vm5 = vcmp.ge.f32.partialorder %v6116_v33, 0.0  ;;  %v5777_v29 = vadd.f32 %v21234_v28, %v25103_v8  ;;  %v5473_v35 = vadd.f32 %v25104_v26, %v5168_v38  ;;  %v25106_v27 = vld [vmem:[#allocation39_spill] sm:$0xff] }
 0x43e   : > { %v6076_v54 = vadd.f32 %v5963_v55, %v5771_v30  ;;  %vm6146_vm4 = vcmp.ge.f32.partialorder %v6114_v39, 0.0  ;;  %v6178_v62 = vmul.f32 0.2, %v6114_v39  ;;  %v6117_v37 = vadd.f32 %v21304_v63, %v6078_v22  ;;  %v25109_v55 = vld [vmem:[#allocation74_spill] sm:$0xff] }
 0x43f   : > { %v17831_v0 = vpop.f32.mrf.mxu1  ;;  %v6212_v30 = vsel %vm6148_vm5, %v6116_v33, %v6180_v51  ;;  %v5172_v1 = vadd.f32 %v25107_v45, %v25106_v27  ;;  %v5778_v13 = vadd.f32 %v21255_v25, %v5473_v35  ;;  %v21404_v33 = vpop.f32.mrf.mxu0  ;;  %v25110_v51 = vld [vmem:[#allocation59_spill] sm:$0xff]  ;;  %v25111_v25 = vld [vmem:[#allocation44_spill] sm:$0xff] }
 0x440   : > { %v6115_v59 = vadd.f32 %v21304_v63, %v6076_v54  ;;  %v6081_v18 = vadd.f32 %v17831_v0, %v5776_v32  ;;  %v6210_v53 = vsel %vm6146_vm4, %v6114_v39, %v6178_v62  ;;  %v6181_v31 = vmul.f32 0.2, %v6117_v37  ;;  %v25105_v39 = vld [vmem:[#allocation48_spill] sm:$0xff] }
 0x441   : > { %v5976_v4 = vpop.f32.mrf.mxu1  ;;  %6276 = vrot.lane.b32.xlu1 %v6209_v44, %s19090_s14  ;;  %6278 = vrot.lane.b32.xlu0 %v6210_v53, %s19090_s14  ;;  %vm6149_vm8 = vcmp.ge.f32.partialorder %v6117_v37, 0.0  ;;  %v5169_v22 = vadd.f32 %v25105_v39, %v4864_v7  ;;  %v25112_v53 = vld [vmem:[#allocation57_spill] sm:$0xff]  ;;  %v21419_v8 = vpop.f32.mrf.mxu0 }
 0x442   : > { %v6079_v48 = vadd.f32 %v5976_v4, %v5774_v19  ;;  %vm6147_vm7 = vcmp.ge.f32.partialorder %v6115_v59, 0.0  ;;  %v6179_v16 = vmul.f32 0.2, %v6115_v59  ;;  %v6120_v46 = vadd.f32 %v21304_v63, %v6081_v18 }
 0x443   : > { %v17832_v5 = vpop.f32.mrf.mxu1  ;;  %v5474_v19 = vadd.f32 %v25109_v55, %v5169_v22  ;;  %v6213_v20 = vsel %vm6149_vm8, %v6117_v37, %v6181_v31  ;;  %v4868_v18 = vadd.f32 %v25111_v25, %v21332_v40  ;;  %v5781_v56 = vadd.f32 %v21262_v50, %v25112_v53  ;;  %v25113_v37 = vld [vmem:[#allocation75_spill] sm:$0xff]  ;;  %v25115_v31 = vld [vmem:[#allocation66_spill] sm:$0xff] }
 0x444   : > { %v6118_v28 = vadd.f32 %v21304_v63, %v6079_v48  ;;  %v6082_v49 = vadd.f32 %v17832_v5, %v5777_v29  ;;  %v6211_v47 = vsel %vm6147_vm7, %v6115_v59, %v6179_v16  ;;  %v6184_v15 = vmul.f32 0.2, %v6120_v46  ;;  %v25114_v5 = vld [vmem:[#allocation52_spill] sm:$0xff] }
 0x445   : > { %v5979_v38 = vpop.f32.mrf.mxu1  ;;  %6282 = vrot.lane.b32.xlu0 %v6212_v30, %s19090_s14  ;;  %6280 = vrot.lane.b32.xlu1 %v6211_v47, %s19090_s14  ;;  %vm6152_vm10 = vcmp.ge.f32.partialorder %v6120_v46, 0.0  ;;  %v21410_v59 = vadd.f32 %v25110_v51, %v4266_v57  ;;  %v5477_v7 = vadd.f32 %v25113_v37, %v5172_v1  ;;  %v5779_v57 = vadd.f32 %v21274_v58, %v5474_v19  ;;  %v25117_v47 = vld [vmem:[#allocation56_spill] sm:$0xff]  ;;  %v25118_v1 = vld [vmem:[#allocation77_spill] sm:$0xff]  ;;  %v25119_v19 = vld [vmem:[#allocation38_spill] sm:$0xff] }
 0x446   : > { %v6080_v36 = vadd.f32 %v5979_v38, %v5775_v61  ;;  %vm6150_vm9 = vcmp.ge.f32.partialorder %v6118_v28, 0.0  ;;  %v6182_v32 = vmul.f32 0.2, %v6118_v28  ;;  %v6121_v54 = vadd.f32 %v21304_v63, %v6082_v49 }
 0x447   : > { %v17835_v62 = vpop.f32.mrf.mxu1  ;;  %v6216_v35 = vsel %vm6152_vm10, %v6120_v46, %v6184_v15  ;;  %v5173_v30 = vadd.f32 %v25114_v5, %v4868_v18  ;;  %v5784_v39 = vadd.f32 %v21287_v24, %v25117_v47  ;;  %v5782_v58 = vadd.f32 %v21315_v12, %v5477_v7  ;;  %v21432_v46 = vpop.f32.mrf.mxu0  ;;  %v25121_v15 = vld [vmem:[#allocation76_spill] sm:$0xff] }
 0x448   : > { %v6119_v2 = vadd.f32 %v21304_v63, %v6080_v36  ;;  %v6085_v0 = vadd.f32 %v17835_v62, %v5780_v3  ;;  %v6214_v44 = vsel %vm6150_vm9, %v6118_v28, %v6182_v32  ;;  %v6185_v48 = vmul.f32 0.2, %v6121_v54  ;;  %v25116_v28 = vld [vmem:[#allocation65_spill] sm:$0xff]  ;;  %v25120_v62 = vld [vmem:[#allocation43_spill] sm:$0xff] }
 0x449   : > { %v5992_v21 = vpop.f32.mrf.mxu1  ;;  %6284 = vrot.lane.b32.xlu1 %v6213_v20, %s19090_s14  ;;  %6286 = vrot.lane.b32.xlu0 %v6214_v44, %s19090_s14  ;;  %vm6153_vm12 = vcmp.ge.f32.partialorder %v6121_v54, 0.0  ;;  %v5176_v49 = vadd.f32 %v25116_v28, %v25115_v31  ;;  %v5478_v34 = vadd.f32 %v25118_v1, %v5173_v30  ;;  %v4270_v12 = vadd.f32 %v25119_v19, %v21319_v23  ;;  %v5735_v51 = vpop.f32.mrf.mxu0  ;;  %v25127_v30 = vld [vmem:[#allocation81_spill] sm:$0xff] }
 0x44a   : > { %v6083_v29 = vadd.f32 %v5992_v21, %v5778_v13  ;;  %vm6151_vm11 = vcmp.ge.f32.partialorder %v6119_v2, 0.0  ;;  %v6183_v4 = vmul.f32 0.2, %v6119_v2  ;;  %v6124_v26 = vadd.f32 %v21304_v63, %v6085_v0 }
 0x44b   : > { %v17836_v40 = vpop.f32.mrf.mxu1  ;;  %v6217_v13 = vsel %vm6153_vm12, %v6121_v54, %v6185_v48  ;;  %v4872_v20 = vadd.f32 %v25120_v62, %v21337_v41  ;;  %v25122_v54 = vld [vmem:[#allocation79_spill] sm:$0xff]  ;;  %v5783_v53 = vadd.f32 %v21360_v11, %v5478_v34  ;;  %v25126_v48 = vld [vmem:[#allocation78_spill] sm:$0xff]  ;;  %v25130_v34 = vld [vmem:[#allocation80_spill] sm:$0xff] }
 0x44c   : > { %v6122_v50 = vadd.f32 %v21304_v63, %v6083_v29  ;;  %v6086_v16 = vadd.f32 %v17836_v40, %v5781_v56  ;;  %v6215_v61 = vsel %vm6151_vm11, %v6119_v2, %v6183_v4  ;;  %v6188_v36 = vmul.f32 0.2, %v6124_v26  ;;  %v25123_v29 = vld [vmem:[#allocation50_spill] sm:$0xff]  ;;  %v25125_v40 = vld [vmem:[#allocation67_spill] sm:$0xff] }
 0x44d   : > { %v5995_v22 = vpop.f32.mrf.mxu1  ;;  %6290 = vrot.lane.b32.xlu0 %v6216_v35, %s19090_s14  ;;  %6288 = vrot.lane.b32.xlu1 %v6215_v61, %s19090_s14  ;;  %vm6156_vm13 = vcmp.ge.f32.partialorder %v6124_v26, 0.0  ;;  %v5785_v2 = vadd.f32 %v21345_v52, %v25121_v15  ;;  %v5481_v44 = vadd.f32 %v25122_v54, %v5176_v49  ;;  %v5177_v4 = vadd.f32 %v25123_v29, %v4872_v20 }
 0x44e   : > { %v6084_v27 = vadd.f32 %v5995_v22, %v5779_v57  ;;  %vm6154_vm6 = vcmp.ge.f32.partialorder %v6122_v50, 0.0  ;;  %v6186_v45 = vmul.f32 0.2, %v6122_v50  ;;  %v6125_v3 = vadd.f32 %v21304_v63, %v6086_v16  ;;  %v25124_v57 = vld [vmem:[#allocation51_spill] sm:$0xff] }
 0x44f   : > { %v17839_v38 = vpop.f32.mrf.mxu1  ;;  %v6220_v41 = vsel %vm6156_vm13, %v6124_v26, %v6188_v36  ;;  %v5180_v35 = vadd.f32 %v25125_v40, %v25124_v57  ;;  %v5786_v11 = vadd.f32 %v21391_v9, %v5481_v44  ;;  %v17812_v26 = vpop.f32.mrf.mxu0  ;;  %v5482_v31 = vadd.f32 %v25127_v30, %v5177_v4  ;;  %v25129_v9 = vld [vmem:[#allocation68_spill] sm:$0xff]  ;;  %v25133_v44 = vld [vmem:[#allocation70_spill] sm:$0xff] }
 0x450   : > { %v6123_v24 = vadd.f32 %v21304_v63, %v6084_v27  ;;  %v6089_v32 = vadd.f32 %v17839_v38, %v5784_v39  ;;  %v6218_v55 = vsel %vm6154_vm6, %v6122_v50, %v6186_v45  ;;  %v6189_v21 = vmul.f32 0.2, %v6125_v3  ;;  %v25128_v27 = vld [vmem:[#allocation42_spill] sm:$0xff] }
 0x451   : > { %v6008_v0 = vpop.f32.mrf.mxu1  ;;  %6292 = vrot.lane.b32.xlu1 %v6217_v13, %s19090_s14  ;;  %6294 = vrot.lane.b32.xlu0 %v6218_v55, %s19090_s14  ;;  %vm6157_vm3 = vcmp.ge.f32.partialorder %v6125_v3, 0.0  ;;  %v5788_v50 = vadd.f32 %v21377_v43, %v25126_v48  ;;  %v4575_v45 = vadd.f32 %v25128_v27, %v4270_v12  ;;  %v4876_v1 = vadd.f32 %v25129_v9, %v21410_v59  ;;  %v5738_v36 = vpop.f32.mrf.mxu0  ;;  %v25136_v48 = vld [vmem:[#allocation40_spill] sm:$0xff]  ;;  %v25138_v27 = vld [vmem:[#allocation46_spill] sm:$0xff] }
 0x452   : > { %v6087_v25 = vadd.f32 %v6008_v0, %v5782_v58  ;;  %vm6155_vm15 = vcmp.ge.f32.partialorder %v6123_v24, 0.0  ;;  %v6187_v18 = vmul.f32 0.2, %v6123_v24  ;;  %v6128_v23 = vadd.f32 %v21304_v63, %v6089_v32  ;;  %v25131_v0 = vld [vmem:[#allocation55_spill] sm:$0xff] }
 0x453   : > { %v17840_v56 = vpop.f32.mrf.mxu1  ;;  %v6221_v47 = vsel %vm6157_vm3, %v6125_v3, %v6189_v21  ;;  %v5789_v38 = vadd.f32 %v21404_v33, %v25130_v34  ;;  %v5485_v3 = vadd.f32 %v21253_v42, %v5180_v35  ;;  %v5787_v55 = vadd.f32 %v21419_v8, %v5482_v31  ;;  %v17815_v20 = vpop.f32.mrf.mxu0  ;;  %v25132_v42 = vld [vmem:[#allocation69_spill] sm:$0xff]  ;;  %v25135_v21 = vld [vmem:[#allocation84_spill] sm:$0xff] }
 0x454   : > { %v6126_v52 = vadd.f32 %v21304_v63, %v6087_v25  ;;  %v6090_v37 = vadd.f32 %v17840_v56, %v5785_v2  ;;  %v6219_v7 = vsel %vm6155_vm15, %v6123_v24, %v6187_v18  ;;  %v6192_v39 = vmul.f32 0.2, %v6128_v23  ;;  %v25134_v18 = vld [vmem:[#allocation82_spill] sm:$0xff] }
 0x455   : > { %v6011_v16 = vpop.f32.mrf.mxu1  ;;  %6298 = vrot.lane.b32.xlu0 %v6220_v41, %s19090_s14  ;;  %6296 = vrot.lane.b32.xlu1 %v6219_v7, %s19090_s14  ;;  %vm6160_vm5 = vcmp.ge.f32.partialorder %v6128_v23, 0.0  ;;  %v5181_v54 = vadd.f32 %v25131_v0, %v4876_v1  ;;  %v5184_v25 = vadd.f32 %v25133_v44, %v25132_v42  ;;  %v5751_v57 = vpop.f32.mrf.mxu0  ;;  %v5796_v9 = vadd.f32 %v17815_v20, %v21267_v60 }
 0x456   : > { %v6088_v61 = vadd.f32 %v6011_v16, %v5783_v53  ;;  %vm6158_vm4 = vcmp.ge.f32.partialorder %v6126_v52, 0.0  ;;  %v6190_v5 = vmul.f32 0.2, %v6126_v52  ;;  %v6129_v28 = vadd.f32 %v21304_v63, %v6090_v37  ;;  %v25137_v16 = vld [vmem:[#allocation83_spill] sm:$0xff] }
 0x457   : > { %v17843_v49 = vpop.f32.mrf.mxu1  ;;  %v6224_v59 = vsel %vm6160_vm5, %v6128_v23, %v6192_v39  ;;  %v5792_v53 = vadd.f32 %v21432_v46, %v25134_v18  ;;  %v5790_v23 = vadd.f32 %v5735_v51, %v5485_v3  ;;  %v5793_v51 = vadd.f32 %v17812_v26, %v25137_v16 }
 0x458   : > { %v6127_v43 = vadd.f32 %v21304_v63, %v6088_v61  ;;  %v6093_v22 = vadd.f32 %v17843_v49, %v5788_v50  ;;  %v6222_v58 = vsel %vm6158_vm4, %v6126_v52, %v6190_v5  ;;  %v6193_v62 = vmul.f32 0.2, %v6129_v28 }
 0x459   : > { %v6024_v13 = vpop.f32.mrf.mxu1  ;;  %6300 = vrot.lane.b32.xlu1 %v6221_v47, %s19090_s14  ;;  %6302 = vrot.lane.b32.xlu0 %v6222_v58, %s19090_s14  ;;  %vm6161_vm8 = vcmp.ge.f32.partialorder %v6129_v28, 0.0  ;;  %v5486_v52 = vadd.f32 %v25135_v21, %v5181_v54  ;;  %v4880_v50 = vadd.f32 %v25136_v48, %v4575_v45  ;;  %v5489_v61 = vadd.f32 %v21269_v17, %v5184_v25 }
 0x45a   : > { %v6091_v24 = vadd.f32 %v6024_v13, %v5786_v11  ;;  %vm6159_vm7 = vcmp.ge.f32.partialorder %v6127_v43, 0.0  ;;  %v6191_v32 = vmul.f32 0.2, %v6127_v43  ;;  %v6132_v19 = vadd.f32 %v21304_v63, %v6093_v22 }
 0x45b   : > { %v17844_v12 = vpop.f32.mrf.mxu1  ;;  %v6225_v29 = vsel %vm6161_vm8, %v6129_v28, %v6193_v62  ;;  %v5791_v31 = vadd.f32 %v5738_v36, %v5486_v52  ;;  %v5185_v45 = vadd.f32 %v25138_v27, %v4880_v50  ;;  %v5794_v1 = vadd.f32 %v5751_v57, %v5489_v61 }
 0x45c   : > { %v6130_v33 = vadd.f32 %v21304_v63, %v6091_v24  ;;  %v6094_v15 = vadd.f32 %v17844_v12, %v5789_v38  ;;  %v6223_v2 = vsel %vm6159_vm7, %v6127_v43, %v6191_v32  ;;  %v6196_v4 = vmul.f32 0.2, %v6132_v19  ;;  %v17816_v43 = vpop.f32.mrf.mxu0 }
 0x45d   : > { %v6027_v8 = vpop.f32.mrf.mxu1  ;;  %6306 = vrot.lane.b32.xlu0 %v6224_v59, %s19090_s14  ;;  %6304 = vrot.lane.b32.xlu1 %v6223_v2, %s19090_s14  ;;  %vm6164_vm10 = vcmp.ge.f32.partialorder %v6132_v19, 0.0  ;;  %v5490_v13 = vadd.f32 %v21282_v6, %v5185_v45  ;;  %v5797_v62 = vadd.f32 %v17816_v43, %v21278_v10 }
 0x45e   : > { %v6092_v56 = vadd.f32 %v6027_v8, %v5787_v55  ;;  %vm6162_vm9 = vcmp.ge.f32.partialorder %v6130_v33, 0.0  ;;  %v6194_v41 = vmul.f32 0.2, %v6130_v33  ;;  %v6133_v37 = vadd.f32 %v21304_v63, %v6094_v15  ;;  %v5754_v55 = vpop.f32.mrf.mxu0 }
 0x45f   : > { %v17847_v7 = vpop.f32.mrf.mxu1  ;;  %v6228_v47 = vsel %vm6164_vm10, %v6132_v19, %v6196_v4 }
 0x460   : > { %v6131_v40 = vadd.f32 %v21304_v63, %v6092_v56  ;;  %v6097_v46 = vadd.f32 %v17847_v7, %v5792_v53  ;;  %v6226_v35 = vsel %vm6162_vm9, %v6130_v33, %v6194_v41  ;;  %v6197_v39 = vmul.f32 0.2, %v6133_v37 }
 0x461   : > { %v6040_v11 = vpop.f32.mrf.mxu1  ;;  %6308 = vrot.lane.b32.xlu1 %v6225_v29, %s19090_s14  ;;  %6310 = vrot.lane.b32.xlu0 %v6226_v35, %s19090_s14  ;;  %vm6165_vm12 = vcmp.ge.f32.partialorder %v6133_v37, 0.0  ;;  %v5795_v33 = vadd.f32 %v5754_v55, %v5490_v13  ;;  %vm6366_vm9 = vcmask 261312  }
 0x462   : > { %v6095_v5 = vadd.f32 %v6040_v11, %v5790_v23  ;;  %vm6163_vm11 = vcmp.ge.f32.partialorder %v6131_v40, 0.0  ;;  %v6195_v30 = vmul.f32 0.2, %v6131_v40  ;;  %v6136_v28 = vadd.f32 %v21304_v63, %v6097_v46 }
 0x463   : > { %v17848_v49 = vpop.f32.mrf.mxu1  ;;  %v6229_v24 = vsel %vm6165_vm12, %v6133_v37, %v6197_v39  ;;  %v18960_v37 = vld [vmem:[%s24892_s5 + $0x38] sm:$0xff]  }
 0x464   : > { %v6134_v22 = vadd.f32 %v21304_v63, %v6095_v5  ;;  %v6098_v26 = vadd.f32 %v17848_v49, %v5793_v51  ;;  %v6227_v58 = vsel %vm6163_vm11, %v6131_v40, %v6195_v30  ;;  %v6200_v32 = vmul.f32 0.2, %v6136_v28  ;;  %17961 = vmatprep.subr.bf16.mxu1 %v18960_v37  ;;  %v18961_v49 = vld [vmem:[%s24892_s5 + $0x30] sm:$0xff]  }
 0x465   : > { %v6043_v17 = vpop.f32.mrf.mxu1  ;;  %6314 = vrot.lane.b32.xlu0 %v6228_v47, %s19090_s14  ;;  %6312 = vrot.lane.b32.xlu1 %v6227_v58, %s19090_s14  ;;  %vm6168_vm13 = vcmp.ge.f32.partialorder %v6136_v28, 0.0  ;;  %vm9507_vm11 = vcmask 326656  }
 0x466   : > { %v6096_v34 = vadd.f32 %v6043_v17, %v5791_v31  ;;  %vm6166_vm6 = vcmp.ge.f32.partialorder %v6134_v22, 0.0  ;;  %v6198_v38 = vmul.f32 0.2, %v6134_v22  ;;  %v6137_v3 = vadd.f32 %v21304_v63, %v6098_v26 }
 0x467   : > { %v17851_v36 = vpop.f32.mrf.mxu1  ;;  %v6232_v2 = vsel %vm6168_vm13, %v6136_v28, %v6200_v32  ;;  %v18959_v28 = vld [vmem:[%s24892_s5 + $0x20] sm:$0xff]  }
 0x468   : > { %v6135_v19 = vadd.f32 %v21304_v63, %v6096_v34  ;;  %v6101_v60 = vadd.f32 %v17851_v36, %v5796_v9  ;;  %v6230_v12 = vsel %vm6166_vm6, %v6134_v22, %v6198_v38  ;;  %v6201_v0 = vmul.f32 0.2, %v6137_v3  ;;  %v21548_v9 = vld [vmem:[%s24892_s5 + $0x58] sm:$0xff]  }
 0x469   : > { %v6056_v59 = vpop.f32.mrf.mxu1  ;;  %6316 = vrot.lane.b32.xlu1 %v6229_v24, %s19090_s14  ;;  %6318 = vrot.lane.b32.xlu0 %v6230_v12, %s19090_s14  ;;  %vm6169_vm3 = vcmp.ge.f32.partialorder %v6137_v3, 0.0 }
 0x46a   : > { %v6099_v20 = vadd.f32 %v6056_v59, %v5794_v1  ;;  %vm6167_vm15 = vcmp.ge.f32.partialorder %v6135_v19, 0.0  ;;  %v6199_v6 = vmul.f32 0.2, %v6135_v19  ;;  %v6140_v54 = vadd.f32 %v21304_v63, %v6101_v60 }
 0x46b   : > { %v17852_v15 = vpop.f32.mrf.mxu1  ;;  %v6233_v56 = vsel %vm6169_vm3, %v6137_v3, %v6201_v0 }
 0x46c   : > { %v6138_v42 = vadd.f32 %v21304_v63, %v6099_v20  ;;  %v6102_v44 = vadd.f32 %v17852_v15, %v5797_v62  ;;  %v6231_v25 = vsel %vm6167_vm15, %v6135_v19, %v6199_v6  ;;  %v6204_v21 = vmul.f32 0.2, %v6140_v54 }
 0x46d   : > { %v6059_v18 = vpop.f32.mrf.mxu1  ;;  %6322 = vrot.lane.b32.xlu0 %v6232_v2, %s19090_s14  ;;  %6320 = vrot.lane.b32.xlu1 %v6231_v25, %s19090_s14  ;;  %vm6172_vm5 = vcmp.ge.f32.partialorder %v6140_v54, 0.0 }
 0x46e   : > { %v6141_v10 = vadd.f32 %v21304_v63, %v6102_v44  ;;  %v6100_v53 = vadd.f32 %v6059_v18, %v5795_v33  ;;  %vm6170_vm4 = vcmp.ge.f32.partialorder %v6138_v42, 0.0  ;;  %v6202_v8 = vmul.f32 0.2, %v6138_v42 }
 0x46f   : > { %v6236_v7 = vsel %vm6172_vm5, %v6140_v54, %v6204_v21 }
 0x470   : > { %v6139_v23 = vadd.f32 %v21304_v63, %v6100_v53  ;;  %v6234_v41 = vsel %vm6170_vm4, %v6138_v42, %v6202_v8  ;;  %v6205_v4 = vmul.f32 0.2, %v6141_v10  ;;  %vm6173_vm8 = vcmp.ge.f32.partialorder %v6141_v10, 0.0 }
 0x471   : > { %6324 = vrot.lane.b32.xlu1 %v6233_v56, %s19090_s14  ;;  %6326 = vrot.lane.b32.xlu0 %v6234_v41, %s19090_s14 }
 0x472   : > { %vm6171_vm7 = vcmp.ge.f32.partialorder %v6139_v23, 0.0  ;;  %v6203_v52 = vmul.f32 0.2, %v6139_v23  ;;  %v6237_v63 = vsel %vm6173_vm8, %v6141_v10, %v6205_v4 }
 0x474   : > { %v6235_v29 = vsel %vm6171_vm7, %v6139_v23, %v6203_v52 }
 0x475   : > { %6330 = vrot.lane.b32.xlu0 %v6236_v7, %s19090_s14  ;;  %6328 = vrot.lane.b32.xlu1 %v6235_v29, %s19090_s14 }
 0x479   : > { %6332 = vrot.lane.b32.xlu1 %v6237_v63, %s19090_s14  ;;  %s19092_s14 = smov 40  }
 0x4ab   : > { %v6271_v57 = vpop.permute.xlu0 %6270 }
 0x4ac   : > { %6367 = vst.msk [vmem:[#allocation2 + $0x19] sm:$0xff] %vm6366_vm9, %v6271_v57 }
 0x4af   : > { %v6275_v40 = vpop.permute.xlu0 %6274  ;;  %v6273_v46 = vpop.permute.xlu1 %6272 }
 0x4b0   : > { %6368 = vst.msk [vmem:[#allocation2 + $0x21] sm:$0xff] %vm6366_vm9, %v6273_v46  ;;  %6369 = vst.msk [vmem:[#allocation2 + $0x31] sm:$0xff] %vm6366_vm9, %v6275_v40 }
 0x4b3   : > { %v6277_v35 = vpop.permute.xlu1 %6276  ;;  %v6279_v48 = vpop.permute.xlu0 %6278  ;;  %v6453_v50 = vld [vmem:[#allocation2 + $0x19] sm:$0xff] }
 0x4b4   : > { %6370 = vst.msk [vmem:[#allocation2 + $0x39] sm:$0xff] %vm6366_vm9, %v6277_v35  ;;  %6371 = vst.msk [vmem:[#allocation2 + $0x49] sm:$0xff] %vm6366_vm9, %v6279_v48  ;;  %v6401_v61 = vld [vmem:[#allocation2 + $0x18] sm:$0xff] }
 0x4b7   : > { %v6283_v16 = vpop.permute.xlu0 %6282  ;;  %v6281_v51 = vpop.permute.xlu1 %6280  ;;  %v6454_v11 = vld [vmem:[#allocation2 + $0x21] sm:$0xff]  ;;  %v6455_v47 = vld [vmem:[#allocation2 + $0x31] sm:$0xff] }
 0x4b8   : > { %v6402_v5 = vld [vmem:[#allocation2 + $0x20] sm:$0xff]  ;;  %v21517_v30 = vpack.c.bf16 %v6454_v11, %v6453_v50  ;;  %6372 = vst.msk [vmem:[#allocation2 + $0x51] sm:$0xff] %vm6366_vm9, %v6281_v51  ;;  %6373 = vst.msk [vmem:[#allocation2 + $0x61] sm:$0xff] %vm6366_vm9, %v6283_v16  ;;  %v6403_v26 = vld [vmem:[#allocation2 + $0x30] sm:$0xff] }
 0x4b9   : > { %v21521_v31 = vpack.c.bf16 %v6402_v5, %v6401_v61 }
 0x4ba   : > { %17858 = vmatmul.mubr.msk.bf16.vlgmr.msra.gmra.mxu0 %vm6516_vm14, %v21517_v30 }
 0x4bb   : > { %17894 = vmatmul.mubr.msk.bf16.vlgmr.msra.gmra.mxu1 %vm6516_vm14, %v21521_v31  ;;  %17926 = vmatpush3.bf16.msra.mxu0 %v21353_v14  ;;  %v6285_v39 = vpop.permute.xlu1 %6284  ;;  %v6287_v43 = vpop.permute.xlu0 %6286  ;;  %v6456_v22 = vld [vmem:[#allocation2 + $0x39] sm:$0xff]  ;;  %v21543_v14 = vld [vmem:[%s24892_s5 + $0x48] sm:$0xff]  }
 0x4bc   : > { %v6404_v58 = vld [vmem:[#allocation2 + $0x38] sm:$0xff]  ;;  %17962 = vmatpush3.bf16.msra.mxu1 %v18960_v37  ;;  %6374 = vst.msk [vmem:[#allocation2 + $0x69] sm:$0xff] %vm6366_vm9, %v6285_v39  ;;  %6375 = vst.msk [vmem:[#allocation2 + $0x79] sm:$0xff] %vm6366_vm9, %v6287_v43  ;;  %v21536_v27 = vpack.c.bf16 %v6456_v22, %v6455_v47  ;;  %17927 = vmatprep.subr.bf16.mxu0 %v18959_v28  ;;  %v6457_v17 = vld [vmem:[#allocation2 + $0x49] sm:$0xff] }
 0x4bd   : > { %v21538_v45 = vpack.c.bf16 %v6404_v58, %v6403_v26  ;;  %17963 = vmatprep.subr.bf16.mxu1 %v18961_v49  ;;  %v6405_v13 = vld [vmem:[#allocation2 + $0x48] sm:$0xff] }
 0x4be   : > { %17861 = vmatprep.mubr.msk.bf16.mxu0 %vm6516_vm14, %v21536_v27 }
 0x4bf   : > { %17897 = vmatprep.mubr.msk.bf16.mxu1 %vm6516_vm14, %v21538_v45  ;;  %v6291_v1 = vpop.permute.xlu0 %6290  ;;  %v6289_v34 = vpop.permute.xlu1 %6288  ;;  %v6458_v38 = vld [vmem:[#allocation2 + $0x51] sm:$0xff]  ;;  %17928 = vmatpush3.bf16.msra.mxu0 %v18959_v28  ;;  %v6459_v32 = vld [vmem:[#allocation2 + $0x61] sm:$0xff] }
 0x4c0   : > { %v6406_v3 = vld [vmem:[#allocation2 + $0x50] sm:$0xff]  ;;  %17964 = vmatpush3.bf16.msra.mxu1 %v18961_v49  ;;  %6377 = vst.msk [vmem:[#allocation2 + $0x91] sm:$0xff] %vm6366_vm9, %v6291_v1  ;;  %6376 = vst.msk [vmem:[#allocation2 + $0x81] sm:$0xff] %vm6366_vm9, %v6289_v34  ;;  %v21556_v36 = vpack.c.bf16 %v6458_v38, %v6457_v17  ;;  %17997 = vmatprep.subr.bf16.mxu0 %v21543_v14  ;;  %v6407_v12 = vld [vmem:[#allocation2 + $0x60] sm:$0xff] }
 0x4c1   : > { %v21558_v24 = vpack.c.bf16 %v6406_v3, %v6405_v13  ;;  %18033 = vmatprep.subr.bf16.mxu1 %v21548_v9 }
 0x4c2   : > { %17862 = vmatmul.mubr.msk.bf16.gmra.mxu0 %vm6516_vm14, %v21556_v36 }
 0x4c3   : > { %17898 = vmatmul.mubr.msk.bf16.gmra.mxu1 %vm6516_vm14, %v21558_v24  ;;  %v6293_v55 = vpop.permute.xlu1 %6292  ;;  %v6295_v19 = vpop.permute.xlu0 %6294  ;;  %v6460_v60 = vld [vmem:[#allocation2 + $0x69] sm:$0xff]  ;;  %v6461_v6 = vld [vmem:[#allocation2 + $0x79] sm:$0xff] }
 0x4c4   : > { %v6408_v59 = vld [vmem:[#allocation2 + $0x68] sm:$0xff]  ;;  %6378 = vst.msk [vmem:[#allocation2 + $0x99] sm:$0xff] %vm6366_vm9, %v6293_v55  ;;  %6379 = vst.msk [vmem:[#allocation2 + $0xa9] sm:$0xff] %vm6366_vm9, %v6295_v19  ;;  %v21568_v62 = vpack.c.bf16 %v6460_v60, %v6459_v32  ;;  %v6409_v0 = vld [vmem:[#allocation2 + $0x78] sm:$0xff] }
 0x4c5   : > { %v21570_v20 = vpack.c.bf16 %v6408_v59, %v6407_v12 }
 0x4c6   : > { %17865 = vmatprep.mubr.msk.bf16.mxu0 %vm6516_vm14, %v21568_v62 }
 0x4c7   : > { %17901 = vmatprep.mubr.msk.bf16.mxu1 %vm6516_vm14, %v21570_v20  ;;  %v6299_v33 = vpop.permute.xlu0 %6298  ;;  %v6297_v15 = vpop.permute.xlu1 %6296  ;;  %v6462_v2 = vld [vmem:[#allocation2 + $0x81] sm:$0xff]  ;;  %v6463_v25 = vld [vmem:[#allocation2 + $0x91] sm:$0xff] }
 0x4c8   : > { %v6410_v54 = vld [vmem:[#allocation2 + $0x80] sm:$0xff]  ;;  %6381 = vst.msk [vmem:[#allocation2 + $0xc1] sm:$0xff] %vm6366_vm9, %v6299_v33  ;;  %6380 = vst.msk [vmem:[#allocation2 + $0xb1] sm:$0xff] %vm6366_vm9, %v6297_v15  ;;  %v21578_v42 = vpack.c.bf16 %v6462_v2, %v6461_v6  ;;  %v6411_v8 = vld [vmem:[#allocation2 + $0x90] sm:$0xff] }
 0x4c9   : > { %v21580_v44 = vpack.c.bf16 %v6410_v54, %v6409_v0 }
 0x4ca   : > { %17866 = vmatmul.mubr.msk.bf16.gmra.mxu0 %vm6516_vm14, %v21578_v42 }
 0x4cb   : > { %17902 = vmatmul.mubr.msk.bf16.gmra.mxu1 %vm6516_vm14, %v21580_v44  ;;  %v6301_v18 = vpop.permute.xlu1 %6300  ;;  %v6303_v10 = vpop.permute.xlu0 %6302  ;;  %v6464_v53 = vld [vmem:[#allocation2 + $0x99] sm:$0xff]  ;;  %v6465_v21 = vld [vmem:[#allocation2 + $0xa9] sm:$0xff] }
 0x4cc   : > { %v6412_v23 = vld [vmem:[#allocation2 + $0x98] sm:$0xff]  ;;  %6382 = vst.msk [vmem:[#allocation2 + $0xc9] sm:$0xff] %vm6366_vm9, %v6301_v18  ;;  %6383 = vst.msk [vmem:[#allocation2 + $0xd9] sm:$0xff] %vm6366_vm9, %v6303_v10  ;;  %v21588_v56 = vpack.c.bf16 %v6464_v53, %v6463_v25  ;;  %v6413_v29 = vld [vmem:[#allocation2 + $0xa8] sm:$0xff] }
 0x4cd   : > { %v21590_v41 = vpack.c.bf16 %v6412_v23, %v6411_v8 }
 0x4ce   : > { %17869 = vmatprep.mubr.msk.bf16.mxu0 %vm6516_vm14, %v21588_v56 }
 0x4cf   : > { %17905 = vmatprep.mubr.msk.bf16.mxu1 %vm6516_vm14, %v21590_v41  ;;  %v6307_v52 = vpop.permute.xlu0 %6306  ;;  %v6305_v37 = vpop.permute.xlu1 %6304  ;;  %v6466_v7 = vld [vmem:[#allocation2 + $0xb1] sm:$0xff]  ;;  %v6467_v40 = vld [vmem:[#allocation2 + $0xc1] sm:$0xff] }
 0x4d0   : > { %v6414_v4 = vld [vmem:[#allocation2 + $0xb0] sm:$0xff]  ;;  %6385 = vst.msk [vmem:[#allocation2 + $0xf1] sm:$0xff] %vm6366_vm9, %v6307_v52  ;;  %6384 = vst.msk [vmem:[#allocation2 + $0xe1] sm:$0xff] %vm6366_vm9, %v6305_v37  ;;  %v21598_v63 = vpack.c.bf16 %v6466_v7, %v6465_v21  ;;  %v6415_v50 = vld [vmem:[#allocation2 + $0xc0] sm:$0xff] }
 0x4d1   : > { %v21600_v57 = vpack.c.bf16 %v6414_v4, %v6413_v29 }
 0x4d2   : > { %17870 = vmatmul.mubr.msk.bf16.gmra.mxu0 %vm6516_vm14, %v21598_v63 }
 0x4d3   : > { %17906 = vmatmul.mubr.msk.bf16.gmra.mxu1 %vm6516_vm14, %v21600_v57  ;;  %v6309_v46 = vpop.permute.xlu1 %6308  ;;  %v6311_v35 = vpop.permute.xlu0 %6310  ;;  %v6468_v48 = vld [vmem:[#allocation2 + $0xc9] sm:$0xff]  ;;  %v6469_v61 = vld [vmem:[#allocation2 + $0xd9] sm:$0xff] }
 0x4d4   : > { %v6416_v16 = vld [vmem:[#allocation2 + $0xc8] sm:$0xff]  ;;  %6386 = vst.msk [vmem:[#allocation2 + $0xf9] sm:$0xff] %vm6366_vm9, %v6309_v46  ;;  %6387 = vst.msk [vmem:[#allocation2 + $0x109] sm:$0xff] %vm6366_vm9, %v6311_v35  ;;  %v21608_v51 = vpack.c.bf16 %v6468_v48, %v6467_v40  ;;  %v6417_v47 = vld [vmem:[#allocation2 + $0xd8] sm:$0xff] }
 0x4d5   : > { %v21610_v11 = vpack.c.bf16 %v6416_v16, %v6415_v50 }
 0x4d6   : > { %17873 = vmatprep.mubr.msk.bf16.mxu0 %vm6516_vm14, %v21608_v51 }
 0x4d7   : > { %17909 = vmatprep.mubr.msk.bf16.mxu1 %vm6516_vm14, %v21610_v11  ;;  %v6315_v5 = vpop.permute.xlu0 %6314  ;;  %v6313_v28 = vpop.permute.xlu1 %6312  ;;  %v6470_v49 = vld [vmem:[#allocation2 + $0xe1] sm:$0xff]  ;;  %v6471_v26 = vld [vmem:[#allocation2 + $0xf1] sm:$0xff] }
 0x4d8   : > { %v6418_v39 = vld [vmem:[#allocation2 + $0xe0] sm:$0xff]  ;;  %6389 = vst.msk [vmem:[#allocation2 + $0x121] sm:$0xff] %vm6366_vm9, %v6315_v5  ;;  %6388 = vst.msk [vmem:[#allocation2 + $0x111] sm:$0xff] %vm6366_vm9, %v6313_v28  ;;  %v21618_v43 = vpack.c.bf16 %v6470_v49, %v6469_v61  ;;  %v6419_v34 = vld [vmem:[#allocation2 + $0xf0] sm:$0xff] }
 0x4d9   : > { %v21620_v22 = vpack.c.bf16 %v6418_v39, %v6417_v47  ;;  %v6947_v5 = vld [vmem:[#allocation2 + $0x2] sm:$0xff]  ;;  %v6948_v28 = vld [vmem:[#allocation2 + $0xa] sm:$0xff] }
 0x4da   : > { %17874 = vmatmul.mubr.msk.bf16.gmra.mxu0 %vm6516_vm14, %v21618_v43 }
 0x4db   : > { %17910 = vmatmul.mubr.msk.bf16.gmra.mxu1 %vm6516_vm14, %v21620_v22  ;;  %v6317_v58 = vpop.permute.xlu1 %6316  ;;  %v6319_v17 = vpop.permute.xlu0 %6318  ;;  %v6472_v1 = vld [vmem:[#allocation2 + $0xf9] sm:$0xff]  ;;  %v6473_v32 = vld [vmem:[#allocation2 + $0x109] sm:$0xff] }
 0x4dc   : > { %v6420_v38 = vld [vmem:[#allocation2 + $0xf8] sm:$0xff]  ;;  %6390 = vst.msk [vmem:[#allocation2 + $0x129] sm:$0xff] %vm6366_vm9, %v6317_v58  ;;  %6391 = vst.msk [vmem:[#allocation2 + $0x139] sm:$0xff] %vm6366_vm9, %v6319_v17  ;;  %v21628_v13 = vpack.c.bf16 %v6472_v1, %v6471_v26  ;;  %v6421_v12 = vld [vmem:[#allocation2 + $0x108] sm:$0xff]  ;;  %v6979_v58 = vpack.c.bf16 %v6948_v28, %v6947_v5 }
 0x4dd   : > { %v21630_v3 = vpack.c.bf16 %v6420_v38, %v6419_v34  ;;  %v6949_v34 = vld [vmem:[#allocation2 + $0x1a] sm:$0xff]  ;;  %v6950_v38 = vld [vmem:[#allocation2 + $0x22] sm:$0xff] }
 0x4de   : > { %17877 = vmatprep.mubr.msk.bf16.mxu0 %vm6516_vm14, %v21628_v13  ;;  %v6965_v5 = vld [vmem:[#allocation2 + $0xda] sm:$0xff]  ;;  %v6966_v28 = vld [vmem:[#allocation2 + $0xe2] sm:$0xff] }
 0x4df   : > { %17913 = vmatprep.mubr.msk.bf16.mxu1 %vm6516_vm14, %v21630_v3  ;;  %v6323_v55 = vpop.permute.xlu0 %6322  ;;  %v6321_v19 = vpop.permute.xlu1 %6320  ;;  %v6474_v60 = vld [vmem:[#allocation2 + $0x111] sm:$0xff]  ;;  %v6475_v15 = vld [vmem:[#allocation2 + $0x121] sm:$0xff] }
 0x4e0   : > { %v6422_v59 = vld [vmem:[#allocation2 + $0x110] sm:$0xff]  ;;  %6393 = vst.msk [vmem:[#allocation2 + $0x151] sm:$0xff] %vm6366_vm9, %v6323_v55  ;;  %6392 = vst.msk [vmem:[#allocation2 + $0x141] sm:$0xff] %vm6366_vm9, %v6321_v19  ;;  %v21638_v6 = vpack.c.bf16 %v6474_v60, %v6473_v32  ;;  %v6423_v25 = vld [vmem:[#allocation2 + $0x120] sm:$0xff]  ;;  %v21686_v19 = vpack.c.bf16 %v6950_v38, %v6949_v34 }
 0x4e1   : > { %v21640_v33 = vpack.c.bf16 %v6422_v59, %v6421_v12  ;;  %v6951_v32 = vld [vmem:[#allocation2 + $0x32] sm:$0xff]  ;;  %v6952_v55 = vld [vmem:[#allocation2 + $0x3a] sm:$0xff]  ;;  %v21708_v59 = vld [vmem:[%s24892_s5 + $0x68] sm:$0xff]  }
 0x4e2   : > { %17878 = vmatmul.mubr.msk.bf16.gmra.mxu0 %vm6516_vm14, %v21638_v6  ;;  %v18963_v60 = vld [vmem:[%s24892_s5 + $0x40] sm:$0xff]   ;;  %v21691_v12 = vpack.c.bf16 %v6952_v55, %v6951_v32  ;;  %v6970_v34 = vld [vmem:[#allocation2 + $0x112] sm:$0xff] }
 0x4e3   : > { %17914 = vmatmul.mubr.msk.bf16.gmra.mxu1 %vm6516_vm14, %v21640_v33  ;;  %v6325_v2 = vpop.permute.xlu1 %6324  ;;  %v6327_v0 = vpop.permute.xlu0 %6326  ;;  %v6476_v54 = vld [vmem:[#allocation2 + $0x129] sm:$0xff]  ;;  %v6477_v8 = vld [vmem:[#allocation2 + $0x139] sm:$0xff] }
 0x4e4   : > { %v6424_v18 = vld [vmem:[#allocation2 + $0x128] sm:$0xff]  ;;  %6394 = vst.msk [vmem:[#allocation2 + $0x159] sm:$0xff] %vm6366_vm9, %v6325_v2  ;;  %6395 = vst.msk [vmem:[#allocation2 + $0x169] sm:$0xff] %vm6366_vm9, %v6327_v0  ;;  %v21648_v10 = vpack.c.bf16 %v6476_v54, %v6475_v15  ;;  %v6425_v37 = vld [vmem:[#allocation2 + $0x138] sm:$0xff] }
 0x4e5   : > { %v21650_v53 = vpack.c.bf16 %v6424_v18, %v6423_v25  ;;  %v6953_v15 = vld [vmem:[#allocation2 + $0x4a] sm:$0xff]  ;;  %v6954_v2 = vld [vmem:[#allocation2 + $0x52] sm:$0xff]  ;;  %v6955_v0 = vld [vmem:[#allocation2 + $0x62] sm:$0xff] }
 0x4e6   : > { %17881 = vmatprep.mubr.msk.bf16.mxu0 %vm6516_vm14, %v21648_v10  ;;  %v6956_v54 = vld [vmem:[#allocation2 + $0x6a] sm:$0xff]  ;;  %v21717_v25 = vld [vmem:[%s24892_s5 + $0x78] sm:$0xff]   ;;  %v6971_v38 = vld [vmem:[#allocation2 + $0x122] sm:$0xff] }
 0x4e7   : > { %17917 = vmatprep.mubr.msk.bf16.mxu1 %vm6516_vm14, %v21650_v53  ;;  %v6331_v23 = vpop.permute.xlu0 %6330  ;;  %v6329_v21 = vpop.permute.xlu1 %6328  ;;  %v6478_v52 = vld [vmem:[#allocation2 + $0x141] sm:$0xff]  ;;  %v6479_v40 = vld [vmem:[#allocation2 + $0x151] sm:$0xff]  ;;  %v21719_v18 = vpack.c.bf16 %v6956_v54, %v6955_v0 }
 0x4e8   : > { %v6426_v7 = vld [vmem:[#allocation2 + $0x140] sm:$0xff]  ;;  %6397 = vst.msk [vmem:[#allocation2 + $0x181] sm:$0xff] %vm6366_vm9, %v6331_v23  ;;  %6396 = vst.msk [vmem:[#allocation2 + $0x171] sm:$0xff] %vm6366_vm9, %v6329_v21  ;;  %v21658_v29 = vpack.c.bf16 %v6478_v52, %v6477_v8  ;;  %v6427_v48 = vld [vmem:[#allocation2 + $0x150] sm:$0xff] }
 0x4e9   : > { %v21660_v4 = vpack.c.bf16 %v6426_v7, %v6425_v37  ;;  %v6958_v8 = vld [vmem:[#allocation2 + $0x82] sm:$0xff]  ;;  %v6959_v23 = vld [vmem:[#allocation2 + $0x92] sm:$0xff]  ;;  %v6960_v21 = vld [vmem:[#allocation2 + $0x9a] sm:$0xff] }
 0x4ea   : > { %17882 = vmatmul.mubr.msk.bf16.gmra.mxu0 %vm6516_vm14, %v21658_v29  ;;  %v21732_v37 = vpack.c.bf16 %v6960_v21, %v6959_v23  ;;  %v6961_v7 = vld [vmem:[#allocation2 + $0xaa] sm:$0xff] }
 0x4eb   : > { %17918 = vmatmul.mubr.msk.bf16.gmra.mxu1 %vm6516_vm14, %v21660_v4  ;;  %v6333_v46 = vpop.permute.xlu1 %6332  ;;  %v6480_v35 = vld [vmem:[#allocation2 + $0x159] sm:$0xff]  ;;  %v6481_v49 = vld [vmem:[#allocation2 + $0x169] sm:$0xff] }
 0x4ec   : > { %v6428_v50 = vld [vmem:[#allocation2 + $0x158] sm:$0xff]  ;;  %6398 = vst.msk [vmem:[#allocation2 + $0x189] sm:$0xff] %vm6366_vm9, %v6333_v46  ;;  %v21667_v16 = vpack.c.bf16 %v6480_v35, %v6479_v40  ;;  %v6429_v39 = vld [vmem:[#allocation2 + $0x168] sm:$0xff] }
 0x4ed   : > { %v21669_v61 = vpack.c.bf16 %v6428_v50, %v6427_v48  ;;  %v6962_v40 = vld [vmem:[#allocation2 + $0xb2] sm:$0xff]  ;;  %v6963_v46 = vld [vmem:[#allocation2 + $0xc2] sm:$0xff]  ;;  %v6964_v35 = vld [vmem:[#allocation2 + $0xca] sm:$0xff] }
 0x4ee   : > { %17885 = vmatprep.mubr.msk.bf16.mxu0 %vm6516_vm14, %v21667_v16  ;;  %v21742_v48 = vpack.c.bf16 %v6962_v40, %v6961_v7  ;;  %v21744_v50 = vpack.c.bf16 %v6964_v35, %v6963_v46  ;;  %v6972_v32 = vld [vmem:[#allocation2 + $0x12a] sm:$0xff]  ;;  %v6976_v0 = vld [vmem:[#allocation2 + $0x15a] sm:$0xff] }
 0x4ef   : > { %17921 = vmatprep.mubr.msk.bf16.mxu1 %vm6516_vm14, %v21669_v61  ;;  %v6482_v47 = vld [vmem:[#allocation2 + $0x171] sm:$0xff]  ;;  %v7283_v7 = vld [vmem:[#allocation2 + $0x180] sm:$0xff] }
 0x4f0   : > { %v6430_v26 = vld [vmem:[#allocation2 + $0x170] sm:$0xff]  ;;  %v21675_v17 = vpack.c.bf16 %v6482_v47, %v6481_v49  ;;  %v6968_v47 = vld [vmem:[#allocation2 + $0xfa] sm:$0xff] }
 0x4f1   : > { %v21677_v1 = vpack.c.bf16 %v6430_v26, %v6429_v39  ;;  %v6967_v49 = vld [vmem:[#allocation2 + $0xf2] sm:$0xff]  ;;  %v6988_v39 = vpack.c.bf16 %v6966_v28, %v6965_v5  ;;  %v18967_v35 = vld [vmem:[%s24892_s5 + $0x60] sm:$0xff]  }
 0x4f2   : > { %17886 = vmatmul.mubr.msk.bf16.gmra.mxu0 %vm6516_vm14, %v21675_v17  ;;  %v6989_v26 = vpack.c.bf16 %v6968_v47, %v6967_v49  ;;  %v6978_v23 = vld [vmem:[#allocation2 + $0x172] sm:$0xff] }
 0x4f3   : > { %17922 = vmatmul.mubr.msk.bf16.gmra.mxu1 %vm6516_vm14, %v21677_v1  ;;  %17929 = vmatprep.mubr.msk.bf16.mxu0 %vm6516_vm14, %v6979_v58  ;;  %v6969_v58 = vld [vmem:[#allocation2 + $0x10a] sm:$0xff] }
 0x4f4   : > { %17965 = vmatprep.mubr.msk.bf16.mxu1 %vm6516_vm14, %v21521_v31  ;;  %v18965_v31 = vld [vmem:[%s24892_s5 + $0x50] sm:$0xff]   ;;  %v6990_v55 = vpack.c.bf16 %v6970_v34, %v6969_v58  ;;  %v7284_v21 = vld [vmem:[#allocation2 + $0x188] sm:$0xff] }
 0x4f5   : > { %v21772_v46 = vpack.c.bf16 %v7284_v21, %v7283_v7  ;;  %v18969_v5 = vld [vmem:[%s24892_s5 + $0x70] sm:$0xff]  }
 0x4fa   : > { %17930 = vmatmul.mubr.msk.bf16.vlgmr.msra.gmra.mxu0 %vm6516_vm14, %v21686_v19 }
 0x4fb   : > { %17966 = vmatmul.mubr.msk.bf16.vlgmr.msra.gmra.mxu1 %vm6516_vm14, %v21538_v45  ;;  %17998 = vmatpush3.bf16.msra.mxu0 %v21543_v14  ;;  %v21711_v14 = vpack.c.bf16 %v6954_v2, %v6953_v15  ;;  %v6974_v15 = vld [vmem:[#allocation2 + $0x142] sm:$0xff]  ;;  %v6975_v2 = vld [vmem:[#allocation2 + $0x152] sm:$0xff] }
 0x4fc   : > { %17933 = vmatprep.mubr.msk.bf16.mxu0 %vm6516_vm14, %v21691_v12  ;;  %17969 = vmatprep.mubr.msk.bf16.mxu1 %vm6516_vm14, %v21558_v24 }
 0x4fd   : > { %17999 = vmatprep.subr.bf16.mxu0 %v18963_v60  ;;  %18034 = vmatpush3.bf16.msra.mxu1 %v21548_v9  ;;  %v6957_v9 = vld [vmem:[#allocation2 + $0x7a] sm:$0xff] }
 0x4fe   : > { %18035 = vmatprep.subr.bf16.mxu1 %v18965_v31  ;;  %v21730_v52 = vpack.c.bf16 %v6958_v8, %v6957_v9  ;;  %v6993_v9 = vpack.c.bf16 %v6976_v0, %v6975_v2  ;;  %v6977_v8 = vld [vmem:[#allocation2 + $0x16a] sm:$0xff] }
 0x4ff   : > { %18000 = vmatpush3.bf16.msra.mxu0 %v18963_v60  ;;  %v6991_v60 = vpack.c.bf16 %v6972_v32, %v6971_v38  ;;  %v6994_v40 = vpack.c.bf16 %v6978_v23, %v6977_v8 }
 0x500   : > { %18069 = vmatprep.subr.bf16.mxu0 %v21708_v59 }
 0x501   : > { %18036 = vmatpush3.bf16.msra.mxu1 %v18965_v31  ;;  %v6973_v31 = vld [vmem:[#allocation2 + $0x13a] sm:$0xff] }
 0x502   : > { %17934 = vmatmul.mubr.msk.bf16.gmra.mxu0 %vm6516_vm14, %v21711_v14  ;;  %18105 = vmatprep.subr.bf16.mxu1 %v21717_v25  ;;  %v6992_v54 = vpack.c.bf16 %v6974_v15, %v6973_v31 }
 0x503   : > { %17970 = vmatmul.mubr.msk.bf16.gmra.mxu1 %vm6516_vm14, %v21570_v20  ;;  %17937 = vmatprep.mubr.msk.bf16.mxu0 %vm6516_vm14, %v21719_v18 }
 0x504   : > { %17973 = vmatprep.mubr.msk.bf16.mxu1 %vm6516_vm14, %v21580_v44 }
 0x50a   : > { %17938 = vmatmul.mubr.msk.bf16.gmra.mxu0 %vm6516_vm14, %v21730_v52 }
 0x50b   : > { %17974 = vmatmul.mubr.msk.bf16.gmra.mxu1 %vm6516_vm14, %v21590_v41  ;;  %17941 = vmatprep.mubr.msk.bf16.mxu0 %vm6516_vm14, %v21732_v37 }
 0x50c   : > { %17977 = vmatprep.mubr.msk.bf16.mxu1 %vm6516_vm14, %v21600_v57 }
 0x512   : > { %17942 = vmatmul.mubr.msk.bf16.gmra.mxu0 %vm6516_vm14, %v21742_v48 }
 0x513   : > { %17978 = vmatmul.mubr.msk.bf16.gmra.mxu1 %vm6516_vm14, %v21610_v11  ;;  %17945 = vmatprep.mubr.msk.bf16.mxu0 %vm6516_vm14, %v21744_v50 }
 0x514   : > { %17981 = vmatprep.mubr.msk.bf16.mxu1 %vm6516_vm14, %v21620_v22 }
 0x51a   : > { %17946 = vmatmul.mubr.msk.bf16.gmra.mxu0 %vm6516_vm14, %v6988_v39 }
 0x51b   : > { %17982 = vmatmul.mubr.msk.bf16.gmra.mxu1 %vm6516_vm14, %v21630_v3  ;;  %17949 = vmatprep.mubr.msk.bf16.mxu0 %vm6516_vm14, %v6989_v26 }
 0x51c   : > { %17985 = vmatprep.mubr.msk.bf16.mxu1 %vm6516_vm14, %v21640_v33 }
 0x522   : > { %17950 = vmatmul.mubr.msk.bf16.gmra.mxu0 %vm6516_vm14, %v6990_v55 }
 0x523   : > { %17986 = vmatmul.mubr.msk.bf16.gmra.mxu1 %vm6516_vm14, %v21650_v53  ;;  %17953 = vmatprep.mubr.msk.bf16.mxu0 %vm6516_vm14, %v6991_v60 }
 0x524   : > { %17989 = vmatprep.mubr.msk.bf16.mxu1 %vm6516_vm14, %v21660_v4 }
 0x52a   : > { %17954 = vmatmul.mubr.msk.bf16.gmra.mxu0 %vm6516_vm14, %v6992_v54 }
 0x52b   : > { %17990 = vmatmul.mubr.msk.bf16.gmra.mxu1 %vm6516_vm14, %v21669_v61  ;;  %17957 = vmatprep.mubr.msk.bf16.mxu0 %vm6516_vm14, %v6993_v9 }
 0x52c   : > { %17993 = vmatprep.mubr.msk.bf16.mxu1 %vm6516_vm14, %v21677_v1 }
 0x532   : > { %17958 = vmatmul.mubr.msk.bf16.gmra.mxu0 %vm6516_vm14, %v6994_v40 }
 0x533   : > { %17994 = vmatmul.mubr.msk.bf16.gmra.mxu1 %vm6516_vm14, %v21772_v46  ;;  %18001 = vmatprep.mubr.msk.bf16.mxu0 %vm6516_vm14, %v21517_v30  ;;  %v18970_v30 = vld [vmem:[%s24892_s5 + $0x88] sm:$0xff]  }
 0x534   : > { %18037 = vmatprep.mubr.msk.bf16.mxu1 %vm6516_vm14, %v21686_v19  ;;  %v7590_v19 = vld [vmem:[#allocation2 + $0x189] sm:$0xff] }
 0x53a   : > { %18002 = vmatmul.mubr.msk.bf16.vlgmr.msra.gmra.mxu0 %vm6516_vm14, %v21536_v27 }
 0x53b   : > { %18038 = vmatmul.mubr.msk.bf16.vlgmr.msra.gmra.mxu1 %vm6516_vm14, %v21691_v12  ;;  %18070 = vmatpush3.bf16.msra.mxu0 %v21708_v59  ;;  %v7895_v59 = vld [vmem:[#allocation2 + $0x182] sm:$0xff] }
 0x53c   : > { %18005 = vmatprep.mubr.msk.bf16.mxu0 %vm6516_vm14, %v21556_v36  ;;  %18041 = vmatprep.mubr.msk.bf16.mxu1 %vm6516_vm14, %v21711_v14 }
 0x53d   : > { %18071 = vmatprep.subr.bf16.mxu0 %v18967_v35  ;;  %18106 = vmatpush3.bf16.msra.mxu1 %v21717_v25  ;;  %v7896_v25 = vld [vmem:[#allocation2 + $0x18a] sm:$0xff] }
 0x53e   : > { %18107 = vmatprep.subr.bf16.mxu1 %v18969_v5 }
 0x53f   : > { %18072 = vmatpush3.bf16.msra.mxu0 %v18967_v35 }
 0x540   : > { %18141 = vmatprep.subr.bf16.mxu0 %v18970_v30 }
 0x541   : > { %18108 = vmatpush3.bf16.msra.mxu1 %v18969_v5 }
 0x542   : > { %18006 = vmatmul.mubr.msk.bf16.gmra.mxu0 %vm6516_vm14, %v21568_v62 }
 0x543   : > { %18042 = vmatmul.mubr.msk.bf16.gmra.mxu1 %vm6516_vm14, %v21719_v18  ;;  %18009 = vmatprep.mubr.msk.bf16.mxu0 %vm6516_vm14, %v21578_v42 }
 0x544   : > { %18045 = vmatprep.mubr.msk.bf16.mxu1 %vm6516_vm14, %v21730_v52  ;;  %v7589_v52 = vld [vmem:[#allocation2 + $0x181] sm:$0xff] }
 0x54a   : > { %18010 = vmatmul.mubr.msk.bf16.gmra.mxu0 %vm6516_vm14, %v21588_v56 }
 0x54b   : > { %18046 = vmatmul.mubr.msk.bf16.gmra.mxu1 %vm6516_vm14, %v21732_v37  ;;  %18013 = vmatprep.mubr.msk.bf16.mxu0 %vm6516_vm14, %v21598_v63  ;;  %v21841_v37 = vpack.c.bf16 %v7590_v19, %v7589_v52 }
 0x54c   : > { %18049 = vmatprep.mubr.msk.bf16.mxu1 %vm6516_vm14, %v21742_v48  ;;  %v21843_v48 = vpack.c.bf16 %v7896_v25, %v7895_v59 }
 0x552   : > { %18014 = vmatmul.mubr.msk.bf16.gmra.mxu0 %vm6516_vm14, %v21608_v51 }
 0x553   : > { %18050 = vmatmul.mubr.msk.bf16.gmra.mxu1 %vm6516_vm14, %v21744_v50  ;;  %18017 = vmatprep.mubr.msk.bf16.mxu0 %vm6516_vm14, %v21618_v43  ;;  %v18971_v50 = vld [vmem:[%s24892_s5 + $0x80] sm:$0xff]  }
 0x554   : > { %18053 = vmatprep.mubr.msk.bf16.mxu1 %vm6516_vm14, %v6988_v39 }
 0x55a   : > { %18018 = vmatmul.mubr.msk.bf16.gmra.mxu0 %vm6516_vm14, %v21628_v13 }
 0x55b   : > { %18054 = vmatmul.mubr.msk.bf16.gmra.mxu1 %vm6516_vm14, %v6989_v26  ;;  %18021 = vmatprep.mubr.msk.bf16.mxu0 %vm6516_vm14, %v21638_v6 }
 0x55c   : > { %18057 = vmatprep.mubr.msk.bf16.mxu1 %vm6516_vm14, %v6990_v55 }
 0x562   : > { %18022 = vmatmul.mubr.msk.bf16.gmra.mxu0 %vm6516_vm14, %v21648_v10 }
 0x563   : > { %18058 = vmatmul.mubr.msk.bf16.gmra.mxu1 %vm6516_vm14, %v6991_v60  ;;  %18025 = vmatprep.mubr.msk.bf16.mxu0 %vm6516_vm14, %v21658_v29 }
 0x564   : > { %18061 = vmatprep.mubr.msk.bf16.mxu1 %vm6516_vm14, %v6992_v54 }
 0x56a   : > { %18026 = vmatmul.mubr.msk.bf16.gmra.mxu0 %vm6516_vm14, %v21667_v16 }
 0x56b   : > { %18062 = vmatmul.mubr.msk.bf16.gmra.mxu1 %vm6516_vm14, %v6993_v9  ;;  %18029 = vmatprep.mubr.msk.bf16.mxu0 %vm6516_vm14, %v21675_v17 }
 0x56c   : > { %18065 = vmatprep.mubr.msk.bf16.mxu1 %vm6516_vm14, %v6994_v40 }
 0x572   : > { %18030 = vmatmul.mubr.msk.bf16.gmra.mxu0 %vm6516_vm14, %v21841_v37 }
 0x573   : > { %18066 = vmatmul.mubr.msk.bf16.gmra.mxu1 %vm6516_vm14, %v21843_v48  ;;  %18073 = vmatprep.mubr.msk.bf16.mxu0 %vm6516_vm14, %v21538_v45 }
 0x574   : > { %18109 = vmatprep.mubr.msk.bf16.mxu1 %vm6516_vm14, %v21536_v27 }
 0x57a   : > { %v17859_v28 = vpop.f32.mrf.mxu0  ;;  %18074 = vmatmul.mubr.msk.bf16.vlgmr.msra.gmra.mxu0 %vm6516_vm14, %v21558_v24 }
 0x57b   : > { %v17895_v49 = vpop.f32.mrf.mxu1  ;;  %18110 = vmatmul.mubr.msk.bf16.vlgmr.msra.gmra.mxu1 %vm6516_vm14, %v21556_v36  ;;  %18142 = vmatpush3.bf16.msra.mxu0 %v18970_v30 }
 0x57c   : > { %v21860_v47 = vadd.f32 %v17895_v49, %v17859_v28  ;;  %18077 = vmatprep.mubr.msk.bf16.mxu0 %vm6516_vm14, %v21570_v20  ;;  %18113 = vmatprep.mubr.msk.bf16.mxu1 %vm6516_vm14, %v21568_v62  ;;  %v6599_v27 = vpop.f32.mrf.mxu0 }
 0x57d   : > { %v6820_v45 = vpop.f32.mrf.mxu1  ;;  %18143 = vmatprep.subr.bf16.mxu0 %v18971_v50 }
 0x57e   : > { %v21866_v39 = vadd.f32 %v6820_v45, %v6599_v27  ;;  %v17860_v26 = vpop.f32.mrf.mxu0 }
 0x57f   : > { %v17896_v58 = vpop.f32.mrf.mxu1  ;;  %18144 = vmatpush3.bf16.msra.mxu0 %v18971_v50 }
 0x580   : > { %v21868_v24 = vadd.f32 %v17896_v58, %v17860_v26  ;;  %v6602_v36 = vpop.f32.mrf.mxu0 }
 0x581   : > { %v6823_v34 = vpop.f32.mrf.mxu1 }
 0x582   : > { %v21870_v38 = vadd.f32 %v6823_v34, %v6602_v36  ;;  %v17863_v32 = vpop.f32.mrf.mxu0  ;;  %18078 = vmatmul.mubr.msk.bf16.gmra.mxu0 %vm6516_vm14, %v21580_v44 }
 0x583   : > { %v17899_v55 = vpop.f32.mrf.mxu1  ;;  %18114 = vmatmul.mubr.msk.bf16.gmra.mxu1 %vm6516_vm14, %v21578_v42  ;;  %18081 = vmatprep.mubr.msk.bf16.mxu0 %vm6516_vm14, %v21590_v41 }
 0x584   : > { %v21876_v62 = vadd.f32 %v17899_v55, %v17863_v32  ;;  %18117 = vmatprep.mubr.msk.bf16.mxu1 %vm6516_vm14, %v21588_v56  ;;  %v6615_v20 = vpop.f32.mrf.mxu0 }
 0x585   : > { %v6836_v60 = vpop.f32.mrf.mxu1 }
 0x586   : > { %v21882_v31 = vadd.f32 %v6836_v60, %v6615_v20  ;;  %v17864_v15 = vpop.f32.mrf.mxu0 }
 0x587   : > { %v17900_v2 = vpop.f32.mrf.mxu1 }
 0x588   : > { %v21884_v0 = vadd.f32 %v17900_v2, %v17864_v15  ;;  %v6618_v44 = vpop.f32.mrf.mxu0 }
 0x589   : > { %v6839_v54 = vpop.f32.mrf.mxu1 }
 0x58a   : > { %v21886_v9 = vadd.f32 %v6839_v54, %v6618_v44  ;;  %v17867_v42 = vpop.f32.mrf.mxu0  ;;  %18082 = vmatmul.mubr.msk.bf16.gmra.mxu0 %vm6516_vm14, %v21600_v57 }
 0x58b   : > { %v17903_v8 = vpop.f32.mrf.mxu1  ;;  %18118 = vmatmul.mubr.msk.bf16.gmra.mxu1 %vm6516_vm14, %v21598_v63  ;;  %18085 = vmatprep.mubr.msk.bf16.mxu0 %vm6516_vm14, %v21610_v11 }
 0x58c   : > { %v21892_v56 = vadd.f32 %v17903_v8, %v17867_v42  ;;  %18121 = vmatprep.mubr.msk.bf16.mxu1 %vm6516_vm14, %v21608_v51  ;;  %v6631_v41 = vpop.f32.mrf.mxu0 }
 0x58d   : > { %v6852_v23 = vpop.f32.mrf.mxu1 }
 0x58e   : > { %v21898_v21 = vadd.f32 %v6852_v23, %v6631_v41  ;;  %v17868_v7 = vpop.f32.mrf.mxu0  ;;  %v8202_v41 = vld [vmem:[#allocation2 + $0x1a0] sm:$0xff] }
 0x58f   : > { %v17904_v40 = vpop.f32.mrf.mxu1  ;;  %v8507_v23 = vld [vmem:[#allocation2 + $0x199] sm:$0xff] }
 0x590   : > { %v21900_v35 = vadd.f32 %v17904_v40, %v17868_v7  ;;  %v6634_v57 = vpop.f32.mrf.mxu0  ;;  %v8508_v7 = vld [vmem:[#allocation2 + $0x1a1] sm:$0xff] }
 0x591   : > { %v6855_v5 = vpop.f32.mrf.mxu1 }
 0x592   : > { %v21902_v30 = vadd.f32 %v6855_v5, %v6634_v57  ;;  %v17871_v63 = vpop.f32.mrf.mxu0  ;;  %18086 = vmatmul.mubr.msk.bf16.gmra.mxu0 %vm6516_vm14, %v21620_v22 }
 0x593   : > { %v17907_v19 = vpop.f32.mrf.mxu1  ;;  %18122 = vmatmul.mubr.msk.bf16.gmra.mxu1 %vm6516_vm14, %v21618_v43  ;;  %18089 = vmatprep.mubr.msk.bf16.mxu0 %vm6516_vm14, %v21630_v3 }
 0x594   : > { %v21908_v51 = vadd.f32 %v17907_v19, %v17871_v63  ;;  %18125 = vmatprep.mubr.msk.bf16.mxu1 %vm6516_vm14, %v21628_v13  ;;  %v6647_v11 = vpop.f32.mrf.mxu0 }
 0x595   : > { %v6868_v59 = vpop.f32.mrf.mxu1 }
 0x596   : > { %v21914_v25 = vadd.f32 %v6868_v59, %v6647_v11  ;;  %v17872_v52 = vpop.f32.mrf.mxu0 }
 0x597   : > { %v17908_v50 = vpop.f32.mrf.mxu1 }
 0x598   : > { %v21916_v28 = vadd.f32 %v17908_v50, %v17872_v52  ;;  %v6650_v22 = vpop.f32.mrf.mxu0 }
 0x599   : > { %v6871_v49 = vpop.f32.mrf.mxu1 }
 0x59a   : > { %v21918_v27 = vadd.f32 %v6871_v49, %v6650_v22  ;;  %v17875_v43 = vpop.f32.mrf.mxu0  ;;  %18090 = vmatmul.mubr.msk.bf16.gmra.mxu0 %vm6516_vm14, %v21640_v33 }
 0x59b   : > { %v17911_v45 = vpop.f32.mrf.mxu1  ;;  %18126 = vmatmul.mubr.msk.bf16.gmra.mxu1 %vm6516_vm14, %v21638_v6  ;;  %18093 = vmatprep.mubr.msk.bf16.mxu0 %vm6516_vm14, %v21650_v53 }
 0x59c   : > { %v21924_v13 = vadd.f32 %v17911_v45, %v17875_v43  ;;  %18129 = vmatprep.mubr.msk.bf16.mxu1 %vm6516_vm14, %v21648_v10  ;;  %v6663_v3 = vpop.f32.mrf.mxu0 }
 0x59d   : > { %v6884_v26 = vpop.f32.mrf.mxu1 }
 0x59e   : > { %v21930_v58 = vadd.f32 %v6884_v26, %v6663_v3  ;;  %v17876_v36 = vpop.f32.mrf.mxu0 }
 0x59f   : > { %v17912_v34 = vpop.f32.mrf.mxu1 }
 0x5a0   : > { %v21932_v32 = vadd.f32 %v17912_v34, %v17876_v36  ;;  %v21934_v33 = vpop.f32.mrf.mxu0 }
 0x5a1   : > { %v21936_v55 = vpop.f32.mrf.mxu1 }
 0x5a2   : > { %v17879_v6 = vpop.f32.mrf.mxu0  ;;  %18094 = vmatmul.mubr.msk.bf16.gmra.mxu0 %vm6516_vm14, %v21660_v4 }
 0x5a3   : > { %v17915_v20 = vpop.f32.mrf.mxu1  ;;  %18130 = vmatmul.mubr.msk.bf16.gmra.mxu1 %vm6516_vm14, %v21658_v29  ;;  %18097 = vmatprep.mubr.msk.bf16.mxu0 %vm6516_vm14, %v21669_v61 }
 0x5a4   : > { %v21942_v10 = vadd.f32 %v17915_v20, %v17879_v6  ;;  %18133 = vmatprep.mubr.msk.bf16.mxu1 %vm6516_vm14, %v21667_v16  ;;  %v6679_v53 = vpop.f32.mrf.mxu0  ;;  %v8201_v16 = vld [vmem:[#allocation2 + $0x198] sm:$0xff] }
 0x5a5   : > { %v6900_v60 = vpop.f32.mrf.mxu1  ;;  %v8218_v19 = vpack.c.bf16 %v8202_v41, %v8201_v16 }
 0x5a6   : > { %v21948_v15 = vadd.f32 %v6900_v60, %v6679_v53  ;;  %v17880_v2 = vpop.f32.mrf.mxu0 }
 0x5a7   : > { %v17916_v44 = vpop.f32.mrf.mxu1 }
 0x5a8   : > { %v21950_v54 = vadd.f32 %v17916_v44, %v17880_v2  ;;  %v21952_v4 = vpop.f32.mrf.mxu0 }
 0x5a9   : > { %v21954_v42 = vpop.f32.mrf.mxu1 }
 0x5aa   : > { %v17883_v29 = vpop.f32.mrf.mxu0  ;;  %18098 = vmatmul.mubr.msk.bf16.gmra.mxu0 %vm6516_vm14, %v21677_v1 }
 0x5ab   : > { %v17919_v8 = vpop.f32.mrf.mxu1  ;;  %18134 = vmatmul.mubr.msk.bf16.gmra.mxu1 %vm6516_vm14, %v21675_v17  ;;  %18101 = vmatprep.mubr.msk.bf16.mxu0 %vm6516_vm14, %v21772_v46  ;;  %v8524_v17 = vpack.c.bf16 %v8508_v7, %v8507_v23  ;;  %v8791_v23 = vld [vmem:[#allocation2 + $0x92] sm:$0xff]  ;;  %v8792_v7 = vld [vmem:[#allocation2 + $0x9a] sm:$0xff] }
 0x5ac   : > { %v21960_v61 = vadd.f32 %v17919_v8, %v17883_v29  ;;  %18137 = vmatprep.mubr.msk.bf16.mxu1 %vm6516_vm14, %v21841_v37  ;;  %v6695_v40 = vpop.f32.mrf.mxu0  ;;  %v8789_v29 = vld [vmem:[#allocation2 + $0x7a] sm:$0xff]  ;;  %v8790_v8 = vld [vmem:[#allocation2 + $0x82] sm:$0xff] }
 0x5ad   : > { %v6916_v57 = vpop.f32.mrf.mxu1 }
 0x5ae   : > { %v21966_v5 = vadd.f32 %v6916_v57, %v6695_v40  ;;  %v17884_v1 = vpop.f32.mrf.mxu0 }
 0x5af   : > { %v17920_v63 = vpop.f32.mrf.mxu1 }
 0x5b0   : > { %v21968_v11 = vadd.f32 %v17920_v63, %v17884_v1  ;;  %v21970_v59 = vpop.f32.mrf.mxu0 }
 0x5b1   : > { %v21972_v52 = vpop.f32.mrf.mxu1 }
 0x5b2   : > { %v17887_v46 = vpop.f32.mrf.mxu0  ;;  %18102 = vmatmul.mubr.msk.bf16.gmra.mxu0 %vm6516_vm14, %v8218_v19 }
 0x5b3   : > { %v17923_v50 = vpop.f32.mrf.mxu1  ;;  %18138 = vmatmul.mubr.msk.bf16.gmra.mxu1 %vm6516_vm14, %v8524_v17  ;;  %18145 = vmatprep.mubr.msk.bf16.mxu0 %vm6516_vm14, %v21691_v12 }
 0x5b4   : > { %v21976_v37 = vadd.f32 %v17923_v50, %v17887_v46  ;;  %v6711_v22 = vpop.f32.mrf.mxu0 }
 0x5b5   : > { %v6932_v49 = vpop.f32.mrf.mxu1 }
 0x5b6   : > { %v21980_v43 = vadd.f32 %v6932_v49, %v6711_v22  ;;  %v17888_v45 = vpop.f32.mrf.mxu0 }
 0x5b7   : > { %v17924_v3 = vpop.f32.mrf.mxu1 }
 0x5b8   : > { %v21982_v26 = vadd.f32 %v17924_v3, %v17888_v45  ;;  %v21984_v36 = vpop.f32.mrf.mxu0  ;;  %v8793_v45 = vld [vmem:[#allocation2 + $0xaa] sm:$0xff]  ;;  %v8794_v3 = vld [vmem:[#allocation2 + $0xb2] sm:$0xff] }
 0x5b9   : > { %v21986_v34 = vpop.f32.mrf.mxu1 }
 0x5ba   : > { %v17931_v6 = vpop.f32.mrf.mxu0  ;;  %18146 = vmatmul.mubr.msk.bf16.vlgmr.msra.gmra.mxu0 %vm6516_vm14, %v21711_v14 }
 0x5bb   : > { %v17967_v20 = vpop.f32.mrf.mxu1  ;;  %v7223_v53 = vadd.f32 %v17931_v6, %v21860_v47  ;;  %18149 = vmatprep.mubr.msk.bf16.mxu0 %vm6516_vm14, %v21719_v18  ;;  %v8818_v18 = vpack.c.bf16 %v8790_v8, %v8789_v29  ;;  %v8820_v29 = vpack.c.bf16 %v8794_v3, %v8793_v45 }
 0x5bc   : > { %v7094_v12 = vpop.f32.mrf.mxu0 }
 0x5bd   : > { %v7400_v60 = vpop.f32.mrf.mxu1  ;;  %v21993_v2 = vadd.f32 %v17967_v20, %v7223_v53  ;;  %v7221_v44 = vadd.f32 %v7094_v12, %v21866_v39  ;;  %v8819_v39 = vpack.c.bf16 %v8792_v7, %v8791_v23  ;;  %v8795_v20 = vld [vmem:[#allocation2 + $0xc2] sm:$0xff]  ;;  %v8796_v53 = vld [vmem:[#allocation2 + $0xca] sm:$0xff] }
 0x5be   : > { %v17932_v16 = vpop.f32.mrf.mxu0 }
 0x5bf   : > { %v17968_v41 = vpop.f32.mrf.mxu1  ;;  %v21996_v40 = vadd.f32 %v7400_v60, %v7221_v44  ;;  %v7224_v14 = vadd.f32 %v17932_v16, %v21868_v24 }
 0x5c0   : > { %v7097_v47 = vpop.f32.mrf.mxu0 }
 0x5c1   : > { %v21999_v57 = vpop.f32.mrf.mxu1  ;;  %v22001_v1 = vadd.f32 %v17968_v41, %v7224_v14  ;;  %v22004_v63 = vadd.f32 %v7097_v47, %v21870_v38 }
 0x5c2   : > { %v17935_v19 = vpop.f32.mrf.mxu0  ;;  %18150 = vmatmul.mubr.msk.bf16.gmra.mxu0 %vm6516_vm14, %v8818_v18 }
 0x5c3   : > { %v17971_v17 = vpop.f32.mrf.mxu1  ;;  %v7227_v46 = vadd.f32 %v17935_v19, %v21876_v62  ;;  %18153 = vmatprep.mubr.msk.bf16.mxu0 %vm6516_vm14, %v8819_v39  ;;  %v8797_v39 = vld [vmem:[#allocation2 + $0xda] sm:$0xff]  ;;  %v8798_v19 = vld [vmem:[#allocation2 + $0xe2] sm:$0xff] }
 0x5c4   : > { %v7110_v50 = vpop.f32.mrf.mxu0  ;;  %v8822_v3 = vpack.c.bf16 %v8798_v19, %v8797_v39 }
 0x5c5   : > { %v7416_v24 = vpop.f32.mrf.mxu1  ;;  %v22009_v22 = vadd.f32 %v17971_v17, %v7227_v46  ;;  %v7225_v49 = vadd.f32 %v7110_v50, %v21882_v31  ;;  %v8821_v31 = vpack.c.bf16 %v8796_v53, %v8795_v20  ;;  %v8799_v46 = vld [vmem:[#allocation2 + $0xf2] sm:$0xff]  ;;  %v8800_v50 = vld [vmem:[#allocation2 + $0xfa] sm:$0xff] }
 0x5c6   : > { %v17936_v6 = vpop.f32.mrf.mxu0 }
 0x5c7   : > { %v17972_v38 = vpop.f32.mrf.mxu1  ;;  %v22012_v12 = vadd.f32 %v7416_v24, %v7225_v49  ;;  %v7228_v60 = vadd.f32 %v17936_v6, %v21884_v0 }
 0x5c8   : > { %v7113_v44 = vpop.f32.mrf.mxu0 }
 0x5c9   : > { %v22015_v62 = vpop.f32.mrf.mxu1  ;;  %v22017_v8 = vadd.f32 %v17972_v38, %v7228_v60  ;;  %v22020_v16 = vadd.f32 %v7113_v44, %v21886_v9 }
 0x5ca   : > { %v17939_v41 = vpop.f32.mrf.mxu0  ;;  %18154 = vmatmul.mubr.msk.bf16.gmra.mxu0 %vm6516_vm14, %v8820_v29 }
 0x5cb   : > { %v17975_v23 = vpop.f32.mrf.mxu1  ;;  %v7231_v7 = vadd.f32 %v17939_v41, %v21892_v56  ;;  %18157 = vmatprep.mubr.msk.bf16.mxu0 %vm6516_vm14, %v8821_v31  ;;  %v8801_v41 = vld [vmem:[#allocation2 + $0x10a] sm:$0xff] }
 0x5cc   : > { %v7126_v14 = vpop.f32.mrf.mxu0 }
 0x5cd   : > { %v7432_v0 = vpop.f32.mrf.mxu1  ;;  %v22025_v47 = vadd.f32 %v17975_v23, %v7231_v7  ;;  %v7229_v18 = vadd.f32 %v7126_v14, %v21898_v21  ;;  %v8823_v21 = vpack.c.bf16 %v8800_v50, %v8799_v46  ;;  %v8802_v23 = vld [vmem:[#allocation2 + $0x112] sm:$0xff]  ;;  %v8803_v14 = vld [vmem:[#allocation2 + $0x122] sm:$0xff] }
 0x5ce   : > { %v17940_v17 = vpop.f32.mrf.mxu0 }
 0x5cf   : > { %v17976_v9 = vpop.f32.mrf.mxu1  ;;  %v22028_v24 = vadd.f32 %v7432_v0, %v7229_v18  ;;  %v7232_v49 = vadd.f32 %v17940_v17, %v21900_v35  ;;  %v8804_v0 = vld [vmem:[#allocation2 + $0x12a] sm:$0xff]  ;;  %v8824_v17 = vpack.c.bf16 %v8802_v23, %v8801_v41 }
 0x5d0   : > { %v7129_v45 = vpop.f32.mrf.mxu0 }
 0x5d1   : > { %v22031_v56 = vpop.f32.mrf.mxu1  ;;  %v22033_v6 = vadd.f32 %v17976_v9, %v7232_v49  ;;  %v22036_v38 = vadd.f32 %v7129_v45, %v21902_v30 }
 0x5d2   : > { %v17943_v20 = vpop.f32.mrf.mxu0  ;;  %18158 = vmatmul.mubr.msk.bf16.gmra.mxu0 %vm6516_vm14, %v8822_v3 }
 0x5d3   : > { %v17979_v53 = vpop.f32.mrf.mxu1  ;;  %v7235_v60 = vadd.f32 %v17943_v20, %v21908_v51  ;;  %18161 = vmatprep.mubr.msk.bf16.mxu0 %vm6516_vm14, %v8823_v21 }
 0x5d4   : > { %v7142_v44 = vpop.f32.mrf.mxu0 }
 0x5d5   : > { %v7448_v35 = vpop.f32.mrf.mxu1  ;;  %v22041_v29 = vadd.f32 %v17979_v53, %v7235_v60  ;;  %v7233_v31 = vadd.f32 %v7142_v44, %v21914_v25  ;;  %v8825_v25 = vpack.c.bf16 %v8804_v0, %v8803_v14  ;;  %v8805_v53 = vld [vmem:[#allocation2 + $0x13a] sm:$0xff]  ;;  %v8806_v60 = vld [vmem:[#allocation2 + $0x142] sm:$0xff] }
 0x5d6   : > { %v17944_v7 = vpop.f32.mrf.mxu0 }
 0x5d7   : > { %v17980_v30 = vpop.f32.mrf.mxu1  ;;  %v22044_v18 = vadd.f32 %v7448_v35, %v7233_v31  ;;  %v7236_v39 = vadd.f32 %v17944_v7, %v21916_v28  ;;  %v8807_v35 = vld [vmem:[#allocation2 + $0x152] sm:$0xff]  ;;  %v8808_v31 = vld [vmem:[#allocation2 + $0x15a] sm:$0xff] }
 0x5d8   : > { %v7145_v19 = vpop.f32.mrf.mxu0  ;;  %v8827_v0 = vpack.c.bf16 %v8808_v31, %v8807_v35 }
 0x5d9   : > { %v22047_v51 = vpop.f32.mrf.mxu1  ;;  %v22049_v9 = vadd.f32 %v17980_v30, %v7236_v39  ;;  %v22052_v46 = vadd.f32 %v7145_v19, %v21918_v27  ;;  %v8826_v30 = vpack.c.bf16 %v8806_v60, %v8805_v53 }
 0x5da   : > { %v17947_v50 = vpop.f32.mrf.mxu0  ;;  %18162 = vmatmul.mubr.msk.bf16.gmra.mxu0 %vm6516_vm14, %v8824_v17 }
 0x5db   : > { %v17983_v49 = vpop.f32.mrf.mxu1  ;;  %v7239_v45 = vadd.f32 %v17947_v50, %v21924_v13  ;;  %18165 = vmatprep.mubr.msk.bf16.mxu0 %vm6516_vm14, %v8825_v25 }
 0x5dc   : > { %v7158_v3 = vpop.f32.mrf.mxu0 }
 0x5dd   : > { %v7464_v28 = vpop.f32.mrf.mxu1  ;;  %v22057_v21 = vadd.f32 %v17983_v49, %v7239_v45  ;;  %v7237_v20 = vadd.f32 %v7158_v3, %v21930_v58  ;;  %v8809_v49 = vld [vmem:[#allocation2 + $0x16a] sm:$0xff]  ;;  %v8810_v45 = vld [vmem:[#allocation2 + $0x172] sm:$0xff] }
 0x5de   : > { %v17948_v44 = vpop.f32.mrf.mxu0 }
 0x5df   : > { %v17984_v27 = vpop.f32.mrf.mxu1  ;;  %v22060_v41 = vadd.f32 %v7464_v28, %v7237_v20  ;;  %v7240_v23 = vadd.f32 %v17948_v44, %v21932_v32 }
 0x5e0   : > { %v22063_v7 = vpop.f32.mrf.mxu0 }
 0x5e1   : > { %v22065_v13 = vpop.f32.mrf.mxu1  ;;  %v22067_v14 = vadd.f32 %v17984_v27, %v7240_v23  ;;  %v8813_v23 = vld [vmem:[#allocation2 + $0x19a] sm:$0xff] }
 0x5e2   : > { %v17951_v39 = vpop.f32.mrf.mxu0  ;;  %18166 = vmatmul.mubr.msk.bf16.gmra.mxu0 %vm6516_vm14, %v8826_v30  ;;  %v8814_v30 = vld [vmem:[#allocation2 + $0x1a2] sm:$0xff] }
 0x5e3   : > { %v17987_v58 = vpop.f32.mrf.mxu1  ;;  %v7243_v19 = vadd.f32 %v17951_v39, %v21942_v10  ;;  %18169 = vmatprep.mubr.msk.bf16.mxu0 %vm6516_vm14, %v8827_v0  ;;  %v8828_v10 = vpack.c.bf16 %v8810_v45, %v8809_v49 }
 0x5e4   : > { %v7174_v17 = vpop.f32.mrf.mxu0 }
 0x5e5   : > { %v7480_v25 = vpop.f32.mrf.mxu1  ;;  %v22072_v50 = vadd.f32 %v17987_v58, %v7243_v19  ;;  %v7241_v32 = vadd.f32 %v7174_v17, %v21948_v15 }
 0x5e6   : > { %v17952_v3 = vpop.f32.mrf.mxu0 }
 0x5e7   : > { %v17988_v28 = vpop.f32.mrf.mxu1  ;;  %v22075_v20 = vadd.f32 %v7480_v25, %v7241_v32  ;;  %v7244_v53 = vadd.f32 %v17952_v3, %v21950_v54  ;;  %v8830_v25 = vpack.c.bf16 %v8814_v30, %v8813_v23 }
 0x5e8   : > { %v22078_v60 = vpop.f32.mrf.mxu0 }
 0x5e9   : > { %v22080_v44 = vpop.f32.mrf.mxu1  ;;  %v22082_v27 = vadd.f32 %v17988_v28, %v7244_v53 }
 0x5ea   : > { %v17955_v35 = vpop.f32.mrf.mxu0  ;;  %18170 = vmatmul.mubr.msk.bf16.gmra.mxu0 %vm6516_vm14, %v8828_v10 }
 0x5eb   : > { %v17991_v31 = vpop.f32.mrf.mxu1  ;;  %v7247_v15 = vadd.f32 %v17955_v35, %v21960_v61  ;;  %18173 = vmatprep.mubr.msk.bf16.mxu0 %vm6516_vm14, %v21843_v48 }
 0x5ec   : > { %v7190_v0 = vpop.f32.mrf.mxu0 }
 0x5ed   : > { %v7496_v54 = vpop.f32.mrf.mxu1  ;;  %v22088_v39 = vadd.f32 %v17991_v31, %v7247_v15  ;;  %v7245_v58 = vadd.f32 %v7190_v0, %v21966_v5 }
 0x5ee   : > { %v17956_v19 = vpop.f32.mrf.mxu0 }
 0x5ef   : > { %v17992_v17 = vpop.f32.mrf.mxu1  ;;  %v22091_v32 = vadd.f32 %v7496_v54, %v7245_v58  ;;  %v7248_v49 = vadd.f32 %v17956_v19, %v21968_v11 }
 0x5f0   : > { %v22094_v45 = vpop.f32.mrf.mxu0 }
 0x5f1   : > { %25139 = vst [vmem:[#allocation49_spill] sm:$0xff] %v22094_v45  ;;  %v22096_v61 = vpop.f32.mrf.mxu1  ;;  %v22098_v48 = vadd.f32 %v17992_v17, %v7248_v49 }
 0x5f2   : > { %25140 = vst [vmem:[#allocation61_spill] sm:$0xff] %v22096_v61  ;;  %v17959_v3 = vpop.f32.mrf.mxu0  ;;  %18174 = vmatmul.mubr.msk.bf16.gmra.mxu0 %vm6516_vm14, %v8830_v25 }
 0x5f3   : > { %v17995_v28 = vpop.f32.mrf.mxu1  ;;  %v7251_v53 = vadd.f32 %v17959_v3, %v21976_v37 }
 0x5f4   : > { %v7206_v5 = vpop.f32.mrf.mxu0 }
 0x5f5   : > { %v7512_v10 = vpop.f32.mrf.mxu1  ;;  %v22102_v35 = vadd.f32 %v17995_v28, %v7251_v53  ;;  %v7249_v31 = vadd.f32 %v7206_v5, %v21980_v43 }
 0x5f6   : > { %v17960_v15 = vpop.f32.mrf.mxu0 }
 0x5f7   : > { %v17996_v11 = vpop.f32.mrf.mxu1  ;;  %v22105_v23 = vadd.f32 %v7512_v10, %v7249_v31  ;;  %v7252_v30 = vadd.f32 %v17960_v15, %v21982_v26 }
 0x5f8   : > { %v22108_v0 = vpop.f32.mrf.mxu0 }
 0x5f9   : > { %25141 = vst [vmem:[#allocation54_spill] sm:$0xff] %v22108_v0  ;;  %v22110_v54 = vpop.f32.mrf.mxu1  ;;  %v22112_v58 = vadd.f32 %v17996_v11, %v7252_v30 }
 0x5fa   : > { %25142 = vst [vmem:[#allocation71_spill] sm:$0xff] %v22110_v54  ;;  %v18003_v19 = vpop.f32.mrf.mxu0 }
 0x5fb   : > { %v18039_v37 = vpop.f32.mrf.mxu1  ;;  %v7835_v17 = vadd.f32 %v18003_v19, %v21993_v2 }
 0x5fc   : > { %v7706_v25 = vpop.f32.mrf.mxu0 }
 0x5fd   : > { %v22115_v49 = vpop.f32.mrf.mxu1  ;;  %v22117_v43 = vadd.f32 %v18039_v37, %v7835_v17  ;;  %v22120_v3 = vadd.f32 %v7706_v25, %v21996_v40 }
 0x5fe   : > { %v18004_v28 = vpop.f32.mrf.mxu0 }
 0x5ff   : > { %v18040_v26 = vpop.f32.mrf.mxu1  ;;  %v7836_v53 = vadd.f32 %v18004_v28, %v22001_v1 }
 0x600   : > { %v22123_v5 = vpop.f32.mrf.mxu0 }
 0x601   : > { %v22125_v10 = vpop.f32.mrf.mxu1  ;;  %v22127_v31 = vadd.f32 %v18040_v26, %v7836_v53 }
 0x602   : > { %v18007_v15 = vpop.f32.mrf.mxu0 }
 0x603   : > { %v18043_v2 = vpop.f32.mrf.mxu1  ;;  %v7839_v11 = vadd.f32 %v18007_v15, %v22009_v22 }
 0x604   : > { %v7722_v30 = vpop.f32.mrf.mxu0 }
 0x605   : > { %v22130_v19 = vpop.f32.mrf.mxu1  ;;  %v22132_v37 = vadd.f32 %v18043_v2, %v7839_v11  ;;  %v22135_v40 = vadd.f32 %v7722_v30, %v22012_v12 }
 0x606   : > { %v18008_v17 = vpop.f32.mrf.mxu0 }
 0x607   : > { %v18044_v1 = vpop.f32.mrf.mxu1  ;;  %v7840_v25 = vadd.f32 %v18008_v17, %v22017_v8 }
 0x608   : > { %v22138_v28 = vpop.f32.mrf.mxu0 }
 0x609   : > { %v22140_v26 = vpop.f32.mrf.mxu1  ;;  %v22142_v53 = vadd.f32 %v18044_v1, %v7840_v25 }
 0x60a   : > { %v18011_v54 = vpop.f32.mrf.mxu0 }
 0x60b   : > { %v18047_v22 = vpop.f32.mrf.mxu1  ;;  %v7843_v15 = vadd.f32 %v18011_v54, %v22025_v47 }
 0x60c   : > { %v7738_v0 = vpop.f32.mrf.mxu0 }
 0x60d   : > { %v22145_v2 = vpop.f32.mrf.mxu1  ;;  %v22147_v11 = vadd.f32 %v18047_v22, %v7843_v15  ;;  %v22150_v12 = vadd.f32 %v7738_v0, %v22028_v24 }
 0x60e   : > { %25143 = vst [vmem:[#allocation62_spill] sm:$0xff] %v22145_v2  ;;  %v18012_v30 = vpop.f32.mrf.mxu0 }
 0x60f   : > { %v18048_v8 = vpop.f32.mrf.mxu1  ;;  %v7844_v17 = vadd.f32 %v18012_v30, %v22033_v6 }
 0x610   : > { %v22153_v61 = vpop.f32.mrf.mxu0 }
 0x611   : > { %25144 = vst [vmem:[#allocation47_spill] sm:$0xff] %v22153_v61  ;;  %v22155_v1 = vpop.f32.mrf.mxu1  ;;  %v22157_v25 = vadd.f32 %v18048_v8, %v7844_v17 }
 0x612   : > { %25145 = vst [vmem:[#allocation41_spill] sm:$0xff] %v22155_v1  ;;  %v18015_v45 = vpop.f32.mrf.mxu0 }
 0x613   : > { %v18051_v47 = vpop.f32.mrf.mxu1  ;;  %v7847_v54 = vadd.f32 %v18015_v45, %v22041_v29 }
 0x614   : > { %v7754_v2 = vpop.f32.mrf.mxu0 }
 0x615   : > { %v22160_v22 = vpop.f32.mrf.mxu1  ;;  %v22162_v15 = vadd.f32 %v18051_v47, %v7847_v54  ;;  %v22165_v24 = vadd.f32 %v7754_v2, %v22044_v18 }
 0x616   : > { %25146 = vst [vmem:[#allocation53_spill] sm:$0xff] %v22160_v22  ;;  %v18016_v0 = vpop.f32.mrf.mxu0 }
 0x617   : > { %25147 = vst [vmem:[#allocation45_spill] sm:$0xff] %v22165_v24  ;;  %v18052_v6 = vpop.f32.mrf.mxu1  ;;  %v7848_v30 = vadd.f32 %v18016_v0, %v22049_v9 }
 0x618   : > { %v22168_v61 = vpop.f32.mrf.mxu0 }
 0x619   : > { %25148 = vst [vmem:[#allocation60_spill] sm:$0xff] %v22168_v61  ;;  %v22170_v8 = vpop.f32.mrf.mxu1  ;;  %v22172_v17 = vadd.f32 %v18052_v6, %v7848_v30 }
 0x61a   : > { %25149 = vst [vmem:[#allocation63_spill] sm:$0xff] %v22170_v8  ;;  %v18019_v1 = vpop.f32.mrf.mxu0 }
 0x61b   : > { %v18055_v29 = vpop.f32.mrf.mxu1  ;;  %v7851_v45 = vadd.f32 %v18019_v1, %v22057_v21 }
 0x61c   : > { %v7770_v22 = vpop.f32.mrf.mxu0 }
 0x61d   : > { %v22175_v47 = vpop.f32.mrf.mxu1  ;;  %v22177_v54 = vadd.f32 %v18055_v29, %v7851_v45  ;;  %v22180_v18 = vadd.f32 %v7770_v22, %v22060_v41 }
 0x61e   : > { %25150 = vst [vmem:[#allocation72_spill] sm:$0xff] %v22175_v47  ;;  %v18020_v2 = vpop.f32.mrf.mxu0 }
 0x61f   : > { %25151 = vst [vmem:[#allocation58_spill] sm:$0xff] %v22180_v18  ;;  %v18056_v9 = vpop.f32.mrf.mxu1  ;;  %v7852_v0 = vadd.f32 %v18020_v2, %v22067_v14 }
 0x620   : > { %v22183_v61 = vpop.f32.mrf.mxu0 }
 0x621   : > { %25152 = vst [vmem:[#allocation48_spill] sm:$0xff] %v22183_v61  ;;  %v22185_v6 = vpop.f32.mrf.mxu1  ;;  %v22187_v30 = vadd.f32 %v18056_v9, %v7852_v0 }
 0x622   : > { %25153 = vst [vmem:[#allocation39_spill] sm:$0xff] %v22185_v6  ;;  %v18023_v8 = vpop.f32.mrf.mxu0 }
 0x623   : > { %v18059_v21 = vpop.f32.mrf.mxu1  ;;  %v7855_v1 = vadd.f32 %v18023_v8, %v22072_v50 }
 0x624   : > { %v7786_v47 = vpop.f32.mrf.mxu0 }
 0x625   : > { %v22190_v29 = vpop.f32.mrf.mxu1  ;;  %v22192_v45 = vadd.f32 %v18059_v21, %v7855_v1  ;;  %v22195_v41 = vadd.f32 %v7786_v47, %v22075_v20 }
 0x626   : > { %25154 = vst [vmem:[#allocation64_spill] sm:$0xff] %v22190_v29  ;;  %v18024_v22 = vpop.f32.mrf.mxu0 }
 0x627   : > { %25155 = vst [vmem:[#allocation73_spill] sm:$0xff] %v22195_v41  ;;  %v18060_v14 = vpop.f32.mrf.mxu1  ;;  %v7856_v2 = vadd.f32 %v18024_v22, %v22082_v27 }
 0x628   : > { %v22198_v61 = vpop.f32.mrf.mxu0 }
 0x629   : > { %25156 = vst [vmem:[#allocation74_spill] sm:$0xff] %v22198_v61  ;;  %v22200_v9 = vpop.f32.mrf.mxu1  ;;  %v22202_v0 = vadd.f32 %v18060_v14, %v7856_v2 }
 0x62a   : > { %25157 = vst [vmem:[#allocation59_spill] sm:$0xff] %v22200_v9  ;;  %v18027_v6 = vpop.f32.mrf.mxu0 }
 0x62b   : > { %v18063_v50 = vpop.f32.mrf.mxu1  ;;  %v7859_v8 = vadd.f32 %v18027_v6, %v22088_v39 }
 0x62c   : > { %v7802_v29 = vpop.f32.mrf.mxu0 }
 0x62d   : > { %v22205_v21 = vpop.f32.mrf.mxu1  ;;  %v22207_v1 = vadd.f32 %v18063_v50, %v7859_v8  ;;  %v22210_v20 = vadd.f32 %v7802_v29, %v22091_v32 }
 0x62e   : > { %25158 = vst [vmem:[#allocation44_spill] sm:$0xff] %v22205_v21  ;;  %v18028_v47 = vpop.f32.mrf.mxu0 }
 0x62f   : > { %25159 = vst [vmem:[#allocation57_spill] sm:$0xff] %v22210_v20  ;;  %v18064_v27 = vpop.f32.mrf.mxu1  ;;  %v7860_v22 = vadd.f32 %v18028_v47, %v22098_v48 }
 0x630   : > { %v22213_v61 = vpop.f32.mrf.mxu0 }
 0x631   : > { %25160 = vst [vmem:[#allocation75_spill] sm:$0xff] %v22213_v61  ;;  %v22215_v14 = vpop.f32.mrf.mxu1  ;;  %v22217_v2 = vadd.f32 %v18064_v27, %v7860_v22 }
 0x632   : > { %25161 = vst [vmem:[#allocation52_spill] sm:$0xff] %v22215_v14  ;;  %v18031_v9 = vpop.f32.mrf.mxu0 }
 0x633   : > { %v18067_v39 = vpop.f32.mrf.mxu1  ;;  %v7863_v6 = vadd.f32 %v18031_v9, %v22102_v35 }
 0x634   : > { %v7818_v21 = vpop.f32.mrf.mxu0 }
 0x635   : > { %v22220_v50 = vpop.f32.mrf.mxu1  ;;  %v22222_v8 = vadd.f32 %v18067_v39, %v7863_v6  ;;  %v22225_v32 = vadd.f32 %v7818_v21, %v22105_v23 }
 0x636   : > { %25162 = vst [vmem:[#allocation66_spill] sm:$0xff] %v22220_v50  ;;  %v18032_v29 = vpop.f32.mrf.mxu0  ;;  %v18974_v50 = vld [vmem:[%s24894_s7 + $0x14] sm:$0xff]  }
 0x637   : > { %25163 = vst [vmem:[#allocation65_spill] sm:$0xff] %v22225_v32  ;;  %v18068_v48 = vpop.f32.mrf.mxu1  ;;  %v7864_v47 = vadd.f32 %v18032_v29, %v22112_v58  ;;  %v18972_v29 = vld [vmem:[%s24894_s7 + $0x24] ss:$0 sps:$4 sm:$0xff]  }
 0x638   : > { %v22228_v61 = vpop.f32.mrf.mxu0  ;;  %18872 = vmatprep.subr.msk.bf16.mxu1 %vm3582_vm2, %v18972_v29 }
 0x639   : > { %25164 = vst [vmem:[#allocation56_spill] sm:$0xff] %v22228_v61  ;;  %v22230_v27 = vpop.f32.mrf.mxu1  ;;  %v22232_v22 = vadd.f32 %v18068_v48, %v7864_v47 }
 0x63a   : > { %25165 = vst [vmem:[#allocation77_spill] sm:$0xff] %v22230_v27  ;;  %v18075_v14 = vpop.f32.mrf.mxu0  ;;  %v9557_v27 = vsel %vm3582_vm2, %v18972_v29, 0 }
 0x63b   : > { %v22234_v35 = vpop.f32.mrf.mxu1  ;;  %v22237_v9 = vadd.f32 %v18075_v14, %v22117_v43  ;;  %18178 = vmatpush3.bf16.msra.mxu1 %v9557_v27 }
 0x63c   : > { %v22239_v39 = vpop.f32.mrf.mxu0 }
 0x63d   : > { %v22241_v23 = vpop.f32.mrf.mxu1 }
 0x63e   : > { %v18076_v21 = vpop.f32.mrf.mxu0 }
 0x63f   : > { %v22244_v6 = vadd.f32 %v18076_v21, %v22127_v31  ;;  %v22251_v48 = vpop.f32.mrf.mxu1  ;;  %v18973_v31 = vld [vmem:[%s24894_s7 + $0x1c] sm:$0xff]  }
 0x640   : > { %v22246_v58 = vpop.f32.mrf.mxu0  ;;  %18179 = vmatprep.subr.bf16.mxu1 %v18973_v31 }
 0x641   : > { %v22263_v21 = vpop.f32.mrf.mxu1  ;;  %18180 = vmatpush3.bf16.msra.mxu1 %v18973_v31 }
 0x642   : > { %v18079_v47 = vpop.f32.mrf.mxu0  ;;  %18181 = vmatprep.subr.bf16.mxu1 %v18974_v50 }
 0x643   : > { %v22255_v43 = vadd.f32 %v18079_v47, %v22132_v37  ;;  %v22273_v32 = vpop.f32.mrf.mxu1 }
 0x644   : > { %v22257_v14 = vpop.f32.mrf.mxu0 }
 0x645   : > { %v22280_v41 = vpop.f32.mrf.mxu1  ;;  %18182 = vmatpush3.bf16.msra.mxu1 %v18974_v50 }
 0x646   : > { %v18080_v61 = vpop.f32.mrf.mxu0 }
 0x647   : > { %v22269_v37 = vadd.f32 %v18080_v61, %v22142_v53  ;;  %v22287_v53 = vpop.f32.mrf.mxu1 }
 0x648   : > { %v22271_v47 = vpop.f32.mrf.mxu0 }
 0x649   : > { %25166 = vst [vmem:[#allocation38_spill] sm:$0xff] %v22269_v37  ;;  %25167 = vst [vmem:[#allocation43_spill] sm:$0xff] %v22271_v47 }
 0x64a   : > { %v18083_v29 = vpop.f32.mrf.mxu0 }
 0x64b   : > { %v22276_v20 = vadd.f32 %v18083_v29, %v22147_v11  ;;  %v22294_v11 = vpop.f32.mrf.mxu1 }
 0x64c   : > { %v22278_v27 = vpop.f32.mrf.mxu0 }
 0x64d   : > { %25168 = vst [vmem:[#allocation76_spill] sm:$0xff] %v22276_v20 }
 0x64e   : > { %v18084_v18 = vpop.f32.mrf.mxu0 }
 0x64f   : > { %v22283_v24 = vadd.f32 %v18084_v18, %v22157_v25  ;;  %v22301_v25 = vpop.f32.mrf.mxu1 }
 0x650   : > { %v22285_v61 = vpop.f32.mrf.mxu0 }
 0x651   : > { %25169 = vst [vmem:[#allocation79_spill] sm:$0xff] %v22283_v24  ;;  %25170 = vst [vmem:[#allocation50_spill] sm:$0xff] %v22285_v61 }
 0x652   : > { %v18087_v37 = vpop.f32.mrf.mxu0 }
 0x653   : > { %v22290_v31 = vadd.f32 %v18087_v37, %v22162_v15  ;;  %v22308_v15 = vpop.f32.mrf.mxu1 }
 0x654   : > { %v22292_v47 = vpop.f32.mrf.mxu0 }
 0x655   : > { %25171 = vst [vmem:[#allocation51_spill] sm:$0xff] %v22290_v31  ;;  %25172 = vst [vmem:[#allocation67_spill] sm:$0xff] %v22292_v47 }
 0x656   : > { %v18088_v29 = vpop.f32.mrf.mxu0 }
 0x657   : > { %v22297_v20 = vadd.f32 %v18088_v29, %v22172_v17  ;;  %v22315_v17 = vpop.f32.mrf.mxu1 }
 0x658   : > { %v22299_v50 = vpop.f32.mrf.mxu0 }
 0x659   : > { %25173 = vst [vmem:[#allocation78_spill] sm:$0xff] %v22297_v20  ;;  %25174 = vst [vmem:[#allocation81_spill] sm:$0xff] %v22299_v50 }
 0x65a   : > { %v18091_v18 = vpop.f32.mrf.mxu0 }
 0x65b   : > { %v22304_v24 = vadd.f32 %v18091_v18, %v22177_v54  ;;  %v22322_v54 = vpop.f32.mrf.mxu1 }
 0x65c   : > { %v22306_v61 = vpop.f32.mrf.mxu0 }
 0x65d   : > { %25175 = vst [vmem:[#allocation42_spill] sm:$0xff] %v22304_v24  ;;  %25176 = vst [vmem:[#allocation68_spill] sm:$0xff] %v22306_v61 }
 0x65e   : > { %v18092_v37 = vpop.f32.mrf.mxu0 }
 0x65f   : > { %v22311_v31 = vadd.f32 %v18092_v37, %v22187_v30  ;;  %v22329_v30 = vpop.f32.mrf.mxu1 }
 0x660   : > { %v22313_v47 = vpop.f32.mrf.mxu0 }
 0x661   : > { %25177 = vst [vmem:[#allocation80_spill] sm:$0xff] %v22311_v31  ;;  %25178 = vst [vmem:[#allocation55_spill] sm:$0xff] %v22313_v47 }
 0x662   : > { %v18095_v29 = vpop.f32.mrf.mxu0 }
 0x663   : > { %v22318_v20 = vadd.f32 %v18095_v29, %v22192_v45  ;;  %v22336_v45 = vpop.f32.mrf.mxu1 }
 0x664   : > { %v22320_v50 = vpop.f32.mrf.mxu0 }
 0x665   : > { %25179 = vst [vmem:[#allocation69_spill] sm:$0xff] %v22318_v20  ;;  %25180 = vst [vmem:[#allocation70_spill] sm:$0xff] %v22320_v50 }
 0x666   : > { %v18096_v18 = vpop.f32.mrf.mxu0 }
 0x667   : > { %v22325_v24 = vadd.f32 %v18096_v18, %v22202_v0  ;;  %v22343_v0 = vpop.f32.mrf.mxu1 }
 0x668   : > { %v22327_v61 = vpop.f32.mrf.mxu0 }
 0x669   : > { %25181 = vst [vmem:[#allocation82_spill] sm:$0xff] %v22325_v24  ;;  %25182 = vst [vmem:[#allocation84_spill] sm:$0xff] %v22327_v61  ;;  %v7528_v24 = vadd.f32 %v21999_v57, %v22004_v63  ;;  %v6888_v63 = vadd.f32 %v21936_v55, %v21934_v33  ;;  %v7532_v33 = vadd.f32 %v22015_v62, %v22020_v16 }
 0x66a   : > { %v18099_v37 = vpop.f32.mrf.mxu0 }
 0x66b   : > { %v22332_v31 = vadd.f32 %v18099_v37, %v22207_v1  ;;  %v8139_v37 = vadd.f32 %v22115_v49, %v22120_v3  ;;  %v7238_v55 = vadd.f32 %v22063_v7, %v6888_v63  ;;  %v7838_v62 = vadd.f32 %v22138_v28, %v7532_v33 }
 0x66c   : > { %v22334_v47 = vpop.f32.mrf.mxu0  ;;  %v22396_v7 = vadd.f32 %v21972_v52, %v21970_v59  ;;  %v7536_v28 = vadd.f32 %v22031_v56, %v22036_v38  ;;  %v22411_v59 = vadd.f32 %v22047_v51, %v22052_v46  ;;  %v25186_v51 = vld [vmem:[#allocation62_spill] sm:$0xff] }
 0x66d   : > { %25183 = vst [vmem:[#allocation40_spill] sm:$0xff] %v22332_v31  ;;  %v7834_v31 = vadd.f32 %v22123_v5, %v7528_v24  ;;  %v8753_v5 = vadd.f32 %v22234_v35, %v22237_v9  ;;  %v8144_v38 = vadd.f32 %v22140_v26, %v7838_v62  ;;  %v8147_v46 = vadd.f32 %v25186_v51, %v22150_v12 }
 0x66e   : > { %v18100_v29 = vpop.f32.mrf.mxu0 }
 0x66f   : > { %v22339_v20 = vadd.f32 %v18100_v29, %v22217_v2  ;;  %v22355_v2 = vpop.f32.mrf.mxu1  ;;  %v8140_v3 = vadd.f32 %v22125_v10, %v7834_v31  ;;  %v8143_v10 = vadd.f32 %v22130_v19, %v22135_v40  ;;  %v8754_v19 = vadd.f32 %v22251_v48, %v22244_v6  ;;  %v18977_v48 = vld [vmem:[%s24894_s7] sm:$0xff]  }
 0x670   : > { %v22341_v50 = vpop.f32.mrf.mxu0 }
 0x671   : > { %25184 = vst [vmem:[#allocation83_spill] sm:$0xff] %v22339_v20  ;;  %25185 = vst [vmem:[#allocation46_spill] sm:$0xff] %v22341_v50  ;;  %v18975_v20 = vld [vmem:[%s24894_s7 + $0x10] ss:$0 sps:$4 sm:$0xff]   ;;  %v8445_v50 = vadd.f32 %v22239_v39, %v8139_v37  ;;  %v22373_v24 = vpop.f32.mrf.mxu1  ;;  %v8446_v9 = vadd.f32 %v22246_v58, %v8140_v3  ;;  %v8449_v40 = vadd.f32 %v22257_v14, %v8143_v10 }
 0x672   : > { %v18103_v18 = vpop.f32.mrf.mxu0  ;;  %18873 = vmatprep.subr.msk.bf16.mxu0 %vm3582_vm2, %v18975_v20  ;;  %v9784_v49 = vsel %vm3582_vm2, %v18975_v20, 0  ;;  %v18976_v20 = vld [vmem:[%s24894_s7 + $0x8] sm:$0xff]   ;;  %v22418_v14 = vadd.f32 %v22065_v13, %v7238_v55 }
 0x673   : > { %v22348_v61 = vadd.f32 %v18103_v18, %v22222_v8  ;;  %18216 = vmatpush3.bf16.msra.mxu0 %v9784_v49  ;;  %v8751_v35 = vadd.f32 %v22241_v23, %v8445_v50  ;;  %v22401_v23 = vpop.f32.mrf.mxu1  ;;  %v8757_v18 = vadd.f32 %v22273_v32, %v22255_v43  ;;  %v8755_v13 = vadd.f32 %v22280_v41, %v8449_v40  ;;  %v9385_v32 = vld [vmem:[#allocation2] sm:$0xff]  ;;  %v9386_v55 = vld [vmem:[#allocation2 + $0x8] sm:$0xff] }
 0x674   : > { %v22350_v1 = vpop.f32.mrf.mxu0  ;;  %18217 = vmatprep.subr.bf16.mxu0 %v18976_v20  ;;  %v9417_v62 = vpack.c.bf16 %v9386_v55, %v9385_v32  ;;  %v25195_v55 = vld [vmem:[#allocation49_spill] sm:$0xff] }
 0x676   : > { %v18104_v29 = vpop.f32.mrf.mxu0  ;;  %18221 = vmatprep.mubr.msk.bf16.mxu0 %vm9507_vm11, %v9417_v62 }
 0x677   : > { %v22362_v57 = vadd.f32 %v18104_v29, %v22232_v22  ;;  %v6904_v22 = vadd.f32 %v21954_v42, %v21952_v4  ;;  %v22390_v4 = vld [vmem:[%s24893_s6] ss:$0 sm:$0xff]  ;;  %18218 = vmatpush3.bf16.msra.mxu0 %v18976_v20  ;;  %v22431_v29 = vpop.f32.mrf.mxu1  ;;  %v25188_v20 = vld [vmem:[#allocation47_spill] sm:$0xff] }
 0x678   : > { %v22366_v8 = vpop.f32.mrf.mxu0  ;;  %18219 = vmatprep.subr.bf16.mxu0 %v18977_v48  ;;  %v7842_v10 = vadd.f32 %v25188_v20, %v7536_v28  ;;  %v25196_v20 = vld [vmem:[#allocation60_spill] sm:$0xff] }
 0x679   : > { %v7242_v42 = vadd.f32 %v22078_v60, %v6904_v22  ;;  %v22405_v60 = vadd.f32 %v21986_v34, %v21984_v36  ;;  %v8752_v36 = vadd.f32 %v22263_v21, %v8446_v9  ;;  %v9439_v22 = vld [vmem:[#allocation2 + $0x9] sm:$0xff] }
 0x67a   : > { %v18147_v39 = vpop.f32.mrf.mxu0 }
 0x67b   : > { %v9059_v31 = vadd.f32 %v18147_v39, %v8753_v5  ;;  %v22423_v56 = vadd.f32 %v22080_v44, %v7242_v42  ;;  %18220 = vmatpush3.bf16.msra.mxu0 %v18977_v48  ;;  %v25187_v44 = vld [vmem:[#allocation43_spill] sm:$0xff]  ;;  %v9438_v5 = vld [vmem:[#allocation2 + $0x1] sm:$0xff] }
 0x67c   : > { %v8930_v16 = vpop.f32.mrf.mxu0  ;;  %v8450_v49 = vadd.f32 %v25187_v44, %v8144_v38  ;;  %v22439_v39 = vld [vmem:[%s24894_s7 + $0x38] ss:$0 sps:$4 sm:$0xff]   ;;  %v9470_v42 = vpack.c.bf16 %v9439_v22, %v9438_v5  ;;  %v25190_v38 = vld [vmem:[#allocation41_spill] sm:$0xff] }
 0x67d   : > { %v9057_v58 = vadd.f32 %v8930_v16, %v8751_v35  ;;  %v9098_v52 = vadd.f32 %v22390_v4, %v9059_v31  ;;  %v25189_v35 = vld [vmem:[#allocation38_spill] sm:$0xff]  ;;  %v8453_v16 = vadd.f32 %v22278_v27, %v8147_v46  ;;  %18874 = vmatprep.subr.msk.bf16.mxu1 %vm3582_vm2, %v22439_v39  ;;  %v8148_v51 = vadd.f32 %v25190_v38, %v7842_v10  ;;  %v25191_v46 = vld [vmem:[#allocation45_spill] sm:$0xff]  ;;  %v25201_v38 = vld [vmem:[#allocation72_spill] sm:$0xff] }
 0x67e   : > { %v18148_v6 = vpop.f32.mrf.mxu0  ;;  %v8758_v9 = vadd.f32 %v22287_v53, %v25189_v35  ;;  %v8756_v28 = vadd.f32 %v22294_v11, %v8450_v49  ;;  %18183 = vmatprep.mubr.msk.bf16.mxu1 %vm9507_vm11, %v9470_v42  ;;  %v7846_v10 = vadd.f32 %v25196_v20, %v22411_v59  ;;  %v25197_v35 = vld [vmem:[#allocation79_spill] sm:$0xff] }
 0x67f   : > { %v9096_v34 = vadd.f32 %v22390_v4, %v9057_v58  ;;  %v9060_v50 = vadd.f32 %v18148_v6, %v8754_v19  ;;  %vm9130_vm10 = vcmp.ge.f32.partialorder %v9098_v52, 0.0  ;;  %v9162_v12 = vmul.f32 0.2, %v9098_v52  ;;  %v22446_v19 = vpop.f32.mrf.mxu1 }
 0x680   : > { %v8933_v37 = vpop.f32.mrf.mxu0 }
 0x681   : > { %v9058_v21 = vadd.f32 %v8933_v37, %v8752_v36  ;;  %vm9128_vm14 = vcmp.ge.f32.partialorder %v9096_v34, 0.0  ;;  %v9160_v63 = vmul.f32 0.2, %v9096_v34  ;;  %v9099_v26 = vadd.f32 %v22390_v4, %v9060_v50  ;;  %v25193_v37 = vld [vmem:[#allocation76_spill] sm:$0xff] }
 0x682   : > { %v18151_v3 = vpop.f32.mrf.mxu0  ;;  %v9194_v48 = vsel %vm9130_vm10, %v9098_v52, %v9162_v12  ;;  %v8759_v52 = vadd.f32 %v22308_v15, %v8453_v16  ;;  %v7246_v15 = vadd.f32 %v25195_v55, %v22396_v7 }
 0x683   : > { %v9097_v43 = vadd.f32 %v22390_v4, %v9058_v21  ;;  %v9063_v33 = vadd.f32 %v18151_v3, %v8757_v18  ;;  %v9192_v41 = vsel %vm9128_vm14, %v9096_v34, %v9160_v63  ;;  %v9163_v36 = vmul.f32 0.2, %v9099_v26  ;;  %v25192_v18 = vld [vmem:[#allocation53_spill] sm:$0xff]  ;;  %v22464_v63 = vpop.f32.mrf.mxu1  ;;  %v25194_v3 = vld [vmem:[#allocation50_spill] sm:$0xff] }
 0x684   : > { %v8946_v31 = vpop.f32.mrf.mxu0  ;;  %9256 = vrot.lane.b32.xlu0 %v9192_v41, %s19091_s22  ;;  %vm9131_vm6 = vcmp.ge.f32.partialorder %v9099_v26, 0.0  ;;  %v8151_v11 = vadd.f32 %v25192_v18, %v25191_v46  ;;  %v8454_v12 = vadd.f32 %v25194_v3, %v8148_v51  ;;  %v25202_v46 = vld [vmem:[#allocation51_spill] sm:$0xff] }
 0x685   : > { %v9061_v40 = vadd.f32 %v8946_v31, %v8755_v13  ;;  %vm9129_vm12 = vcmp.ge.f32.partialorder %v9097_v43, 0.0  ;;  %v9161_v58 = vmul.f32 0.2, %v9097_v43  ;;  %v9102_v53 = vadd.f32 %v22390_v4, %v9063_v33  ;;  %v22478_v62 = vpop.f32.mrf.mxu1 }
 0x686   : > { %v18152_v6 = vpop.f32.mrf.mxu0  ;;  %v8761_v13 = vadd.f32 %v22301_v25, %v25193_v37  ;;  %v9195_v32 = vsel %vm9131_vm6, %v9099_v26, %v9163_v36  ;;  %v25198_v26 = vld [vmem:[#allocation67_spill] sm:$0xff]  ;;  %v8760_v7 = vadd.f32 %v22322_v54, %v8454_v12  ;;  %v8765_v18 = vadd.f32 %v22329_v30, %v25202_v46 }
 0x687   : > { %v9100_v27 = vadd.f32 %v22390_v4, %v9061_v40  ;;  %v9064_v34 = vadd.f32 %v18152_v6, %v8758_v9  ;;  %v9193_v50 = vsel %vm9129_vm12, %v9097_v43, %v9161_v58  ;;  %v9166_v43 = vmul.f32 0.2, %v9102_v53 }
 0x688   : > { %v8949_v21 = vpop.f32.mrf.mxu0  ;;  %9260 = vrot.lane.b32.xlu0 %v9194_v48, %s19091_s22  ;;  %9258 = vrot.lane.b32.xlu1 %v9193_v50, %s19091_s22  ;;  %vm9134_vm15 = vcmp.ge.f32.partialorder %v9102_v53, 0.0  ;;  %v8762_v9 = vadd.f32 %v22315_v17, %v25197_v35  ;;  %v8457_v42 = vadd.f32 %v25198_v26, %v8151_v11  ;;  %v25200_v50 = vld [vmem:[#allocation58_spill] sm:$0xff] }
 0x689   : > { %v9062_v44 = vadd.f32 %v8949_v21, %v8756_v28  ;;  %vm9132_vm13 = vcmp.ge.f32.partialorder %v9100_v27, 0.0  ;;  %v9164_v49 = vmul.f32 0.2, %v9100_v27  ;;  %v9103_v5 = vadd.f32 %v22390_v4, %v9064_v34  ;;  %v25203_v21 = vld [vmem:[#allocation81_spill] sm:$0xff] }
 0x68a   : > { %v18155_v22 = vpop.f32.mrf.mxu0  ;;  %v9198_v28 = vsel %vm9134_vm15, %v9102_v53, %v9166_v43  ;;  %v8155_v51 = vadd.f32 %v25201_v38, %v25200_v50  ;;  %v8763_v54 = vadd.f32 %v22336_v45, %v8457_v42  ;;  %v22491_v53 = vpop.f32.mrf.mxu1  ;;  %v25204_v43 = vld [vmem:[#allocation61_spill] sm:$0xff]  ;;  %v25205_v45 = vld [vmem:[#allocation48_spill] sm:$0xff] }
 0x68b   : > { %v9101_v25 = vadd.f32 %v22390_v4, %v9062_v44  ;;  %v9067_v33 = vadd.f32 %v18155_v22, %v8761_v13  ;;  %v9196_v41 = vsel %vm9132_vm13, %v9100_v27, %v9164_v49  ;;  %v9167_v6 = vmul.f32 0.2, %v9103_v5  ;;  %v25199_v27 = vld [vmem:[#allocation63_spill] sm:$0xff] }
 0x68c   : > { %v8962_v31 = vpop.f32.mrf.mxu0  ;;  %9262 = vrot.lane.b32.xlu1 %v9195_v32, %s19091_s22  ;;  %9264 = vrot.lane.b32.xlu0 %v9196_v41, %s19091_s22  ;;  %vm9135_vm4 = vcmp.ge.f32.partialorder %v9103_v5, 0.0  ;;  %v8152_v34 = vadd.f32 %v25199_v27, %v7846_v10  ;;  %v25206_v41 = vld [vmem:[#allocation78_spill] sm:$0xff]  ;;  %v22506_v35 = vpop.f32.mrf.mxu1 }
 0x68d   : > { %v9065_v16 = vadd.f32 %v8962_v31, %v8759_v52  ;;  %vm9133_vm3 = vcmp.ge.f32.partialorder %v9101_v25, 0.0  ;;  %v9165_v40 = vmul.f32 0.2, %v9101_v25  ;;  %v9106_v58 = vadd.f32 %v22390_v4, %v9067_v33 }
 0x68e   : > { %v18156_v59 = vpop.f32.mrf.mxu0  ;;  %v8458_v52 = vadd.f32 %v25203_v21, %v8152_v34  ;;  %v9199_v3 = vsel %vm9135_vm4, %v9103_v5, %v9167_v6  ;;  %v7850_v33 = vadd.f32 %v25205_v45, %v22418_v14  ;;  %v8766_v55 = vadd.f32 %v22343_v0, %v25206_v41  ;;  %v25207_v5 = vld [vmem:[#allocation68_spill] sm:$0xff]  ;;  %v25209_v6 = vld [vmem:[#allocation73_spill] sm:$0xff] }
 0x68f   : > { %v9104_v17 = vadd.f32 %v22390_v4, %v9065_v16  ;;  %v9068_v48 = vadd.f32 %v18156_v59, %v8762_v9  ;;  %v9197_v36 = vsel %vm9133_vm3, %v9101_v25, %v9165_v40  ;;  %v9170_v12 = vmul.f32 0.2, %v9106_v58  ;;  %v25208_v59 = vld [vmem:[#allocation39_spill] sm:$0xff] }
 0x690   : > { %v8965_v11 = vpop.f32.mrf.mxu0  ;;  %9268 = vrot.lane.b32.xlu0 %v9198_v28, %s19091_s22  ;;  %9266 = vrot.lane.b32.xlu1 %v9197_v36, %s19091_s22  ;;  %vm9138_vm7 = vcmp.ge.f32.partialorder %v9106_v58, 0.0  ;;  %v22497_v25 = vadd.f32 %v25204_v43, %v7246_v15  ;;  %v8461_v10 = vadd.f32 %v25207_v5, %v8155_v51  ;;  %v8764_v15 = vadd.f32 %v22355_v2, %v8458_v52  ;;  %v25211_v36 = vld [vmem:[#allocation42_spill] sm:$0xff]  ;;  %v25212_v51 = vld [vmem:[#allocation55_spill] sm:$0xff] }
 0x691   : > { %v9066_v37 = vadd.f32 %v8965_v11, %v8760_v7  ;;  %vm9136_vm5 = vcmp.ge.f32.partialorder %v9104_v17, 0.0  ;;  %v9168_v13 = vmul.f32 0.2, %v9104_v17  ;;  %v9107_v44 = vadd.f32 %v22390_v4, %v9068_v48  ;;  %v25213_v52 = vld [vmem:[#allocation54_spill] sm:$0xff] }
 0x692   : > { %v18159_v49 = vpop.f32.mrf.mxu0  ;;  %v9202_v42 = vsel %vm9138_vm7, %v9106_v58, %v9170_v12  ;;  %v8156_v28 = vadd.f32 %v25208_v59, %v7850_v33  ;;  %v8769_v27 = vadd.f32 %v22373_v24, %v25211_v36  ;;  %v8767_v2 = vadd.f32 %v22401_v23, %v8461_v10  ;;  %v22519_v58 = vpop.f32.mrf.mxu1  ;;  %v25215_v12 = vld [vmem:[#allocation80_spill] sm:$0xff] }
 0x693   : > { %v9105_v30 = vadd.f32 %v22390_v4, %v9066_v37  ;;  %v9071_v22 = vadd.f32 %v18159_v49, %v8765_v18  ;;  %v9200_v32 = vsel %vm9136_vm5, %v9104_v17, %v9168_v13  ;;  %v9171_v16 = vmul.f32 0.2, %v9107_v44  ;;  %v25210_v17 = vld [vmem:[#allocation64_spill] sm:$0xff]  ;;  %v25214_v49 = vld [vmem:[#allocation74_spill] sm:$0xff] }
 0x694   : > { %v8978_v20 = vpop.f32.mrf.mxu0  ;;  %9270 = vrot.lane.b32.xlu1 %v9199_v3, %s19091_s22  ;;  %9272 = vrot.lane.b32.xlu0 %v9200_v32, %s19091_s22  ;;  %vm9139_vm9 = vcmp.ge.f32.partialorder %v9107_v44, 0.0  ;;  %v8159_v48 = vadd.f32 %v25210_v17, %v25209_v6  ;;  %v8462_v46 = vadd.f32 %v25212_v51, %v8156_v28  ;;  %v7250_v23 = vadd.f32 %v25213_v52, %v22405_v60  ;;  %v8720_v43 = vpop.f32.mrf.mxu1  ;;  %v25221_v28 = vld [vmem:[#allocation84_spill] sm:$0xff] }
 0x695   : > { %v9069_v9 = vadd.f32 %v8978_v20, %v8763_v54  ;;  %vm9137_vm8 = vcmp.ge.f32.partialorder %v9105_v30, 0.0  ;;  %v9169_v31 = vmul.f32 0.2, %v9105_v30  ;;  %v9110_v26 = vadd.f32 %v22390_v4, %v9071_v22 }
 0x696   : > { %v18160_v14 = vpop.f32.mrf.mxu0  ;;  %v9203_v54 = vsel %vm9139_vm9, %v9107_v44, %v9171_v16  ;;  %v7854_v3 = vadd.f32 %v25214_v49, %v22423_v56  ;;  %v25216_v44 = vld [vmem:[#allocation70_spill] sm:$0xff]  ;;  %v8768_v41 = vadd.f32 %v22446_v19, %v8462_v46  ;;  %v25220_v16 = vld [vmem:[#allocation69_spill] sm:$0xff] }
 0x697   : > { %v9108_v0 = vadd.f32 %v22390_v4, %v9069_v9  ;;  %v9072_v40 = vadd.f32 %v18160_v14, %v8766_v55  ;;  %v9201_v7 = vsel %vm9137_vm8, %v9105_v30, %v9169_v31  ;;  %v9174_v37 = vmul.f32 0.2, %v9110_v26  ;;  %v25217_v9 = vld [vmem:[#allocation59_spill] sm:$0xff]  ;;  %v25219_v14 = vld [vmem:[#allocation44_spill] sm:$0xff]  ;;  %v25224_v46 = vld [vmem:[#allocation82_spill] sm:$0xff] }
 0x698   : > { %v8981_v34 = vpop.f32.mrf.mxu0  ;;  %9276 = vrot.lane.b32.xlu0 %v9202_v42, %s19091_s22  ;;  %9274 = vrot.lane.b32.xlu1 %v9201_v7, %s19091_s22  ;;  %vm9142_vm10 = vcmp.ge.f32.partialorder %v9110_v26, 0.0  ;;  %v8770_v30 = vadd.f32 %v22431_v29, %v25215_v12  ;;  %v8465_v32 = vadd.f32 %v25216_v44, %v8159_v48  ;;  %v8160_v31 = vadd.f32 %v25217_v9, %v7854_v3 }
 0x699   : > { %v9070_v50 = vadd.f32 %v8981_v34, %v8764_v15  ;;  %vm9140_vm14 = vcmp.ge.f32.partialorder %v9108_v0, 0.0  ;;  %v9172_v38 = vmul.f32 0.2, %v9108_v0  ;;  %v9111_v18 = vadd.f32 %v22390_v4, %v9072_v40  ;;  %v25218_v15 = vld [vmem:[#allocation57_spill] sm:$0xff] }
 0x69a   : > { %v18163_v11 = vpop.f32.mrf.mxu0  ;;  %v9206_v56 = vsel %vm9142_vm10, %v9110_v26, %v9174_v37  ;;  %v8163_v42 = vadd.f32 %v25219_v14, %v25218_v15  ;;  %v8771_v19 = vadd.f32 %v22478_v62, %v8465_v32  ;;  %v18136_v26 = vpop.f32.mrf.mxu1  ;;  %v8466_v6 = vadd.f32 %v25221_v28, %v8160_v31  ;;  %v25223_v62 = vld [vmem:[#allocation75_spill] sm:$0xff]  ;;  %v25227_v32 = vld [vmem:[#allocation66_spill] sm:$0xff] }
 0x69b   : > { %v9109_v24 = vadd.f32 %v22390_v4, %v9070_v50  ;;  %v9075_v13 = vadd.f32 %v18163_v11, %v8769_v27  ;;  %v9204_v21 = vsel %vm9140_vm14, %v9108_v0, %v9172_v38  ;;  %v9175_v20 = vmul.f32 0.2, %v9111_v18  ;;  %v25222_v50 = vld [vmem:[#allocation71_spill] sm:$0xff] }
 0x69c   : > { %v8994_v22 = vpop.f32.mrf.mxu0  ;;  %9278 = vrot.lane.b32.xlu1 %v9203_v54, %s19091_s22  ;;  %9280 = vrot.lane.b32.xlu0 %v9204_v21, %s19091_s22  ;;  %vm9143_vm6 = vcmp.ge.f32.partialorder %v9111_v18, 0.0  ;;  %v8773_v0 = vadd.f32 %v22464_v63, %v25220_v16  ;;  %v7556_v38 = vadd.f32 %v25222_v50, %v7250_v23  ;;  %v7858_v51 = vadd.f32 %v25223_v62, %v22497_v25  ;;  %v8723_v37 = vpop.f32.mrf.mxu1  ;;  %v25230_v16 = vld [vmem:[#allocation56_spill] sm:$0xff]  ;;  %v25232_v50 = vld [vmem:[#allocation77_spill] sm:$0xff] }
 0x69d   : > { %v9073_v45 = vadd.f32 %v8994_v22, %v8767_v2  ;;  %vm9141_vm12 = vcmp.ge.f32.partialorder %v9109_v24, 0.0  ;;  %v9173_v33 = vmul.f32 0.2, %v9109_v24  ;;  %v9114_v60 = vadd.f32 %v22390_v4, %v9075_v13  ;;  %v25225_v22 = vld [vmem:[#allocation52_spill] sm:$0xff] }
 0x69e   : > { %v18164_v55 = vpop.f32.mrf.mxu0  ;;  %v9207_v36 = vsel %vm9143_vm6, %v9111_v18, %v9175_v20  ;;  %v8774_v11 = vadd.f32 %v22491_v53, %v25224_v46  ;;  %v8469_v18 = vadd.f32 %v22334_v47, %v8163_v42  ;;  %v8772_v21 = vadd.f32 %v22506_v35, %v8466_v6  ;;  %v18139_v3 = vpop.f32.mrf.mxu1  ;;  %v25226_v47 = vld [vmem:[#allocation65_spill] sm:$0xff]  ;;  %v25229_v20 = vld [vmem:[#allocation46_spill] sm:$0xff] }
 0x69f   : > { %v9112_v29 = vadd.f32 %v22390_v4, %v9073_v45  ;;  %v9076_v5 = vadd.f32 %v18164_v55, %v8770_v30  ;;  %v9205_v10 = vsel %vm9141_vm12, %v9109_v24, %v9173_v33  ;;  %v9178_v27 = vmul.f32 0.2, %v9114_v60  ;;  %v25228_v33 = vld [vmem:[#allocation40_spill] sm:$0xff] }
 0x6a0   : > { %v8997_v40 = vpop.f32.mrf.mxu0  ;;  %9284 = vrot.lane.b32.xlu0 %v9206_v56, %s19091_s22  ;;  %9282 = vrot.lane.b32.xlu1 %v9205_v10, %s19091_s22  ;;  %vm9146_vm15 = vcmp.ge.f32.partialorder %v9114_v60, 0.0  ;;  %v8164_v44 = vadd.f32 %v25225_v22, %v7858_v51  ;;  %v8167_v45 = vadd.f32 %v25227_v32, %v25226_v47  ;;  %v8736_v15 = vpop.f32.mrf.mxu1  ;;  %v8781_v62 = vadd.f32 %v18139_v3, %v22348_v61 }
 0x6a1   : > { %v9074_v7 = vadd.f32 %v8997_v40, %v8768_v41  ;;  %vm9144_vm13 = vcmp.ge.f32.partialorder %v9112_v29, 0.0  ;;  %v9176_v59 = vmul.f32 0.2, %v9112_v29  ;;  %v9115_v17 = vadd.f32 %v22390_v4, %v9076_v5  ;;  %v25231_v40 = vld [vmem:[#allocation83_spill] sm:$0xff] }
 0x6a2   : > { %v18167_v48 = vpop.f32.mrf.mxu0  ;;  %v9210_v25 = vsel %vm9146_vm15, %v9114_v60, %v9178_v27  ;;  %v8777_v41 = vadd.f32 %v22519_v58, %v25228_v33  ;;  %v8775_v60 = vadd.f32 %v8720_v43, %v8469_v18  ;;  %v8778_v43 = vadd.f32 %v18136_v26, %v25231_v40 }
 0x6a3   : > { %v9113_v63 = vadd.f32 %v22390_v4, %v9074_v7  ;;  %v9079_v34 = vadd.f32 %v18167_v48, %v8773_v0  ;;  %v9208_v2 = vsel %vm9144_vm13, %v9112_v29, %v9176_v59  ;;  %v9179_v49 = vmul.f32 0.2, %v9115_v17 }
 0x6a4   : > { %v9010_v54 = vpop.f32.mrf.mxu0  ;;  %9286 = vrot.lane.b32.xlu1 %v9207_v36, %s19091_s22  ;;  %9288 = vrot.lane.b32.xlu0 %v9208_v2, %s19091_s22  ;;  %vm9147_vm4 = vcmp.ge.f32.partialorder %v9115_v17, 0.0  ;;  %v8470_v29 = vadd.f32 %v25229_v20, %v8164_v44  ;;  %v7862_v0 = vadd.f32 %v25230_v16, %v7556_v38  ;;  %v8473_v7 = vadd.f32 %v22350_v1, %v8167_v45 }
 0x6a5   : > { %v9077_v24 = vadd.f32 %v9010_v54, %v8771_v19  ;;  %vm9145_vm3 = vcmp.ge.f32.partialorder %v9113_v63, 0.0  ;;  %v9177_v13 = vmul.f32 0.2, %v9113_v63  ;;  %v9118_v52 = vadd.f32 %v22390_v4, %v9079_v34 }
 0x6a6   : > { %v18168_v23 = vpop.f32.mrf.mxu0  ;;  %v9211_v9 = vsel %vm9147_vm4, %v9115_v17, %v9179_v49  ;;  %v8776_v6 = vadd.f32 %v8723_v37, %v8470_v29  ;;  %v8168_v38 = vadd.f32 %v25232_v50, %v7862_v0  ;;  %v8779_v51 = vadd.f32 %v8736_v15, %v8473_v7 }
 0x6a7   : > { %v9116_v53 = vadd.f32 %v22390_v4, %v9077_v24  ;;  %v9080_v12 = vadd.f32 %v18168_v23, %v8774_v11  ;;  %v9209_v30 = vsel %vm9145_vm3, %v9113_v63, %v9177_v13  ;;  %v9182_v31 = vmul.f32 0.2, %v9118_v52  ;;  %v18140_v63 = vpop.f32.mrf.mxu1 }
 0x6a8   : > { %v9013_v35 = vpop.f32.mrf.mxu0  ;;  %9292 = vrot.lane.b32.xlu0 %v9210_v25, %s19091_s22  ;;  %9290 = vrot.lane.b32.xlu1 %v9209_v30, %s19091_s22  ;;  %vm9150_vm7 = vcmp.ge.f32.partialorder %v9118_v52, 0.0  ;;  %v8474_v54 = vadd.f32 %v22366_v8, %v8168_v38  ;;  %v8782_v49 = vadd.f32 %v18140_v63, %v22362_v57 }
 0x6a9   : > { %v9078_v55 = vadd.f32 %v9013_v35, %v8772_v21  ;;  %vm9148_vm5 = vcmp.ge.f32.partialorder %v9116_v53, 0.0  ;;  %v9180_v56 = vmul.f32 0.2, %v9116_v53  ;;  %v9119_v5 = vadd.f32 %v22390_v4, %v9080_v12  ;;  %v8739_v21 = vpop.f32.mrf.mxu1 }
 0x6aa   : > { %v18171_v10 = vpop.f32.mrf.mxu0  ;;  %v9214_v36 = vsel %vm9150_vm7, %v9118_v52, %v9182_v31 }
 0x6ab   : > { %v9117_v14 = vadd.f32 %v22390_v4, %v9078_v55  ;;  %v9083_v58 = vadd.f32 %v18171_v10, %v8777_v41  ;;  %v9212_v42 = vsel %vm9148_vm5, %v9116_v53, %v9180_v56  ;;  %v9183_v27 = vmul.f32 0.2, %v9119_v5 }
 0x6ac   : > { %v9026_v19 = vpop.f32.mrf.mxu0  ;;  %9294 = vrot.lane.b32.xlu1 %v9211_v9, %s19091_s22  ;;  %9296 = vrot.lane.b32.xlu0 %v9212_v42, %s19091_s22  ;;  %vm9151_vm9 = vcmp.ge.f32.partialorder %v9119_v5, 0.0  ;;  %v8780_v53 = vadd.f32 %v8739_v21, %v8474_v54  ;;  %vm9352_vm5 = vcmask 326912  }
 0x6ad   : > { %v9081_v59 = vadd.f32 %v9026_v19, %v8775_v60  ;;  %vm9149_vm8 = vcmp.ge.f32.partialorder %v9117_v14, 0.0  ;;  %v9181_v28 = vmul.f32 0.2, %v9117_v14  ;;  %v9122_v17 = vadd.f32 %v22390_v4, %v9083_v58  ;;  %v18981_v60 = vld [vmem:[%s24894_s7 + $0x4c] ss:$0 sps:$4 sm:$0xff]  }
 0x6ae   : > { %v18172_v48 = vpop.f32.mrf.mxu0  ;;  %v9215_v24 = vsel %vm9151_vm9, %v9119_v5, %v9183_v27  ;;  %18875 = vmatprep.subr.msk.bf16.mxu0 %vm3582_vm2, %v18981_v60  ;;  %v18982_v27 = vld [vmem:[%s24894_s7 + $0x44] sm:$0xff]  }
 0x6af   : > { %v9120_v34 = vadd.f32 %v22390_v4, %v9081_v59  ;;  %v9084_v26 = vadd.f32 %v18172_v48, %v8778_v43  ;;  %v9213_v2 = vsel %vm9149_vm8, %v9117_v14, %v9181_v28  ;;  %v9186_v13 = vmul.f32 0.2, %v9122_v17  ;;  %v18979_v48 = vld [vmem:[%s24894_s7 + $0x30] sm:$0xff]  }
 0x6b0   : > { %v9029_v1 = vpop.f32.mrf.mxu0  ;;  %9300 = vrot.lane.b32.xlu0 %v9214_v36, %s19091_s22  ;;  %9298 = vrot.lane.b32.xlu1 %v9213_v2, %s19091_s22  ;;  %vm9154_vm10 = vcmp.ge.f32.partialorder %v9122_v17, 0.0  ;;  %v10378_v36 = vsel %vm3582_vm2, %v18981_v60, 0 }
 0x6b1   : > { %v9082_v46 = vadd.f32 %v9029_v1, %v8776_v6  ;;  %vm9152_vm14 = vcmp.ge.f32.partialorder %v9120_v34, 0.0  ;;  %v9184_v11 = vmul.f32 0.2, %v9120_v34  ;;  %v9123_v18 = vadd.f32 %v22390_v4, %v9084_v26  ;;  %v18980_v1 = vld [vmem:[%s24894_s7 + $0x28] sm:$0xff]  }
 0x6b2   : > { %v18175_v37 = vpop.f32.mrf.mxu0  ;;  %v9218_v30 = vsel %vm9154_vm10, %v9122_v17, %v9186_v13  ;;  %v10065_v17 = vsel %vm3582_vm2, %v22439_v39, 0 }
 0x6b3   : > { %v9121_v52 = vadd.f32 %v22390_v4, %v9082_v46  ;;  %v9087_v61 = vadd.f32 %v18175_v37, %v8781_v62  ;;  %v9216_v23 = vsel %vm9152_vm14, %v9120_v34, %v9184_v11  ;;  %v9187_v22 = vmul.f32 0.2, %v9123_v18 }
 0x6b4   : > { %v9042_v25 = vpop.f32.mrf.mxu0  ;;  %9302 = vrot.lane.b32.xlu1 %v9215_v24, %s19091_s22  ;;  %9304 = vrot.lane.b32.xlu0 %v9216_v23, %s19091_s22  ;;  %vm9155_vm6 = vcmp.ge.f32.partialorder %v9123_v18, 0.0 }
 0x6b5   : > { %v9085_v3 = vadd.f32 %v9042_v25, %v8779_v51  ;;  %vm9153_vm12 = vcmp.ge.f32.partialorder %v9121_v52, 0.0  ;;  %v9185_v8 = vmul.f32 0.2, %v9121_v52  ;;  %v9126_v44 = vadd.f32 %v22390_v4, %v9087_v61  ;;  %v18983_v51 = vld [vmem:[%s24894_s7 + $0x3c] sm:$0xff]   ;;  %v22654_v61 = vld [vmem:[%s24894_s7 + $0x74] ss:$0 sps:$4 sm:$0xff]  }
 0x6b6   : > { %v18176_v12 = vpop.f32.mrf.mxu0  ;;  %v9219_v56 = vsel %vm9155_vm6, %v9123_v18, %v9187_v22 }
 0x6b7   : > { %v9124_v47 = vadd.f32 %v22390_v4, %v9085_v3  ;;  %v9088_v32 = vadd.f32 %v18176_v12, %v8782_v49  ;;  %v9217_v45 = vsel %vm9153_vm12, %v9121_v52, %v9185_v8  ;;  %v9190_v29 = vmul.f32 0.2, %v9126_v44  ;;  %v22649_v52 = vld [vmem:[%s24894_s7 + $0x60] ss:$0 sps:$4 sm:$0xff]  }
 0x6b8   : > { %v9045_v33 = vpop.f32.mrf.mxu0  ;;  %9308 = vrot.lane.b32.xlu0 %v9218_v30, %s19091_s22  ;;  %9306 = vrot.lane.b32.xlu1 %v9217_v45, %s19091_s22  ;;  %vm9158_vm15 = vcmp.ge.f32.partialorder %v9126_v44, 0.0 }
 0x6b9   : > { %v9127_v57 = vadd.f32 %v22390_v4, %v9088_v32  ;;  %v9086_v41 = vadd.f32 %v9045_v33, %v8780_v53  ;;  %vm9156_vm13 = vcmp.ge.f32.partialorder %v9124_v47, 0.0  ;;  %v9188_v35 = vmul.f32 0.2, %v9124_v47 }
 0x6ba   : > { %v9222_v10 = vsel %vm9158_vm15, %v9126_v44, %v9190_v29 }
 0x6bb   : > { %v9125_v55 = vadd.f32 %v22390_v4, %v9086_v41  ;;  %v9220_v20 = vsel %vm9156_vm13, %v9124_v47, %v9188_v35  ;;  %v9191_v31 = vmul.f32 0.2, %v9127_v57  ;;  %vm9159_vm4 = vcmp.ge.f32.partialorder %v9127_v57, 0.0 }
 0x6bc   : > { %9310 = vrot.lane.b32.xlu1 %v9219_v56, %s19091_s22  ;;  %9312 = vrot.lane.b32.xlu0 %v9220_v20, %s19091_s22 }
 0x6bd   : > { %vm9157_vm3 = vcmp.ge.f32.partialorder %v9125_v55, 0.0  ;;  %v9189_v5 = vmul.f32 0.2, %v9125_v55  ;;  %v9223_v4 = vsel %vm9159_vm4, %v9127_v57, %v9191_v31 }
 0x6bf   : > { %v9221_v9 = vsel %vm9157_vm3, %v9125_v55, %v9189_v5 }
 0x6c0   : > { %9316 = vrot.lane.b32.xlu0 %v9222_v10, %s19091_s22  ;;  %9314 = vrot.lane.b32.xlu1 %v9221_v9, %s19091_s22 }
 0x6c4   : > { %9318 = vrot.lane.b32.xlu1 %v9223_v4, %s19091_s22  ;;  %s19093_s22 = smov [#allocation3]  }
 0x6c5   : > { %s19030_s24 = sshll.u32 %s19093_s22, 4  ;;  %s19031_s24 = int_to_ptr.vmem [resolvable:$false] %s19030_s24 }
 0x6c6   : > { %p19033_p0 = scmp.lt.s32.totalorder %s24838_s30, %s19031_s24 }
 0x6f6   : > { %v9257_v15 = vpop.permute.xlu0 %9256 }
 0x6f7   : > { %9353 = vst.msk [vmem:[#allocation2 + $0x19] sm:$0xff] %vm9352_vm5, %v9257_v15 }
 0x6fa   : > { %v9261_v14 = vpop.permute.xlu0 %9260  ;;  %v9259_v58 = vpop.permute.xlu1 %9258 }
 0x6fb   : > { %9354 = vst.msk [vmem:[#allocation2 + $0x21] sm:$0xff] %vm9352_vm5, %v9259_v58  ;;  %9355 = vst.msk [vmem:[#allocation2 + $0x31] sm:$0xff] %vm9352_vm5, %v9261_v14 }
 0x6fe   : > { %v9263_v42 = vpop.permute.xlu1 %9262  ;;  %v9265_v16 = vpop.permute.xlu0 %9264  ;;  %v9440_v0 = vld [vmem:[#allocation2 + $0x19] sm:$0xff] }
 0x6ff   : > { %9356 = vst.msk [vmem:[#allocation2 + $0x39] sm:$0xff] %vm9352_vm5, %v9263_v42  ;;  %9357 = vst.msk [vmem:[#allocation2 + $0x49] sm:$0xff] %vm9352_vm5, %v9265_v16  ;;  %v9387_v7 = vld [vmem:[#allocation2 + $0x18] sm:$0xff] }
 0x702   : > { %v9269_v40 = vpop.permute.xlu0 %9268  ;;  %v9267_v43 = vpop.permute.xlu1 %9266  ;;  %v9441_v19 = vld [vmem:[#allocation2 + $0x21] sm:$0xff]  ;;  %v9442_v63 = vld [vmem:[#allocation2 + $0x31] sm:$0xff] }
 0x703   : > { %v9388_v59 = vld [vmem:[#allocation2 + $0x20] sm:$0xff]  ;;  %v22605_v28 = vpack.c.bf16 %v9441_v19, %v9440_v0  ;;  %9358 = vst.msk [vmem:[#allocation2 + $0x51] sm:$0xff] %vm9352_vm5, %v9267_v43  ;;  %9359 = vst.msk [vmem:[#allocation2 + $0x61] sm:$0xff] %vm9352_vm5, %v9269_v40  ;;  %v9389_v2 = vld [vmem:[#allocation2 + $0x30] sm:$0xff] }
 0x704   : > { %v22609_v6 = vpack.c.bf16 %v9388_v59, %v9387_v7 }
 0x705   : > { %18184 = vmatmul.mubr.msk.bf16.vlgmr.msra.gmra.mxu1 %vm9507_vm11, %v22605_v28 }
 0x706   : > { %18222 = vmatmul.mubr.msk.bf16.vlgmr.msra.gmra.mxu0 %vm9507_vm11, %v22609_v6  ;;  %18254 = vmatpush3.bf16.msra.mxu1 %v10065_v17  ;;  %v9271_v34 = vpop.permute.xlu1 %9270  ;;  %v9273_v39 = vpop.permute.xlu0 %9272  ;;  %v9443_v26 = vld [vmem:[#allocation2 + $0x39] sm:$0xff]  ;;  %v9444_v46 = vld [vmem:[#allocation2 + $0x49] sm:$0xff] }
 0x707   : > { %v9390_v50 = vld [vmem:[#allocation2 + $0x38] sm:$0xff]  ;;  %18292 = vmatpush3.bf16.msra.mxu0 %v10378_v36  ;;  %9360 = vst.msk [vmem:[#allocation2 + $0x69] sm:$0xff] %vm9352_vm5, %v9271_v34  ;;  %9361 = vst.msk [vmem:[#allocation2 + $0x79] sm:$0xff] %vm9352_vm5, %v9273_v39  ;;  %v22626_v38 = vpack.c.bf16 %v9443_v26, %v9442_v63  ;;  %18255 = vmatprep.subr.bf16.mxu1 %v18979_v48  ;;  %v9391_v37 = vld [vmem:[#allocation2 + $0x48] sm:$0xff] }
 0x708   : > { %v22628_v62 = vpack.c.bf16 %v9390_v50, %v9389_v2  ;;  %18293 = vmatprep.subr.bf16.mxu0 %v18982_v27 }
 0x709   : > { %18187 = vmatprep.mubr.msk.bf16.mxu1 %vm9507_vm11, %v22626_v38 }
 0x70a   : > { %18225 = vmatprep.mubr.msk.bf16.mxu0 %vm9507_vm11, %v22628_v62  ;;  %v9277_v11 = vpop.permute.xlu0 %9276  ;;  %v9275_v54 = vpop.permute.xlu1 %9274  ;;  %v9445_v18 = vld [vmem:[#allocation2 + $0x51] sm:$0xff]  ;;  %18256 = vmatpush3.bf16.msra.mxu1 %v18979_v48  ;;  %v9446_v23 = vld [vmem:[#allocation2 + $0x61] sm:$0xff] }
 0x70b   : > { %v9392_v24 = vld [vmem:[#allocation2 + $0x50] sm:$0xff]  ;;  %18294 = vmatpush3.bf16.msra.mxu0 %v18982_v27  ;;  %9363 = vst.msk [vmem:[#allocation2 + $0x91] sm:$0xff] %vm9352_vm5, %v9277_v11  ;;  %9362 = vst.msk [vmem:[#allocation2 + $0x81] sm:$0xff] %vm9352_vm5, %v9275_v54  ;;  %v22642_v13 = vpack.c.bf16 %v9445_v18, %v9444_v46  ;;  %18257 = vmatprep.subr.bf16.mxu1 %v18980_v1  ;;  %v9393_v8 = vld [vmem:[#allocation2 + $0x60] sm:$0xff] }
 0x70c   : > { %v22644_v21 = vpack.c.bf16 %v9392_v24, %v9391_v37  ;;  %18295 = vmatprep.subr.bf16.mxu0 %v18983_v51 }
 0x70d   : > { %18188 = vmatmul.mubr.msk.bf16.gmra.mxu1 %vm9507_vm11, %v22642_v13 }
 0x70e   : > { %18226 = vmatmul.mubr.msk.bf16.gmra.mxu0 %vm9507_vm11, %v22644_v21  ;;  %v9279_v25 = vpop.permute.xlu1 %9278  ;;  %v9281_v49 = vpop.permute.xlu0 %9280  ;;  %v9447_v3 = vld [vmem:[#allocation2 + $0x69] sm:$0xff]  ;;  %18258 = vmatpush3.bf16.msra.mxu1 %v18980_v1  ;;  %v9448_v22 = vld [vmem:[#allocation2 + $0x79] sm:$0xff] }
 0x70f   : > { %v9394_v53 = vld [vmem:[#allocation2 + $0x68] sm:$0xff]  ;;  %18296 = vmatpush3.bf16.msra.mxu0 %v18983_v51  ;;  %9364 = vst.msk [vmem:[#allocation2 + $0x99] sm:$0xff] %vm9352_vm5, %v9279_v25  ;;  %9365 = vst.msk [vmem:[#allocation2 + $0xa9] sm:$0xff] %vm9352_vm5, %v9281_v49  ;;  %v22662_v12 = vpack.c.bf16 %v9447_v3, %v9446_v23  ;;  %18876 = vmatprep.subr.msk.bf16.mxu1 %vm3582_vm2, %v22649_v52  ;;  %v9395_v45 = vld [vmem:[#allocation2 + $0x78] sm:$0xff] }
 0x710   : > { %v22664_v30 = vpack.c.bf16 %v9394_v53, %v9393_v8  ;;  %18877 = vmatprep.subr.msk.bf16.mxu0 %vm3582_vm2, %v22654_v61 }
 0x711   : > { %18191 = vmatprep.mubr.msk.bf16.mxu1 %vm9507_vm11, %v22662_v12 }
 0x712   : > { %18229 = vmatprep.mubr.msk.bf16.mxu0 %vm9507_vm11, %v22664_v30  ;;  %v9285_v44 = vpop.permute.xlu0 %9284  ;;  %v9283_v47 = vpop.permute.xlu1 %9282  ;;  %v9449_v32 = vld [vmem:[#allocation2 + $0x81] sm:$0xff]  ;;  %v9450_v35 = vld [vmem:[#allocation2 + $0x91] sm:$0xff] }
 0x713   : > { %v9396_v33 = vld [vmem:[#allocation2 + $0x80] sm:$0xff]  ;;  %9367 = vst.msk [vmem:[#allocation2 + $0xc1] sm:$0xff] %vm9352_vm5, %v9285_v44  ;;  %9366 = vst.msk [vmem:[#allocation2 + $0xb1] sm:$0xff] %vm9352_vm5, %v9283_v47  ;;  %v22676_v57 = vpack.c.bf16 %v9449_v32, %v9448_v22  ;;  %v9397_v20 = vld [vmem:[#allocation2 + $0x90] sm:$0xff] }
 0x714   : > { %v22678_v41 = vpack.c.bf16 %v9396_v33, %v9395_v45 }
 0x715   : > { %18192 = vmatmul.mubr.msk.bf16.gmra.mxu1 %vm9507_vm11, %v22676_v57 }
 0x716   : > { %18230 = vmatmul.mubr.msk.bf16.gmra.mxu0 %vm9507_vm11, %v22678_v41  ;;  %v9287_v60 = vpop.permute.xlu1 %9286  ;;  %v9289_v55 = vpop.permute.xlu0 %9288  ;;  %v9451_v56 = vld [vmem:[#allocation2 + $0x99] sm:$0xff]  ;;  %v9452_v9 = vld [vmem:[#allocation2 + $0xa9] sm:$0xff] }
 0x717   : > { %v9398_v29 = vld [vmem:[#allocation2 + $0x98] sm:$0xff]  ;;  %9368 = vst.msk [vmem:[#allocation2 + $0xc9] sm:$0xff] %vm9352_vm5, %v9287_v60  ;;  %9369 = vst.msk [vmem:[#allocation2 + $0xd9] sm:$0xff] %vm9352_vm5, %v9289_v55  ;;  %v22686_v5 = vpack.c.bf16 %v9451_v56, %v9450_v35  ;;  %v9399_v14 = vld [vmem:[#allocation2 + $0xa8] sm:$0xff] }
 0x718   : > { %v22688_v10 = vpack.c.bf16 %v9398_v29, %v9397_v20 }
 0x719   : > { %18195 = vmatprep.mubr.msk.bf16.mxu1 %vm9507_vm11, %v22686_v5 }
 0x71a   : > { %18233 = vmatprep.mubr.msk.bf16.mxu0 %vm9507_vm11, %v22688_v10  ;;  %v9293_v31 = vpop.permute.xlu0 %9292  ;;  %v9291_v4 = vpop.permute.xlu1 %9290  ;;  %v9453_v15 = vld [vmem:[#allocation2 + $0xb1] sm:$0xff]  ;;  %v9454_v0 = vld [vmem:[#allocation2 + $0xc1] sm:$0xff] }
 0x71b   : > { %v9400_v58 = vld [vmem:[#allocation2 + $0xb0] sm:$0xff]  ;;  %9371 = vst.msk [vmem:[#allocation2 + $0xf1] sm:$0xff] %vm9352_vm5, %v9293_v31  ;;  %9370 = vst.msk [vmem:[#allocation2 + $0xe1] sm:$0xff] %vm9352_vm5, %v9291_v4  ;;  %v22696_v42 = vpack.c.bf16 %v9453_v15, %v9452_v9  ;;  %v9401_v7 = vld [vmem:[#allocation2 + $0xc0] sm:$0xff] }
 0x71c   : > { %v22698_v16 = vpack.c.bf16 %v9400_v58, %v9399_v14 }
 0x71d   : > { %18196 = vmatmul.mubr.msk.bf16.gmra.mxu1 %vm9507_vm11, %v22696_v42 }
 0x71e   : > { %18234 = vmatmul.mubr.msk.bf16.gmra.mxu0 %vm9507_vm11, %v22698_v16  ;;  %v9295_v40 = vpop.permute.xlu1 %9294  ;;  %v9297_v43 = vpop.permute.xlu0 %9296  ;;  %v9455_v19 = vld [vmem:[#allocation2 + $0xc9] sm:$0xff]  ;;  %v9456_v36 = vld [vmem:[#allocation2 + $0xd9] sm:$0xff] }
 0x71f   : > { %v9402_v59 = vld [vmem:[#allocation2 + $0xc8] sm:$0xff]  ;;  %9372 = vst.msk [vmem:[#allocation2 + $0xf9] sm:$0xff] %vm9352_vm5, %v9295_v40  ;;  %9373 = vst.msk [vmem:[#allocation2 + $0x109] sm:$0xff] %vm9352_vm5, %v9297_v43  ;;  %v22706_v17 = vpack.c.bf16 %v9455_v19, %v9454_v0  ;;  %v9403_v39 = vld [vmem:[#allocation2 + $0xd8] sm:$0xff] }
 0x720   : > { %v22708_v48 = vpack.c.bf16 %v9402_v59, %v9401_v7 }
 0x721   : > { %18199 = vmatprep.mubr.msk.bf16.mxu1 %vm9507_vm11, %v22706_v17 }
 0x722   : > { %18237 = vmatprep.mubr.msk.bf16.mxu0 %vm9507_vm11, %v22708_v48  ;;  %v9301_v27 = vpop.permute.xlu0 %9300  ;;  %v9299_v63 = vpop.permute.xlu1 %9298  ;;  %v9457_v34 = vld [vmem:[#allocation2 + $0xe1] sm:$0xff]  ;;  %v9458_v1 = vld [vmem:[#allocation2 + $0xf1] sm:$0xff] }
 0x723   : > { %v9404_v26 = vld [vmem:[#allocation2 + $0xe0] sm:$0xff]  ;;  %9375 = vst.msk [vmem:[#allocation2 + $0x121] sm:$0xff] %vm9352_vm5, %v9301_v27  ;;  %9374 = vst.msk [vmem:[#allocation2 + $0x111] sm:$0xff] %vm9352_vm5, %v9299_v63  ;;  %v22716_v2 = vpack.c.bf16 %v9457_v34, %v9456_v36  ;;  %v9405_v54 = vld [vmem:[#allocation2 + $0xf0] sm:$0xff] }
 0x724   : > { %v22718_v50 = vpack.c.bf16 %v9404_v26, %v9403_v39  ;;  %v9947_v27 = vld [vmem:[#allocation2 + $0x2] sm:$0xff]  ;;  %v9948_v63 = vld [vmem:[#allocation2 + $0xa] sm:$0xff] }
 0x725   : > { %18200 = vmatmul.mubr.msk.bf16.gmra.mxu1 %vm9507_vm11, %v22716_v2 }
 0x726   : > { %18238 = vmatmul.mubr.msk.bf16.gmra.mxu0 %vm9507_vm11, %v22718_v50  ;;  %v9303_v51 = vpop.permute.xlu1 %9302  ;;  %v9305_v46 = vpop.permute.xlu0 %9304  ;;  %v9459_v11 = vld [vmem:[#allocation2 + $0xf9] sm:$0xff]  ;;  %v9460_v23 = vld [vmem:[#allocation2 + $0x109] sm:$0xff] }
 0x727   : > { %v9406_v18 = vld [vmem:[#allocation2 + $0xf8] sm:$0xff]  ;;  %9376 = vst.msk [vmem:[#allocation2 + $0x129] sm:$0xff] %vm9352_vm5, %v9303_v51  ;;  %9377 = vst.msk [vmem:[#allocation2 + $0x139] sm:$0xff] %vm9352_vm5, %v9305_v46  ;;  %v22726_v37 = vpack.c.bf16 %v9459_v11, %v9458_v1  ;;  %v9407_v8 = vld [vmem:[#allocation2 + $0x108] sm:$0xff]  ;;  %v9979_v51 = vpack.c.bf16 %v9948_v63, %v9947_v27 }
 0x728   : > { %v22728_v24 = vpack.c.bf16 %v9406_v18, %v9405_v54  ;;  %v9949_v54 = vld [vmem:[#allocation2 + $0x1a] sm:$0xff]  ;;  %v9950_v18 = vld [vmem:[#allocation2 + $0x22] sm:$0xff]  ;;  %v9964_v63 = vld [vmem:[#allocation2 + $0xca] sm:$0xff] }
 0x729   : > { %18203 = vmatprep.mubr.msk.bf16.mxu1 %vm9507_vm11, %v22726_v37  ;;  %v9963_v27 = vld [vmem:[#allocation2 + $0xc2] sm:$0xff] }
 0x72a   : > { %18241 = vmatprep.mubr.msk.bf16.mxu0 %vm9507_vm11, %v22728_v24  ;;  %v9309_v25 = vpop.permute.xlu0 %9308  ;;  %v9307_v49 = vpop.permute.xlu1 %9306  ;;  %v9461_v3 = vld [vmem:[#allocation2 + $0x111] sm:$0xff]  ;;  %v9462_v47 = vld [vmem:[#allocation2 + $0x121] sm:$0xff] }
 0x72b   : > { %v9408_v53 = vld [vmem:[#allocation2 + $0x110] sm:$0xff]  ;;  %9379 = vst.msk [vmem:[#allocation2 + $0x151] sm:$0xff] %vm9352_vm5, %v9309_v25  ;;  %9378 = vst.msk [vmem:[#allocation2 + $0x141] sm:$0xff] %vm9352_vm5, %v9307_v49  ;;  %v22736_v22 = vpack.c.bf16 %v9461_v3, %v9460_v23  ;;  %v9409_v35 = vld [vmem:[#allocation2 + $0x120] sm:$0xff]  ;;  %v22784_v49 = vpack.c.bf16 %v9950_v18, %v9949_v54  ;;  %v10691_v3 = vsel %vm3582_vm2, %v22649_v52, 0 }
 0x72c   : > { %v22738_v44 = vpack.c.bf16 %v9408_v53, %v9407_v8  ;;  %v9951_v23 = vld [vmem:[#allocation2 + $0x32] sm:$0xff]  ;;  %v9952_v25 = vld [vmem:[#allocation2 + $0x3a] sm:$0xff] }
 0x72d   : > { %18204 = vmatmul.mubr.msk.bf16.gmra.mxu1 %vm9507_vm11, %v22736_v22  ;;  %v18985_v8 = vld [vmem:[%s24894_s7 + $0x58] sm:$0xff]   ;;  %v22791_v53 = vpack.c.bf16 %v9952_v25, %v9951_v23  ;;  %v18986_v52 = vld [vmem:[%s24894_s7 + $0x50] sm:$0xff]  }
 0x72e   : > { %18242 = vmatmul.mubr.msk.bf16.gmra.mxu0 %vm9507_vm11, %v22738_v44  ;;  %v9311_v32 = vpop.permute.xlu1 %9310  ;;  %v9313_v45 = vpop.permute.xlu0 %9312  ;;  %v9463_v33 = vld [vmem:[#allocation2 + $0x129] sm:$0xff]  ;;  %v9464_v20 = vld [vmem:[#allocation2 + $0x139] sm:$0xff] }
 0x72f   : > { %v9410_v60 = vld [vmem:[#allocation2 + $0x128] sm:$0xff]  ;;  %9380 = vst.msk [vmem:[#allocation2 + $0x159] sm:$0xff] %vm9352_vm5, %v9311_v32  ;;  %9381 = vst.msk [vmem:[#allocation2 + $0x169] sm:$0xff] %vm9352_vm5, %v9313_v45  ;;  %v22746_v55 = vpack.c.bf16 %v9463_v33, %v9462_v47  ;;  %v9411_v4 = vld [vmem:[#allocation2 + $0x138] sm:$0xff] }
 0x730   : > { %v22748_v56 = vpack.c.bf16 %v9410_v60, %v9409_v35  ;;  %v18988_v47 = vld [vmem:[%s24894_s7 + $0x6c] sm:$0xff]   ;;  %v18989_v60 = vld [vmem:[%s24894_s7 + $0x64] sm:$0xff]   ;;  %v9968_v54 = vld [vmem:[#allocation2 + $0xfa] sm:$0xff] }
 0x731   : > { %18207 = vmatprep.mubr.msk.bf16.mxu1 %vm9507_vm11, %v22746_v55  ;;  %v9953_v32 = vld [vmem:[#allocation2 + $0x4a] sm:$0xff]  ;;  %v9954_v45 = vld [vmem:[#allocation2 + $0x52] sm:$0xff] }
 0x732   : > { %18245 = vmatprep.mubr.msk.bf16.mxu0 %vm9507_vm11, %v22748_v56  ;;  %v9317_v29 = vpop.permute.xlu0 %9316  ;;  %v9315_v9 = vpop.permute.xlu1 %9314  ;;  %v9465_v31 = vld [vmem:[#allocation2 + $0x141] sm:$0xff]  ;;  %v9466_v0 = vld [vmem:[#allocation2 + $0x151] sm:$0xff]  ;;  %v22809_v35 = vpack.c.bf16 %v9954_v45, %v9953_v32 }
 0x733   : > { %v9412_v15 = vld [vmem:[#allocation2 + $0x140] sm:$0xff]  ;;  %9383 = vst.msk [vmem:[#allocation2 + $0x181] sm:$0xff] %vm9352_vm5, %v9317_v29  ;;  %9382 = vst.msk [vmem:[#allocation2 + $0x171] sm:$0xff] %vm9352_vm5, %v9315_v9  ;;  %v22756_v14 = vpack.c.bf16 %v9465_v31, %v9464_v20  ;;  %v9413_v19 = vld [vmem:[#allocation2 + $0x150] sm:$0xff] }
 0x734   : > { %v22758_v58 = vpack.c.bf16 %v9412_v15, %v9411_v4  ;;  %v9956_v33 = vld [vmem:[#allocation2 + $0x6a] sm:$0xff]  ;;  %v22819_v29 = vld [vmem:[%s24894_s7 + $0x88] ss:$0 sps:$4 sm:$0xff]   ;;  %v22828_v9 = vld [vmem:[%s24894_s7 + $0x9c] ss:$0 sps:$4 sm:$0xff]  }
 0x735   : > { %18208 = vmatmul.mubr.msk.bf16.gmra.mxu1 %vm9507_vm11, %v22756_v14  ;;  %v9957_v31 = vld [vmem:[#allocation2 + $0x7a] sm:$0xff]  ;;  %v9958_v4 = vld [vmem:[#allocation2 + $0x82] sm:$0xff]  ;;  %v9959_v15 = vld [vmem:[#allocation2 + $0x92] sm:$0xff] }
 0x736   : > { %18246 = vmatmul.mubr.msk.bf16.gmra.mxu0 %vm9507_vm11, %v22758_v58  ;;  %v9319_v40 = vpop.permute.xlu1 %9318  ;;  %v9467_v43 = vld [vmem:[#allocation2 + $0x159] sm:$0xff]  ;;  %v9468_v34 = vld [vmem:[#allocation2 + $0x169] sm:$0xff] }
 0x737   : > { %v9414_v7 = vld [vmem:[#allocation2 + $0x158] sm:$0xff]  ;;  %9384 = vst.msk [vmem:[#allocation2 + $0x189] sm:$0xff] %vm9352_vm5, %v9319_v40  ;;  %v22765_v59 = vpack.c.bf16 %v9467_v43, %v9466_v0  ;;  %v9415_v26 = vld [vmem:[#allocation2 + $0x168] sm:$0xff]  ;;  %v22838_v40 = vpack.c.bf16 %v9958_v4, %v9957_v31 }
 0x738   : > { %v22767_v36 = vpack.c.bf16 %v9414_v7, %v9413_v19  ;;  %v9960_v0 = vld [vmem:[#allocation2 + $0x9a] sm:$0xff]  ;;  %v9961_v19 = vld [vmem:[#allocation2 + $0xaa] sm:$0xff]  ;;  %v9962_v7 = vld [vmem:[#allocation2 + $0xb2] sm:$0xff] }
 0x739   : > { %18211 = vmatprep.mubr.msk.bf16.mxu1 %vm9507_vm11, %v22765_v59  ;;  %v22840_v43 = vpack.c.bf16 %v9960_v0, %v9959_v15  ;;  %v9969_v25 = vld [vmem:[#allocation2 + $0x10a] sm:$0xff]  ;;  %v9974_v32 = vld [vmem:[#allocation2 + $0x142] sm:$0xff]  ;;  %v9975_v45 = vld [vmem:[#allocation2 + $0x152] sm:$0xff] }
 0x73a   : > { %18249 = vmatprep.mubr.msk.bf16.mxu0 %vm9507_vm11, %v22767_v36  ;;  %v9469_v39 = vld [vmem:[#allocation2 + $0x171] sm:$0xff] }
 0x73b   : > { %v9416_v1 = vld [vmem:[#allocation2 + $0x170] sm:$0xff]  ;;  %v22773_v46 = vpack.c.bf16 %v9469_v39, %v9468_v34  ;;  %v22850_v34 = vpack.c.bf16 %v9962_v7, %v9961_v19  ;;  %v22852_v39 = vpack.c.bf16 %v9964_v63, %v9963_v27  ;;  %v18991_v7 = vld [vmem:[%s24894_s7 + $0x80] sm:$0xff]   ;;  %v11630_v27 = vsel %vm3582_vm2, %v22828_v9, 0 }
 0x73c   : > { %v22775_v11 = vpack.c.bf16 %v9416_v1, %v9415_v26  ;;  %v9965_v26 = vld [vmem:[#allocation2 + $0xda] sm:$0xff]  ;;  %v9966_v1 = vld [vmem:[#allocation2 + $0xe2] sm:$0xff]  ;;  %v9977_v31 = vld [vmem:[#allocation2 + $0x16a] sm:$0xff] }
 0x73d   : > { %18212 = vmatmul.mubr.msk.bf16.gmra.mxu1 %vm9507_vm11, %v22773_v46  ;;  %v22862_v18 = vpack.c.bf16 %v9966_v1, %v9965_v26  ;;  %v9978_v4 = vld [vmem:[#allocation2 + $0x172] sm:$0xff] }
 0x73e   : > { %18250 = vmatmul.mubr.msk.bf16.gmra.mxu0 %vm9507_vm11, %v22775_v11  ;;  %18259 = vmatprep.mubr.msk.bf16.mxu1 %vm9507_vm11, %v9979_v51  ;;  %v9967_v51 = vld [vmem:[#allocation2 + $0xf2] sm:$0xff]  ;;  %v10291_v15 = vld [vmem:[#allocation2 + $0x188] sm:$0xff]  ;;  %v9994_v0 = vpack.c.bf16 %v9978_v4, %v9977_v31 }
 0x73f   : > { %18297 = vmatprep.mubr.msk.bf16.mxu0 %vm9507_vm11, %v22609_v6  ;;  %v11004_v6 = vsel %vm3582_vm2, %v22654_v61, 0  ;;  %v9955_v61 = vld [vmem:[#allocation2 + $0x62] sm:$0xff]  ;;  %v22864_v23 = vpack.c.bf16 %v9968_v54, %v9967_v51  ;;  %v11526_v31 = vld [vmem:[#allocation2 + $0xd9] sm:$0xff] }
 0x740   : > { %v22814_v20 = vpack.c.bf16 %v9956_v33, %v9955_v61  ;;  %v9976_v61 = vld [vmem:[#allocation2 + $0x15a] sm:$0xff] }
 0x745   : > { %18260 = vmatmul.mubr.msk.bf16.vlgmr.msra.gmra.mxu1 %vm9507_vm11, %v22784_v49 }
 0x746   : > { %18298 = vmatmul.mubr.msk.bf16.vlgmr.msra.gmra.mxu0 %vm9507_vm11, %v22628_v62  ;;  %18330 = vmatpush3.bf16.msra.mxu1 %v10691_v3  ;;  %v9970_v3 = vld [vmem:[#allocation2 + $0x112] sm:$0xff] }
 0x747   : > { %18263 = vmatprep.mubr.msk.bf16.mxu1 %vm9507_vm11, %v22791_v53  ;;  %18301 = vmatprep.mubr.msk.bf16.mxu0 %vm9507_vm11, %v22644_v21 }
 0x748   : > { %18331 = vmatprep.subr.bf16.mxu1 %v18985_v8  ;;  %18368 = vmatpush3.bf16.msra.mxu0 %v11004_v6  ;;  %v9972_v6 = vld [vmem:[#allocation2 + $0x12a] sm:$0xff] }
 0x749   : > { %18369 = vmatprep.subr.bf16.mxu0 %v18988_v47 }
 0x74a   : > { %18332 = vmatpush3.bf16.msra.mxu1 %v18985_v8  ;;  %v9971_v8 = vld [vmem:[#allocation2 + $0x122] sm:$0xff] }
 0x74b   : > { %18333 = vmatprep.subr.bf16.mxu1 %v18986_v52 }
 0x74c   : > { %18370 = vmatpush3.bf16.msra.mxu0 %v18988_v47  ;;  %v22874_v47 = vpack.c.bf16 %v9970_v3, %v9969_v25 }
 0x74d   : > { %18264 = vmatmul.mubr.msk.bf16.gmra.mxu1 %vm9507_vm11, %v22809_v35  ;;  %18371 = vmatprep.subr.bf16.mxu0 %v18989_v60 }
 0x74e   : > { %18302 = vmatmul.mubr.msk.bf16.gmra.mxu0 %vm9507_vm11, %v22664_v30  ;;  %18267 = vmatprep.mubr.msk.bf16.mxu1 %vm9507_vm11, %v22814_v20 }
 0x74f   : > { %18305 = vmatprep.mubr.msk.bf16.mxu0 %vm9507_vm11, %v22678_v41  ;;  %18334 = vmatpush3.bf16.msra.mxu1 %v18986_v52  ;;  %v22876_v52 = vpack.c.bf16 %v9972_v6, %v9971_v8 }
 0x750   : > { %18372 = vmatpush3.bf16.msra.mxu0 %v18989_v60  ;;  %18878 = vmatprep.subr.msk.bf16.mxu1 %vm3582_vm2, %v22819_v29  ;;  %v9993_v60 = vpack.c.bf16 %v9976_v61, %v9975_v45  ;;  %v11527_v45 = vld [vmem:[#allocation2 + $0xe1] sm:$0xff] }
 0x751   : > { %18879 = vmatprep.subr.msk.bf16.mxu0 %vm3582_vm2, %v22828_v9 }
 0x755   : > { %18268 = vmatmul.mubr.msk.bf16.gmra.mxu1 %vm9507_vm11, %v22838_v40 }
 0x756   : > { %18306 = vmatmul.mubr.msk.bf16.gmra.mxu0 %vm9507_vm11, %v22688_v10  ;;  %18271 = vmatprep.mubr.msk.bf16.mxu1 %vm9507_vm11, %v22840_v43 }
 0x757   : > { %18309 = vmatprep.mubr.msk.bf16.mxu0 %vm9507_vm11, %v22698_v16 }
 0x75d   : > { %18272 = vmatmul.mubr.msk.bf16.gmra.mxu1 %vm9507_vm11, %v22850_v34 }
 0x75e   : > { %18310 = vmatmul.mubr.msk.bf16.gmra.mxu0 %vm9507_vm11, %v22708_v48  ;;  %18275 = vmatprep.mubr.msk.bf16.mxu1 %vm9507_vm11, %v22852_v39 }
 0x75f   : > { %18313 = vmatprep.mubr.msk.bf16.mxu0 %vm9507_vm11, %v22718_v50 }
 0x765   : > { %18276 = vmatmul.mubr.msk.bf16.gmra.mxu1 %vm9507_vm11, %v22862_v18 }
 0x766   : > { %18314 = vmatmul.mubr.msk.bf16.gmra.mxu0 %vm9507_vm11, %v22728_v24  ;;  %18279 = vmatprep.mubr.msk.bf16.mxu1 %vm9507_vm11, %v22864_v23 }
 0x767   : > { %18317 = vmatprep.mubr.msk.bf16.mxu0 %vm9507_vm11, %v22738_v44  ;;  %v9973_v44 = vld [vmem:[#allocation2 + $0x13a] sm:$0xff] }
 0x768   : > { %v9992_v33 = vpack.c.bf16 %v9974_v32, %v9973_v44 }
 0x76d   : > { %18280 = vmatmul.mubr.msk.bf16.gmra.mxu1 %vm9507_vm11, %v22874_v47 }
 0x76e   : > { %18318 = vmatmul.mubr.msk.bf16.gmra.mxu0 %vm9507_vm11, %v22748_v56  ;;  %18283 = vmatprep.mubr.msk.bf16.mxu1 %vm9507_vm11, %v22876_v52 }
 0x76f   : > { %18321 = vmatprep.mubr.msk.bf16.mxu0 %vm9507_vm11, %v22758_v58  ;;  %v10290_v58 = vld [vmem:[#allocation2 + $0x180] sm:$0xff] }
 0x770   : > { %v22892_v19 = vpack.c.bf16 %v10291_v15, %v10290_v58  ;;  %v11551_v15 = vpack.c.bf16 %v11527_v45, %v11526_v31  ;;  %v11528_v58 = vld [vmem:[#allocation2 + $0xf1] sm:$0xff] }
 0x775   : > { %18284 = vmatmul.mubr.msk.bf16.gmra.mxu1 %vm9507_vm11, %v9992_v33 }
 0x776   : > { %18322 = vmatmul.mubr.msk.bf16.gmra.mxu0 %vm9507_vm11, %v22767_v36  ;;  %18287 = vmatprep.mubr.msk.bf16.mxu1 %vm9507_vm11, %v9993_v60 }
 0x777   : > { %18325 = vmatprep.mubr.msk.bf16.mxu0 %vm9507_vm11, %v22775_v11  ;;  %v11317_v11 = vsel %vm3582_vm2, %v22819_v29, 0  ;;  %v18996_v29 = vld [vmem:[%s24894_s7 + $0xb0] ss:$0 sps:$4 sm:$0xff]  }
 0x77d   : > { %18288 = vmatmul.mubr.msk.bf16.gmra.mxu1 %vm9507_vm11, %v9994_v0 }
 0x77e   : > { %18326 = vmatmul.mubr.msk.bf16.gmra.mxu0 %vm9507_vm11, %v22892_v19  ;;  %18335 = vmatprep.mubr.msk.bf16.mxu1 %vm9507_vm11, %v22605_v28  ;;  %v18994_v28 = vld [vmem:[%s24894_s7 + $0x94] sm:$0xff]  }
 0x77f   : > { %18373 = vmatprep.mubr.msk.bf16.mxu0 %vm9507_vm11, %v22784_v49  ;;  %v18992_v49 = vld [vmem:[%s24894_s7 + $0x78] sm:$0xff]  }
 0x785   : > { %18336 = vmatmul.mubr.msk.bf16.vlgmr.msra.gmra.mxu1 %vm9507_vm11, %v22626_v38 }
 0x786   : > { %18374 = vmatmul.mubr.msk.bf16.vlgmr.msra.gmra.mxu0 %vm9507_vm11, %v22791_v53  ;;  %18406 = vmatpush3.bf16.msra.mxu1 %v11317_v11  ;;  %v18995_v53 = vld [vmem:[%s24894_s7 + $0x8c] sm:$0xff]  }
 0x787   : > { %18339 = vmatprep.mubr.msk.bf16.mxu1 %vm9507_vm11, %v22642_v13  ;;  %18377 = vmatprep.mubr.msk.bf16.mxu0 %vm9507_vm11, %v22809_v35 }
 0x788   : > { %18407 = vmatprep.subr.bf16.mxu1 %v18991_v7  ;;  %18444 = vmatpush3.bf16.msra.mxu0 %v11630_v27 }
 0x789   : > { %18445 = vmatprep.subr.bf16.mxu0 %v18994_v28 }
 0x78a   : > { %18408 = vmatpush3.bf16.msra.mxu1 %v18991_v7 }
 0x78b   : > { %18409 = vmatprep.subr.bf16.mxu1 %v18992_v49 }
 0x78c   : > { %18446 = vmatpush3.bf16.msra.mxu0 %v18994_v28 }
 0x78d   : > { %18340 = vmatmul.mubr.msk.bf16.gmra.mxu1 %vm9507_vm11, %v22662_v12  ;;  %18447 = vmatprep.subr.bf16.mxu0 %v18995_v53 }
 0x78e   : > { %18378 = vmatmul.mubr.msk.bf16.gmra.mxu0 %vm9507_vm11, %v22814_v20  ;;  %18343 = vmatprep.mubr.msk.bf16.mxu1 %vm9507_vm11, %v22676_v57 }
 0x78f   : > { %18381 = vmatprep.mubr.msk.bf16.mxu0 %vm9507_vm11, %v22838_v40  ;;  %18410 = vmatpush3.bf16.msra.mxu1 %v18992_v49 }
 0x790   : > { %18448 = vmatpush3.bf16.msra.mxu0 %v18995_v53  ;;  %18880 = vmatprep.subr.msk.bf16.mxu1 %vm3582_vm2, %v18996_v29  ;;  %v11218_v53 = vld [vmem:[#allocation2 + $0x110] sm:$0xff] }
 0x795   : > { %18344 = vmatmul.mubr.msk.bf16.gmra.mxu1 %vm9507_vm11, %v22686_v5 }
 0x796   : > { %18382 = vmatmul.mubr.msk.bf16.gmra.mxu0 %vm9507_vm11, %v22840_v43  ;;  %18347 = vmatprep.mubr.msk.bf16.mxu1 %vm9507_vm11, %v22696_v42  ;;  %v18998_v43 = vld [vmem:[%s24894_s7 + $0xa0] sm:$0xff]  }
 0x797   : > { %18385 = vmatprep.mubr.msk.bf16.mxu0 %vm9507_vm11, %v22850_v34 }
 0x79d   : > { %18348 = vmatmul.mubr.msk.bf16.gmra.mxu1 %vm9507_vm11, %v22706_v17 }
 0x79e   : > { %18386 = vmatmul.mubr.msk.bf16.gmra.mxu0 %vm9507_vm11, %v22852_v39  ;;  %18351 = vmatprep.mubr.msk.bf16.mxu1 %vm9507_vm11, %v22716_v2  ;;  %v10604_v2 = vld [vmem:[#allocation2 + $0x189] sm:$0xff] }
 0x79f   : > { %18389 = vmatprep.mubr.msk.bf16.mxu0 %vm9507_vm11, %v22862_v18 }
 0x7a5   : > { %18352 = vmatmul.mubr.msk.bf16.gmra.mxu1 %vm9507_vm11, %v22726_v37  ;;  %v10916_v37 = vld [vmem:[#allocation2 + $0x182] sm:$0xff] }
 0x7a6   : > { %18390 = vmatmul.mubr.msk.bf16.gmra.mxu0 %vm9507_vm11, %v22864_v23  ;;  %18355 = vmatprep.mubr.msk.bf16.mxu1 %vm9507_vm11, %v22736_v22  ;;  %v10917_v22 = vld [vmem:[#allocation2 + $0x18a] sm:$0xff] }
 0x7a7   : > { %18393 = vmatprep.mubr.msk.bf16.mxu0 %vm9507_vm11, %v22874_v47  ;;  %v22976_v20 = vpack.c.bf16 %v10917_v22, %v10916_v37  ;;  %v11533_v22 = vld [vmem:[#allocation2 + $0x129] sm:$0xff] }
 0x7ad   : > { %18356 = vmatmul.mubr.msk.bf16.gmra.mxu1 %vm9507_vm11, %v22746_v55  ;;  %v10603_v55 = vld [vmem:[#allocation2 + $0x181] sm:$0xff] }
 0x7ae   : > { %18394 = vmatmul.mubr.msk.bf16.gmra.mxu0 %vm9507_vm11, %v22876_v52  ;;  %18359 = vmatprep.mubr.msk.bf16.mxu1 %vm9507_vm11, %v22756_v14  ;;  %v22974_v35 = vpack.c.bf16 %v10604_v2, %v10603_v55  ;;  %v11943_v14 = vsel %vm3582_vm2, %v18996_v29, 0  ;;  %v11531_v29 = vld [vmem:[#allocation2 + $0x111] sm:$0xff] }
 0x7af   : > { %18397 = vmatprep.mubr.msk.bf16.mxu0 %vm9507_vm11, %v9992_v33 }
 0x7b5   : > { %18360 = vmatmul.mubr.msk.bf16.gmra.mxu1 %vm9507_vm11, %v22765_v59  ;;  %v18997_v59 = vld [vmem:[%s24894_s7 + $0xa8] sm:$0xff]  }
 0x7b6   : > { %18398 = vmatmul.mubr.msk.bf16.gmra.mxu0 %vm9507_vm11, %v9993_v60  ;;  %18363 = vmatprep.mubr.msk.bf16.mxu1 %vm9507_vm11, %v22773_v46  ;;  %v11529_v60 = vld [vmem:[#allocation2 + $0xf9] sm:$0xff] }
 0x7b7   : > { %18401 = vmatprep.mubr.msk.bf16.mxu0 %vm9507_vm11, %v9994_v0 }
 0x7bd   : > { %18364 = vmatmul.mubr.msk.bf16.gmra.mxu1 %vm9507_vm11, %v22974_v35 }
 0x7be   : > { %18402 = vmatmul.mubr.msk.bf16.gmra.mxu0 %vm9507_vm11, %v22976_v20  ;;  %18411 = vmatprep.mubr.msk.bf16.mxu1 %vm9507_vm11, %v22628_v62 }
 0x7bf   : > { %18449 = vmatprep.mubr.msk.bf16.mxu0 %vm9507_vm11, %v22626_v38 }
 0x7c5   : > { %v18185_v46 = vpop.f32.mrf.mxu1  ;;  %18412 = vmatmul.mubr.msk.bf16.vlgmr.msra.gmra.mxu1 %vm9507_vm11, %v22644_v21 }
 0x7c6   : > { %v18223_v9 = vpop.f32.mrf.mxu0  ;;  %18450 = vmatmul.mubr.msk.bf16.vlgmr.msra.gmra.mxu0 %vm9507_vm11, %v22642_v13  ;;  %18482 = vmatpush3.bf16.msra.mxu1 %v11943_v14  ;;  %v11530_v14 = vld [vmem:[#allocation2 + $0x109] sm:$0xff] }
 0x7c7   : > { %v22994_v40 = vadd.f32 %v18223_v9, %v18185_v46  ;;  %18415 = vmatprep.mubr.msk.bf16.mxu1 %vm9507_vm11, %v22664_v30  ;;  %18453 = vmatprep.mubr.msk.bf16.mxu0 %vm9507_vm11, %v22662_v12  ;;  %v9593_v38 = vpop.f32.mrf.mxu1 }
 0x7c8   : > { %v9820_v62 = vpop.f32.mrf.mxu0  ;;  %18483 = vmatprep.subr.bf16.mxu1 %v18997_v59 }
 0x7c9   : > { %v23003_v21 = vadd.f32 %v9820_v62, %v9593_v38  ;;  %v18186_v63 = vpop.f32.mrf.mxu1  ;;  %v11553_v38 = vpack.c.bf16 %v11531_v29, %v11530_v14  ;;  %v11538_v29 = vld [vmem:[#allocation2 + $0x169] sm:$0xff] }
 0x7ca   : > { %v18224_v13 = vpop.f32.mrf.mxu0  ;;  %18484 = vmatpush3.bf16.msra.mxu1 %v18997_v59 }
 0x7cb   : > { %v23005_v34 = vadd.f32 %v18224_v13, %v18186_v63  ;;  %v9596_v39 = vpop.f32.mrf.mxu1  ;;  %18485 = vmatprep.subr.bf16.mxu1 %v18998_v43 }
 0x7cc   : > { %v9823_v26 = vpop.f32.mrf.mxu0 }
 0x7cd   : > { %v23007_v30 = vadd.f32 %v9823_v26, %v9596_v39  ;;  %v18189_v12 = vpop.f32.mrf.mxu1  ;;  %18416 = vmatmul.mubr.msk.bf16.gmra.mxu1 %vm9507_vm11, %v22678_v41 }
 0x7ce   : > { %v18227_v1 = vpop.f32.mrf.mxu0  ;;  %18454 = vmatmul.mubr.msk.bf16.gmra.mxu0 %vm9507_vm11, %v22676_v57  ;;  %18419 = vmatprep.mubr.msk.bf16.mxu1 %vm9507_vm11, %v22688_v10 }
 0x7cf   : > { %v23013_v51 = vadd.f32 %v18227_v1, %v18189_v12  ;;  %18457 = vmatprep.mubr.msk.bf16.mxu0 %vm9507_vm11, %v22686_v5  ;;  %v9609_v54 = vpop.f32.mrf.mxu1  ;;  %18486 = vmatpush3.bf16.msra.mxu1 %v18998_v43 }
 0x7d0   : > { %v9836_v18 = vpop.f32.mrf.mxu0 }
 0x7d1   : > { %v23019_v23 = vadd.f32 %v9836_v18, %v9609_v54  ;;  %v18190_v25 = vpop.f32.mrf.mxu1  ;;  %v11222_v54 = vld [vmem:[#allocation2 + $0x140] sm:$0xff] }
 0x7d2   : > { %v18228_v3 = vpop.f32.mrf.mxu0  ;;  %v11535_v18 = vld [vmem:[#allocation2 + $0x141] sm:$0xff] }
 0x7d3   : > { %v23021_v8 = vadd.f32 %v18228_v3, %v18190_v25  ;;  %v9612_v41 = vpop.f32.mrf.mxu1 }
 0x7d4   : > { %v9839_v6 = vpop.f32.mrf.mxu0 }
 0x7d5   : > { %v23023_v57 = vadd.f32 %v9839_v6, %v9612_v41  ;;  %v18193_v47 = vpop.f32.mrf.mxu1  ;;  %18420 = vmatmul.mubr.msk.bf16.gmra.mxu1 %vm9507_vm11, %v22698_v16  ;;  %v11537_v41 = vld [vmem:[#allocation2 + $0x159] sm:$0xff] }
 0x7d6   : > { %v18231_v52 = vpop.f32.mrf.mxu0  ;;  %18458 = vmatmul.mubr.msk.bf16.gmra.mxu0 %vm9507_vm11, %v22696_v42  ;;  %18423 = vmatprep.mubr.msk.bf16.mxu1 %vm9507_vm11, %v22708_v48  ;;  %v11552_v48 = vpack.c.bf16 %v11529_v60, %v11528_v58 }
 0x7d7   : > { %v23029_v5 = vadd.f32 %v18231_v52, %v18193_v47  ;;  %18461 = vmatprep.mubr.msk.bf16.mxu0 %vm9507_vm11, %v22706_v17  ;;  %v9625_v10 = vpop.f32.mrf.mxu1  ;;  %v11221_v47 = vld [vmem:[#allocation2 + $0x138] sm:$0xff] }
 0x7d8   : > { %v9852_v44 = vpop.f32.mrf.mxu0  ;;  %v11534_v52 = vld [vmem:[#allocation2 + $0x139] sm:$0xff] }
 0x7d9   : > { %v23035_v32 = vadd.f32 %v9852_v44, %v9625_v10  ;;  %v18194_v61 = vpop.f32.mrf.mxu1  ;;  %v11555_v45 = vpack.c.bf16 %v11535_v18, %v11534_v52  ;;  %v11825_v18 = vld [vmem:[#allocation2 + $0x32] sm:$0xff] }
 0x7da   : > { %v18232_v33 = vpop.f32.mrf.mxu0 }
 0x7db   : > { %v23037_v16 = vadd.f32 %v18232_v33, %v18194_v61  ;;  %v9628_v42 = vpop.f32.mrf.mxu1  ;;  %v11536_v61 = vld [vmem:[#allocation2 + $0x151] sm:$0xff] }
 0x7dc   : > { %v9855_v4 = vpop.f32.mrf.mxu0  ;;  %v11556_v33 = vpack.c.bf16 %v11537_v41, %v11536_v61 }
 0x7dd   : > { %v23039_v0 = vadd.f32 %v9855_v4, %v9628_v42  ;;  %v18197_v11 = vpop.f32.mrf.mxu1  ;;  %18424 = vmatmul.mubr.msk.bf16.gmra.mxu1 %vm9507_vm11, %v22718_v50  ;;  %v11217_v50 = vld [vmem:[#allocation2 + $0x108] sm:$0xff] }
 0x7de   : > { %v18235_v17 = vpop.f32.mrf.mxu0  ;;  %18462 = vmatmul.mubr.msk.bf16.gmra.mxu0 %vm9507_vm11, %v11551_v15  ;;  %18427 = vmatprep.mubr.msk.bf16.mxu1 %vm9507_vm11, %v22728_v24  ;;  %v11240_v9 = vpack.c.bf16 %v11218_v53, %v11217_v50  ;;  %v11532_v24 = vld [vmem:[#allocation2 + $0x121] sm:$0xff] }
 0x7df   : > { %v23044_v7 = vadd.f32 %v18235_v17, %v18197_v11  ;;  %18465 = vmatprep.mubr.msk.bf16.mxu0 %vm9507_vm11, %v11552_v48  ;;  %v9641_v27 = vpop.f32.mrf.mxu1  ;;  %v11554_v43 = vpack.c.bf16 %v11533_v22, %v11532_v24  ;;  %v11226_v48 = vld [vmem:[#allocation2 + $0x170] sm:$0xff]  ;;  %v11225_v53 = vld [vmem:[#allocation2 + $0x168] sm:$0xff] }
 0x7e0   : > { %v9868_v28 = vpop.f32.mrf.mxu0  ;;  %v11539_v11 = vld [vmem:[#allocation2 + $0x171] sm:$0xff]  ;;  %v11244_v22 = vpack.c.bf16 %v11226_v48, %v11225_v53  ;;  %v11543_v24 = vld [vmem:[#allocation2 + $0x1a1] sm:$0xff] }
 0x7e1   : > { %v23049_v49 = vadd.f32 %v9868_v28, %v9641_v27  ;;  %v18198_v2 = vpop.f32.mrf.mxu1 }
 0x7e2   : > { %v18236_v37 = vpop.f32.mrf.mxu0 }
 0x7e3   : > { %v23051_v55 = vadd.f32 %v18236_v37, %v18198_v2  ;;  %v9644_v59 = vpop.f32.mrf.mxu1 }
 0x7e4   : > { %v9871_v46 = vpop.f32.mrf.mxu0 }
 0x7e5   : > { %v23053_v62 = vadd.f32 %v9871_v46, %v9644_v59  ;;  %v18201_v63 = vpop.f32.mrf.mxu1  ;;  %18428 = vmatmul.mubr.msk.bf16.gmra.mxu1 %vm9507_vm11, %v11240_v9  ;;  %v11229_v59 = vld [vmem:[#allocation2 + $0x198] sm:$0xff]  ;;  %v11230_v9 = vld [vmem:[#allocation2 + $0x1a0] sm:$0xff] }
 0x7e6   : > { %v18239_v13 = vpop.f32.mrf.mxu0  ;;  %18466 = vmatmul.mubr.msk.bf16.gmra.mxu0 %vm9507_vm11, %v11553_v38  ;;  %18431 = vmatprep.mubr.msk.bf16.mxu1 %vm9507_vm11, %v22748_v56  ;;  %v11242_v56 = vpack.c.bf16 %v11222_v54, %v11221_v47  ;;  %v11542_v38 = vld [vmem:[#allocation2 + $0x199] sm:$0xff]  ;;  %v11246_v54 = vpack.c.bf16 %v11230_v9, %v11229_v59 }
 0x7e7   : > { %v23057_v39 = vadd.f32 %v18239_v13, %v18201_v63  ;;  %18469 = vmatprep.mubr.msk.bf16.mxu0 %vm9507_vm11, %v11554_v43  ;;  %v9657_v26 = vpop.f32.mrf.mxu1 }
 0x7e8   : > { %v9884_v12 = vpop.f32.mrf.mxu0 }
 0x7e9   : > { %v23062_v1 = vadd.f32 %v9884_v12, %v9657_v26  ;;  %v18202_v25 = vpop.f32.mrf.mxu1 }
 0x7ea   : > { %v18240_v3 = vpop.f32.mrf.mxu0 }
 0x7eb   : > { %v23064_v6 = vadd.f32 %v18240_v3, %v18202_v25  ;;  %v23066_v10 = vpop.f32.mrf.mxu1  ;;  %v11826_v25 = vld [vmem:[#allocation2 + $0x3a] sm:$0xff]  ;;  %v11559_v3 = vpack.c.bf16 %v11543_v24, %v11542_v38 }
 0x7ec   : > { %v23068_v44 = vpop.f32.mrf.mxu0 }
 0x7ed   : > { %v18205_v60 = vpop.f32.mrf.mxu1  ;;  %18432 = vmatmul.mubr.msk.bf16.gmra.mxu1 %vm9507_vm11, %v11242_v56 }
 0x7ee   : > { %v18243_v31 = vpop.f32.mrf.mxu0  ;;  %18470 = vmatmul.mubr.msk.bf16.gmra.mxu0 %vm9507_vm11, %v11555_v45  ;;  %18435 = vmatprep.mubr.msk.bf16.mxu1 %vm9507_vm11, %v22767_v36  ;;  %v11557_v36 = vpack.c.bf16 %v11539_v11, %v11538_v29  ;;  %v11829_v11 = vld [vmem:[#allocation2 + $0x62] sm:$0xff] }
 0x7ef   : > { %v23072_v42 = vadd.f32 %v18243_v31, %v18205_v60  ;;  %18473 = vmatprep.mubr.msk.bf16.mxu0 %vm9507_vm11, %v11556_v33  ;;  %v9673_v4 = vpop.f32.mrf.mxu1  ;;  %v11827_v31 = vld [vmem:[#allocation2 + $0x4a] sm:$0xff] }
 0x7f0   : > { %v9900_v15 = vpop.f32.mrf.mxu0 }
 0x7f1   : > { %v23077_v58 = vadd.f32 %v9900_v15, %v9673_v4  ;;  %v18206_v17 = vpop.f32.mrf.mxu1  ;;  %v11828_v4 = vld [vmem:[#allocation2 + $0x52] sm:$0xff] }
 0x7f2   : > { %v18244_v27 = vpop.f32.mrf.mxu0 }
 0x7f3   : > { %v23079_v28 = vadd.f32 %v18244_v27, %v18206_v17  ;;  %v23081_v2 = vpop.f32.mrf.mxu1  ;;  %v11830_v17 = vld [vmem:[#allocation2 + $0x6a] sm:$0xff] }
 0x7f4   : > { %v23083_v37 = vpop.f32.mrf.mxu0 }
 0x7f5   : > { %v18209_v50 = vpop.f32.mrf.mxu1  ;;  %18436 = vmatmul.mubr.msk.bf16.gmra.mxu1 %vm9507_vm11, %v11244_v22  ;;  %v11858_v22 = vpack.c.bf16 %v11828_v4, %v11827_v31 }
 0x7f6   : > { %v18247_v14 = vpop.f32.mrf.mxu0  ;;  %18474 = vmatmul.mubr.msk.bf16.gmra.mxu0 %vm9507_vm11, %v11557_v36  ;;  %18439 = vmatprep.mubr.msk.bf16.mxu1 %vm9507_vm11, %v22892_v19  ;;  %v11859_v36 = vpack.c.bf16 %v11830_v17, %v11829_v11 }
 0x7f7   : > { %v23087_v46 = vadd.f32 %v18247_v14, %v18209_v50  ;;  %18477 = vmatprep.mubr.msk.bf16.mxu0 %vm9507_vm11, %v22974_v35  ;;  %v9689_v43 = vpop.f32.mrf.mxu1  ;;  %v11857_v35 = vpack.c.bf16 %v11826_v25, %v11825_v18  ;;  %v11833_v18 = vld [vmem:[#allocation2 + $0x92] sm:$0xff]  ;;  %v11834_v25 = vld [vmem:[#allocation2 + $0x9a] sm:$0xff] }
 0x7f8   : > { %v9916_v63 = vpop.f32.mrf.mxu0 }
 0x7f9   : > { %v23093_v13 = vadd.f32 %v9916_v63, %v9689_v43  ;;  %v18210_v26 = vpop.f32.mrf.mxu1  ;;  %v11831_v63 = vld [vmem:[#allocation2 + $0x7a] sm:$0xff] }
 0x7fa   : > { %v18248_v12 = vpop.f32.mrf.mxu0 }
 0x7fb   : > { %v23095_v41 = vadd.f32 %v18248_v12, %v18210_v26  ;;  %v23097_v47 = vpop.f32.mrf.mxu1  ;;  %v11832_v26 = vld [vmem:[#allocation2 + $0x82] sm:$0xff] }
 0x7fc   : > { %v23099_v19 = vpop.f32.mrf.mxu0 }
 0x7fd   : > { %v18213_v52 = vpop.f32.mrf.mxu1  ;;  %18440 = vmatmul.mubr.msk.bf16.gmra.mxu1 %vm9507_vm11, %v11246_v54 }
 0x7fe   : > { %v18251_v56 = vpop.f32.mrf.mxu0  ;;  %18478 = vmatmul.mubr.msk.bf16.gmra.mxu0 %vm9507_vm11, %v11559_v3  ;;  %18487 = vmatprep.mubr.msk.bf16.mxu1 %vm9507_vm11, %v11857_v35 }
 0x7ff   : > { %v23103_v45 = vadd.f32 %v18251_v56, %v18213_v52  ;;  %v9705_v61 = vpop.f32.mrf.mxu1  ;;  %v11860_v56 = vpack.c.bf16 %v11832_v26, %v11831_v63 }
 0x800   : > { %v9932_v33 = vpop.f32.mrf.mxu0 }
 0x801   : > { %v23106_v60 = vadd.f32 %v9932_v33, %v9705_v61  ;;  %v18214_v15 = vpop.f32.mrf.mxu1 }
 0x802   : > { %v18252_v48 = vpop.f32.mrf.mxu0 }
 0x803   : > { %v23108_v27 = vadd.f32 %v18252_v48, %v18214_v15  ;;  %v23110_v53 = vpop.f32.mrf.mxu1 }
 0x804   : > { %v23112_v29 = vpop.f32.mrf.mxu0 }
 0x805   : > { %v18261_v50 = vpop.f32.mrf.mxu1  ;;  %18488 = vmatmul.mubr.msk.bf16.vlgmr.msra.gmra.mxu1 %vm9507_vm11, %v11858_v22  ;;  %v11835_v22 = vld [vmem:[#allocation2 + $0xaa] sm:$0xff] }
 0x806   : > { %v18299_v14 = vpop.f32.mrf.mxu0  ;;  %v10230_v59 = vadd.f32 %v18261_v50, %v22994_v40  ;;  %18491 = vmatprep.mubr.msk.bf16.mxu1 %vm9507_vm11, %v11859_v36  ;;  %v11836_v36 = vld [vmem:[#allocation2 + $0xb2] sm:$0xff] }
 0x807   : > { %v10101_v9 = vpop.f32.mrf.mxu1  ;;  %v11862_v63 = vpack.c.bf16 %v11836_v36, %v11835_v22 }
 0x808   : > { %v10414_v38 = vpop.f32.mrf.mxu0  ;;  %v23117_v24 = vadd.f32 %v18299_v14, %v10230_v59  ;;  %v10228_v43 = vadd.f32 %v10101_v9, %v23003_v21  ;;  %v11861_v21 = vpack.c.bf16 %v11834_v25, %v11833_v18  ;;  %v11837_v14 = vld [vmem:[#allocation2 + $0xc2] sm:$0xff]  ;;  %v11838_v59 = vld [vmem:[#allocation2 + $0xca] sm:$0xff] }
 0x809   : > { %v18262_v12 = vpop.f32.mrf.mxu1 }
 0x80a   : > { %v18300_v54 = vpop.f32.mrf.mxu0  ;;  %v23120_v3 = vadd.f32 %v10414_v38, %v10228_v43  ;;  %v10231_v35 = vadd.f32 %v18262_v12, %v23005_v34 }
 0x80b   : > { %v10104_v52 = vpop.f32.mrf.mxu1 }
 0x80c   : > { %v23123_v40 = vpop.f32.mrf.mxu0  ;;  %v23125_v61 = vadd.f32 %v18300_v54, %v10231_v35  ;;  %v23128_v33 = vadd.f32 %v10104_v52, %v23007_v30 }
 0x80d   : > { %v18265_v31 = vpop.f32.mrf.mxu1  ;;  %18492 = vmatmul.mubr.msk.bf16.gmra.mxu1 %vm9507_vm11, %v11860_v56 }
 0x80e   : > { %v18303_v4 = vpop.f32.mrf.mxu0  ;;  %v10234_v15 = vadd.f32 %v18265_v31, %v23013_v51  ;;  %18495 = vmatprep.mubr.msk.bf16.mxu1 %vm9507_vm11, %v11861_v21  ;;  %v11839_v21 = vld [vmem:[#allocation2 + $0xda] sm:$0xff]  ;;  %v11840_v31 = vld [vmem:[#allocation2 + $0xe2] sm:$0xff] }
 0x80f   : > { %v10117_v48 = vpop.f32.mrf.mxu1  ;;  %v11864_v36 = vpack.c.bf16 %v11840_v31, %v11839_v21 }
 0x810   : > { %v10430_v34 = vpop.f32.mrf.mxu0  ;;  %v23133_v11 = vadd.f32 %v18303_v4, %v10234_v15  ;;  %v10232_v17 = vadd.f32 %v10117_v48, %v23019_v23  ;;  %v11863_v23 = vpack.c.bf16 %v11838_v59, %v11837_v14  ;;  %v11841_v15 = vld [vmem:[#allocation2 + $0xf2] sm:$0xff]  ;;  %v11842_v48 = vld [vmem:[#allocation2 + $0xfa] sm:$0xff] }
 0x811   : > { %v18266_v50 = vpop.f32.mrf.mxu1 }
 0x812   : > { %v18304_v30 = vpop.f32.mrf.mxu0  ;;  %v23136_v9 = vadd.f32 %v10430_v34, %v10232_v17  ;;  %v10235_v38 = vadd.f32 %v18266_v50, %v23021_v8 }
 0x813   : > { %v10120_v43 = vpop.f32.mrf.mxu1 }
 0x814   : > { %v23139_v51 = vpop.f32.mrf.mxu0  ;;  %v23141_v26 = vadd.f32 %v18304_v30, %v10235_v38  ;;  %v23144_v12 = vadd.f32 %v10120_v43, %v23023_v57 }
 0x815   : > { %v18269_v54 = vpop.f32.mrf.mxu1  ;;  %18496 = vmatmul.mubr.msk.bf16.gmra.mxu1 %vm9507_vm11, %v11862_v63 }
 0x816   : > { %v18307_v18 = vpop.f32.mrf.mxu0  ;;  %v10238_v25 = vadd.f32 %v18269_v54, %v23029_v5  ;;  %18499 = vmatprep.mubr.msk.bf16.mxu1 %vm9507_vm11, %v11863_v23  ;;  %v11843_v54 = vld [vmem:[#allocation2 + $0x10a] sm:$0xff] }
 0x817   : > { %v10133_v35 = vpop.f32.mrf.mxu1 }
 0x818   : > { %v10446_v8 = vpop.f32.mrf.mxu0  ;;  %v23149_v52 = vadd.f32 %v18307_v18, %v10238_v25  ;;  %v10236_v56 = vadd.f32 %v10133_v35, %v23035_v32  ;;  %v11865_v32 = vpack.c.bf16 %v11842_v48, %v11841_v15  ;;  %v11844_v18 = vld [vmem:[#allocation2 + $0x112] sm:$0xff]  ;;  %v11845_v35 = vld [vmem:[#allocation2 + $0x122] sm:$0xff] }
 0x819   : > { %v18270_v4 = vpop.f32.mrf.mxu1 }
 0x81a   : > { %v18308_v57 = vpop.f32.mrf.mxu0  ;;  %v23152_v34 = vadd.f32 %v10446_v8, %v10236_v56  ;;  %v10239_v17 = vadd.f32 %v18270_v4, %v23037_v16  ;;  %v11846_v8 = vld [vmem:[#allocation2 + $0x12a] sm:$0xff]  ;;  %v11866_v4 = vpack.c.bf16 %v11844_v18, %v11843_v54 }
 0x81b   : > { %v10136_v22 = vpop.f32.mrf.mxu1 }
 0x81c   : > { %v23155_v5 = vpop.f32.mrf.mxu0  ;;  %v23157_v50 = vadd.f32 %v18308_v57, %v10239_v17  ;;  %v23160_v30 = vadd.f32 %v10136_v22, %v23039_v0 }
 0x81d   : > { %v18273_v14 = vpop.f32.mrf.mxu1  ;;  %18500 = vmatmul.mubr.msk.bf16.gmra.mxu1 %vm9507_vm11, %v11864_v36 }
 0x81e   : > { %v18311_v59 = vpop.f32.mrf.mxu0  ;;  %v10242_v38 = vadd.f32 %v18273_v14, %v23044_v7  ;;  %18503 = vmatprep.mubr.msk.bf16.mxu1 %vm9507_vm11, %v11865_v32 }
 0x81f   : > { %v10149_v43 = vpop.f32.mrf.mxu1 }
 0x820   : > { %v10462_v16 = vpop.f32.mrf.mxu0  ;;  %v23165_v63 = vadd.f32 %v18311_v59, %v10242_v38  ;;  %v10240_v23 = vadd.f32 %v10149_v43, %v23049_v49  ;;  %v11867_v49 = vpack.c.bf16 %v11846_v8, %v11845_v35  ;;  %v11847_v59 = vld [vmem:[#allocation2 + $0x13a] sm:$0xff]  ;;  %v11848_v38 = vld [vmem:[#allocation2 + $0x142] sm:$0xff] }
 0x821   : > { %v18274_v25 = vpop.f32.mrf.mxu1 }
 0x822   : > { %v18312_v0 = vpop.f32.mrf.mxu0  ;;  %v23168_v56 = vadd.f32 %v10462_v16, %v10240_v23  ;;  %v10243_v21 = vadd.f32 %v18274_v25, %v23051_v55  ;;  %v11849_v16 = vld [vmem:[#allocation2 + $0x152] sm:$0xff]  ;;  %v11850_v23 = vld [vmem:[#allocation2 + $0x15a] sm:$0xff] }
 0x823   : > { %v10152_v31 = vpop.f32.mrf.mxu1  ;;  %v11869_v8 = vpack.c.bf16 %v11850_v23, %v11849_v16 }
 0x824   : > { %v23171_v7 = vpop.f32.mrf.mxu0  ;;  %v23173_v57 = vadd.f32 %v18312_v0, %v10243_v21  ;;  %v23176_v15 = vadd.f32 %v10152_v31, %v23053_v62  ;;  %v11868_v0 = vpack.c.bf16 %v11848_v38, %v11847_v59 }
 0x825   : > { %v18277_v48 = vpop.f32.mrf.mxu1  ;;  %18504 = vmatmul.mubr.msk.bf16.gmra.mxu1 %vm9507_vm11, %v11866_v4 }
 0x826   : > { %v18315_v17 = vpop.f32.mrf.mxu0  ;;  %v10246_v22 = vadd.f32 %v18277_v48, %v23057_v39  ;;  %18507 = vmatprep.mubr.msk.bf16.mxu1 %vm9507_vm11, %v11867_v49 }
 0x827   : > { %v10165_v36 = vpop.f32.mrf.mxu1 }
 0x828   : > { %v10478_v55 = vpop.f32.mrf.mxu0  ;;  %v23181_v32 = vadd.f32 %v18315_v17, %v10246_v22  ;;  %v10244_v14 = vadd.f32 %v10165_v36, %v23062_v1  ;;  %v11851_v17 = vld [vmem:[#allocation2 + $0x16a] sm:$0xff]  ;;  %v11852_v22 = vld [vmem:[#allocation2 + $0x172] sm:$0xff] }
 0x829   : > { %v18278_v43 = vpop.f32.mrf.mxu1 }
 0x82a   : > { %v18316_v62 = vpop.f32.mrf.mxu0  ;;  %v23184_v54 = vadd.f32 %v10478_v55, %v10244_v14  ;;  %v10247_v18 = vadd.f32 %v18278_v43, %v23064_v6 }
 0x82b   : > { %v23187_v25 = vpop.f32.mrf.mxu1 }
 0x82c   : > { %v23189_v39 = vpop.f32.mrf.mxu0  ;;  %v23191_v35 = vadd.f32 %v18316_v62, %v10247_v18  ;;  %v11855_v18 = vld [vmem:[#allocation2 + $0x19a] sm:$0xff] }
 0x82d   : > { %v18281_v21 = vpop.f32.mrf.mxu1  ;;  %18508 = vmatmul.mubr.msk.bf16.gmra.mxu1 %vm9507_vm11, %v11868_v0  ;;  %v11856_v0 = vld [vmem:[#allocation2 + $0x1a2] sm:$0xff] }
 0x82e   : > { %v18319_v1 = vpop.f32.mrf.mxu0  ;;  %v10250_v31 = vadd.f32 %v18281_v21, %v23072_v42  ;;  %18511 = vmatprep.mubr.msk.bf16.mxu1 %vm9507_vm11, %v11869_v8  ;;  %v11870_v42 = vpack.c.bf16 %v11852_v22, %v11851_v17 }
 0x82f   : > { %v10181_v4 = vpop.f32.mrf.mxu1 }
 0x830   : > { %v10494_v49 = vpop.f32.mrf.mxu0  ;;  %v23196_v48 = vadd.f32 %v18319_v1, %v10250_v31  ;;  %v10248_v6 = vadd.f32 %v10181_v4, %v23077_v58 }
 0x831   : > { %v18282_v36 = vpop.f32.mrf.mxu1 }
 0x832   : > { %v18320_v55 = vpop.f32.mrf.mxu0  ;;  %v23199_v14 = vadd.f32 %v10494_v49, %v10248_v6  ;;  %v10251_v59 = vadd.f32 %v18282_v36, %v23079_v28  ;;  %v11872_v49 = vpack.c.bf16 %v11856_v0, %v11855_v18 }
 0x833   : > { %v23202_v38 = vpop.f32.mrf.mxu1 }
 0x834   : > { %v23204_v43 = vpop.f32.mrf.mxu0  ;;  %v23206_v62 = vadd.f32 %v18320_v55, %v10251_v59 }
 0x835   : > { %v18285_v16 = vpop.f32.mrf.mxu1  ;;  %18512 = vmatmul.mubr.msk.bf16.gmra.mxu1 %vm9507_vm11, %v11870_v42 }
 0x836   : > { %v18323_v23 = vpop.f32.mrf.mxu0  ;;  %v10254_v58 = vadd.f32 %v18285_v16, %v23087_v46  ;;  %18515 = vmatprep.mubr.msk.bf16.mxu1 %vm9507_vm11, %v22976_v20 }
 0x837   : > { %v10197_v8 = vpop.f32.mrf.mxu1 }
 0x838   : > { %v10510_v28 = vpop.f32.mrf.mxu0  ;;  %v23212_v21 = vadd.f32 %v18323_v23, %v10254_v58  ;;  %v10252_v1 = vadd.f32 %v10197_v8, %v23093_v13 }
 0x839   : > { %v18286_v31 = vpop.f32.mrf.mxu1 }
 0x83a   : > { %v18324_v4 = vpop.f32.mrf.mxu0  ;;  %v23215_v6 = vadd.f32 %v10510_v28, %v10252_v1  ;;  %v10255_v17 = vadd.f32 %v18286_v31, %v23095_v41 }
 0x83b   : > { %v23218_v22 = vpop.f32.mrf.mxu1 }
 0x83c   : > { %25233 = vst [vmem:[#allocation62_spill] sm:$0xff] %v23218_v22  ;;  %v23220_v46 = vpop.f32.mrf.mxu0  ;;  %v23222_v20 = vadd.f32 %v18324_v4, %v10255_v17 }
 0x83d   : > { %25234 = vst [vmem:[#allocation43_spill] sm:$0xff] %v23220_v46  ;;  %v18289_v36 = vpop.f32.mrf.mxu1  ;;  %18516 = vmatmul.mubr.msk.bf16.gmra.mxu1 %vm9507_vm11, %v11872_v49 }
 0x83e   : > { %v18327_v55 = vpop.f32.mrf.mxu0  ;;  %v10258_v59 = vadd.f32 %v18289_v36, %v23103_v45 }
 0x83f   : > { %v10213_v13 = vpop.f32.mrf.mxu1 }
 0x840   : > { %v10526_v42 = vpop.f32.mrf.mxu0  ;;  %v23226_v16 = vadd.f32 %v18327_v55, %v10258_v59  ;;  %v10256_v23 = vadd.f32 %v10213_v13, %v23106_v60 }
 0x841   : > { %v18290_v58 = vpop.f32.mrf.mxu1 }
 0x842   : > { %v18328_v41 = vpop.f32.mrf.mxu0  ;;  %v23229_v18 = vadd.f32 %v10526_v42, %v10256_v23  ;;  %v10259_v0 = vadd.f32 %v18290_v58, %v23108_v27 }
 0x843   : > { %v23232_v8 = vpop.f32.mrf.mxu1 }
 0x844   : > { %25235 = vst [vmem:[#allocation47_spill] sm:$0xff] %v23232_v8  ;;  %v23234_v28 = vpop.f32.mrf.mxu0  ;;  %v23236_v1 = vadd.f32 %v18328_v41, %v10259_v0 }
 0x845   : > { %25236 = vst [vmem:[#allocation38_spill] sm:$0xff] %v23234_v28  ;;  %v18337_v31 = vpop.f32.mrf.mxu1 }
 0x846   : > { %v18375_v45 = vpop.f32.mrf.mxu0  ;;  %v10856_v4 = vadd.f32 %v18337_v31, %v23117_v24 }
 0x847   : > { %v10727_v49 = vpop.f32.mrf.mxu1 }
 0x848   : > { %v23239_v17 = vpop.f32.mrf.mxu0  ;;  %v23241_v60 = vadd.f32 %v18375_v45, %v10856_v4  ;;  %v23244_v36 = vadd.f32 %v10727_v49, %v23120_v3 }
 0x849   : > { %v18338_v55 = vpop.f32.mrf.mxu1 }
 0x84a   : > { %v18376_v27 = vpop.f32.mrf.mxu0  ;;  %v10857_v59 = vadd.f32 %v18338_v55, %v23125_v61 }
 0x84b   : > { %v23247_v13 = vpop.f32.mrf.mxu1 }
 0x84c   : > { %v23249_v42 = vpop.f32.mrf.mxu0  ;;  %v23251_v23 = vadd.f32 %v18376_v27, %v10857_v59 }
 0x84d   : > { %v18341_v58 = vpop.f32.mrf.mxu1 }
 0x84e   : > { %v18379_v24 = vpop.f32.mrf.mxu0  ;;  %v10860_v41 = vadd.f32 %v18341_v58, %v23133_v11 }
 0x84f   : > { %v10743_v0 = vpop.f32.mrf.mxu1 }
 0x850   : > { %v23254_v31 = vpop.f32.mrf.mxu0  ;;  %v23256_v45 = vadd.f32 %v18379_v24, %v10860_v41  ;;  %v23259_v3 = vadd.f32 %v10743_v0, %v23136_v9 }
 0x851   : > { %v18342_v4 = vpop.f32.mrf.mxu1 }
 0x852   : > { %v18380_v61 = vpop.f32.mrf.mxu0  ;;  %v10861_v49 = vadd.f32 %v18342_v4, %v23141_v26 }
 0x853   : > { %v23262_v55 = vpop.f32.mrf.mxu1 }
 0x854   : > { %v23264_v27 = vpop.f32.mrf.mxu0  ;;  %v23266_v59 = vadd.f32 %v18380_v61, %v10861_v49 }
 0x855   : > { %v18345_v28 = vpop.f32.mrf.mxu1 }
 0x856   : > { %v18383_v11 = vpop.f32.mrf.mxu0  ;;  %v10864_v58 = vadd.f32 %v18345_v28, %v23149_v52 }
 0x857   : > { %v10759_v8 = vpop.f32.mrf.mxu1 }
 0x858   : > { %v23269_v24 = vpop.f32.mrf.mxu0  ;;  %v23271_v41 = vadd.f32 %v18383_v11, %v10864_v58  ;;  %v23274_v9 = vadd.f32 %v10759_v8, %v23152_v34 }
 0x859   : > { %25237 = vst [vmem:[#allocation41_spill] sm:$0xff] %v23269_v24  ;;  %v18346_v0 = vpop.f32.mrf.mxu1 }
 0x85a   : > { %v18384_v26 = vpop.f32.mrf.mxu0  ;;  %v10865_v4 = vadd.f32 %v18346_v0, %v23157_v50 }
 0x85b   : > { %v23277_v46 = vpop.f32.mrf.mxu1 }
 0x85c   : > { %25238 = vst [vmem:[#allocation45_spill] sm:$0xff] %v23277_v46  ;;  %v23279_v61 = vpop.f32.mrf.mxu0  ;;  %v23281_v49 = vadd.f32 %v18384_v26, %v10865_v4 }
 0x85d   : > { %25239 = vst [vmem:[#allocation53_spill] sm:$0xff] %v23279_v61  ;;  %v18349_v22 = vpop.f32.mrf.mxu1 }
 0x85e   : > { %v18387_v52 = vpop.f32.mrf.mxu0  ;;  %v10868_v28 = vadd.f32 %v18349_v22, %v23165_v63 }
 0x85f   : > { %v10775_v24 = vpop.f32.mrf.mxu1 }
 0x860   : > { %v23284_v11 = vpop.f32.mrf.mxu0  ;;  %v23286_v58 = vadd.f32 %v18387_v52, %v10868_v28  ;;  %v23289_v34 = vadd.f32 %v10775_v24, %v23168_v56 }
 0x861   : > { %25240 = vst [vmem:[#allocation76_spill] sm:$0xff] %v23284_v11  ;;  %v18350_v8 = vpop.f32.mrf.mxu1 }
 0x862   : > { %25241 = vst [vmem:[#allocation50_spill] sm:$0xff] %v23289_v34  ;;  %v18388_v50 = vpop.f32.mrf.mxu0  ;;  %v10869_v0 = vadd.f32 %v18350_v8, %v23173_v57 }
 0x863   : > { %v23292_v46 = vpop.f32.mrf.mxu1 }
 0x864   : > { %25242 = vst [vmem:[#allocation49_spill] sm:$0xff] %v23292_v46  ;;  %v23294_v26 = vpop.f32.mrf.mxu0  ;;  %v23296_v4 = vadd.f32 %v18388_v50, %v10869_v0 }
 0x865   : > { %25243 = vst [vmem:[#allocation60_spill] sm:$0xff] %v23294_v26  ;;  %v18353_v61 = vpop.f32.mrf.mxu1 }
 0x866   : > { %v18391_v63 = vpop.f32.mrf.mxu0  ;;  %v10872_v22 = vadd.f32 %v18353_v61, %v23181_v32 }
 0x867   : > { %v10791_v11 = vpop.f32.mrf.mxu1 }
 0x868   : > { %v23299_v52 = vpop.f32.mrf.mxu0  ;;  %v23301_v28 = vadd.f32 %v18391_v63, %v10872_v22  ;;  %v23304_v56 = vadd.f32 %v10791_v11, %v23184_v54 }
 0x869   : > { %25244 = vst [vmem:[#allocation79_spill] sm:$0xff] %v23299_v52  ;;  %v18354_v24 = vpop.f32.mrf.mxu1 }
 0x86a   : > { %25245 = vst [vmem:[#allocation67_spill] sm:$0xff] %v23304_v56  ;;  %v18392_v57 = vpop.f32.mrf.mxu0  ;;  %v10873_v8 = vadd.f32 %v18354_v24, %v23191_v35 }
 0x86b   : > { %v23307_v46 = vpop.f32.mrf.mxu1 }
 0x86c   : > { %25246 = vst [vmem:[#allocation63_spill] sm:$0xff] %v23307_v46  ;;  %v23309_v50 = vpop.f32.mrf.mxu0  ;;  %v23311_v0 = vadd.f32 %v18392_v57, %v10873_v8 }
 0x86d   : > { %25247 = vst [vmem:[#allocation58_spill] sm:$0xff] %v23309_v50  ;;  %v18357_v26 = vpop.f32.mrf.mxu1 }
 0x86e   : > { %v18395_v32 = vpop.f32.mrf.mxu0  ;;  %v10876_v61 = vadd.f32 %v18357_v26, %v23196_v48 }
 0x86f   : > { %v10807_v52 = vpop.f32.mrf.mxu1 }
 0x870   : > { %v23314_v63 = vpop.f32.mrf.mxu0  ;;  %v23316_v22 = vadd.f32 %v18395_v32, %v10876_v61  ;;  %v23319_v54 = vadd.f32 %v10807_v52, %v23199_v14 }
 0x871   : > { %25248 = vst [vmem:[#allocation72_spill] sm:$0xff] %v23314_v63  ;;  %v18358_v11 = vpop.f32.mrf.mxu1 }
 0x872   : > { %25249 = vst [vmem:[#allocation51_spill] sm:$0xff] %v23319_v54  ;;  %v18396_v35 = vpop.f32.mrf.mxu0  ;;  %v10877_v24 = vadd.f32 %v18358_v11, %v23206_v62 }
 0x873   : > { %v23322_v46 = vpop.f32.mrf.mxu1 }
 0x874   : > { %25250 = vst [vmem:[#allocation81_spill] sm:$0xff] %v23322_v46  ;;  %v23324_v57 = vpop.f32.mrf.mxu0  ;;  %v23326_v8 = vadd.f32 %v18396_v35, %v10877_v24 }
 0x875   : > { %25251 = vst [vmem:[#allocation61_spill] sm:$0xff] %v23324_v57  ;;  %v18361_v50 = vpop.f32.mrf.mxu1 }
 0x876   : > { %v18399_v48 = vpop.f32.mrf.mxu0  ;;  %v10880_v26 = vadd.f32 %v18361_v50, %v23212_v21 }
 0x877   : > { %v10823_v63 = vpop.f32.mrf.mxu1 }
 0x878   : > { %v23329_v32 = vpop.f32.mrf.mxu0  ;;  %v23331_v61 = vadd.f32 %v18399_v48, %v10880_v26  ;;  %v23334_v14 = vadd.f32 %v10823_v63, %v23215_v6 }
 0x879   : > { %25252 = vst [vmem:[#allocation48_spill] sm:$0xff] %v23329_v32  ;;  %v18362_v52 = vpop.f32.mrf.mxu1 }
 0x87a   : > { %25253 = vst [vmem:[#allocation78_spill] sm:$0xff] %v23334_v14  ;;  %v18400_v62 = vpop.f32.mrf.mxu0  ;;  %v10881_v11 = vadd.f32 %v18362_v52, %v23222_v20 }
 0x87b   : > { %v23337_v46 = vpop.f32.mrf.mxu1 }
 0x87c   : > { %25254 = vst [vmem:[#allocation68_spill] sm:$0xff] %v23337_v46  ;;  %v23339_v35 = vpop.f32.mrf.mxu0  ;;  %v23341_v24 = vadd.f32 %v18400_v62, %v10881_v11 }
 0x87d   : > { %25255 = vst [vmem:[#allocation39_spill] sm:$0xff] %v23339_v35  ;;  %v18365_v57 = vpop.f32.mrf.mxu1 }
 0x87e   : > { %v18403_v21 = vpop.f32.mrf.mxu0  ;;  %v10884_v50 = vadd.f32 %v18365_v57, %v23226_v16 }
 0x87f   : > { %v10839_v32 = vpop.f32.mrf.mxu1 }
 0x880   : > { %v23344_v48 = vpop.f32.mrf.mxu0  ;;  %v23346_v26 = vadd.f32 %v18403_v21, %v10884_v50  ;;  %v23349_v6 = vadd.f32 %v10839_v32, %v23229_v18 }
 0x881   : > { %25256 = vst [vmem:[#allocation73_spill] sm:$0xff] %v23344_v48  ;;  %v18366_v63 = vpop.f32.mrf.mxu1 }
 0x882   : > { %25257 = vst [vmem:[#allocation64_spill] sm:$0xff] %v23349_v6  ;;  %v18404_v20 = vpop.f32.mrf.mxu0  ;;  %v10885_v52 = vadd.f32 %v18366_v63, %v23236_v1  ;;  %v18999_v63 = vld [vmem:[%s24896_s9 + $0x28] sm:$0xff]  }
 0x883   : > { %v23352_v46 = vpop.f32.mrf.mxu1  ;;  %18519 = vmatprep.subr.bf16.mxu0 %v18999_v63 }
 0x884   : > { %25258 = vst [vmem:[#allocation42_spill] sm:$0xff] %v23352_v46  ;;  %v23354_v62 = vpop.f32.mrf.mxu0  ;;  %v23356_v11 = vadd.f32 %v18404_v20, %v10885_v52  ;;  %18520 = vmatpush3.bf16.msra.mxu0 %v18999_v63 }
 0x885   : > { %25259 = vst [vmem:[#allocation55_spill] sm:$0xff] %v23354_v62  ;;  %v18413_v35 = vpop.f32.mrf.mxu1 }
 0x886   : > { %v23358_v16 = vpop.f32.mrf.mxu0  ;;  %v23361_v57 = vadd.f32 %v18413_v35, %v23241_v60 }
 0x887   : > { %v23363_v21 = vpop.f32.mrf.mxu1 }
 0x888   : > { %v23365_v18 = vpop.f32.mrf.mxu0 }
 0x889   : > { %v18414_v32 = vpop.f32.mrf.mxu1 }
 0x88a   : > { %v23368_v50 = vadd.f32 %v18414_v32, %v23251_v23  ;;  %v23375_v20 = vpop.f32.mrf.mxu0  ;;  %v19000_v23 = vld [vmem:[%s24896_s9 + $0x20] sm:$0xff]   ;;  %v19001_v32 = vld [vmem:[%s24896_s9 + $0x18] sm:$0xff]  }
 0x88b   : > { %v23370_v1 = vpop.f32.mrf.mxu1  ;;  %18521 = vmatprep.subr.bf16.mxu0 %v19000_v23 }
 0x88c   : > { %v23388_v62 = vpop.f32.mrf.mxu0  ;;  %18522 = vmatpush3.bf16.msra.mxu0 %v19000_v23 }
 0x88d   : > { %v18417_v52 = vpop.f32.mrf.mxu1  ;;  %18523 = vmatprep.subr.bf16.mxu0 %v19001_v32 }
 0x88e   : > { %v23378_v60 = vadd.f32 %v18417_v52, %v23256_v45  ;;  %v23395_v63 = vpop.f32.mrf.mxu0 }
 0x88f   : > { %v23380_v35 = vpop.f32.mrf.mxu1 }
 0x890   : > { %18524 = vmatpush3.bf16.msra.mxu0 %v19001_v32  ;;  %v23402_v54 = vpop.f32.mrf.mxu0 }
 0x891   : > { %v18418_v46 = vpop.f32.mrf.mxu1 }
 0x892   : > { %v23391_v48 = vadd.f32 %v18418_v46, %v23266_v59  ;;  %v23409_v59 = vpop.f32.mrf.mxu0 }
 0x893   : > { %v23393_v45 = vpop.f32.mrf.mxu1 }
 0x894   : > { %25260 = vst [vmem:[#allocation54_spill] sm:$0xff] %v23391_v48  ;;  %25261 = vst [vmem:[#allocation74_spill] sm:$0xff] %v23393_v45 }
 0x895   : > { %v18421_v52 = vpop.f32.mrf.mxu1 }
 0x896   : > { %v23398_v6 = vadd.f32 %v18421_v52, %v23271_v41  ;;  %v23416_v41 = vpop.f32.mrf.mxu0 }
 0x897   : > { %v23400_v14 = vpop.f32.mrf.mxu1 }
 0x898   : > { %25262 = vst [vmem:[#allocation80_spill] sm:$0xff] %v23398_v6 }
 0x899   : > { %v18422_v56 = vpop.f32.mrf.mxu1 }
 0x89a   : > { %v23405_v34 = vadd.f32 %v18422_v56, %v23281_v49  ;;  %v23423_v49 = vpop.f32.mrf.mxu0 }
 0x89b   : > { %v23407_v46 = vpop.f32.mrf.mxu1 }
 0x89c   : > { %25263 = vst [vmem:[#allocation70_spill] sm:$0xff] %v23405_v34  ;;  %25264 = vst [vmem:[#allocation59_spill] sm:$0xff] %v23407_v46 }
 0x89d   : > { %v18425_v23 = vpop.f32.mrf.mxu1 }
 0x89e   : > { %v23412_v48 = vadd.f32 %v18425_v23, %v23286_v58  ;;  %v23430_v58 = vpop.f32.mrf.mxu0 }
 0x89f   : > { %v23414_v45 = vpop.f32.mrf.mxu1 }
 0x8a0   : > { %25265 = vst [vmem:[#allocation57_spill] sm:$0xff] %v23412_v48  ;;  %25266 = vst [vmem:[#allocation44_spill] sm:$0xff] %v23414_v45 }
 0x8a1   : > { %v18426_v32 = vpop.f32.mrf.mxu1 }
 0x8a2   : > { %v23419_v52 = vadd.f32 %v18426_v32, %v23296_v4  ;;  %v23437_v4 = vpop.f32.mrf.mxu0 }
 0x8a3   : > { %v23421_v6 = vpop.f32.mrf.mxu1 }
 0x8a4   : > { %25267 = vst [vmem:[#allocation69_spill] sm:$0xff] %v23419_v52  ;;  %25268 = vst [vmem:[#allocation84_spill] sm:$0xff] %v23421_v6 }
 0x8a5   : > { %v18429_v56 = vpop.f32.mrf.mxu1 }
 0x8a6   : > { %v23426_v34 = vadd.f32 %v18429_v56, %v23301_v28  ;;  %v23444_v28 = vpop.f32.mrf.mxu0 }
 0x8a7   : > { %v23428_v46 = vpop.f32.mrf.mxu1 }
 0x8a8   : > { %25269 = vst [vmem:[#allocation71_spill] sm:$0xff] %v23426_v34  ;;  %25270 = vst [vmem:[#allocation75_spill] sm:$0xff] %v23428_v46 }
 0x8a9   : > { %v18430_v23 = vpop.f32.mrf.mxu1 }
 0x8aa   : > { %v23433_v48 = vadd.f32 %v18430_v23, %v23311_v0  ;;  %v23451_v0 = vpop.f32.mrf.mxu0 }
 0x8ab   : > { %v23435_v45 = vpop.f32.mrf.mxu1 }
 0x8ac   : > { %25271 = vst [vmem:[#allocation82_spill] sm:$0xff] %v23433_v48  ;;  %25272 = vst [vmem:[#allocation52_spill] sm:$0xff] %v23435_v45 }
 0x8ad   : > { %v18433_v32 = vpop.f32.mrf.mxu1 }
 0x8ae   : > { %v23440_v52 = vadd.f32 %v18433_v32, %v23316_v22  ;;  %v23458_v22 = vpop.f32.mrf.mxu0 }
 0x8af   : > { %v23442_v6 = vpop.f32.mrf.mxu1 }
 0x8b0   : > { %25273 = vst [vmem:[#allocation65_spill] sm:$0xff] %v23440_v52  ;;  %25274 = vst [vmem:[#allocation66_spill] sm:$0xff] %v23442_v6 }
 0x8b1   : > { %v18434_v56 = vpop.f32.mrf.mxu1 }
 0x8b2   : > { %v23447_v34 = vadd.f32 %v18434_v56, %v23326_v8  ;;  %v23465_v8 = vpop.f32.mrf.mxu0 }
 0x8b3   : > { %v23449_v46 = vpop.f32.mrf.mxu1 }
 0x8b4   : > { %25275 = vst [vmem:[#allocation40_spill] sm:$0xff] %v23447_v34  ;;  %25276 = vst [vmem:[#allocation46_spill] sm:$0xff] %v23449_v46  ;;  %v10542_v34 = vadd.f32 %v23123_v40, %v23128_v33 }
 0x8b5   : > { %v18437_v23 = vpop.f32.mrf.mxu1 }
 0x8b6   : > { %v23454_v48 = vadd.f32 %v18437_v23, %v23331_v61  ;;  %v11167_v23 = vadd.f32 %v23239_v17, %v23244_v36  ;;  %v11795_v17 = vadd.f32 %v23358_v16, %v23361_v57 }
 0x8b7   : > { %v23456_v45 = vpop.f32.mrf.mxu1 }
 0x8b8   : > { %25277 = vst [vmem:[#allocation56_spill] sm:$0xff] %v23454_v48  ;;  %v10855_v48 = vadd.f32 %v23247_v13, %v10542_v34  ;;  %v9888_v13 = vadd.f32 %v23068_v44, %v23066_v10  ;;  %v9904_v34 = vadd.f32 %v23083_v37, %v23081_v2  ;;  %v23507_v10 = vld [vmem:[%s24895_s8] ss:$0 sm:$0xff]  ;;  %v11171_v37 = vadd.f32 %v23254_v31, %v23259_v3 }
 0x8b9   : > { %v18438_v32 = vpop.f32.mrf.mxu1 }
 0x8ba   : > { %v23461_v52 = vadd.f32 %v18438_v32, %v23341_v24  ;;  %v23477_v24 = vpop.f32.mrf.mxu0  ;;  %v10245_v44 = vadd.f32 %v23187_v25, %v9888_v13  ;;  %v10249_v2 = vadd.f32 %v23202_v38, %v9904_v34  ;;  %v23524_v25 = vadd.f32 %v23112_v29, %v23110_v53  ;;  %v12489_v34 = vld [vmem:[#allocation2 + $0x9] sm:$0xff] }
 0x8bb   : > { %v23463_v6 = vpop.f32.mrf.mxu1  ;;  %v10550_v38 = vadd.f32 %v23155_v5, %v23160_v30  ;;  %v11484_v31 = vadd.f32 %v23380_v35, %v11171_v37  ;;  %v25280_v35 = vld [vmem:[#allocation41_spill] sm:$0xff] }
 0x8bc   : > { %25278 = vst [vmem:[#allocation83_spill] sm:$0xff] %v23461_v52  ;;  %25279 = vst [vmem:[#allocation77_spill] sm:$0xff] %v23463_v6  ;;  %v19002_v52 = vld [vmem:[%s24896_s9 + $0x10] sm:$0xff]   ;;  %v11480_v6 = vadd.f32 %v23363_v21, %v11167_v23  ;;  %v23491_v36 = vpop.f32.mrf.mxu0  ;;  %v23540_v5 = vadd.f32 %v23189_v39, %v10245_v44  ;;  %v23543_v30 = vadd.f32 %v23204_v43, %v10249_v2 }
 0x8bd   : > { %v18441_v56 = vpop.f32.mrf.mxu1  ;;  %18557 = vmatprep.subr.bf16.mxu1 %v19002_v52  ;;  %v11797_v39 = vadd.f32 %v23402_v54, %v11484_v31  ;;  %v25281_v43 = vld [vmem:[#allocation74_spill] sm:$0xff]  ;;  %v25282_v54 = vld [vmem:[#allocation45_spill] sm:$0xff] }
 0x8be   : > { %v23470_v46 = vadd.f32 %v18441_v56, %v23346_v26  ;;  %v11168_v26 = vadd.f32 %v23249_v42, %v10855_v48  ;;  %18558 = vmatpush3.bf16.msra.mxu1 %v19002_v52  ;;  %v19003_v42 = vld [vmem:[%s24896_s9 + $0x8] sm:$0xff]   ;;  %v11793_v48 = vadd.f32 %v23365_v18, %v11480_v6  ;;  %v23516_v6 = vadd.f32 %v23099_v19, %v23097_v47  ;;  %v19004_v19 = vld [vmem:[%s24896_s9] sm:$0xff]  }
 0x8bf   : > { %v23472_v61 = vpop.f32.mrf.mxu1  ;;  %18559 = vmatprep.subr.bf16.mxu1 %v19003_v42  ;;  %v11796_v18 = vadd.f32 %v23375_v20, %v23368_v50  ;;  %v11175_v56 = vadd.f32 %v25280_v35, %v23274_v9  ;;  %v12488_v9 = vld [vmem:[#allocation2 + $0x1] sm:$0xff] }
 0x8c0   : > { %v11481_v16 = vadd.f32 %v23370_v1, %v11168_v26  ;;  %v23520_v1 = vpop.f32.mrf.mxu0  ;;  %v12520_v37 = vpack.c.bf16 %v12489_v34, %v12488_v9 }
 0x8c1   : > { %v18442_v32 = vpop.f32.mrf.mxu1 }
 0x8c2   : > { %v23484_v40 = vadd.f32 %v18442_v32, %v23356_v11  ;;  %v10546_v11 = vadd.f32 %v23139_v51, %v23144_v12  ;;  %18560 = vmatpush3.bf16.msra.mxu1 %v19003_v42  ;;  %v11794_v50 = vadd.f32 %v23388_v62, %v11481_v16  ;;  %v12435_v42 = vld [vmem:[#allocation2 + $0x8] sm:$0xff]  ;;  %v10863_v16 = vadd.f32 %v25282_v54, %v10550_v38 }
 0x8c3   : > { %v23486_v33 = vpop.f32.mrf.mxu1  ;;  %18561 = vmatprep.subr.bf16.mxu1 %v19004_v19  ;;  %18525 = vmatprep.mubr.msk.bf16.mxu0 %vm386_vm0, %v12520_v37  ;;  %v25290_v54 = vld [vmem:[#allocation49_spill] sm:$0xff] }
 0x8c4   : > { %v10859_v51 = vadd.f32 %v23262_v55, %v10546_v11  ;;  %v23535_v55 = vadd.f32 %v23171_v7, %v23176_v15  ;;  %v11799_v7 = vadd.f32 %v23395_v63, %v23378_v60  ;;  %v23550_v15 = vpop.f32.mrf.mxu0  ;;  %v12434_v11 = vld [vmem:[#allocation2] sm:$0xff] }
 0x8c5   : > { %v18489_v21 = vpop.f32.mrf.mxu1 }
 0x8c6   : > { %v12108_v57 = vadd.f32 %v18489_v21, %v11795_v17  ;;  %v11172_v20 = vadd.f32 %v23264_v27, %v10859_v51  ;;  %18562 = vmatpush3.bf16.msra.mxu1 %v19004_v19  ;;  %v12466_v51 = vpack.c.bf16 %v12435_v42, %v12434_v11 }
 0x8c7   : > { %v11979_v12 = vpop.f32.mrf.mxu1 }
 0x8c8   : > { %v12106_v52 = vadd.f32 %v11979_v12, %v11793_v48  ;;  %v12147_v3 = vadd.f32 %v23507_v10, %v12108_v57  ;;  %v11485_v26 = vadd.f32 %v25281_v43, %v11172_v20  ;;  %v23559_v48 = vld [vmem:[%s24896_s9 + $0x40] sm:$0xff]   ;;  %v25283_v57 = vld [vmem:[#allocation54_spill] sm:$0xff]  ;;  %v11488_v12 = vadd.f32 %v23400_v14, %v11175_v56  ;;  %18563 = vmatprep.mubr.msk.bf16.mxu1 %vm386_vm0, %v12466_v51  ;;  %v25284_v20 = vld [vmem:[#allocation53_spill] sm:$0xff] }
 0x8c9   : > { %v18490_v47 = vpop.f32.mrf.mxu1  ;;  %v11800_v44 = vadd.f32 %v23409_v59, %v25283_v57  ;;  %18595 = vmatprep.subr.bf16.mxu0 %v23559_v48  ;;  %v11176_v35 = vadd.f32 %v25284_v20, %v10863_v16  ;;  %v25285_v56 = vld [vmem:[#allocation50_spill] sm:$0xff]  ;;  %v10867_v16 = vadd.f32 %v25290_v54, %v23535_v55  ;;  %v25295_v20 = vld [vmem:[#allocation79_spill] sm:$0xff] }
 0x8ca   : > { %v12145_v53 = vadd.f32 %v23507_v10, %v12106_v52  ;;  %v12109_v29 = vadd.f32 %v18490_v47, %v11796_v18  ;;  %v12211_v17 = vmul.f32 0.2, %v12147_v3  ;;  %vm12179_vm11 = vcmp.ge.f32.partialorder %v12147_v3, 0.0  ;;  %v23566_v18 = vpop.f32.mrf.mxu0  ;;  %v25291_v57 = vld [vmem:[#allocation70_spill] sm:$0xff] }
 0x8cb   : > { %v11982_v23 = vpop.f32.mrf.mxu1  ;;  %v11798_v38 = vadd.f32 %v23416_v41, %v11485_v26 }
 0x8cc   : > { %v12107_v62 = vadd.f32 %v11982_v23, %v11794_v50  ;;  %vm12177_vm2 = vcmp.ge.f32.partialorder %v12145_v53, 0.0  ;;  %v12209_v32 = vmul.f32 0.2, %v12145_v53  ;;  %v12148_v27 = vadd.f32 %v23507_v10, %v12109_v29  ;;  %v25286_v23 = vld [vmem:[#allocation76_spill] sm:$0xff] }
 0x8cd   : > { %v18493_v13 = vpop.f32.mrf.mxu1  ;;  %v12243_v50 = vsel %vm12179_vm11, %v12147_v3, %v12211_v17  ;;  %v11179_v41 = vadd.f32 %v25286_v23, %v25285_v56  ;;  %v11801_v3 = vadd.f32 %v23430_v58, %v11488_v12  ;;  %v25288_v17 = vld [vmem:[#allocation59_spill] sm:$0xff]  ;;  %v25289_v58 = vld [vmem:[#allocation62_spill] sm:$0xff]  ;;  %v25296_v56 = vld [vmem:[#allocation57_spill] sm:$0xff] }
 0x8ce   : > { %v12146_v21 = vadd.f32 %v23507_v10, %v12107_v62  ;;  %v12112_v60 = vadd.f32 %v18493_v13, %v11799_v7  ;;  %v12241_v63 = vsel %vm12177_vm2, %v12145_v53, %v12209_v32  ;;  %v12212_v47 = vmul.f32 0.2, %v12148_v27  ;;  %v25287_v7 = vld [vmem:[#allocation80_spill] sm:$0xff] }
 0x8cf   : > { %v11995_v2 = vpop.f32.mrf.mxu1  ;;  %12305 = vrot.lane.b32.xlu0 %v12241_v63, %s19092_s14  ;;  %vm12180_vm8 = vcmp.ge.f32.partialorder %v12148_v27, 0.0  ;;  %v11803_v62 = vadd.f32 %v23423_v49, %v25287_v7  ;;  %v11489_v13 = vadd.f32 %v25288_v17, %v11176_v35  ;;  %v10253_v42 = vadd.f32 %v25289_v58, %v23516_v6 }
 0x8d0   : > { %v12110_v52 = vadd.f32 %v11995_v2, %v11797_v39  ;;  %vm12178_vm7 = vcmp.ge.f32.partialorder %v12146_v21, 0.0  ;;  %v12210_v31 = vmul.f32 0.2, %v12146_v21  ;;  %v12151_v59 = vadd.f32 %v23507_v10, %v12112_v60  ;;  %v23583_v39 = vpop.f32.mrf.mxu0 }
 0x8d1   : > { %v18494_v19 = vpop.f32.mrf.mxu1  ;;  %v12244_v49 = vsel %vm12180_vm8, %v12148_v27, %v12212_v47  ;;  %v25292_v27 = vld [vmem:[#allocation44_spill] sm:$0xff]  ;;  %v11802_v6 = vadd.f32 %v23444_v28, %v11489_v13  ;;  %v11807_v23 = vadd.f32 %v23451_v0, %v25296_v56 }
 0x8d2   : > { %v12149_v14 = vadd.f32 %v23507_v10, %v12110_v52  ;;  %v12113_v53 = vadd.f32 %v18494_v19, %v11800_v44  ;;  %v12242_v29 = vsel %vm12178_vm7, %v12146_v21, %v12210_v31  ;;  %v12215_v9 = vmul.f32 0.2, %v12151_v59  ;;  %v23598_v51 = vpop.f32.mrf.mxu0 }
 0x8d3   : > { %v11998_v32 = vpop.f32.mrf.mxu1  ;;  %12309 = vrot.lane.b32.xlu0 %v12243_v50, %s19092_s14  ;;  %12307 = vrot.lane.b32.xlu1 %v12242_v29, %s19092_s14  ;;  %vm12183_vm14 = vcmp.ge.f32.partialorder %v12151_v59, 0.0  ;;  %v11804_v44 = vadd.f32 %v23437_v4, %v25291_v57  ;;  %v11492_v37 = vadd.f32 %v25292_v27, %v11179_v41  ;;  %v25294_v29 = vld [vmem:[#allocation67_spill] sm:$0xff] }
 0x8d4   : > { %v12213_v43 = vmul.f32 0.2, %v12149_v14  ;;  %v12111_v26 = vadd.f32 %v11998_v32, %v11798_v38  ;;  %vm12181_vm9 = vcmp.ge.f32.partialorder %v12149_v14, 0.0  ;;  %v12152_v34 = vadd.f32 %v23507_v10, %v12113_v53  ;;  %v23612_v41 = vpop.f32.mrf.mxu0  ;;  %v25297_v32 = vld [vmem:[#allocation84_spill] sm:$0xff] }
 0x8d5   : > { %v18497_v11 = vpop.f32.mrf.mxu1  ;;  %v12247_v4 = vsel %vm12183_vm14, %v12151_v59, %v12215_v9  ;;  %v11183_v35 = vadd.f32 %v25295_v20, %v25294_v29  ;;  %v11805_v59 = vadd.f32 %v23458_v22, %v11492_v37 }
 0x8d6   : > { %v12150_v21 = vadd.f32 %v23507_v10, %v12111_v26  ;;  %v12116_v60 = vadd.f32 %v18497_v11, %v11803_v62  ;;  %v12245_v63 = vsel %vm12181_vm9, %v12149_v14, %v12213_v43  ;;  %v12216_v31 = vmul.f32 0.2, %v12152_v34  ;;  %v25293_v14 = vld [vmem:[#allocation60_spill] sm:$0xff]  ;;  %v23628_v57 = vpop.f32.mrf.mxu0 }
 0x8d7   : > { %v12011_v2 = vpop.f32.mrf.mxu1  ;;  %12311 = vrot.lane.b32.xlu1 %v12244_v49, %s19092_s14  ;;  %12313 = vrot.lane.b32.xlu0 %v12245_v63, %s19092_s14  ;;  %vm12184_vm12 = vcmp.ge.f32.partialorder %v12152_v34, 0.0  ;;  %v11180_v53 = vadd.f32 %v25293_v14, %v10867_v16  ;;  %v25298_v49 = vld [vmem:[#allocation43_spill] sm:$0xff]  ;;  %v25300_v63 = vld [vmem:[#allocation69_spill] sm:$0xff] }
 0x8d8   : > { %v12114_v12 = vadd.f32 %v12011_v2, %v11801_v3  ;;  %vm12182_vm10 = vcmp.ge.f32.partialorder %v12150_v21, 0.0  ;;  %v12214_v52 = vmul.f32 0.2, %v12150_v21  ;;  %v12155_v55 = vadd.f32 %v23507_v10, %v12116_v60 }
 0x8d9   : > { %v18498_v38 = vpop.f32.mrf.mxu1  ;;  %v11493_v3 = vadd.f32 %v25297_v32, %v11180_v53  ;;  %v12248_v0 = vsel %vm12184_vm12, %v12152_v34, %v12216_v31  ;;  %v23619_v22 = vadd.f32 %v25298_v49, %v10253_v42  ;;  %v11808_v58 = vadd.f32 %v23465_v8, %v25300_v63  ;;  %v25301_v34 = vld [vmem:[#allocation75_spill] sm:$0xff]  ;;  %v25302_v31 = vld [vmem:[#allocation58_spill] sm:$0xff]  ;;  %v23642_v53 = vpop.f32.mrf.mxu0 }
 0x8da   : > { %v12153_v47 = vadd.f32 %v23507_v10, %v12114_v12  ;;  %v12117_v19 = vadd.f32 %v18498_v38, %v11804_v44  ;;  %v12246_v50 = vsel %vm12182_vm10, %v12150_v21, %v12214_v52  ;;  %v12219_v43 = vmul.f32 0.2, %v12155_v55  ;;  %v25299_v21 = vld [vmem:[#allocation63_spill] sm:$0xff] }
 0x8db   : > { %v12014_v28 = vpop.f32.mrf.mxu1  ;;  %12317 = vrot.lane.b32.xlu0 %v12247_v4, %s19092_s14  ;;  %12315 = vrot.lane.b32.xlu1 %v12246_v50, %s19092_s14  ;;  %vm12187_vm13 = vcmp.ge.f32.partialorder %v12155_v55, 0.0  ;;  %v10871_v60 = vadd.f32 %v25299_v21, %v23540_v5  ;;  %v11496_v16 = vadd.f32 %v25301_v34, %v11183_v35  ;;  %v11806_v42 = vadd.f32 %v23477_v24, %v11493_v3  ;;  %v25303_v4 = vld [vmem:[#allocation51_spill] sm:$0xff]  ;;  %v25306_v35 = vld [vmem:[#allocation52_spill] sm:$0xff]  ;;  %v11762_v49 = vpop.f32.mrf.mxu0 }
 0x8dc   : > { %v12217_v7 = vmul.f32 0.2, %v12153_v47  ;;  %v12115_v62 = vadd.f32 %v12014_v28, %v11802_v6  ;;  %vm12185_vm6 = vcmp.ge.f32.partialorder %v12153_v47, 0.0  ;;  %v12156_v26 = vadd.f32 %v23507_v10, %v12117_v19  ;;  %v25305_v50 = vld [vmem:[#allocation71_spill] sm:$0xff] }
 0x8dd   : > { %v18501_v17 = vpop.f32.mrf.mxu1  ;;  %v12251_v8 = vsel %vm12187_vm13, %v12155_v55, %v12219_v43  ;;  %v11184_v38 = vadd.f32 %v25302_v31, %v10871_v60  ;;  %v11811_v14 = vadd.f32 %v23491_v36, %v25305_v50  ;;  %v11809_v55 = vadd.f32 %v23520_v1, %v11496_v16  ;;  %v25307_v1 = vld [vmem:[#allocation47_spill] sm:$0xff]  ;;  %v25308_v43 = vld [vmem:[#allocation81_spill] sm:$0xff] }
 0x8de   : > { %v12154_v13 = vadd.f32 %v23507_v10, %v12115_v62  ;;  %v12120_v9 = vadd.f32 %v18501_v17, %v11807_v23  ;;  %v12249_v11 = vsel %vm12185_vm6, %v12153_v47, %v12217_v7  ;;  %v12220_v27 = vmul.f32 0.2, %v12156_v26  ;;  %v25304_v47 = vld [vmem:[#allocation72_spill] sm:$0xff] }
 0x8df   : > { %v12027_v54 = vpop.f32.mrf.mxu1  ;;  %12319 = vrot.lane.b32.xlu1 %v12248_v0, %s19092_s14  ;;  %12321 = vrot.lane.b32.xlu0 %v12249_v11, %s19092_s14  ;;  %vm12188_vm3 = vcmp.ge.f32.partialorder %v12156_v26, 0.0  ;;  %v11187_v19 = vadd.f32 %v25304_v47, %v25303_v4  ;;  %v11497_v56 = vadd.f32 %v25306_v35, %v11184_v38  ;;  %v10257_v3 = vadd.f32 %v25307_v1, %v23524_v25  ;;  %v25309_v0 = vld [vmem:[#allocation82_spill] sm:$0xff] }
 0x8e0   : > { %v12118_v44 = vadd.f32 %v12027_v54, %v11805_v59  ;;  %vm12186_vm15 = vcmp.ge.f32.partialorder %v12154_v13, 0.0  ;;  %v12218_v2 = vmul.f32 0.2, %v12154_v13  ;;  %v12159_v5 = vadd.f32 %v23507_v10, %v12120_v9  ;;  %v25315_v38 = vld [vmem:[#allocation46_spill] sm:$0xff] }
 0x8e1   : > { %v18502_v37 = vpop.f32.mrf.mxu1  ;;  %v12252_v36 = vsel %vm12188_vm3, %v12156_v26, %v12220_v27  ;;  %v10875_v17 = vadd.f32 %v25308_v43, %v23543_v30  ;;  %v25310_v26 = vld [vmem:[#allocation66_spill] sm:$0xff]  ;;  %v11810_v63 = vadd.f32 %v23566_v18, %v11497_v56  ;;  %v25313_v27 = vld [vmem:[#allocation48_spill] sm:$0xff] }
 0x8e2   : > { %v12157_v12 = vadd.f32 %v23507_v10, %v12118_v44  ;;  %v12121_v52 = vadd.f32 %v18502_v37, %v11808_v58  ;;  %v12250_v6 = vsel %vm12186_vm15, %v12154_v13, %v12218_v2  ;;  %v12223_v23 = vmul.f32 0.2, %v12159_v5  ;;  %v25311_v44 = vld [vmem:[#allocation61_spill] sm:$0xff]  ;;  %v25318_v56 = vld [vmem:[#allocation40_spill] sm:$0xff] }
 0x8e3   : > { %v12030_v24 = vpop.f32.mrf.mxu1  ;;  %12325 = vrot.lane.b32.xlu0 %v12251_v8, %s19092_s14  ;;  %12323 = vrot.lane.b32.xlu1 %v12250_v6, %s19092_s14  ;;  %vm12191_vm5 = vcmp.ge.f32.partialorder %v12159_v5, 0.0  ;;  %v11812_v13 = vadd.f32 %v23550_v15, %v25309_v0  ;;  %v11500_v11 = vadd.f32 %v25310_v26, %v11187_v19  ;;  %v11188_v2 = vadd.f32 %v25311_v44, %v10875_v17  ;;  %v25314_v8 = vld [vmem:[#allocation65_spill] sm:$0xff]  ;;  %v25320_v26 = vld [vmem:[#allocation64_spill] sm:$0xff] }
 0x8e4   : > { %v12221_v29 = vmul.f32 0.2, %v12157_v12  ;;  %v12119_v20 = vadd.f32 %v12030_v24, %v11806_v42  ;;  %vm12189_vm4 = vcmp.ge.f32.partialorder %v12157_v12, 0.0  ;;  %v12160_v28 = vadd.f32 %v23507_v10, %v12121_v52  ;;  %v25312_v42 = vld [vmem:[#allocation78_spill] sm:$0xff]  ;;  %v18476_v52 = vpop.f32.mrf.mxu0 }
 0x8e5   : > { %v18505_v59 = vpop.f32.mrf.mxu1  ;;  %v12255_v54 = vsel %vm12191_vm5, %v12159_v5, %v12223_v23  ;;  %v11191_v37 = vadd.f32 %v25313_v27, %v25312_v42  ;;  %v11813_v5 = vadd.f32 %v23598_v51, %v11500_v11  ;;  %v11501_v4 = vadd.f32 %v25315_v38, %v11188_v2  ;;  %v25317_v51 = vld [vmem:[#allocation68_spill] sm:$0xff]  ;;  %v25321_v11 = vld [vmem:[#allocation73_spill] sm:$0xff] }
 0x8e6   : > { %v12158_v7 = vadd.f32 %v23507_v10, %v12119_v20  ;;  %v12124_v62 = vadd.f32 %v18505_v59, %v11811_v14  ;;  %v12253_v32 = vsel %vm12189_vm4, %v12157_v12, %v12221_v29  ;;  %v12224_v25 = vmul.f32 0.2, %v12160_v28  ;;  %v25316_v29 = vld [vmem:[#allocation38_spill] sm:$0xff] }
 0x8e7   : > { %v12043_v9 = vpop.f32.mrf.mxu1  ;;  %12327 = vrot.lane.b32.xlu1 %v12252_v36, %s19092_s14  ;;  %12329 = vrot.lane.b32.xlu0 %v12253_v32, %s19092_s14  ;;  %vm12192_vm11 = vcmp.ge.f32.partialorder %v12160_v28, 0.0  ;;  %v11815_v12 = vadd.f32 %v23583_v39, %v25314_v8  ;;  %v10570_v20 = vadd.f32 %v25316_v29, %v10257_v3  ;;  %v10879_v35 = vadd.f32 %v25317_v51, %v23619_v22  ;;  %v11765_v36 = vpop.f32.mrf.mxu0  ;;  %v25324_v8 = vld [vmem:[#allocation42_spill] sm:$0xff]  ;;  %v25326_v29 = vld [vmem:[#allocation55_spill] sm:$0xff] }
 0x8e8   : > { %v12122_v21 = vadd.f32 %v12043_v9, %v11809_v55  ;;  %vm12190_vm2 = vcmp.ge.f32.partialorder %v12158_v7, 0.0  ;;  %v12222_v60 = vmul.f32 0.2, %v12158_v7  ;;  %v12163_v58 = vadd.f32 %v23507_v10, %v12124_v62  ;;  %v25319_v9 = vld [vmem:[#allocation39_spill] sm:$0xff] }
 0x8e9   : > { %v18506_v30 = vpop.f32.mrf.mxu1  ;;  %v12256_v14 = vsel %vm12192_vm11, %v12160_v28, %v12224_v25  ;;  %v11816_v23 = vadd.f32 %v23612_v41, %v25318_v56  ;;  %v11504_v28 = vadd.f32 %v23456_v45, %v11191_v37  ;;  %v11814_v32 = vadd.f32 %v23628_v57, %v11501_v4  ;;  %v18479_v41 = vpop.f32.mrf.mxu0 }
 0x8ea   : > { %v12161_v15 = vadd.f32 %v23507_v10, %v12122_v21  ;;  %v12125_v34 = vadd.f32 %v18506_v30, %v11812_v13  ;;  %v12254_v16 = vsel %vm12190_vm2, %v12158_v7, %v12222_v60  ;;  %v12227_v47 = vmul.f32 0.2, %v12163_v58  ;;  %v25322_v60 = vld [vmem:[#allocation56_spill] sm:$0xff] }
 0x8eb   : > { %v12046_v18 = vpop.f32.mrf.mxu1  ;;  %12333 = vrot.lane.b32.xlu0 %v12255_v54, %s19092_s14  ;;  %12331 = vrot.lane.b32.xlu1 %v12254_v16, %s19092_s14  ;;  %vm12195_vm8 = vcmp.ge.f32.partialorder %v12163_v58, 0.0  ;;  %v11192_v45 = vadd.f32 %v25319_v9, %v10879_v35  ;;  %v11195_v21 = vadd.f32 %v25321_v11, %v25320_v26  ;;  %v11819_v57 = vadd.f32 %v23642_v53, %v25322_v60  ;;  %v25323_v54 = vld [vmem:[#allocation77_spill] sm:$0xff]  ;;  %v11778_v42 = vpop.f32.mrf.mxu0 }
 0x8ec   : > { %v12225_v6 = vmul.f32 0.2, %v12161_v15  ;;  %v12123_v31 = vadd.f32 %v12046_v18, %v11810_v63  ;;  %vm12193_vm7 = vcmp.ge.f32.partialorder %v12161_v15, 0.0  ;;  %v12164_v19 = vadd.f32 %v23507_v10, %v12125_v34  ;;  %v25325_v18 = vld [vmem:[#allocation83_spill] sm:$0xff] }
 0x8ed   : > { %v18509_v50 = vpop.f32.mrf.mxu1  ;;  %v12259_v43 = vsel %vm12195_vm8, %v12163_v58, %v12227_v47  ;;  %v11817_v25 = vadd.f32 %v11762_v49, %v11504_v28  ;;  %v11820_v49 = vadd.f32 %v18476_v52, %v25325_v18  ;;  %v11823_v51 = vadd.f32 %v18479_v41, %v23470_v46 }
 0x8ee   : > { %v12162_v39 = vadd.f32 %v23507_v10, %v12123_v31  ;;  %v12128_v24 = vadd.f32 %v18509_v50, %v11815_v12  ;;  %v12257_v55 = vsel %vm12193_vm7, %v12161_v15, %v12225_v6  ;;  %v12228_v1 = vmul.f32 0.2, %v12164_v19 }
 0x8ef   : > { %v12059_v59 = vpop.f32.mrf.mxu1  ;;  %12335 = vrot.lane.b32.xlu1 %v12256_v14, %s19092_s14  ;;  %12337 = vrot.lane.b32.xlu0 %v12257_v55, %s19092_s14  ;;  %vm12196_vm14 = vcmp.ge.f32.partialorder %v12164_v19, 0.0  ;;  %v11505_v15 = vadd.f32 %v25323_v54, %v11192_v45  ;;  %v10883_v12 = vadd.f32 %v25324_v8, %v10570_v20  ;;  %v11508_v6 = vadd.f32 %v23472_v61, %v11195_v21 }
 0x8f0   : > { %v12126_v7 = vadd.f32 %v12059_v59, %v11813_v5  ;;  %vm12194_vm9 = vcmp.ge.f32.partialorder %v12162_v39, 0.0  ;;  %v12226_v62 = vmul.f32 0.2, %v12162_v39  ;;  %v12167_v3 = vadd.f32 %v23507_v10, %v12128_v24 }
 0x8f1   : > { %v18510_v22 = vpop.f32.mrf.mxu1  ;;  %v12260_v2 = vsel %vm12196_vm14, %v12164_v19, %v12228_v1  ;;  %v11818_v4 = vadd.f32 %v11765_v36, %v11505_v15  ;;  %v11196_v20 = vadd.f32 %v25326_v29, %v10883_v12  ;;  %v11821_v35 = vadd.f32 %v11778_v42, %v11508_v6 }
 0x8f2   : > { %v12165_v17 = vadd.f32 %v23507_v10, %v12126_v7  ;;  %v12129_v0 = vadd.f32 %v18510_v22, %v11816_v23  ;;  %v12258_v13 = vsel %vm12194_vm9, %v12162_v39, %v12226_v62  ;;  %v12231_v34 = vmul.f32 0.2, %v12167_v3  ;;  %v18480_v39 = vpop.f32.mrf.mxu0 }
 0x8f3   : > { %v12062_v63 = vpop.f32.mrf.mxu1  ;;  %12341 = vrot.lane.b32.xlu0 %v12259_v43, %s19092_s14  ;;  %12339 = vrot.lane.b32.xlu1 %v12258_v13, %s19092_s14  ;;  %vm12199_vm12 = vcmp.ge.f32.partialorder %v12167_v3, 0.0  ;;  %v11509_v59 = vadd.f32 %v23486_v33, %v11196_v20  ;;  %v11824_v43 = vadd.f32 %v18480_v39, %v23484_v40  ;;  %vm12401_vm9 = vcmask 392512  }
 0x8f4   : > { %v12229_v58 = vmul.f32 0.2, %v12165_v17  ;;  %v12127_v30 = vadd.f32 %v12062_v63, %v11814_v32  ;;  %vm12197_vm10 = vcmp.ge.f32.partialorder %v12165_v17, 0.0  ;;  %v12168_v16 = vadd.f32 %v23507_v10, %v12129_v0  ;;  %v11781_v32 = vpop.f32.mrf.mxu0 }
 0x8f5   : > { %v18513_v44 = vpop.f32.mrf.mxu1  ;;  %v12263_v14 = vsel %vm12199_vm12, %v12167_v3, %v12231_v34 }
 0x8f6   : > { %v12166_v27 = vadd.f32 %v23507_v10, %v12127_v30  ;;  %v12132_v53 = vadd.f32 %v18513_v44, %v11819_v57  ;;  %v12261_v37 = vsel %vm12197_vm10, %v12165_v17, %v12229_v58  ;;  %v12232_v47 = vmul.f32 0.2, %v12168_v16 }
 0x8f7   : > { %v12075_v5 = vpop.f32.mrf.mxu1  ;;  %12343 = vrot.lane.b32.xlu1 %v12260_v2, %s19092_s14  ;;  %12345 = vrot.lane.b32.xlu0 %v12261_v37, %s19092_s14  ;;  %vm12200_vm13 = vcmp.ge.f32.partialorder %v12168_v16, 0.0  ;;  %v11822_v17 = vadd.f32 %v11781_v32, %v11509_v59  ;;  %v23778_v32 = vld [vmem:[%s24896_s9 + $0x88] sm:$0xff]  }
 0x8f8   : > { %v12130_v31 = vadd.f32 %v12075_v5, %v11817_v25  ;;  %vm12198_vm6 = vcmp.ge.f32.partialorder %v12166_v27, 0.0  ;;  %v12230_v38 = vmul.f32 0.2, %v12166_v27  ;;  %v12171_v19 = vadd.f32 %v23507_v10, %v12132_v53  ;;  %v19008_v25 = vld [vmem:[%s24896_s9 + $0x58] sm:$0xff]  }
 0x8f9   : > { %v18514_v50 = vpop.f32.mrf.mxu1  ;;  %v12264_v62 = vsel %vm12200_vm13, %v12168_v16, %v12232_v47  ;;  %18633 = vmatprep.subr.bf16.mxu1 %v19008_v25  ;;  %v19006_v47 = vld [vmem:[%s24896_s9 + $0x38] sm:$0xff]  }
 0x8fa   : > { %v12169_v24 = vadd.f32 %v23507_v10, %v12130_v31  ;;  %v12133_v52 = vadd.f32 %v18514_v50, %v11820_v49  ;;  %v12262_v55 = vsel %vm12198_vm6, %v12166_v27, %v12230_v38  ;;  %v12235_v28 = vmul.f32 0.2, %v12171_v19 }
 0x8fb   : > { %v12078_v61 = vpop.f32.mrf.mxu1  ;;  %12349 = vrot.lane.b32.xlu0 %v12263_v14, %s19092_s14  ;;  %12347 = vrot.lane.b32.xlu1 %v12262_v55, %s19092_s14  ;;  %vm12203_vm3 = vcmp.ge.f32.partialorder %v12171_v19, 0.0 }
 0x8fc   : > { %v12233_v56 = vmul.f32 0.2, %v12169_v24  ;;  %v12131_v23 = vadd.f32 %v12078_v61, %v11818_v4  ;;  %vm12201_vm15 = vcmp.ge.f32.partialorder %v12169_v24, 0.0  ;;  %v12172_v36 = vadd.f32 %v23507_v10, %v12133_v52 }
 0x8fd   : > { %v18517_v7 = vpop.f32.mrf.mxu1  ;;  %v12267_v9 = vsel %vm12203_vm3, %v12171_v19, %v12235_v28  ;;  %v19009_v19 = vld [vmem:[%s24896_s9 + $0x50] sm:$0xff]  }
 0x8fe   : > { %v12170_v1 = vadd.f32 %v23507_v10, %v12131_v23  ;;  %v12136_v46 = vadd.f32 %v18517_v7, %v11823_v51  ;;  %v12265_v3 = vsel %vm12201_vm15, %v12169_v24, %v12233_v56  ;;  %v12236_v0 = vmul.f32 0.2, %v12172_v36  ;;  %v19007_v51 = vld [vmem:[%s24896_s9 + $0x30] sm:$0xff]  }
 0x8ff   : > { %v12091_v22 = vpop.f32.mrf.mxu1  ;;  %12351 = vrot.lane.b32.xlu1 %v12264_v62, %s19092_s14  ;;  %12353 = vrot.lane.b32.xlu0 %v12265_v3, %s19092_s14  ;;  %vm12204_vm5 = vcmp.ge.f32.partialorder %v12172_v36, 0.0  ;;  %v23773_v62 = vld [vmem:[%s24896_s9 + $0x70] sm:$0xff]  }
 0x900   : > { %v12134_v41 = vadd.f32 %v12091_v22, %v11821_v35  ;;  %vm12202_vm4 = vcmp.ge.f32.partialorder %v12170_v1, 0.0  ;;  %v12234_v33 = vmul.f32 0.2, %v12170_v1  ;;  %v12175_v45 = vadd.f32 %v23507_v10, %v12136_v46 }
 0x901   : > { %v18518_v13 = vpop.f32.mrf.mxu1  ;;  %v12268_v54 = vsel %vm12204_vm5, %v12172_v36, %v12236_v0 }
 0x902   : > { %v12173_v26 = vadd.f32 %v23507_v10, %v12134_v41  ;;  %v12137_v11 = vadd.f32 %v18518_v13, %v11824_v43  ;;  %v12266_v21 = vsel %vm12202_vm4, %v12170_v1, %v12234_v33  ;;  %v12239_v58 = vmul.f32 0.2, %v12175_v45 }
 0x903   : > { %v12094_v60 = vpop.f32.mrf.mxu1  ;;  %12357 = vrot.lane.b32.xlu0 %v12267_v9, %s19092_s14  ;;  %12355 = vrot.lane.b32.xlu1 %v12266_v21, %s19092_s14  ;;  %vm12207_vm11 = vcmp.ge.f32.partialorder %v12175_v45, 0.0 }
 0x904   : > { %v12237_v40 = vmul.f32 0.2, %v12173_v26  ;;  %v12176_v57 = vadd.f32 %v23507_v10, %v12137_v11  ;;  %v12135_v63 = vadd.f32 %v12094_v60, %v11822_v17  ;;  %vm12205_vm2 = vcmp.ge.f32.partialorder %v12173_v26, 0.0 }
 0x905   : > { %v12271_v44 = vsel %vm12207_vm11, %v12175_v45, %v12239_v58 }
 0x906   : > { %v12174_v30 = vadd.f32 %v23507_v10, %v12135_v63  ;;  %v12269_v15 = vsel %vm12205_vm2, %v12173_v26, %v12237_v40  ;;  %v12240_v16 = vmul.f32 0.2, %v12176_v57  ;;  %vm12208_vm8 = vcmp.ge.f32.partialorder %v12176_v57, 0.0 }
 0x907   : > { %12359 = vrot.lane.b32.xlu1 %v12268_v54, %s19092_s14  ;;  %12361 = vrot.lane.b32.xlu0 %v12269_v15, %s19092_s14 }
 0x908   : > { %vm12206_vm7 = vcmp.ge.f32.partialorder %v12174_v30, 0.0  ;;  %v12238_v34 = vmul.f32 0.2, %v12174_v30  ;;  %v12272_v42 = vsel %vm12208_vm8, %v12176_v57, %v12240_v16 }
 0x90a   : > { %v12270_v2 = vsel %vm12206_vm7, %v12174_v30, %v12238_v34 }
 0x90b   : > { %12365 = vrot.lane.b32.xlu0 %v12271_v44, %s19092_s14  ;;  %12363 = vrot.lane.b32.xlu1 %v12270_v2, %s19092_s14 }
 0x90f   : > { %12367 = vrot.lane.b32.xlu1 %v12272_v42, %s19092_s14  ;;  %s24836_s14 = scalar_lea.hbm %s24898_s11, %s16403_s29  ;;  %s19032_s29 = scalar_lea.vmem %s19031_s24, 8192 }
 0x910   : > { %p19034_p1 = scmp.lt.s32.totalorder %s19032_s29, %s19026_s16 }
 0x912   : > { %p19035_p2 = por %p19034_p1, %p19033_p0 }
 0x914   : > { %p19036_p3 = pnand %p19035_p2, %p19029_p13 }
 0x941   : > { %v12306_v10 = vpop.permute.xlu0 %12305 }
 0x942   : > { %12402 = vst.msk [vmem:[#allocation2 + $0x19] sm:$0xff] %vm12401_vm9, %v12306_v10 }
 0x945   : > { %v12310_v27 = vpop.permute.xlu0 %12309  ;;  %v12308_v53 = vpop.permute.xlu1 %12307 }
 0x946   : > { %12403 = vst.msk [vmem:[#allocation2 + $0x21] sm:$0xff] %vm12401_vm9, %v12308_v53  ;;  %12404 = vst.msk [vmem:[#allocation2 + $0x31] sm:$0xff] %vm12401_vm9, %v12310_v27 }
 0x949   : > { %v12312_v37 = vpop.permute.xlu1 %12311  ;;  %v12314_v8 = vpop.permute.xlu0 %12313  ;;  %v12490_v12 = vld [vmem:[#allocation2 + $0x19] sm:$0xff] }
 0x94a   : > { %12405 = vst.msk [vmem:[#allocation2 + $0x39] sm:$0xff] %vm12401_vm9, %v12312_v37  ;;  %12406 = vst.msk [vmem:[#allocation2 + $0x49] sm:$0xff] %vm12401_vm9, %v12314_v8  ;;  %v12436_v6 = vld [vmem:[#allocation2 + $0x18] sm:$0xff] }
 0x94d   : > { %v12318_v18 = vpop.permute.xlu0 %12317  ;;  %v12316_v49 = vpop.permute.xlu1 %12315  ;;  %v12491_v5 = vld [vmem:[#allocation2 + $0x21] sm:$0xff]  ;;  %v12492_v50 = vld [vmem:[#allocation2 + $0x31] sm:$0xff] }
 0x94e   : > { %v12437_v31 = vld [vmem:[#allocation2 + $0x20] sm:$0xff]  ;;  %v23731_v38 = vpack.c.bf16 %v12491_v5, %v12490_v12  ;;  %12407 = vst.msk [vmem:[#allocation2 + $0x51] sm:$0xff] %vm12401_vm9, %v12316_v49  ;;  %12408 = vst.msk [vmem:[#allocation2 + $0x61] sm:$0xff] %vm12401_vm9, %v12318_v18  ;;  %v12438_v52 = vld [vmem:[#allocation2 + $0x30] sm:$0xff] }
 0x94f   : > { %v23735_v4 = vpack.c.bf16 %v12437_v31, %v12436_v6 }
 0x950   : > { %18526 = vmatmul.mubr.msk.bf16.vlgmr.msra.gmra.mxu0 %vm386_vm0, %v23731_v38 }
 0x951   : > { %18564 = vmatmul.mubr.msk.bf16.vlgmr.msra.gmra.mxu1 %vm386_vm0, %v23735_v4  ;;  %18596 = vmatpush3.bf16.msra.mxu0 %v23559_v48  ;;  %v12320_v14 = vpop.permute.xlu1 %12319  ;;  %v12322_v39 = vpop.permute.xlu0 %12321  ;;  %v12493_v24 = vld [vmem:[#allocation2 + $0x39] sm:$0xff]  ;;  %v19010_v48 = vld [vmem:[%s24896_s9 + $0x48] sm:$0xff]  }
 0x952   : > { %v12439_v55 = vld [vmem:[#allocation2 + $0x38] sm:$0xff]  ;;  %18634 = vmatpush3.bf16.msra.mxu1 %v19008_v25  ;;  %12409 = vst.msk [vmem:[#allocation2 + $0x69] sm:$0xff] %vm12401_vm9, %v12320_v14  ;;  %12410 = vst.msk [vmem:[#allocation2 + $0x79] sm:$0xff] %vm12401_vm9, %v12322_v39  ;;  %v23750_v29 = vpack.c.bf16 %v12493_v24, %v12492_v50  ;;  %18597 = vmatprep.subr.bf16.mxu0 %v19006_v47  ;;  %v12494_v61 = vld [vmem:[#allocation2 + $0x49] sm:$0xff] }
 0x953   : > { %v23752_v20 = vpack.c.bf16 %v12439_v55, %v12438_v52  ;;  %18635 = vmatprep.subr.bf16.mxu1 %v19009_v19  ;;  %v12440_v59 = vld [vmem:[#allocation2 + $0x48] sm:$0xff] }
 0x954   : > { %18529 = vmatprep.mubr.msk.bf16.mxu0 %vm386_vm0, %v23750_v29 }
 0x955   : > { %18567 = vmatprep.mubr.msk.bf16.mxu1 %vm386_vm0, %v23752_v20  ;;  %v12326_v35 = vpop.permute.xlu0 %12325  ;;  %v12324_v56 = vpop.permute.xlu1 %12323  ;;  %v12495_v23 = vld [vmem:[#allocation2 + $0x51] sm:$0xff]  ;;  %18598 = vmatpush3.bf16.msra.mxu0 %v19006_v47  ;;  %v12496_v1 = vld [vmem:[#allocation2 + $0x61] sm:$0xff] }
 0x956   : > { %v12441_v28 = vld [vmem:[#allocation2 + $0x50] sm:$0xff]  ;;  %18636 = vmatpush3.bf16.msra.mxu1 %v19009_v19  ;;  %12412 = vst.msk [vmem:[#allocation2 + $0x91] sm:$0xff] %vm12401_vm9, %v12326_v35  ;;  %12411 = vst.msk [vmem:[#allocation2 + $0x81] sm:$0xff] %vm12401_vm9, %v12324_v56  ;;  %v23766_v36 = vpack.c.bf16 %v12495_v23, %v12494_v61  ;;  %18599 = vmatprep.subr.bf16.mxu0 %v19007_v51  ;;  %v12442_v43 = vld [vmem:[#allocation2 + $0x60] sm:$0xff] }
 0x957   : > { %v23768_v7 = vpack.c.bf16 %v12441_v28, %v12440_v59  ;;  %18637 = vmatprep.subr.bf16.mxu1 %v19010_v48 }
 0x958   : > { %18530 = vmatmul.mubr.msk.bf16.gmra.mxu0 %vm386_vm0, %v23766_v36 }
 0x959   : > { %18568 = vmatmul.mubr.msk.bf16.gmra.mxu1 %vm386_vm0, %v23768_v7  ;;  %v12328_v46 = vpop.permute.xlu1 %12327  ;;  %v12330_v3 = vpop.permute.xlu0 %12329  ;;  %v12497_v22 = vld [vmem:[#allocation2 + $0x69] sm:$0xff]  ;;  %18600 = vmatpush3.bf16.msra.mxu0 %v19007_v51  ;;  %v12498_v0 = vld [vmem:[#allocation2 + $0x79] sm:$0xff] }
 0x95a   : > { %v12443_v41 = vld [vmem:[#allocation2 + $0x68] sm:$0xff]  ;;  %18638 = vmatpush3.bf16.msra.mxu1 %v19010_v48  ;;  %12413 = vst.msk [vmem:[#allocation2 + $0x99] sm:$0xff] %vm12401_vm9, %v12328_v46  ;;  %12414 = vst.msk [vmem:[#allocation2 + $0xa9] sm:$0xff] %vm12401_vm9, %v12330_v3  ;;  %v23786_v33 = vpack.c.bf16 %v12497_v22, %v12496_v1  ;;  %18671 = vmatprep.subr.bf16.mxu0 %v23773_v62  ;;  %v12444_v26 = vld [vmem:[#allocation2 + $0x78] sm:$0xff] }
 0x95b   : > { %v23788_v17 = vpack.c.bf16 %v12443_v41, %v12442_v43  ;;  %18709 = vmatprep.subr.bf16.mxu1 %v23778_v32 }
 0x95c   : > { %18533 = vmatprep.mubr.msk.bf16.mxu0 %vm386_vm0, %v23786_v33 }
 0x95d   : > { %18571 = vmatprep.mubr.msk.bf16.mxu1 %vm386_vm0, %v23788_v17  ;;  %v12334_v13 = vpop.permute.xlu0 %12333  ;;  %v12332_v9 = vpop.permute.xlu1 %12331  ;;  %v12499_v45 = vld [vmem:[#allocation2 + $0x81] sm:$0xff]  ;;  %v12500_v40 = vld [vmem:[#allocation2 + $0x91] sm:$0xff] }
 0x95e   : > { %v12445_v11 = vld [vmem:[#allocation2 + $0x80] sm:$0xff]  ;;  %12416 = vst.msk [vmem:[#allocation2 + $0xc1] sm:$0xff] %vm12401_vm9, %v12334_v13  ;;  %12415 = vst.msk [vmem:[#allocation2 + $0xb1] sm:$0xff] %vm12401_vm9, %v12332_v9  ;;  %v23798_v21 = vpack.c.bf16 %v12499_v45, %v12498_v0  ;;  %v12446_v58 = vld [vmem:[#allocation2 + $0x90] sm:$0xff] }
 0x95f   : > { %v23800_v60 = vpack.c.bf16 %v12445_v11, %v12444_v26 }
 0x960   : > { %18534 = vmatmul.mubr.msk.bf16.gmra.mxu0 %vm386_vm0, %v23798_v21 }
 0x961   : > { %18572 = vmatmul.mubr.msk.bf16.gmra.mxu1 %vm386_vm0, %v23800_v60  ;;  %v12336_v57 = vpop.permute.xlu1 %12335  ;;  %v12338_v63 = vpop.permute.xlu0 %12337  ;;  %v12501_v25 = vld [vmem:[#allocation2 + $0x99] sm:$0xff]  ;;  %v12502_v34 = vld [vmem:[#allocation2 + $0xa9] sm:$0xff] }
 0x962   : > { %v12447_v30 = vld [vmem:[#allocation2 + $0x98] sm:$0xff]  ;;  %12417 = vst.msk [vmem:[#allocation2 + $0xc9] sm:$0xff] %vm12401_vm9, %v12336_v57  ;;  %12418 = vst.msk [vmem:[#allocation2 + $0xd9] sm:$0xff] %vm12401_vm9, %v12338_v63  ;;  %v23808_v54 = vpack.c.bf16 %v12501_v25, %v12500_v40  ;;  %v12448_v42 = vld [vmem:[#allocation2 + $0xa8] sm:$0xff] }
 0x963   : > { %v23810_v15 = vpack.c.bf16 %v12447_v30, %v12446_v58 }
 0x964   : > { %18537 = vmatprep.mubr.msk.bf16.mxu0 %vm386_vm0, %v23808_v54 }
 0x965   : > { %18575 = vmatprep.mubr.msk.bf16.mxu1 %vm386_vm0, %v23810_v15  ;;  %v12342_v16 = vpop.permute.xlu0 %12341  ;;  %v12340_v44 = vpop.permute.xlu1 %12339  ;;  %v12503_v2 = vld [vmem:[#allocation2 + $0xb1] sm:$0xff]  ;;  %v12504_v37 = vld [vmem:[#allocation2 + $0xc1] sm:$0xff] }
 0x966   : > { %v12449_v10 = vld [vmem:[#allocation2 + $0xb0] sm:$0xff]  ;;  %12420 = vst.msk [vmem:[#allocation2 + $0xf1] sm:$0xff] %vm12401_vm9, %v12342_v16  ;;  %12419 = vst.msk [vmem:[#allocation2 + $0xe1] sm:$0xff] %vm12401_vm9, %v12340_v44  ;;  %v23818_v27 = vpack.c.bf16 %v12503_v2, %v12502_v34  ;;  %v12450_v49 = vld [vmem:[#allocation2 + $0xc0] sm:$0xff] }
 0x967   : > { %v23820_v53 = vpack.c.bf16 %v12449_v10, %v12448_v42 }
 0x968   : > { %18538 = vmatmul.mubr.msk.bf16.gmra.mxu0 %vm386_vm0, %v23818_v27 }
 0x969   : > { %18576 = vmatmul.mubr.msk.bf16.gmra.mxu1 %vm386_vm0, %v23820_v53  ;;  %v12344_v8 = vpop.permute.xlu1 %12343  ;;  %v12346_v12 = vpop.permute.xlu0 %12345  ;;  %v12505_v18 = vld [vmem:[#allocation2 + $0xc9] sm:$0xff]  ;;  %v12506_v47 = vld [vmem:[#allocation2 + $0xd9] sm:$0xff] }
 0x96a   : > { %v12451_v5 = vld [vmem:[#allocation2 + $0xc8] sm:$0xff]  ;;  %12421 = vst.msk [vmem:[#allocation2 + $0xf9] sm:$0xff] %vm12401_vm9, %v12344_v8  ;;  %12422 = vst.msk [vmem:[#allocation2 + $0x109] sm:$0xff] %vm12401_vm9, %v12346_v12  ;;  %v23828_v6 = vpack.c.bf16 %v12505_v18, %v12504_v37  ;;  %v12452_v39 = vld [vmem:[#allocation2 + $0xd8] sm:$0xff] }
 0x96b   : > { %v23830_v31 = vpack.c.bf16 %v12451_v5, %v12450_v49 }
 0x96c   : > { %18541 = vmatprep.mubr.msk.bf16.mxu0 %vm386_vm0, %v23828_v6 }
 0x96d   : > { %18579 = vmatprep.mubr.msk.bf16.mxu1 %vm386_vm0, %v23830_v31  ;;  %v12350_v19 = vpop.permute.xlu0 %12349  ;;  %v12348_v50 = vpop.permute.xlu1 %12347  ;;  %v12507_v14 = vld [vmem:[#allocation2 + $0xe1] sm:$0xff]  ;;  %v12508_v51 = vld [vmem:[#allocation2 + $0xf1] sm:$0xff] }
 0x96e   : > { %v12453_v24 = vld [vmem:[#allocation2 + $0xe0] sm:$0xff]  ;;  %12424 = vst.msk [vmem:[#allocation2 + $0x121] sm:$0xff] %vm12401_vm9, %v12350_v19  ;;  %12423 = vst.msk [vmem:[#allocation2 + $0x111] sm:$0xff] %vm12401_vm9, %v12348_v50  ;;  %v23838_v52 = vpack.c.bf16 %v12507_v14, %v12506_v47  ;;  %v12454_v56 = vld [vmem:[#allocation2 + $0xf0] sm:$0xff] }
 0x96f   : > { %v23840_v55 = vpack.c.bf16 %v12453_v24, %v12452_v39  ;;  %v12997_v19 = vld [vmem:[#allocation2 + $0x2] sm:$0xff]  ;;  %v12998_v50 = vld [vmem:[#allocation2 + $0xa] sm:$0xff] }
 0x970   : > { %18542 = vmatmul.mubr.msk.bf16.gmra.mxu0 %vm386_vm0, %v23838_v52 }
 0x971   : > { %18580 = vmatmul.mubr.msk.bf16.gmra.mxu1 %vm386_vm0, %v23840_v55  ;;  %v12352_v48 = vpop.permute.xlu1 %12351  ;;  %v12354_v61 = vpop.permute.xlu0 %12353  ;;  %v12509_v35 = vld [vmem:[#allocation2 + $0xf9] sm:$0xff]  ;;  %v12510_v1 = vld [vmem:[#allocation2 + $0x109] sm:$0xff] }
 0x972   : > { %v12455_v23 = vld [vmem:[#allocation2 + $0xf8] sm:$0xff]  ;;  %12425 = vst.msk [vmem:[#allocation2 + $0x129] sm:$0xff] %vm12401_vm9, %v12352_v48  ;;  %12426 = vst.msk [vmem:[#allocation2 + $0x139] sm:$0xff] %vm12401_vm9, %v12354_v61  ;;  %v23848_v59 = vpack.c.bf16 %v12509_v35, %v12508_v51  ;;  %v12456_v43 = vld [vmem:[#allocation2 + $0x108] sm:$0xff]  ;;  %v13029_v48 = vpack.c.bf16 %v12998_v50, %v12997_v19 }
 0x973   : > { %v23850_v28 = vpack.c.bf16 %v12455_v23, %v12454_v56  ;;  %v12999_v56 = vld [vmem:[#allocation2 + $0x1a] sm:$0xff]  ;;  %v13000_v23 = vld [vmem:[#allocation2 + $0x22] sm:$0xff] }
 0x974   : > { %18545 = vmatprep.mubr.msk.bf16.mxu0 %vm386_vm0, %v23848_v59 }
 0x975   : > { %18583 = vmatprep.mubr.msk.bf16.mxu1 %vm386_vm0, %v23850_v28  ;;  %v12358_v46 = vpop.permute.xlu0 %12357  ;;  %v12356_v3 = vpop.permute.xlu1 %12355  ;;  %v12511_v22 = vld [vmem:[#allocation2 + $0x111] sm:$0xff]  ;;  %v12512_v9 = vld [vmem:[#allocation2 + $0x121] sm:$0xff] }
 0x976   : > { %v12457_v41 = vld [vmem:[#allocation2 + $0x110] sm:$0xff]  ;;  %12428 = vst.msk [vmem:[#allocation2 + $0x151] sm:$0xff] %vm12401_vm9, %v12358_v46  ;;  %12427 = vst.msk [vmem:[#allocation2 + $0x141] sm:$0xff] %vm12401_vm9, %v12356_v3  ;;  %v23858_v0 = vpack.c.bf16 %v12511_v22, %v12510_v1  ;;  %v12458_v40 = vld [vmem:[#allocation2 + $0x120] sm:$0xff]  ;;  %v23906_v3 = vpack.c.bf16 %v13000_v23, %v12999_v56 }
 0x977   : > { %v23860_v13 = vpack.c.bf16 %v12457_v41, %v12456_v43  ;;  %v13001_v1 = vld [vmem:[#allocation2 + $0x32] sm:$0xff]  ;;  %v13002_v46 = vld [vmem:[#allocation2 + $0x3a] sm:$0xff]  ;;  %v19012_v22 = vld [vmem:[%s24896_s9 + $0x68] sm:$0xff]  }
 0x978   : > { %18546 = vmatmul.mubr.msk.bf16.gmra.mxu0 %vm386_vm0, %v23858_v0  ;;  %v23911_v43 = vpack.c.bf16 %v13002_v46, %v13001_v1  ;;  %v19013_v41 = vld [vmem:[%s24896_s9 + $0x60] sm:$0xff]   ;;  %v13019_v23 = vld [vmem:[#allocation2 + $0x10a] sm:$0xff]  ;;  %v13020_v1 = vld [vmem:[#allocation2 + $0x112] sm:$0xff] }
 0x979   : > { %18584 = vmatmul.mubr.msk.bf16.gmra.mxu1 %vm386_vm0, %v23860_v13  ;;  %v12360_v45 = vpop.permute.xlu1 %12359  ;;  %v12362_v26 = vpop.permute.xlu0 %12361  ;;  %v12513_v11 = vld [vmem:[#allocation2 + $0x129] sm:$0xff]  ;;  %v12514_v58 = vld [vmem:[#allocation2 + $0x139] sm:$0xff] }
 0x97a   : > { %v12459_v57 = vld [vmem:[#allocation2 + $0x128] sm:$0xff]  ;;  %12429 = vst.msk [vmem:[#allocation2 + $0x159] sm:$0xff] %vm12401_vm9, %v12360_v45  ;;  %12430 = vst.msk [vmem:[#allocation2 + $0x169] sm:$0xff] %vm12401_vm9, %v12362_v26  ;;  %v23868_v63 = vpack.c.bf16 %v12513_v11, %v12512_v9  ;;  %v12460_v44 = vld [vmem:[#allocation2 + $0x138] sm:$0xff] }
 0x97b   : > { %v23870_v25 = vpack.c.bf16 %v12459_v57, %v12458_v40  ;;  %v13003_v9 = vld [vmem:[#allocation2 + $0x4a] sm:$0xff]  ;;  %v13004_v45 = vld [vmem:[#allocation2 + $0x52] sm:$0xff]  ;;  %v13005_v26 = vld [vmem:[#allocation2 + $0x62] sm:$0xff] }
 0x97c   : > { %18549 = vmatprep.mubr.msk.bf16.mxu0 %vm386_vm0, %v23868_v63  ;;  %v13006_v11 = vld [vmem:[#allocation2 + $0x6a] sm:$0xff]  ;;  %v19016_v40 = vld [vmem:[%s24896_s9 + $0x78] sm:$0xff]   ;;  %v13021_v46 = vld [vmem:[#allocation2 + $0x122] sm:$0xff] }
 0x97d   : > { %18587 = vmatprep.mubr.msk.bf16.mxu1 %vm386_vm0, %v23870_v25  ;;  %v12366_v30 = vpop.permute.xlu0 %12365  ;;  %v12364_v34 = vpop.permute.xlu1 %12363  ;;  %v12515_v16 = vld [vmem:[#allocation2 + $0x141] sm:$0xff]  ;;  %v12516_v37 = vld [vmem:[#allocation2 + $0x151] sm:$0xff]  ;;  %v23934_v57 = vpack.c.bf16 %v13006_v11, %v13005_v26 }
 0x97e   : > { %v12461_v2 = vld [vmem:[#allocation2 + $0x140] sm:$0xff]  ;;  %12432 = vst.msk [vmem:[#allocation2 + $0x181] sm:$0xff] %vm12401_vm9, %v12366_v30  ;;  %12431 = vst.msk [vmem:[#allocation2 + $0x171] sm:$0xff] %vm12401_vm9, %v12364_v34  ;;  %v23878_v42 = vpack.c.bf16 %v12515_v16, %v12514_v58  ;;  %v12462_v18 = vld [vmem:[#allocation2 + $0x150] sm:$0xff] }
 0x97f   : > { %v23880_v10 = vpack.c.bf16 %v12461_v2, %v12460_v44  ;;  %v23939_v58 = vld [vmem:[%s24896_s9 + $0xa0] sm:$0xff]   ;;  %v13009_v16 = vld [vmem:[#allocation2 + $0x92] sm:$0xff] }
 0x980   : > { %18550 = vmatmul.mubr.msk.bf16.gmra.mxu0 %vm386_vm0, %v23878_v42  ;;  %v13007_v30 = vld [vmem:[#allocation2 + $0x7a] sm:$0xff]  ;;  %v13008_v34 = vld [vmem:[#allocation2 + $0x82] sm:$0xff] }
 0x981   : > { %18588 = vmatmul.mubr.msk.bf16.gmra.mxu1 %vm386_vm0, %v23880_v10  ;;  %v12368_v8 = vpop.permute.xlu1 %12367  ;;  %v12517_v12 = vld [vmem:[#allocation2 + $0x159] sm:$0xff]  ;;  %v12518_v14 = vld [vmem:[#allocation2 + $0x169] sm:$0xff]  ;;  %v23956_v2 = vpack.c.bf16 %v13008_v34, %v13007_v30 }
 0x982   : > { %v12463_v49 = vld [vmem:[#allocation2 + $0x158] sm:$0xff]  ;;  %12433 = vst.msk [vmem:[#allocation2 + $0x189] sm:$0xff] %vm12401_vm9, %v12368_v8  ;;  %v23887_v5 = vpack.c.bf16 %v12517_v12, %v12516_v37  ;;  %v12464_v24 = vld [vmem:[#allocation2 + $0x168] sm:$0xff] }
 0x983   : > { %v23889_v47 = vpack.c.bf16 %v12463_v49, %v12462_v18  ;;  %v13010_v44 = vld [vmem:[#allocation2 + $0x9a] sm:$0xff]  ;;  %v13011_v8 = vld [vmem:[#allocation2 + $0xaa] sm:$0xff]  ;;  %v13012_v12 = vld [vmem:[#allocation2 + $0xb2] sm:$0xff] }
 0x984   : > { %18553 = vmatprep.mubr.msk.bf16.mxu0 %vm386_vm0, %v23887_v5  ;;  %v23958_v37 = vpack.c.bf16 %v13010_v44, %v13009_v16  ;;  %v13013_v18 = vld [vmem:[#allocation2 + $0xc2] sm:$0xff]  ;;  %v13014_v49 = vld [vmem:[#allocation2 + $0xca] sm:$0xff]  ;;  %v23968_v19 = vpack.c.bf16 %v13012_v12, %v13011_v8  ;;  %v13025_v26 = vld [vmem:[#allocation2 + $0x152] sm:$0xff] }
 0x985   : > { %18591 = vmatprep.mubr.msk.bf16.mxu1 %vm386_vm0, %v23889_v47  ;;  %v12519_v39 = vld [vmem:[#allocation2 + $0x171] sm:$0xff]  ;;  %v23970_v50 = vpack.c.bf16 %v13014_v49, %v13013_v18 }
 0x986   : > { %v12465_v51 = vld [vmem:[#allocation2 + $0x170] sm:$0xff]  ;;  %v23895_v61 = vpack.c.bf16 %v12519_v39, %v12518_v14  ;;  %v13015_v14 = vld [vmem:[#allocation2 + $0xda] sm:$0xff]  ;;  %v13016_v39 = vld [vmem:[#allocation2 + $0xe2] sm:$0xff] }
 0x987   : > { %v23897_v35 = vpack.c.bf16 %v12465_v51, %v12464_v24  ;;  %v13017_v24 = vld [vmem:[#allocation2 + $0xf2] sm:$0xff]  ;;  %v13018_v51 = vld [vmem:[#allocation2 + $0xfa] sm:$0xff]  ;;  %v13027_v30 = vld [vmem:[#allocation2 + $0x16a] sm:$0xff] }
 0x988   : > { %18554 = vmatmul.mubr.msk.bf16.gmra.mxu0 %vm386_vm0, %v23895_v61  ;;  %v23982_v56 = vpack.c.bf16 %v13018_v51, %v13017_v24  ;;  %v13028_v34 = vld [vmem:[#allocation2 + $0x172] sm:$0xff] }
 0x989   : > { %18592 = vmatmul.mubr.msk.bf16.gmra.mxu1 %vm386_vm0, %v23897_v35  ;;  %18601 = vmatprep.mubr.msk.bf16.mxu0 %vm386_vm0, %v13029_v48  ;;  %v23980_v48 = vpack.c.bf16 %v13016_v39, %v13015_v14  ;;  %v13342_v16 = vld [vmem:[#allocation2 + $0x188] sm:$0xff]  ;;  %v13044_v44 = vpack.c.bf16 %v13028_v34, %v13027_v30  ;;  %v19021_v12 = vld [vmem:[%s24896_s9 + $0xb0] sm:$0xff]  }
 0x98a   : > { %18639 = vmatprep.mubr.msk.bf16.mxu1 %vm386_vm0, %v23735_v4  ;;  %v19015_v4 = vld [vmem:[%s24896_s9 + $0x80] sm:$0xff]   ;;  %v14583_v30 = vld [vmem:[#allocation2 + $0xf1] sm:$0xff] }
 0x990   : > { %18602 = vmatmul.mubr.msk.bf16.vlgmr.msra.gmra.mxu0 %vm386_vm0, %v23906_v3 }
 0x991   : > { %18640 = vmatmul.mubr.msk.bf16.vlgmr.msra.gmra.mxu1 %vm386_vm0, %v23752_v20  ;;  %18672 = vmatpush3.bf16.msra.mxu0 %v23773_v62  ;;  %v23929_v62 = vpack.c.bf16 %v13004_v45, %v13003_v9  ;;  %v13023_v9 = vld [vmem:[#allocation2 + $0x13a] sm:$0xff]  ;;  %v13024_v45 = vld [vmem:[#allocation2 + $0x142] sm:$0xff] }
 0x992   : > { %18605 = vmatprep.mubr.msk.bf16.mxu0 %vm386_vm0, %v23911_v43  ;;  %18643 = vmatprep.mubr.msk.bf16.mxu1 %vm386_vm0, %v23768_v7  ;;  %v13042_v11 = vpack.c.bf16 %v13024_v45, %v13023_v9 }
 0x993   : > { %18673 = vmatprep.subr.bf16.mxu0 %v19012_v22  ;;  %18710 = vmatpush3.bf16.msra.mxu1 %v23778_v32  ;;  %v23948_v32 = vld [vmem:[%s24896_s9 + $0xb8] sm:$0xff]  }
 0x994   : > { %18711 = vmatprep.subr.bf16.mxu1 %v19015_v4 }
 0x995   : > { %18674 = vmatpush3.bf16.msra.mxu0 %v19012_v22  ;;  %v13022_v22 = vld [vmem:[#allocation2 + $0x12a] sm:$0xff] }
 0x996   : > { %18675 = vmatprep.subr.bf16.mxu0 %v19013_v41 }
 0x997   : > { %18712 = vmatpush3.bf16.msra.mxu1 %v19015_v4  ;;  %v13040_v4 = vpack.c.bf16 %v13020_v1, %v13019_v23 }
 0x998   : > { %18606 = vmatmul.mubr.msk.bf16.gmra.mxu0 %vm386_vm0, %v23929_v62  ;;  %18713 = vmatprep.subr.bf16.mxu1 %v19016_v40 }
 0x999   : > { %18644 = vmatmul.mubr.msk.bf16.gmra.mxu1 %vm386_vm0, %v23788_v17  ;;  %18609 = vmatprep.mubr.msk.bf16.mxu0 %vm386_vm0, %v23934_v57 }
 0x99a   : > { %18647 = vmatprep.mubr.msk.bf16.mxu1 %vm386_vm0, %v23800_v60  ;;  %18676 = vmatpush3.bf16.msra.mxu0 %v19013_v41  ;;  %v13041_v41 = vpack.c.bf16 %v13022_v22, %v13021_v46 }
 0x99b   : > { %18714 = vmatpush3.bf16.msra.mxu1 %v19016_v40  ;;  %18747 = vmatprep.subr.bf16.mxu0 %v23939_v58 }
 0x99c   : > { %18785 = vmatprep.subr.bf16.mxu1 %v23948_v32 }
 0x9a0   : > { %18610 = vmatmul.mubr.msk.bf16.gmra.mxu0 %vm386_vm0, %v23956_v2 }
 0x9a1   : > { %18648 = vmatmul.mubr.msk.bf16.gmra.mxu1 %vm386_vm0, %v23810_v15  ;;  %18613 = vmatprep.mubr.msk.bf16.mxu0 %vm386_vm0, %v23958_v37 }
 0x9a2   : > { %18651 = vmatprep.mubr.msk.bf16.mxu1 %vm386_vm0, %v23820_v53 }
 0x9a8   : > { %18614 = vmatmul.mubr.msk.bf16.gmra.mxu0 %vm386_vm0, %v23968_v19 }
 0x9a9   : > { %18652 = vmatmul.mubr.msk.bf16.gmra.mxu1 %vm386_vm0, %v23830_v31  ;;  %18617 = vmatprep.mubr.msk.bf16.mxu0 %vm386_vm0, %v23970_v50 }
 0x9aa   : > { %18655 = vmatprep.mubr.msk.bf16.mxu1 %vm386_vm0, %v23840_v55 }
 0x9b0   : > { %18618 = vmatmul.mubr.msk.bf16.gmra.mxu0 %vm386_vm0, %v23980_v48 }
 0x9b1   : > { %18656 = vmatmul.mubr.msk.bf16.gmra.mxu1 %vm386_vm0, %v23850_v28  ;;  %18621 = vmatprep.mubr.msk.bf16.mxu0 %vm386_vm0, %v23982_v56 }
 0x9b2   : > { %18659 = vmatprep.mubr.msk.bf16.mxu1 %vm386_vm0, %v23860_v13  ;;  %v13026_v13 = vld [vmem:[#allocation2 + $0x15a] sm:$0xff] }
 0x9b3   : > { %v13043_v40 = vpack.c.bf16 %v13026_v13, %v13025_v26  ;;  %v14584_v26 = vld [vmem:[#allocation2 + $0xf9] sm:$0xff] }
 0x9b4   : > { %v14581_v13 = vld [vmem:[#allocation2 + $0xd9] sm:$0xff] }
 0x9b8   : > { %18622 = vmatmul.mubr.msk.bf16.gmra.mxu0 %vm386_vm0, %v13040_v4 }
 0x9b9   : > { %18660 = vmatmul.mubr.msk.bf16.gmra.mxu1 %vm386_vm0, %v23870_v25  ;;  %18625 = vmatprep.mubr.msk.bf16.mxu0 %vm386_vm0, %v13041_v41 }
 0x9ba   : > { %18663 = vmatprep.mubr.msk.bf16.mxu1 %vm386_vm0, %v23880_v10  ;;  %v13341_v10 = vld [vmem:[#allocation2 + $0x180] sm:$0xff] }
 0x9bb   : > { %v24004_v8 = vpack.c.bf16 %v13342_v16, %v13341_v10 }
 0x9c0   : > { %18626 = vmatmul.mubr.msk.bf16.gmra.mxu0 %vm386_vm0, %v13042_v11 }
 0x9c1   : > { %18664 = vmatmul.mubr.msk.bf16.gmra.mxu1 %vm386_vm0, %v23889_v47  ;;  %18629 = vmatprep.mubr.msk.bf16.mxu0 %vm386_vm0, %v13043_v40 }
 0x9c2   : > { %18667 = vmatprep.mubr.msk.bf16.mxu1 %vm386_vm0, %v23897_v35  ;;  %v19018_v35 = vld [vmem:[%s24896_s9 + $0x98] sm:$0xff]  }
 0x9c8   : > { %18630 = vmatmul.mubr.msk.bf16.gmra.mxu0 %vm386_vm0, %v13044_v44 }
 0x9c9   : > { %18668 = vmatmul.mubr.msk.bf16.gmra.mxu1 %vm386_vm0, %v24004_v8  ;;  %18677 = vmatprep.mubr.msk.bf16.mxu0 %vm386_vm0, %v23731_v38  ;;  %v19019_v38 = vld [vmem:[%s24896_s9 + $0x90] sm:$0xff]  }
 0x9ca   : > { %18715 = vmatprep.mubr.msk.bf16.mxu1 %vm386_vm0, %v23906_v3  ;;  %v19022_v3 = vld [vmem:[%s24896_s9 + $0xa8] sm:$0xff]  }
 0x9d0   : > { %18678 = vmatmul.mubr.msk.bf16.vlgmr.msra.gmra.mxu0 %vm386_vm0, %v23750_v29 }
 0x9d1   : > { %18716 = vmatmul.mubr.msk.bf16.vlgmr.msra.gmra.mxu1 %vm386_vm0, %v23911_v43  ;;  %18748 = vmatpush3.bf16.msra.mxu0 %v23939_v58  ;;  %v19023_v43 = vld [vmem:[%s24896_s9 + $0xd0] sm:$0xff]  }
 0x9d2   : > { %18681 = vmatprep.mubr.msk.bf16.mxu0 %vm386_vm0, %v23766_v36  ;;  %18719 = vmatprep.mubr.msk.bf16.mxu1 %vm386_vm0, %v23929_v62 }
 0x9d3   : > { %18749 = vmatprep.subr.bf16.mxu0 %v19018_v35  ;;  %18786 = vmatpush3.bf16.msra.mxu1 %v23948_v32  ;;  %v19025_v32 = vld [vmem:[%s24896_s9 + $0xc0] sm:$0xff]  }
 0x9d4   : > { %18787 = vmatprep.subr.bf16.mxu1 %v19021_v12 }
 0x9d5   : > { %18750 = vmatpush3.bf16.msra.mxu0 %v19018_v35 }
 0x9d6   : > { %18751 = vmatprep.subr.bf16.mxu0 %v19019_v38 }
 0x9d7   : > { %18788 = vmatpush3.bf16.msra.mxu1 %v19021_v12 }
 0x9d8   : > { %18682 = vmatmul.mubr.msk.bf16.gmra.mxu0 %vm386_vm0, %v23786_v33  ;;  %18789 = vmatprep.subr.bf16.mxu1 %v19022_v3 }
 0x9d9   : > { %18720 = vmatmul.mubr.msk.bf16.gmra.mxu1 %vm386_vm0, %v23934_v57  ;;  %18685 = vmatprep.mubr.msk.bf16.mxu0 %vm386_vm0, %v23798_v21 }
 0x9da   : > { %18723 = vmatprep.mubr.msk.bf16.mxu1 %vm386_vm0, %v23956_v2  ;;  %18752 = vmatpush3.bf16.msra.mxu0 %v19019_v38  ;;  %v14272_v38 = vld [vmem:[#allocation2 + $0x110] sm:$0xff] }
 0x9db   : > { %18790 = vmatpush3.bf16.msra.mxu1 %v19022_v3  ;;  %18823 = vmatprep.subr.bf16.mxu0 %v19023_v43  ;;  %v14586_v3 = vld [vmem:[#allocation2 + $0x111] sm:$0xff] }
 0x9e0   : > { %18686 = vmatmul.mubr.msk.bf16.gmra.mxu0 %vm386_vm0, %v23808_v54 }
 0x9e1   : > { %18724 = vmatmul.mubr.msk.bf16.gmra.mxu1 %vm386_vm0, %v23958_v37  ;;  %18689 = vmatprep.mubr.msk.bf16.mxu0 %vm386_vm0, %v23818_v27 }
 0x9e2   : > { %18727 = vmatprep.mubr.msk.bf16.mxu1 %vm386_vm0, %v23968_v19 }
 0x9e8   : > { %18690 = vmatmul.mubr.msk.bf16.gmra.mxu0 %vm386_vm0, %v23828_v6 }
 0x9e9   : > { %18728 = vmatmul.mubr.msk.bf16.gmra.mxu1 %vm386_vm0, %v23970_v50  ;;  %18693 = vmatprep.mubr.msk.bf16.mxu0 %vm386_vm0, %v23838_v52  ;;  %v13656_v52 = vld [vmem:[#allocation2 + $0x189] sm:$0xff] }
 0x9ea   : > { %18731 = vmatprep.mubr.msk.bf16.mxu1 %vm386_vm0, %v23980_v48 }
 0x9f0   : > { %18694 = vmatmul.mubr.msk.bf16.gmra.mxu0 %vm386_vm0, %v23848_v59  ;;  %v13969_v59 = vld [vmem:[#allocation2 + $0x182] sm:$0xff] }
 0x9f1   : > { %18732 = vmatmul.mubr.msk.bf16.gmra.mxu1 %vm386_vm0, %v23982_v56  ;;  %18697 = vmatprep.mubr.msk.bf16.mxu0 %vm386_vm0, %v23858_v0  ;;  %v13970_v0 = vld [vmem:[#allocation2 + $0x18a] sm:$0xff] }
 0x9f2   : > { %18735 = vmatprep.mubr.msk.bf16.mxu1 %vm386_vm0, %v13040_v4  ;;  %v24083_v57 = vpack.c.bf16 %v13970_v0, %v13969_v59  ;;  %v14588_v59 = vld [vmem:[#allocation2 + $0x129] sm:$0xff] }
 0x9f8   : > { %18698 = vmatmul.mubr.msk.bf16.gmra.mxu0 %vm386_vm0, %v23868_v63  ;;  %v13655_v63 = vld [vmem:[#allocation2 + $0x181] sm:$0xff] }
 0x9f9   : > { %18736 = vmatmul.mubr.msk.bf16.gmra.mxu1 %vm386_vm0, %v13041_v41  ;;  %18701 = vmatprep.mubr.msk.bf16.mxu0 %vm386_vm0, %v23878_v42  ;;  %v24081_v62 = vpack.c.bf16 %v13656_v52, %v13655_v63  ;;  %v19024_v42 = vld [vmem:[%s24896_s9 + $0xc8] sm:$0xff]  }
 0x9fa   : > { %18739 = vmatprep.mubr.msk.bf16.mxu1 %vm386_vm0, %v13042_v11  ;;  %v14582_v41 = vld [vmem:[#allocation2 + $0xe1] sm:$0xff]  ;;  %v14585_v63 = vld [vmem:[#allocation2 + $0x109] sm:$0xff] }
 0xa00   : > { %18702 = vmatmul.mubr.msk.bf16.gmra.mxu0 %vm386_vm0, %v23887_v5 }
 0xa01   : > { %18740 = vmatmul.mubr.msk.bf16.gmra.mxu1 %vm386_vm0, %v13043_v40  ;;  %18705 = vmatprep.mubr.msk.bf16.mxu0 %vm386_vm0, %v23895_v61  ;;  %v14606_v40 = vpack.c.bf16 %v14582_v41, %v14581_v13 }
 0xa02   : > { %18743 = vmatprep.mubr.msk.bf16.mxu1 %vm386_vm0, %v13044_v44 }
 0xa08   : > { %18706 = vmatmul.mubr.msk.bf16.gmra.mxu0 %vm386_vm0, %v24081_v62 }
 0xa09   : > { %18744 = vmatmul.mubr.msk.bf16.gmra.mxu1 %vm386_vm0, %v24083_v57  ;;  %18753 = vmatprep.mubr.msk.bf16.mxu0 %vm386_vm0, %v23752_v20 }
 0xa0a   : > { %18791 = vmatprep.mubr.msk.bf16.mxu1 %vm386_vm0, %v23750_v29 }
 0xa10   : > { %v18527_v5 = vpop.f32.mrf.mxu0  ;;  %18754 = vmatmul.mubr.msk.bf16.vlgmr.msra.gmra.mxu0 %vm386_vm0, %v23768_v7 }
 0xa11   : > { %v18565_v61 = vpop.f32.mrf.mxu1  ;;  %18792 = vmatmul.mubr.msk.bf16.vlgmr.msra.gmra.mxu1 %vm386_vm0, %v23766_v36  ;;  %18824 = vmatpush3.bf16.msra.mxu0 %v19023_v43 }
 0xa12   : > { %v24100_v58 = vadd.f32 %v18565_v61, %v18527_v5  ;;  %18757 = vmatprep.mubr.msk.bf16.mxu0 %vm386_vm0, %v23788_v17  ;;  %18795 = vmatprep.mubr.msk.bf16.mxu1 %vm386_vm0, %v23786_v33  ;;  %v12643_v29 = vpop.f32.mrf.mxu0 }
 0xa13   : > { %v12870_v20 = vpop.f32.mrf.mxu1  ;;  %18825 = vmatprep.subr.bf16.mxu0 %v19024_v42 }
 0xa14   : > { %v24109_v7 = vadd.f32 %v12870_v20, %v12643_v29  ;;  %v18528_v2 = vpop.f32.mrf.mxu0  ;;  %v14608_v29 = vpack.c.bf16 %v14586_v3, %v14585_v63  ;;  %v14279_v3 = vld [vmem:[#allocation2 + $0x168] sm:$0xff] }
 0xa15   : > { %v18566_v36 = vpop.f32.mrf.mxu1  ;;  %18826 = vmatpush3.bf16.msra.mxu0 %v19024_v42 }
 0xa16   : > { %v24111_v37 = vadd.f32 %v18566_v36, %v18528_v2  ;;  %v12646_v18 = vpop.f32.mrf.mxu0  ;;  %18827 = vmatprep.subr.bf16.mxu0 %v19025_v32 }
 0xa17   : > { %v12873_v49 = vpop.f32.mrf.mxu1 }
 0xa18   : > { %v24113_v17 = vadd.f32 %v12873_v49, %v12646_v18  ;;  %v18531_v33 = vpop.f32.mrf.mxu0  ;;  %18758 = vmatmul.mubr.msk.bf16.gmra.mxu0 %vm386_vm0, %v23800_v60 }
 0xa19   : > { %v18569_v19 = vpop.f32.mrf.mxu1  ;;  %18796 = vmatmul.mubr.msk.bf16.gmra.mxu1 %vm386_vm0, %v23798_v21  ;;  %18761 = vmatprep.mubr.msk.bf16.mxu0 %vm386_vm0, %v23810_v15 }
 0xa1a   : > { %v24119_v50 = vadd.f32 %v18569_v19, %v18531_v33  ;;  %18799 = vmatprep.mubr.msk.bf16.mxu1 %vm386_vm0, %v23808_v54  ;;  %v12659_v14 = vpop.f32.mrf.mxu0  ;;  %18828 = vmatpush3.bf16.msra.mxu0 %v19025_v32 }
 0xa1b   : > { %v12886_v39 = vpop.f32.mrf.mxu1 }
 0xa1c   : > { %v24125_v24 = vadd.f32 %v12886_v39, %v12659_v14  ;;  %v18532_v51 = vpop.f32.mrf.mxu0  ;;  %v14276_v14 = vld [vmem:[#allocation2 + $0x140] sm:$0xff] }
 0xa1d   : > { %v18570_v48 = vpop.f32.mrf.mxu1  ;;  %v14590_v39 = vld [vmem:[#allocation2 + $0x141] sm:$0xff] }
 0xa1e   : > { %v24127_v56 = vadd.f32 %v18570_v48, %v18532_v51  ;;  %v12662_v60 = vpop.f32.mrf.mxu0 }
 0xa1f   : > { %v12889_v23 = vpop.f32.mrf.mxu1 }
 0xa20   : > { %v24129_v21 = vadd.f32 %v12889_v23, %v12662_v60  ;;  %v18535_v1 = vpop.f32.mrf.mxu0  ;;  %18762 = vmatmul.mubr.msk.bf16.gmra.mxu0 %vm386_vm0, %v23820_v53  ;;  %v14592_v60 = vld [vmem:[#allocation2 + $0x159] sm:$0xff] }
 0xa21   : > { %v18573_v46 = vpop.f32.mrf.mxu1  ;;  %18800 = vmatmul.mubr.msk.bf16.gmra.mxu1 %vm386_vm0, %v23818_v27  ;;  %18765 = vmatprep.mubr.msk.bf16.mxu0 %vm386_vm0, %v23830_v31  ;;  %v14607_v31 = vpack.c.bf16 %v14584_v26, %v14583_v30 }
 0xa22   : > { %v24135_v54 = vadd.f32 %v18573_v46, %v18535_v1  ;;  %18803 = vmatprep.mubr.msk.bf16.mxu1 %vm386_vm0, %v23828_v6  ;;  %v12675_v15 = vpop.f32.mrf.mxu0  ;;  %v14275_v1 = vld [vmem:[#allocation2 + $0x138] sm:$0xff] }
 0xa23   : > { %v12902_v22 = vpop.f32.mrf.mxu1  ;;  %v14589_v46 = vld [vmem:[#allocation2 + $0x139] sm:$0xff]  ;;  %v14296_v41 = vpack.c.bf16 %v14276_v14, %v14275_v1 }
 0xa24   : > { %v24141_v4 = vadd.f32 %v12902_v22, %v12675_v15  ;;  %v18536_v9 = vpop.f32.mrf.mxu0 }
 0xa25   : > { %v18574_v45 = vpop.f32.mrf.mxu1 }
 0xa26   : > { %v24143_v53 = vadd.f32 %v18574_v45, %v18536_v9  ;;  %v12678_v27 = vpop.f32.mrf.mxu0  ;;  %v14610_v9 = vpack.c.bf16 %v14590_v39, %v14589_v46 }
 0xa27   : > { %v12905_v11 = vpop.f32.mrf.mxu1 }
 0xa28   : > { %v24145_v34 = vadd.f32 %v12905_v11, %v12678_v27  ;;  %v18539_v16 = vpop.f32.mrf.mxu0  ;;  %18766 = vmatmul.mubr.msk.bf16.gmra.mxu0 %vm386_vm0, %v23840_v55  ;;  %v14271_v55 = vld [vmem:[#allocation2 + $0x108] sm:$0xff] }
 0xa29   : > { %v18577_v6 = vpop.f32.mrf.mxu1  ;;  %18804 = vmatmul.mubr.msk.bf16.gmra.mxu1 %vm386_vm0, %v14606_v40  ;;  %18769 = vmatprep.mubr.msk.bf16.mxu0 %vm386_vm0, %v23850_v28  ;;  %v14294_v61 = vpack.c.bf16 %v14272_v38, %v14271_v55  ;;  %v14587_v28 = vld [vmem:[#allocation2 + $0x121] sm:$0xff] }
 0xa2a   : > { %v24150_v10 = vadd.f32 %v18577_v6, %v18539_v16  ;;  %18807 = vmatprep.mubr.msk.bf16.mxu1 %vm386_vm0, %v14607_v31  ;;  %v12691_v44 = vpop.f32.mrf.mxu0  ;;  %v14609_v32 = vpack.c.bf16 %v14588_v59, %v14587_v28  ;;  %v14280_v16 = vld [vmem:[#allocation2 + $0x170] sm:$0xff]  ;;  %v14284_v28 = vld [vmem:[#allocation2 + $0x1a0] sm:$0xff] }
 0xa2b   : > { %v12918_v35 = vpop.f32.mrf.mxu1  ;;  %v14594_v6 = vld [vmem:[#allocation2 + $0x171] sm:$0xff]  ;;  %v14298_v55 = vpack.c.bf16 %v14280_v16, %v14279_v3 }
 0xa2c   : > { %v24155_v12 = vadd.f32 %v12918_v35, %v12691_v44  ;;  %v18540_v43 = vpop.f32.mrf.mxu0 }
 0xa2d   : > { %v18578_v52 = vpop.f32.mrf.mxu1 }
 0xa2e   : > { %v24157_v0 = vadd.f32 %v18578_v52, %v18540_v43  ;;  %v12694_v42 = vpop.f32.mrf.mxu0  ;;  %v14593_v43 = vld [vmem:[#allocation2 + $0x169] sm:$0xff] }
 0xa2f   : > { %v12921_v5 = vpop.f32.mrf.mxu1  ;;  %v14612_v63 = vpack.c.bf16 %v14594_v6, %v14593_v43 }
 0xa30   : > { %v24159_v20 = vadd.f32 %v12921_v5, %v12694_v42  ;;  %v18543_v2 = vpop.f32.mrf.mxu0  ;;  %18770 = vmatmul.mubr.msk.bf16.gmra.mxu0 %vm386_vm0, %v14294_v61  ;;  %v14283_v61 = vld [vmem:[#allocation2 + $0x198] sm:$0xff] }
 0xa31   : > { %v18581_v36 = vpop.f32.mrf.mxu1  ;;  %18808 = vmatmul.mubr.msk.bf16.gmra.mxu1 %vm386_vm0, %v14608_v29  ;;  %18773 = vmatprep.mubr.msk.bf16.mxu0 %vm386_vm0, %v23870_v25  ;;  %v14591_v25 = vld [vmem:[#allocation2 + $0x151] sm:$0xff] }
 0xa32   : > { %v24163_v18 = vadd.f32 %v18581_v36, %v18543_v2  ;;  %18811 = vmatprep.mubr.msk.bf16.mxu1 %vm386_vm0, %v14609_v32  ;;  %v12707_v49 = vpop.f32.mrf.mxu0  ;;  %v14611_v26 = vpack.c.bf16 %v14592_v60, %v14591_v25  ;;  %v14597_v32 = vld [vmem:[#allocation2 + $0x199] sm:$0xff]  ;;  %v14598_v2 = vld [vmem:[#allocation2 + $0x1a1] sm:$0xff] }
 0xa33   : > { %v12934_v33 = vpop.f32.mrf.mxu1  ;;  %v14882_v60 = vld [vmem:[#allocation2 + $0x3a] sm:$0xff]  ;;  %v14614_v1 = vpack.c.bf16 %v14598_v2, %v14597_v32 }
 0xa34   : > { %v24168_v19 = vadd.f32 %v12934_v33, %v12707_v49  ;;  %v18544_v51 = vpop.f32.mrf.mxu0 }
 0xa35   : > { %v18582_v48 = vpop.f32.mrf.mxu1 }
 0xa36   : > { %v24170_v23 = vadd.f32 %v18582_v48, %v18544_v51  ;;  %v12710_v15 = vpop.f32.mrf.mxu0  ;;  %v14300_v51 = vpack.c.bf16 %v14284_v28, %v14283_v61  ;;  %v14881_v48 = vld [vmem:[#allocation2 + $0x32] sm:$0xff] }
 0xa37   : > { %v12937_v22 = vpop.f32.mrf.mxu1 }
 0xa38   : > { %v24172_v45 = vadd.f32 %v12937_v22, %v12710_v15  ;;  %v18547_v13 = vpop.f32.mrf.mxu0  ;;  %18774 = vmatmul.mubr.msk.bf16.gmra.mxu0 %vm386_vm0, %v14296_v41 }
 0xa39   : > { %v18585_v27 = vpop.f32.mrf.mxu1  ;;  %18812 = vmatmul.mubr.msk.bf16.gmra.mxu1 %vm386_vm0, %v14610_v9  ;;  %18777 = vmatprep.mubr.msk.bf16.mxu0 %vm386_vm0, %v23889_v47 }
 0xa3a   : > { %v24176_v11 = vadd.f32 %v18585_v27, %v18547_v13  ;;  %18815 = vmatprep.mubr.msk.bf16.mxu1 %vm386_vm0, %v14611_v26  ;;  %v12723_v40 = vpop.f32.mrf.mxu0 }
 0xa3b   : > { %v12950_v30 = vpop.f32.mrf.mxu1 }
 0xa3c   : > { %v24181_v31 = vadd.f32 %v12950_v30, %v12723_v40  ;;  %v18548_v44 = vpop.f32.mrf.mxu0  ;;  %v14883_v40 = vld [vmem:[#allocation2 + $0x4a] sm:$0xff]  ;;  %v14884_v30 = vld [vmem:[#allocation2 + $0x52] sm:$0xff] }
 0xa3d   : > { %v18586_v35 = vpop.f32.mrf.mxu1 }
 0xa3e   : > { %v24183_v38 = vadd.f32 %v18586_v35, %v18548_v44  ;;  %v12726_v52 = vpop.f32.mrf.mxu0  ;;  %v14885_v44 = vld [vmem:[#allocation2 + $0x62] sm:$0xff]  ;;  %v14886_v35 = vld [vmem:[#allocation2 + $0x6a] sm:$0xff] }
 0xa3f   : > { %v12953_v59 = vpop.f32.mrf.mxu1 }
 0xa40   : > { %v24185_v42 = vadd.f32 %v12953_v59, %v12726_v52  ;;  %v18551_v47 = vpop.f32.mrf.mxu0  ;;  %18778 = vmatmul.mubr.msk.bf16.gmra.mxu0 %vm386_vm0, %v14298_v55  ;;  %v14914_v59 = vpack.c.bf16 %v14884_v30, %v14883_v40 }
 0xa41   : > { %v18589_v5 = vpop.f32.mrf.mxu1  ;;  %18816 = vmatmul.mubr.msk.bf16.gmra.mxu1 %vm386_vm0, %v14612_v63  ;;  %18781 = vmatprep.mubr.msk.bf16.mxu0 %vm386_vm0, %v24004_v8  ;;  %v14915_v63 = vpack.c.bf16 %v14886_v35, %v14885_v44  ;;  %v14891_v35 = vld [vmem:[#allocation2 + $0xaa] sm:$0xff] }
 0xa42   : > { %v24189_v29 = vadd.f32 %v18589_v5, %v18551_v47  ;;  %18819 = vmatprep.mubr.msk.bf16.mxu1 %vm386_vm0, %v24081_v62  ;;  %v12739_v36 = vpop.f32.mrf.mxu0  ;;  %v14913_v62 = vpack.c.bf16 %v14882_v60, %v14881_v48  ;;  %v14889_v48 = vld [vmem:[#allocation2 + $0x92] sm:$0xff]  ;;  %v14890_v60 = vld [vmem:[#allocation2 + $0x9a] sm:$0xff] }
 0xa43   : > { %v12966_v49 = vpop.f32.mrf.mxu1 }
 0xa44   : > { %v24195_v33 = vadd.f32 %v12966_v49, %v12739_v36  ;;  %v18552_v14 = vpop.f32.mrf.mxu0  ;;  %v14887_v49 = vld [vmem:[#allocation2 + $0x7a] sm:$0xff] }
 0xa45   : > { %v18590_v39 = vpop.f32.mrf.mxu1 }
 0xa46   : > { %v24197_v46 = vadd.f32 %v18590_v39, %v18552_v14  ;;  %v12742_v15 = vpop.f32.mrf.mxu0  ;;  %v14888_v14 = vld [vmem:[#allocation2 + $0x82] sm:$0xff] }
 0xa47   : > { %v12969_v8 = vpop.f32.mrf.mxu1 }
 0xa48   : > { %v24199_v22 = vadd.f32 %v12969_v8, %v12742_v15  ;;  %v18555_v41 = vpop.f32.mrf.mxu0  ;;  %18782 = vmatmul.mubr.msk.bf16.gmra.mxu0 %vm386_vm0, %v14300_v51 }
 0xa49   : > { %v18593_v9 = vpop.f32.mrf.mxu1  ;;  %18820 = vmatmul.mubr.msk.bf16.gmra.mxu1 %vm386_vm0, %v14614_v1  ;;  %18829 = vmatprep.mubr.msk.bf16.mxu0 %vm386_vm0, %v14913_v62  ;;  %v14916_v62 = vpack.c.bf16 %v14888_v14, %v14887_v49 }
 0xa4a   : > { %v24203_v25 = vadd.f32 %v18593_v9, %v18555_v41  ;;  %v12755_v26 = vpop.f32.mrf.mxu0 }
 0xa4b   : > { %v12982_v13 = vpop.f32.mrf.mxu1 }
 0xa4c   : > { %v24206_v27 = vadd.f32 %v12982_v13, %v12755_v26  ;;  %v18556_v16 = vpop.f32.mrf.mxu0  ;;  %v14917_v26 = vpack.c.bf16 %v14890_v60, %v14889_v48 }
 0xa4d   : > { %v18594_v6 = vpop.f32.mrf.mxu1 }
 0xa4e   : > { %v24208_v3 = vadd.f32 %v18594_v6, %v18556_v16  ;;  %v12758_v43 = vpop.f32.mrf.mxu0 }
 0xa4f   : > { %v12985_v52 = vpop.f32.mrf.mxu1 }
 0xa50   : > { %v24210_v55 = vadd.f32 %v12985_v52, %v12758_v43  ;;  %v18603_v47 = vpop.f32.mrf.mxu0  ;;  %18830 = vmatmul.mubr.msk.bf16.vlgmr.msra.gmra.mxu0 %vm386_vm0, %v14914_v59  ;;  %v14892_v43 = vld [vmem:[#allocation2 + $0xb2] sm:$0xff]  ;;  %v14893_v59 = vld [vmem:[#allocation2 + $0xc2] sm:$0xff] }
 0xa51   : > { %v18641_v5 = vpop.f32.mrf.mxu1  ;;  %v13281_v61 = vadd.f32 %v18603_v47, %v24100_v58  ;;  %18833 = vmatprep.mubr.msk.bf16.mxu0 %vm386_vm0, %v14915_v63  ;;  %v14894_v63 = vld [vmem:[#allocation2 + $0xca] sm:$0xff] }
 0xa52   : > { %v13152_v28 = vpop.f32.mrf.mxu0  ;;  %v14919_v49 = vpack.c.bf16 %v14894_v63, %v14893_v59 }
 0xa53   : > { %v13466_v32 = vpop.f32.mrf.mxu1  ;;  %v24215_v2 = vadd.f32 %v18641_v5, %v13281_v61  ;;  %v13279_v36 = vadd.f32 %v13152_v28, %v24109_v7  ;;  %v14918_v28 = vpack.c.bf16 %v14892_v43, %v14891_v35 }
 0xa54   : > { %v18604_v39 = vpop.f32.mrf.mxu0 }
 0xa55   : > { %v18642_v51 = vpop.f32.mrf.mxu1  ;;  %v24218_v1 = vadd.f32 %v13466_v32, %v13279_v36  ;;  %v13282_v15 = vadd.f32 %v18604_v39, %v24111_v37 }
 0xa56   : > { %v13155_v8 = vpop.f32.mrf.mxu0 }
 0xa57   : > { %v13469_v58 = vpop.f32.mrf.mxu1  ;;  %v24221_v41 = vadd.f32 %v18642_v51, %v13282_v15  ;;  %v13280_v9 = vadd.f32 %v13155_v8, %v24113_v17  ;;  %v14895_v8 = vld [vmem:[#allocation2 + $0xda] sm:$0xff] }
 0xa58   : > { %v18607_v13 = vpop.f32.mrf.mxu0  ;;  %18834 = vmatmul.mubr.msk.bf16.gmra.mxu0 %vm386_vm0, %v14916_v62 }
 0xa59   : > { %v18645_v7 = vpop.f32.mrf.mxu1  ;;  %v24225_v40 = vadd.f32 %v13469_v58, %v13280_v9  ;;  %v13285_v30 = vadd.f32 %v18607_v13, %v24119_v50  ;;  %18837 = vmatprep.mubr.msk.bf16.mxu0 %vm386_vm0, %v14917_v26  ;;  %v14896_v58 = vld [vmem:[#allocation2 + $0xe2] sm:$0xff]  ;;  %v14897_v9 = vld [vmem:[#allocation2 + $0xf2] sm:$0xff]  ;;  %v14898_v26 = vld [vmem:[#allocation2 + $0xfa] sm:$0xff] }
 0xa5a   : > { %v13168_v16 = vpop.f32.mrf.mxu0  ;;  %v14921_v35 = vpack.c.bf16 %v14898_v26, %v14897_v9 }
 0xa5b   : > { %v13482_v37 = vpop.f32.mrf.mxu1  ;;  %v24229_v6 = vadd.f32 %v18645_v7, %v13285_v30  ;;  %v13283_v44 = vadd.f32 %v13168_v16, %v24125_v24  ;;  %v14920_v16 = vpack.c.bf16 %v14896_v58, %v14895_v8 }
 0xa5c   : > { %v18608_v17 = vpop.f32.mrf.mxu0 }
 0xa5d   : > { %v18646_v52 = vpop.f32.mrf.mxu1  ;;  %v24232_v47 = vadd.f32 %v13482_v37, %v13283_v44  ;;  %v13286_v5 = vadd.f32 %v18608_v17, %v24127_v56 }
 0xa5e   : > { %v13171_v61 = vpop.f32.mrf.mxu0 }
 0xa5f   : > { %v13485_v50 = vpop.f32.mrf.mxu1  ;;  %v24235_v32 = vadd.f32 %v18646_v52, %v13286_v5  ;;  %v13284_v36 = vadd.f32 %v13171_v61, %v24129_v21  ;;  %v14899_v61 = vld [vmem:[#allocation2 + $0x10a] sm:$0xff] }
 0xa60   : > { %v18611_v14 = vpop.f32.mrf.mxu0  ;;  %18838 = vmatmul.mubr.msk.bf16.gmra.mxu0 %vm386_vm0, %v14918_v28 }
 0xa61   : > { %v18649_v24 = vpop.f32.mrf.mxu1  ;;  %v24239_v39 = vadd.f32 %v13485_v50, %v13284_v36  ;;  %v13289_v51 = vadd.f32 %v18611_v14, %v24135_v54  ;;  %18841 = vmatprep.mubr.msk.bf16.mxu0 %vm386_vm0, %v14919_v49  ;;  %v14900_v50 = vld [vmem:[#allocation2 + $0x112] sm:$0xff]  ;;  %v14901_v36 = vld [vmem:[#allocation2 + $0x122] sm:$0xff]  ;;  %v14902_v49 = vld [vmem:[#allocation2 + $0x12a] sm:$0xff] }
 0xa62   : > { %v13184_v48 = vpop.f32.mrf.mxu0  ;;  %v14923_v8 = vpack.c.bf16 %v14902_v49, %v14901_v36 }
 0xa63   : > { %v13498_v56 = vpop.f32.mrf.mxu1  ;;  %v24243_v60 = vadd.f32 %v18649_v24, %v13289_v51  ;;  %v13287_v15 = vadd.f32 %v13184_v48, %v24141_v4  ;;  %v14922_v48 = vpack.c.bf16 %v14900_v50, %v14899_v61 }
 0xa64   : > { %v18612_v21 = vpop.f32.mrf.mxu0 }
 0xa65   : > { %v18650_v62 = vpop.f32.mrf.mxu1  ;;  %v24246_v13 = vadd.f32 %v13498_v56, %v13287_v15  ;;  %v13290_v7 = vadd.f32 %v18612_v21, %v24143_v53 }
 0xa66   : > { %v13187_v30 = vpop.f32.mrf.mxu0 }
 0xa67   : > { %v13501_v54 = vpop.f32.mrf.mxu1  ;;  %v24249_v37 = vadd.f32 %v18650_v62, %v13290_v7  ;;  %v13288_v44 = vadd.f32 %v13187_v30, %v24145_v34  ;;  %v14903_v30 = vld [vmem:[#allocation2 + $0x13a] sm:$0xff] }
 0xa68   : > { %v18615_v43 = vpop.f32.mrf.mxu0  ;;  %18842 = vmatmul.mubr.msk.bf16.gmra.mxu0 %vm386_vm0, %v14920_v16 }
 0xa69   : > { %v18653_v4 = vpop.f32.mrf.mxu1  ;;  %v24253_v17 = vadd.f32 %v13501_v54, %v13288_v44  ;;  %v13293_v52 = vadd.f32 %v18615_v43, %v24150_v10  ;;  %18845 = vmatprep.mubr.msk.bf16.mxu0 %vm386_vm0, %v14921_v35  ;;  %v14904_v54 = vld [vmem:[#allocation2 + $0x142] sm:$0xff]  ;;  %v14905_v44 = vld [vmem:[#allocation2 + $0x152] sm:$0xff]  ;;  %v14906_v35 = vld [vmem:[#allocation2 + $0x15a] sm:$0xff] }
 0xa6a   : > { %v13200_v59 = vpop.f32.mrf.mxu0  ;;  %v14925_v61 = vpack.c.bf16 %v14906_v35, %v14905_v44 }
 0xa6b   : > { %v13514_v53 = vpop.f32.mrf.mxu1  ;;  %v24257_v63 = vadd.f32 %v18653_v4, %v13293_v52  ;;  %v13291_v5 = vadd.f32 %v13200_v59, %v24155_v12  ;;  %v14924_v59 = vpack.c.bf16 %v14904_v54, %v14903_v30  ;;  %v14911_v54 = vld [vmem:[#allocation2 + $0x19a] sm:$0xff] }
 0xa6c   : > { %v18616_v34 = vpop.f32.mrf.mxu0 }
 0xa6d   : > { %v18654_v28 = vpop.f32.mrf.mxu1  ;;  %v24260_v14 = vadd.f32 %v13514_v53, %v13291_v5  ;;  %v13294_v24 = vadd.f32 %v18616_v34, %v24157_v0 }
 0xa6e   : > { %v13203_v51 = vpop.f32.mrf.mxu0 }
 0xa6f   : > { %v13517_v10 = vpop.f32.mrf.mxu1  ;;  %v24263_v56 = vadd.f32 %v18654_v28, %v13294_v24  ;;  %v13292_v15 = vadd.f32 %v13203_v51, %v24159_v20  ;;  %v14907_v51 = vld [vmem:[#allocation2 + $0x16a] sm:$0xff] }
 0xa70   : > { %v18619_v58 = vpop.f32.mrf.mxu0  ;;  %18846 = vmatmul.mubr.msk.bf16.gmra.mxu0 %vm386_vm0, %v14922_v48 }
 0xa71   : > { %v18657_v12 = vpop.f32.mrf.mxu1  ;;  %v24267_v21 = vadd.f32 %v13517_v10, %v13292_v15  ;;  %v13297_v62 = vadd.f32 %v18619_v58, %v24163_v18  ;;  %18849 = vmatprep.mubr.msk.bf16.mxu0 %vm386_vm0, %v14923_v8  ;;  %v14908_v10 = vld [vmem:[#allocation2 + $0x172] sm:$0xff] }
 0xa72   : > { %v13216_v9 = vpop.f32.mrf.mxu0 }
 0xa73   : > { %v13530_v0 = vpop.f32.mrf.mxu1  ;;  %v24271_v26 = vadd.f32 %v18657_v12, %v13297_v62  ;;  %v13295_v7 = vadd.f32 %v13216_v9, %v24168_v19  ;;  %v14926_v62 = vpack.c.bf16 %v14908_v10, %v14907_v51 }
 0xa74   : > { %v18620_v20 = vpop.f32.mrf.mxu0 }
 0xa75   : > { %v18658_v16 = vpop.f32.mrf.mxu1  ;;  %v24274_v43 = vadd.f32 %v13530_v0, %v13295_v7  ;;  %v13298_v4 = vadd.f32 %v18620_v20, %v24170_v23 }
 0xa76   : > { %v13219_v52 = vpop.f32.mrf.mxu0 }
 0xa77   : > { %v13533_v18 = vpop.f32.mrf.mxu1  ;;  %v24277_v53 = vadd.f32 %v18658_v16, %v13298_v4  ;;  %v13296_v5 = vadd.f32 %v13219_v52, %v24172_v45 }
 0xa78   : > { %v18623_v50 = vpop.f32.mrf.mxu0  ;;  %18850 = vmatmul.mubr.msk.bf16.gmra.mxu0 %vm386_vm0, %v14924_v59 }
 0xa79   : > { %v18661_v19 = vpop.f32.mrf.mxu1  ;;  %v24281_v34 = vadd.f32 %v13533_v18, %v13296_v5  ;;  %v13301_v28 = vadd.f32 %v18623_v50, %v24176_v11  ;;  %18853 = vmatprep.mubr.msk.bf16.mxu0 %vm386_vm0, %v14925_v61 }
 0xa7a   : > { %v13232_v36 = vpop.f32.mrf.mxu0 }
 0xa7b   : > { %v13546_v23 = vpop.f32.mrf.mxu1  ;;  %v24285_v49 = vadd.f32 %v18661_v19, %v13301_v28  ;;  %v13299_v24 = vadd.f32 %v13232_v36, %v24181_v31 }
 0xa7c   : > { %v18624_v45 = vpop.f32.mrf.mxu0 }
 0xa7d   : > { %v18662_v48 = vpop.f32.mrf.mxu1  ;;  %v24288_v15 = vadd.f32 %v13546_v23, %v13299_v24  ;;  %v13302_v8 = vadd.f32 %v18624_v45, %v24183_v38  ;;  %v14912_v38 = vld [vmem:[#allocation2 + $0x1a2] sm:$0xff] }
 0xa7e   : > { %v13235_v58 = vpop.f32.mrf.mxu0  ;;  %v14928_v52 = vpack.c.bf16 %v14912_v38, %v14911_v54 }
 0xa7f   : > { %v13549_v12 = vpop.f32.mrf.mxu1  ;;  %v24291_v11 = vadd.f32 %v18662_v48, %v13302_v8  ;;  %v13300_v9 = vadd.f32 %v13235_v58, %v24185_v42 }
 0xa80   : > { %v18627_v0 = vpop.f32.mrf.mxu0  ;;  %18854 = vmatmul.mubr.msk.bf16.gmra.mxu0 %vm386_vm0, %v14926_v62 }
 0xa81   : > { %v18665_v7 = vpop.f32.mrf.mxu1  ;;  %v24295_v31 = vadd.f32 %v13549_v12, %v13300_v9  ;;  %v13305_v30 = vadd.f32 %v18627_v0, %v24189_v29  ;;  %18857 = vmatprep.mubr.msk.bf16.mxu0 %vm386_vm0, %v24083_v57 }
 0xa82   : > { %v13248_v20 = vpop.f32.mrf.mxu0 }
 0xa83   : > { %v13562_v16 = vpop.f32.mrf.mxu1  ;;  %v24300_v44 = vadd.f32 %v18665_v7, %v13305_v30  ;;  %v13303_v35 = vadd.f32 %v13248_v20, %v24195_v33 }
 0xa84   : > { %v18628_v42 = vpop.f32.mrf.mxu0 }
 0xa85   : > { %v18666_v4 = vpop.f32.mrf.mxu1  ;;  %v24303_v18 = vadd.f32 %v13562_v16, %v13303_v35  ;;  %v13306_v59 = vadd.f32 %v18628_v42, %v24197_v46 }
 0xa86   : > { %v13251_v5 = vpop.f32.mrf.mxu0 }
 0xa87   : > { %v13565_v29 = vpop.f32.mrf.mxu1  ;;  %v24306_v61 = vadd.f32 %v18666_v4, %v13306_v59  ;;  %v13304_v57 = vadd.f32 %v13251_v5, %v24199_v22 }
 0xa88   : > { %v18631_v50 = vpop.f32.mrf.mxu0  ;;  %18858 = vmatmul.mubr.msk.bf16.gmra.mxu0 %vm386_vm0, %v14928_v52 }
 0xa89   : > { %v18669_v19 = vpop.f32.mrf.mxu1  ;;  %v24310_v28 = vadd.f32 %v13565_v29, %v13304_v57  ;;  %v13309_v33 = vadd.f32 %v18631_v50, %v24203_v25 }
 0xa8a   : > { %v13264_v36 = vpop.f32.mrf.mxu0 }
 0xa8b   : > { %v13578_v23 = vpop.f32.mrf.mxu1  ;;  %v24313_v24 = vadd.f32 %v18669_v19, %v13309_v33  ;;  %v13307_v46 = vadd.f32 %v13264_v36, %v24206_v27 }
 0xa8c   : > { %v18632_v51 = vpop.f32.mrf.mxu0 }
 0xa8d   : > { %v18670_v10 = vpop.f32.mrf.mxu1  ;;  %v24316_v45 = vadd.f32 %v13578_v23, %v13307_v46  ;;  %v13310_v22 = vadd.f32 %v18632_v51, %v24208_v3 }
 0xa8e   : > { %v13267_v48 = vpop.f32.mrf.mxu0 }
 0xa8f   : > { %v13581_v8 = vpop.f32.mrf.mxu1  ;;  %v24319_v58 = vadd.f32 %v18670_v10, %v13310_v22  ;;  %v13308_v12 = vadd.f32 %v13267_v48, %v24210_v55 }
 0xa90   : > { %v18679_v62 = vpop.f32.mrf.mxu0 }
 0xa91   : > { %v24322_v25 = vpop.f32.mrf.mxu1  ;;  %v24324_v9 = vadd.f32 %v13581_v8, %v13308_v12  ;;  %v24327_v0 = vadd.f32 %v18679_v62, %v24215_v2 }
 0xa92   : > { %v13780_v27 = vpop.f32.mrf.mxu0 }
 0xa93   : > { %v24329_v7 = vpop.f32.mrf.mxu1  ;;  %v24332_v30 = vadd.f32 %v13780_v27, %v24218_v1 }
 0xa94   : > { %v18680_v3 = vpop.f32.mrf.mxu0 }
 0xa95   : > { %v24334_v54 = vpop.f32.mrf.mxu1  ;;  %v24337_v38 = vadd.f32 %v18680_v3, %v24221_v41 }
 0xa96   : > { %v13783_v55 = vpop.f32.mrf.mxu0 }
 0xa97   : > { %v24339_v20 = vpop.f32.mrf.mxu1  ;;  %v24342_v16 = vadd.f32 %v13783_v55, %v24225_v40 }
 0xa98   : > { %v18683_v2 = vpop.f32.mrf.mxu0 }
 0xa99   : > { %v24344_v35 = vpop.f32.mrf.mxu1  ;;  %v24347_v42 = vadd.f32 %v18683_v2, %v24229_v6 }
 0xa9a   : > { %v13796_v1 = vpop.f32.mrf.mxu0 }
 0xa9b   : > { %v24349_v4 = vpop.f32.mrf.mxu1  ;;  %v24352_v52 = vadd.f32 %v13796_v1, %v24232_v47 }
 0xa9c   : > { %v18684_v41 = vpop.f32.mrf.mxu0 }
 0xa9d   : > { %v24354_v59 = vpop.f32.mrf.mxu1  ;;  %v24357_v5 = vadd.f32 %v18684_v41, %v24235_v32 }
 0xa9e   : > { %v13799_v40 = vpop.f32.mrf.mxu0 }
 0xa9f   : > { %v24359_v29 = vpop.f32.mrf.mxu1  ;;  %v24362_v57 = vadd.f32 %v13799_v40, %v24239_v39 }
 0xaa0   : > { %v18687_v6 = vpop.f32.mrf.mxu0 }
 0xaa1   : > { %v24364_v50 = vpop.f32.mrf.mxu1  ;;  %v24367_v19 = vadd.f32 %v18687_v6, %v24243_v60 }
 0xaa2   : > { %v13812_v47 = vpop.f32.mrf.mxu0 }
 0xaa3   : > { %v24369_v33 = vpop.f32.mrf.mxu1  ;;  %v24372_v36 = vadd.f32 %v13812_v47, %v24246_v13 }
 0xaa4   : > { %v18688_v32 = vpop.f32.mrf.mxu0 }
 0xaa5   : > { %v24374_v23 = vpop.f32.mrf.mxu1  ;;  %v24377_v46 = vadd.f32 %v18688_v32, %v24249_v37 }
 0xaa6   : > { %v13815_v39 = vpop.f32.mrf.mxu0 }
 0xaa7   : > { %v24379_v51 = vpop.f32.mrf.mxu1  ;;  %v24382_v10 = vadd.f32 %v13815_v39, %v24253_v17 }
 0xaa8   : > { %v18691_v60 = vpop.f32.mrf.mxu0 }
 0xaa9   : > { %v24384_v22 = vpop.f32.mrf.mxu1  ;;  %v24387_v48 = vadd.f32 %v18691_v60, %v24257_v63 }
 0xaaa   : > { %v13828_v13 = vpop.f32.mrf.mxu0 }
 0xaab   : > { %v24389_v8 = vpop.f32.mrf.mxu1  ;;  %v24392_v12 = vadd.f32 %v13828_v13, %v24260_v14 }
 0xaac   : > { %v18692_v37 = vpop.f32.mrf.mxu0 }
 0xaad   : > { %v24394_v62 = vpop.f32.mrf.mxu1  ;;  %v24397_v27 = vadd.f32 %v18692_v37, %v24263_v56 }
 0xaae   : > { %25327 = vst [vmem:[#allocation41_spill] sm:$0xff] %v24394_v62  ;;  %v13831_v17 = vpop.f32.mrf.mxu0 }
 0xaaf   : > { %v24399_v3 = vpop.f32.mrf.mxu1  ;;  %v24402_v55 = vadd.f32 %v13831_v17, %v24267_v21 }
 0xab0   : > { %25328 = vst [vmem:[#allocation74_spill] sm:$0xff] %v24399_v3  ;;  %v18695_v63 = vpop.f32.mrf.mxu0 }
 0xab1   : > { %25329 = vst [vmem:[#allocation45_spill] sm:$0xff] %v24402_v55  ;;  %v24404_v2 = vpop.f32.mrf.mxu1  ;;  %v24407_v1 = vadd.f32 %v18695_v63, %v24271_v26 }
 0xab2   : > { %25330 = vst [vmem:[#allocation54_spill] sm:$0xff] %v24404_v2  ;;  %v13844_v14 = vpop.f32.mrf.mxu0 }
 0xab3   : > { %25331 = vst [vmem:[#allocation53_spill] sm:$0xff] %v24407_v1  ;;  %v24409_v41 = vpop.f32.mrf.mxu1  ;;  %v24412_v40 = vadd.f32 %v13844_v14, %v24274_v43 }
 0xab4   : > { %25332 = vst [vmem:[#allocation50_spill] sm:$0xff] %v24409_v41  ;;  %v18696_v56 = vpop.f32.mrf.mxu0 }
 0xab5   : > { %25333 = vst [vmem:[#allocation76_spill] sm:$0xff] %v24412_v40  ;;  %v24414_v6 = vpop.f32.mrf.mxu1  ;;  %v24417_v47 = vadd.f32 %v18696_v56, %v24277_v53 }
 0xab6   : > { %25334 = vst [vmem:[#allocation80_spill] sm:$0xff] %v24414_v6  ;;  %v13847_v21 = vpop.f32.mrf.mxu0 }
 0xab7   : > { %25335 = vst [vmem:[#allocation59_spill] sm:$0xff] %v24417_v47  ;;  %v24419_v32 = vpop.f32.mrf.mxu1  ;;  %v24422_v39 = vadd.f32 %v13847_v21, %v24281_v34 }
 0xab8   : > { %25336 = vst [vmem:[#allocation62_spill] sm:$0xff] %v24419_v32  ;;  %v18699_v26 = vpop.f32.mrf.mxu0 }
 0xab9   : > { %25337 = vst [vmem:[#allocation49_spill] sm:$0xff] %v24422_v39  ;;  %v24424_v60 = vpop.f32.mrf.mxu1  ;;  %v24427_v13 = vadd.f32 %v18699_v26, %v24285_v49 }
 0xaba   : > { %25338 = vst [vmem:[#allocation70_spill] sm:$0xff] %v24424_v60  ;;  %v13860_v43 = vpop.f32.mrf.mxu0 }
 0xabb   : > { %25339 = vst [vmem:[#allocation44_spill] sm:$0xff] %v24427_v13  ;;  %v24429_v37 = vpop.f32.mrf.mxu1  ;;  %v24432_v17 = vadd.f32 %v13860_v43, %v24288_v15 }
 0xabc   : > { %25340 = vst [vmem:[#allocation60_spill] sm:$0xff] %v24429_v37  ;;  %v18700_v53 = vpop.f32.mrf.mxu0 }
 0xabd   : > { %25341 = vst [vmem:[#allocation67_spill] sm:$0xff] %v24432_v17  ;;  %v24434_v63 = vpop.f32.mrf.mxu1  ;;  %v24437_v14 = vadd.f32 %v18700_v53, %v24291_v11 }
 0xabe   : > { %25342 = vst [vmem:[#allocation79_spill] sm:$0xff] %v24434_v63  ;;  %v13863_v34 = vpop.f32.mrf.mxu0 }
 0xabf   : > { %25343 = vst [vmem:[#allocation57_spill] sm:$0xff] %v24437_v14  ;;  %v24439_v56 = vpop.f32.mrf.mxu1  ;;  %v24442_v21 = vadd.f32 %v13863_v34, %v24295_v31 }
 0xac0   : > { %25344 = vst [vmem:[#allocation84_spill] sm:$0xff] %v24439_v56  ;;  %v18703_v49 = vpop.f32.mrf.mxu0 }
 0xac1   : > { %25345 = vst [vmem:[#allocation43_spill] sm:$0xff] %v24442_v21  ;;  %v24444_v26 = vpop.f32.mrf.mxu1  ;;  %v24447_v37 = vadd.f32 %v18703_v49, %v24300_v44 }
 0xac2   : > { %25346 = vst [vmem:[#allocation63_spill] sm:$0xff] %v24444_v26  ;;  %v13876_v15 = vpop.f32.mrf.mxu0 }
 0xac3   : > { %25347 = vst [vmem:[#allocation69_spill] sm:$0xff] %v24447_v37  ;;  %v24449_v43 = vpop.f32.mrf.mxu1  ;;  %v24452_v63 = vadd.f32 %v13876_v15, %v24303_v18 }
 0xac4   : > { %25348 = vst [vmem:[#allocation75_spill] sm:$0xff] %v24449_v43  ;;  %v18704_v11 = vpop.f32.mrf.mxu0 }
 0xac5   : > { %25349 = vst [vmem:[#allocation58_spill] sm:$0xff] %v24452_v63  ;;  %v24454_v53 = vpop.f32.mrf.mxu1  ;;  %v24457_v56 = vadd.f32 %v18704_v11, %v24306_v61 }
 0xac6   : > { %25350 = vst [vmem:[#allocation51_spill] sm:$0xff] %v24454_v53  ;;  %v13879_v31 = vpop.f32.mrf.mxu0 }
 0xac7   : > { %25351 = vst [vmem:[#allocation72_spill] sm:$0xff] %v24457_v56  ;;  %v24459_v34 = vpop.f32.mrf.mxu1  ;;  %v24462_v26 = vadd.f32 %v13879_v31, %v24310_v28 }
 0xac8   : > { %25352 = vst [vmem:[#allocation71_spill] sm:$0xff] %v24459_v34  ;;  %v18707_v44 = vpop.f32.mrf.mxu0 }
 0xac9   : > { %25353 = vst [vmem:[#allocation52_spill] sm:$0xff] %v24462_v26  ;;  %v24464_v49 = vpop.f32.mrf.mxu1  ;;  %v24467_v43 = vadd.f32 %v18707_v44, %v24313_v24 }
 0xaca   : > { %25354 = vst [vmem:[#allocation47_spill] sm:$0xff] %v24464_v49  ;;  %v13892_v18 = vpop.f32.mrf.mxu0 }
 0xacb   : > { %25355 = vst [vmem:[#allocation81_spill] sm:$0xff] %v24467_v43  ;;  %v24469_v15 = vpop.f32.mrf.mxu1  ;;  %v24472_v53 = vadd.f32 %v13892_v18, %v24316_v45 }
 0xacc   : > { %25356 = vst [vmem:[#allocation82_spill] sm:$0xff] %v24469_v15  ;;  %v18708_v61 = vpop.f32.mrf.mxu0 }
 0xacd   : > { %25357 = vst [vmem:[#allocation66_spill] sm:$0xff] %v24472_v53  ;;  %v24474_v11 = vpop.f32.mrf.mxu1  ;;  %v24477_v34 = vadd.f32 %v18708_v61, %v24319_v58 }
 0xace   : > { %25358 = vst [vmem:[#allocation61_spill] sm:$0xff] %v24474_v11  ;;  %v13895_v28 = vpop.f32.mrf.mxu0 }
 0xacf   : > { %25359 = vst [vmem:[#allocation78_spill] sm:$0xff] %v24477_v34  ;;  %v24479_v31 = vpop.f32.mrf.mxu1  ;;  %v24482_v49 = vadd.f32 %v13895_v28, %v24324_v9 }
 0xad0   : > { %25360 = vst [vmem:[#allocation48_spill] sm:$0xff] %v24479_v31  ;;  %v18755_v24 = vpop.f32.mrf.mxu0 }
 0xad1   : > { %25361 = vst [vmem:[#allocation65_spill] sm:$0xff] %v24482_v49  ;;  %v18793_v44 = vpop.f32.mrf.mxu1 }
 0xad2   : > { %v14408_v43 = vpop.f32.mrf.mxu0 }
 0xad3   : > { %v14722_v26 = vpop.f32.mrf.mxu1 }
 0xad4   : > { %v18756_v15 = vpop.f32.mrf.mxu0 }
 0xad5   : > { %v18794_v45 = vpop.f32.mrf.mxu1 }
 0xad6   : > { %v14411_v56 = vpop.f32.mrf.mxu0 }
 0xad7   : > { %v24486_v11 = vpop.f32.mrf.mxu1 }
 0xad8   : > { %v18759_v18 = vpop.f32.mrf.mxu0 }
 0xad9   : > { %v24492_v31 = vpop.f32.mrf.mxu1 }
 0xada   : > { %v24484_v53 = vpop.f32.mrf.mxu0 }
 0xadb   : > { %v24498_v49 = vpop.f32.mrf.mxu1 }
 0xadc   : > { %v24488_v58 = vpop.f32.mrf.mxu0 }
 0xadd   : > { %v24504_v37 = vpop.f32.mrf.mxu1 }
 0xade   : > { %v24490_v61 = vpop.f32.mrf.mxu0 }
 0xadf   : > { %v24510_v17 = vpop.f32.mrf.mxu1 }
 0xae0   : > { %v24494_v9 = vpop.f32.mrf.mxu0 }
 0xae1   : > { %v24516_v32 = vpop.f32.mrf.mxu1 }
 0xae2   : > { %v24496_v28 = vpop.f32.mrf.mxu0 }
 0xae3   : > { %v24522_v47 = vpop.f32.mrf.mxu1 }
 0xae4   : > { %v24500_v34 = vpop.f32.mrf.mxu0 }
 0xae5   : > { %v24528_v2 = vpop.f32.mrf.mxu1 }
 0xae6   : > { %v24502_v63 = vpop.f32.mrf.mxu0 }
 0xae8   : > { %v24506_v21 = vpop.f32.mrf.mxu0 }
 0xaea   : > { %v24508_v14 = vpop.f32.mrf.mxu0 }
 0xaeb   : > { %25362 = vst [vmem:[#allocation46_spill] sm:$0xff] %v24508_v14 }
 0xaec   : > { %v24512_v60 = vpop.f32.mrf.mxu0 }
 0xaed   : > { %25363 = vst [vmem:[#allocation38_spill] sm:$0xff] %v24512_v60  ;;  %v24534_v60 = vpop.f32.mrf.mxu1 }
 0xaee   : > { %v24514_v13 = vpop.f32.mrf.mxu0 }
 0xaef   : > { %25364 = vst [vmem:[#allocation68_spill] sm:$0xff] %v24514_v13 }
 0xaf0   : > { %v24518_v39 = vpop.f32.mrf.mxu0 }
 0xaf1   : > { %25365 = vst [vmem:[#allocation40_spill] sm:$0xff] %v24518_v39  ;;  %v24540_v39 = vpop.f32.mrf.mxu1 }
 0xaf2   : > { %v24520_v6 = vpop.f32.mrf.mxu0  ;;  %25373 = vst [vmem:[#allocation55_spill] sm:$0xff] %v24540_v39 }
 0xaf3   : > { %25366 = vst [vmem:[#allocation39_spill] sm:$0xff] %v24520_v6 }
 0xaf4   : > { %v24524_v41 = vpop.f32.mrf.mxu0 }
 0xaf5   : > { %25367 = vst [vmem:[#allocation64_spill] sm:$0xff] %v24524_v41  ;;  %v24546_v41 = vpop.f32.mrf.mxu1 }
 0xaf6   : > { %v24526_v40 = vpop.f32.mrf.mxu0  ;;  %25376 = vst [vmem:[#allocation87_spill] sm:$0xff] %v24546_v41 }
 0xaf7   : > { %25368 = vst [vmem:[#allocation73_spill] sm:$0xff] %v24526_v40 }
 0xaf8   : > { %v24530_v1 = vpop.f32.mrf.mxu0 }
 0xaf9   : > { %25369 = vst [vmem:[#allocation56_spill] sm:$0xff] %v24530_v1  ;;  %v24552_v1 = vpop.f32.mrf.mxu1 }
 0xafa   : > { %v24532_v3 = vpop.f32.mrf.mxu0  ;;  %25379 = vst [vmem:[#allocation90_spill] sm:$0xff] %v24552_v1 }
 0xafb   : > { %25370 = vst [vmem:[#allocation77_spill] sm:$0xff] %v24532_v3  ;;  %v24562_v39 = vpop.f32.mrf.mxu1 }
 0xafc   : > { %v24536_v13 = vpop.f32.mrf.mxu0 }
 0xafd   : > { %25371 = vst [vmem:[#allocation42_spill] sm:$0xff] %v24536_v13 }
 0xafe   : > { %v24538_v55 = vpop.f32.mrf.mxu0 }
 0xaff   : > { %25372 = vst [vmem:[#allocation83_spill] sm:$0xff] %v24538_v55  ;;  %v14223_v55 = vadd.f32 %v24322_v25, %v24327_v0 }
 0xb00   : > { %v24542_v6 = vpop.f32.mrf.mxu0 }
 0xb01   : > { %25374 = vst [vmem:[#allocation85_spill] sm:$0xff] %v24542_v6  ;;  %v14221_v6 = vadd.f32 %v24329_v7, %v24332_v30  ;;  %v14227_v7 = vadd.f32 %v24344_v35, %v24347_v42 }
 0xb02   : > { %v24544_v14 = vpop.f32.mrf.mxu0 }
 0xb03   : > { %25375 = vst [vmem:[#allocation86_spill] sm:$0xff] %v24544_v14  ;;  %v14537_v14 = vadd.f32 %v18755_v24, %v14223_v55  ;;  %v14226_v24 = vadd.f32 %v24359_v29, %v24362_v57 }
 0xb04   : > { %v24548_v40 = vpop.f32.mrf.mxu0 }
 0xb05   : > { %25377 = vst [vmem:[#allocation88_spill] sm:$0xff] %v24548_v40  ;;  %v14535_v40 = vadd.f32 %v14408_v43, %v14221_v6  ;;  %v14851_v25 = vadd.f32 %v18793_v44, %v14537_v14  ;;  %v14540_v29 = vadd.f32 %v24490_v61, %v14226_v24 }
 0xb06   : > { %v24550_v62 = vpop.f32.mrf.mxu0 }
 0xb07   : > { %25378 = vst [vmem:[#allocation89_spill] sm:$0xff] %v24550_v62  ;;  %v14224_v62 = vadd.f32 %v24334_v54, %v24337_v38  ;;  %v24580_v54 = vld [vmem:[%s24897_s10] ss:$0 sm:$0xff]  ;;  %v14849_v38 = vadd.f32 %v14722_v26, %v14535_v40 }
 0xb08   : > { %v24554_v3 = vpop.f32.mrf.mxu0 }
 0xb09   : > { %25380 = vst [vmem:[#allocation91_spill] sm:$0xff] %v24554_v3  ;;  %v14222_v3 = vadd.f32 %v24339_v20, %v24342_v16  ;;  %v14538_v0 = vadd.f32 %v18756_v15, %v14224_v62  ;;  %v14225_v20 = vadd.f32 %v24349_v4, %v24352_v52  ;;  %v14541_v16 = vadd.f32 %v18759_v18, %v14227_v7 }
 0xb0a   : > { %v24558_v13 = vpop.f32.mrf.mxu0  ;;  %v14228_v15 = vadd.f32 %v24354_v59, %v24357_v5  ;;  %v25382_v59 = vld [vmem:[#allocation12_spill] sm:$0xff]  ;;  %v14231_v7 = vadd.f32 %v24364_v50, %v24367_v19  ;;  %v14229_v50 = vadd.f32 %v24369_v33, %v24372_v36  ;;  %v14854_v33 = vadd.f32 %v24510_v17, %v14540_v29 }
 0xb0b   : > { %25381 = vst [vmem:[#allocation92_spill] sm:$0xff] %v24558_v13  ;;  %v24572_v13 = vpop.f32.mrf.mxu1  ;;  %v14536_v55 = vadd.f32 %v14411_v56, %v14222_v3  ;;  %v14852_v14 = vadd.f32 %v18794_v45, %v14538_v0  ;;  %v14539_v40 = vadd.f32 %v24484_v53, %v14225_v20  ;;  %v14855_v44 = vadd.f32 %v24492_v31, %v14541_v16  ;;  %v25383_v31 = vld [vmem:[#allocation6_spill] sm:$0xff]  ;;  %v25384_v16 = vld [vmem:[#allocation13_spill] sm:$0xff] }
 0xb0c   : > { %v24564_v41 = vpop.f32.mrf.mxu0  ;;  %v14542_v45 = vadd.f32 %v24488_v58, %v14228_v15  ;;  %v14232_v15 = vadd.f32 %v24374_v23, %v24377_v46  ;;  %v14543_v36 = vadd.f32 %v24496_v28, %v14229_v50  ;;  %v25386_v28 = vld [vmem:[#allocation20_spill] sm:$0xff] }
 0xb0d   : > { %v24584_v43 = vpop.f32.mrf.mxu1  ;;  %v14850_v56 = vadd.f32 %v24486_v11, %v14536_v55 }
 0xb0e   : > { %v24568_v1 = vpop.f32.mrf.mxu0  ;;  %v14856_v19 = vadd.f32 %v24504_v37, %v14542_v45  ;;  %v14546_v23 = vadd.f32 %v24500_v34, %v14232_v15  ;;  %v25387_v34 = vld [vmem:[#allocation14_spill] sm:$0xff] }
 0xb10   : > { %v18831_v30 = vpop.f32.mrf.mxu0 }
 0xb11   : > { %v15165_v6 = vadd.f32 %v18831_v30, %v14851_v25  ;;  %v24598_v25 = vpop.f32.mrf.mxu1  ;;  %v14853_v30 = vadd.f32 %v24498_v49, %v14539_v40  ;;  %v14545_v49 = vadd.f32 %v24494_v9, %v14231_v7  ;;  %v25385_v9 = vld [vmem:[#allocation7_spill] sm:$0xff]  ;;  %v14233_v7 = vadd.f32 %v24389_v8, %v24392_v12  ;;  %v25390_v12 = vld [vmem:[#allocation46_spill] sm:$0xff] }
 0xb12   : > { %v15036_v62 = vpop.f32.mrf.mxu0 }
 0xb13   : > { %v15204_v35 = vadd.f32 %v24580_v54, %v15165_v6  ;;  %v15163_v42 = vadd.f32 %v15036_v62, %v14849_v38  ;;  %v24616_v20 = vpop.f32.mrf.mxu1 }
 0xb14   : > { %v18832_v3 = vpop.f32.mrf.mxu0 }
 0xb15   : > { %v15236_v26 = vmul.f32 0.2, %v15204_v35  ;;  %v15202_v4 = vadd.f32 %v24580_v54, %v15163_v42  ;;  %v15166_v52 = vadd.f32 %v18832_v3, %v14852_v14  ;;  %v24634_v17 = vpop.f32.mrf.mxu1 }
 0xb16   : > { %v15039_v18 = vpop.f32.mrf.mxu0 }
 0xb17   : > { %v15268_v5 = vadd.f32 %v15236_v26, %v25382_v59  ;;  %v15234_v53 = vmul.f32 0.2, %v15202_v4  ;;  %v15205_v0 = vadd.f32 %v24580_v54, %v15166_v52  ;;  %v15164_v11 = vadd.f32 %v15039_v18, %v14850_v56 }
 0xb18   : > { %v18835_v57 = vpop.f32.mrf.mxu0  ;;  %v14230_v4 = vadd.f32 %v24379_v51, %v24382_v10  ;;  %v14859_v52 = vadd.f32 %v24516_v32, %v14545_v49  ;;  %v14235_v59 = vadd.f32 %v24384_v22, %v24387_v48  ;;  %v14857_v51 = vadd.f32 %v24522_v47, %v14543_v36  ;;  %v24652_v47 = vpop.f32.mrf.mxu1  ;;  %v25396_v36 = vld [vmem:[#allocation28_spill] sm:$0xff] }
 0xb19   : > { %15300 = vst.msk [vmem:[%s24606_s25 + $0x10] sm:$0xff] %vm474_vm1, %v15268_v5  ;;  %v15266_v58 = vadd.f32 %v15234_v53, %v25383_v31  ;;  %v15237_v38 = vmul.f32 0.2, %v15205_v0  ;;  %v15203_v55 = vadd.f32 %v24580_v54, %v15164_v11  ;;  %v15169_v6 = vadd.f32 %v18835_v57, %v14855_v44 }
 0xb1a   : > { %v15052_v61 = vpop.f32.mrf.mxu0  ;;  %v14544_v10 = vadd.f32 %v24502_v63, %v14230_v4  ;;  %v14549_v22 = vadd.f32 %v24506_v21, %v14235_v59  ;;  %v25388_v63 = vld [vmem:[#allocation21_spill] sm:$0xff] }
 0xb1b   : > { %15298 = vst.msk [vmem:[%s24606_s25] sm:$0xff] %vm474_vm1, %v15266_v58  ;;  %v15269_v62 = vadd.f32 %v15237_v38, %v25384_v16  ;;  %v15235_v14 = vmul.f32 0.2, %v15203_v55  ;;  %v15208_v35 = vadd.f32 %v24580_v54, %v15169_v6  ;;  %v15167_v42 = vadd.f32 %v15052_v61, %v14853_v30  ;;  %v25389_v38 = vld [vmem:[#allocation41_spill] sm:$0xff]  ;;  %v25391_v6 = vld [vmem:[#allocation15_spill] sm:$0xff] }
 0xb1c   : > { %v18836_v37 = vpop.f32.mrf.mxu0  ;;  %v14860_v30 = vadd.f32 %v24528_v2, %v14546_v23  ;;  %v14236_v55 = vadd.f32 %v25389_v38, %v24397_v27  ;;  %v14858_v8 = vadd.f32 %v24534_v60, %v14544_v10  ;;  %v14547_v2 = vadd.f32 %v25390_v12, %v14233_v7  ;;  %v25392_v16 = vld [vmem:[#allocation45_spill] sm:$0xff]  ;;  %v25395_v27 = vld [vmem:[#allocation38_spill] sm:$0xff]  ;;  %v25402_v10 = vld [vmem:[#allocation76_spill] sm:$0xff] }
 0xb1d   : > { %15301 = vst.msk [vmem:[%s24606_s25 + $0x18] sm:$0xff] %vm474_vm1, %v15269_v62  ;;  %v15267_v40 = vadd.f32 %v15235_v14, %v25385_v9  ;;  %v15240_v3 = vmul.f32 0.2, %v15208_v35  ;;  %v15206_v56 = vadd.f32 %v24580_v54, %v15167_v42  ;;  %v15170_v26 = vadd.f32 %v18836_v37, %v14856_v19  ;;  %v25393_v62 = vld [vmem:[#allocation74_spill] sm:$0xff]  ;;  %v25394_v35 = vld [vmem:[#allocation55_spill] sm:$0xff] }
 0xb1e   : > { %v15055_v46 = vpop.f32.mrf.mxu0  ;;  %v14234_v14 = vadd.f32 %v25393_v62, %v25392_v16  ;;  %v14863_v42 = vadd.f32 %v25394_v35, %v14549_v22  ;;  %v14550_v15 = vadd.f32 %v25395_v27, %v14236_v55  ;;  %v25406_v22 = vld [vmem:[#allocation29_spill] sm:$0xff]  ;;  %v25412_v16 = vld [vmem:[#allocation62_spill] sm:$0xff]  ;;  %v25413_v35 = vld [vmem:[#allocation64_spill] sm:$0xff] }
 0xb1f   : > { %15299 = vst.msk [vmem:[%s24606_s25 + $0x8] sm:$0xff] %vm474_vm1, %v15267_v40  ;;  %v15272_v24 = vadd.f32 %v15240_v3, %v25386_v28  ;;  %v15238_v44 = vmul.f32 0.2, %v15206_v56  ;;  %v15209_v45 = vadd.f32 %v24580_v54, %v15170_v26  ;;  %v15168_v18 = vadd.f32 %v15055_v46, %v14854_v33  ;;  %v24670_v33 = vpop.f32.mrf.mxu1  ;;  %v25397_v56 = vld [vmem:[#allocation53_spill] sm:$0xff]  ;;  %v25398_v26 = vld [vmem:[#allocation54_spill] sm:$0xff]  ;;  %v25400_v46 = vld [vmem:[#allocation68_spill] sm:$0xff] }
 0xb20   : > { %v18839_v32 = vpop.f32.mrf.mxu0  ;;  %v14239_v4 = vadd.f32 %v25398_v26, %v25397_v56  ;;  %v14548_v28 = vadd.f32 %v25400_v46, %v14234_v14 }
 0xb21   : > { %15304 = vst.msk [vmem:[%s24606_s25 + $0x30] sm:$0xff] %vm474_vm1, %v15272_v24  ;;  %v15270_v5 = vadd.f32 %v15238_v44, %v25387_v34  ;;  %v15241_v53 = vmul.f32 0.2, %v15209_v45  ;;  %v15207_v0 = vadd.f32 %v24580_v54, %v15168_v18  ;;  %v15173_v11 = vadd.f32 %v18839_v32, %v14859_v52  ;;  %v25399_v52 = vld [vmem:[#allocation87_spill] sm:$0xff]  ;;  %v25401_v44 = vld [vmem:[#allocation22_spill] sm:$0xff] }
 0xb22   : > { %v15068_v48 = vpop.f32.mrf.mxu0  ;;  %v14861_v23 = vadd.f32 %v25399_v52, %v14547_v2  ;;  %v25403_v32 = vld [vmem:[#allocation50_spill] sm:$0xff]  ;;  %v14862_v55 = vadd.f32 %v24562_v39, %v14548_v28 }
 0xb23   : > { %15302 = vst.msk [vmem:[%s24606_s25 + $0x20] sm:$0xff] %vm474_vm1, %v15270_v5  ;;  %v15273_v29 = vadd.f32 %v15241_v53, %v25388_v63  ;;  %v15239_v57 = vmul.f32 0.2, %v15207_v0  ;;  %v15212_v31 = vadd.f32 %v24580_v54, %v15173_v11  ;;  %v15171_v58 = vadd.f32 %v15068_v48, %v14857_v51  ;;  %v25404_v5 = vld [vmem:[#allocation90_spill] sm:$0xff]  ;;  %v25405_v0 = vld [vmem:[#allocation40_spill] sm:$0xff] }
 0xb24   : > { %v18840_v21 = vpop.f32.mrf.mxu0  ;;  %v14237_v34 = vadd.f32 %v25403_v32, %v25402_v10  ;;  %v14864_v53 = vadd.f32 %v25404_v5, %v14550_v15  ;;  %v14553_v11 = vadd.f32 %v25405_v0, %v14239_v4  ;;  %v25414_v15 = vld [vmem:[#allocation8_spill] sm:$0xff]  ;;  %v25422_v5 = vld [vmem:[#allocation9_spill] sm:$0xff] }
 0xb25   : > { %15305 = vst.msk [vmem:[%s24606_s25 + $0x38] sm:$0xff] %vm474_vm1, %v15273_v29  ;;  %v15271_v50 = vadd.f32 %v15239_v57, %v25391_v6  ;;  %v15244_v19 = vmul.f32 0.2, %v15212_v31  ;;  %v15210_v49 = vadd.f32 %v24580_v54, %v15171_v58  ;;  %v15174_v61 = vadd.f32 %v18840_v21, %v14860_v30  ;;  %v24688_v30 = vpop.f32.mrf.mxu1  ;;  %v25407_v31 = vld [vmem:[#allocation59_spill] sm:$0xff]  ;;  %v25408_v58 = vld [vmem:[#allocation80_spill] sm:$0xff] }
 0xb26   : > { %v15071_v60 = vpop.f32.mrf.mxu0  ;;  %v14240_v38 = vadd.f32 %v25408_v58, %v25407_v31  ;;  %v25410_v21 = vld [vmem:[#allocation23_spill] sm:$0xff]  ;;  %v14867_v14 = vadd.f32 %v24572_v13, %v14553_v11  ;;  %v25417_v13 = vld [vmem:[#allocation73_spill] sm:$0xff]  ;;  %v25421_v10 = vld [vmem:[#allocation56_spill] sm:$0xff] }
 0xb27   : > { %15303 = vst.msk [vmem:[%s24606_s25 + $0x28] sm:$0xff] %vm474_vm1, %v15271_v50  ;;  %v15276_v37 = vadd.f32 %v15244_v19, %v25396_v36  ;;  %v15242_v9 = vmul.f32 0.2, %v15210_v49  ;;  %v15213_v40 = vadd.f32 %v24580_v54, %v15174_v61  ;;  %v15172_v3 = vadd.f32 %v15071_v60, %v14858_v8  ;;  %v25409_v8 = vld [vmem:[#allocation39_spill] sm:$0xff]  ;;  %v25411_v61 = vld [vmem:[#allocation49_spill] sm:$0xff]  ;;  %v24706_v27 = vpop.f32.mrf.mxu1 }
 0xb28   : > { %v18843_v24 = vpop.f32.mrf.mxu0  ;;  %v14551_v12 = vadd.f32 %v25409_v8, %v14237_v34  ;;  %v14238_v62 = vadd.f32 %v25412_v16, %v25411_v61  ;;  %v25426_v58 = vld [vmem:[#allocation31_spill] sm:$0xff]  ;;  %v25430_v16 = vld [vmem:[#allocation16_spill] sm:$0xff] }
 0xb29   : > { %15308 = vst.msk [vmem:[%s24606_s25 + $0x50] sm:$0xff] %vm474_vm1, %v15276_v37  ;;  %v15274_v45 = vadd.f32 %v15242_v9, %v25401_v44  ;;  %v15245_v18 = vmul.f32 0.2, %v15213_v40  ;;  %v15211_v59 = vadd.f32 %v24580_v54, %v15172_v3  ;;  %v15177_v51 = vadd.f32 %v18843_v24, %v14863_v42  ;;  %v25415_v40 = vld [vmem:[#allocation44_spill] sm:$0xff]  ;;  %v25416_v3 = vld [vmem:[#allocation70_spill] sm:$0xff]  ;;  %v24724_v34 = vpop.f32.mrf.mxu1 }
 0xb2a   : > { %v15084_v7 = vpop.f32.mrf.mxu0  ;;  %v14554_v42 = vadd.f32 %v25413_v35, %v14240_v38  ;;  %v14243_v56 = vadd.f32 %v25416_v3, %v25415_v40  ;;  %v14865_v26 = vadd.f32 %v24584_v43, %v14551_v12  ;;  %v14552_v4 = vadd.f32 %v25417_v13, %v14238_v62  ;;  %v25434_v40 = vld [vmem:[#allocation10_spill] sm:$0xff] }
 0xb2b   : > { %15306 = vst.msk [vmem:[%s24606_s25 + $0x40] sm:$0xff] %vm474_vm1, %v15274_v45  ;;  %v15277_v48 = vadd.f32 %v15245_v18, %v25406_v22  ;;  %v15243_v63 = vmul.f32 0.2, %v15211_v59  ;;  %v15216_v29 = vadd.f32 %v24580_v54, %v15177_v51  ;;  %v15175_v57 = vadd.f32 %v15084_v7, %v14861_v23  ;;  %v25418_v23 = vld [vmem:[#allocation30_spill] sm:$0xff]  ;;  %v25419_v45 = vld [vmem:[#allocation67_spill] sm:$0xff]  ;;  %v25420_v18 = vld [vmem:[#allocation60_spill] sm:$0xff]  ;;  %v18818_v61 = vpop.f32.mrf.mxu1 }
 0xb2c   : > { %v18844_v2 = vpop.f32.mrf.mxu0  ;;  %v14241_v59 = vadd.f32 %v25420_v18, %v25419_v45  ;;  %v14868_v51 = vadd.f32 %v24598_v25, %v14554_v42  ;;  %v14557_v32 = vadd.f32 %v25421_v10, %v14243_v56  ;;  %v25423_v22 = vld [vmem:[#allocation57_spill] sm:$0xff] }
 0xb2d   : > { %15309 = vst.msk [vmem:[%s24606_s25 + $0x58] sm:$0xff] %vm474_vm1, %v15277_v48  ;;  %v15275_v6 = vadd.f32 %v15243_v63, %v25410_v21  ;;  %v15248_v50 = vmul.f32 0.2, %v15216_v29  ;;  %v15214_v19 = vadd.f32 %v24580_v54, %v15175_v57  ;;  %v15178_v49 = vadd.f32 %v18844_v2, %v14864_v53  ;;  %v25424_v48 = vld [vmem:[#allocation79_spill] sm:$0xff]  ;;  %v25425_v25 = vld [vmem:[#allocation77_spill] sm:$0xff]  ;;  %v25428_v21 = vld [vmem:[#allocation84_spill] sm:$0xff] }
 0xb2e   : > { %v15087_v39 = vpop.f32.mrf.mxu0  ;;  %v14244_v63 = vadd.f32 %v25424_v48, %v25423_v22  ;;  %v14866_v29 = vadd.f32 %v24616_v20, %v14552_v4  ;;  %v14555_v57 = vadd.f32 %v25425_v25, %v14241_v59  ;;  %v25427_v2 = vld [vmem:[#allocation43_spill] sm:$0xff]  ;;  %v25435_v4 = vld [vmem:[#allocation58_spill] sm:$0xff]  ;;  %v25438_v45 = vld [vmem:[#allocation17_spill] sm:$0xff] }
 0xb2f   : > { %15307 = vst.msk [vmem:[%s24606_s25 + $0x48] sm:$0xff] %vm474_vm1, %v15275_v6  ;;  %v15280_v60 = vadd.f32 %v15248_v50, %v25414_v15  ;;  %v15246_v36 = vmul.f32 0.2, %v15214_v19  ;;  %v15217_v37 = vadd.f32 %v24580_v54, %v15178_v49  ;;  %v15176_v9 = vadd.f32 %v15087_v39, %v14862_v55  ;;  %v25429_v19 = vld [vmem:[#allocation42_spill] sm:$0xff]  ;;  %v25431_v39 = vld [vmem:[#allocation69_spill] sm:$0xff]  ;;  %v25432_v15 = vld [vmem:[#allocation63_spill] sm:$0xff] }
 0xb30   : > { %v18847_v52 = vpop.f32.mrf.mxu0  ;;  %v14242_v6 = vadd.f32 %v25428_v21, %v25427_v2  ;;  %v14871_v50 = vadd.f32 %v24634_v17, %v14557_v32  ;;  %v14558_v49 = vadd.f32 %v25429_v19, %v14244_v63  ;;  %v25439_v32 = vld [vmem:[#allocation72_spill] sm:$0xff]  ;;  %v25442_v22 = vld [vmem:[#allocation11_spill] sm:$0xff]  ;;  %v25447_v19 = vld [vmem:[#allocation81_spill] sm:$0xff] }
 0xb31   : > { %15312 = vst.msk [vmem:[%s24606_s25 + $0x70] sm:$0xff] %vm474_vm1, %v15280_v60  ;;  %v15278_v46 = vadd.f32 %v15246_v36, %v25418_v23  ;;  %v15249_v28 = vmul.f32 0.2, %v15217_v37  ;;  %v15215_v24 = vadd.f32 %v24580_v54, %v15176_v9  ;;  %v15181_v44 = vadd.f32 %v18847_v52, %v14867_v14  ;;  %v25433_v37 = vld [vmem:[#allocation83_spill] sm:$0xff] }
 0xb32   : > { %v15100_v43 = vpop.f32.mrf.mxu0  ;;  %v14247_v60 = vadd.f32 %v25432_v15, %v25431_v39  ;;  %v14869_v36 = vadd.f32 %v24652_v47, %v14555_v57  ;;  %v14556_v17 = vadd.f32 %v25433_v37, %v14242_v6  ;;  %v25436_v52 = vld [vmem:[#allocation75_spill] sm:$0xff]  ;;  %v25443_v57 = vld [vmem:[#allocation52_spill] sm:$0xff]  ;;  %v25451_v37 = vld [vmem:[#allocation66_spill] sm:$0xff] }
 0xb33   : > { %15310 = vst.msk [vmem:[%s24606_s25 + $0x60] sm:$0xff] %vm474_vm1, %v15278_v46  ;;  %v15281_v53 = vadd.f32 %v15249_v28, %v25422_v5  ;;  %v15247_v0 = vmul.f32 0.2, %v15215_v24  ;;  %v15220_v11 = vadd.f32 %v24580_v54, %v15181_v44  ;;  %v15179_v7 = vadd.f32 %v15100_v43, %v14865_v26  ;;  %v25437_v28 = vld [vmem:[#allocation85_spill] sm:$0xff]  ;;  %v14821_v44 = vpop.f32.mrf.mxu1  ;;  %v25440_v43 = vld [vmem:[#allocation51_spill] sm:$0xff] }
 0xb34   : > { %v18848_v31 = vpop.f32.mrf.mxu0  ;;  %v14245_v23 = vadd.f32 %v25436_v52, %v25435_v4  ;;  %v14872_v46 = vadd.f32 %v24670_v33, %v14558_v49  ;;  %v14561_v24 = vadd.f32 %v25437_v28, %v14247_v60  ;;  %v14248_v5 = vadd.f32 %v25440_v43, %v25439_v32  ;;  %v25448_v49 = vld [vmem:[#allocation47_spill] sm:$0xff]  ;;  %v25456_v28 = vld [vmem:[#allocation61_spill] sm:$0xff] }
 0xb35   : > { %15313 = vst.msk [vmem:[%s24606_s25 + $0x78] sm:$0xff] %vm474_vm1, %v15281_v53  ;;  %v15279_v38 = vadd.f32 %v15247_v0, %v25426_v58  ;;  %v15252_v55 = vmul.f32 0.2, %v15220_v11  ;;  %v15218_v8 = vadd.f32 %v24580_v54, %v15179_v7  ;;  %v15182_v12 = vadd.f32 %v18848_v31, %v14868_v51  ;;  %v25441_v0 = vld [vmem:[#allocation86_spill] sm:$0xff]  ;;  %v18821_v7 = vpop.f32.mrf.mxu1  ;;  %v25444_v31 = vld [vmem:[#allocation71_spill] sm:$0xff] }
 0xb36   : > { %v15103_v20 = vpop.f32.mrf.mxu0  ;;  %v14870_v53 = vadd.f32 %v24688_v30, %v14556_v17  ;;  %v14559_v33 = vadd.f32 %v25441_v0, %v14245_v23  ;;  %v14246_v58 = vadd.f32 %v25444_v31, %v25443_v57  ;;  %v25452_v17 = vld [vmem:[#allocation82_spill] sm:$0xff]  ;;  %v25460_v0 = vld [vmem:[#allocation48_spill] sm:$0xff] }
 0xb37   : > { %15311 = vst.msk [vmem:[%s24606_s25 + $0x68] sm:$0xff] %vm474_vm1, %v15279_v38  ;;  %v15284_v62 = vadd.f32 %v15252_v55, %v25430_v16  ;;  %v15250_v14 = vmul.f32 0.2, %v15218_v8  ;;  %v15221_v35 = vadd.f32 %v24580_v54, %v15182_v12  ;;  %v15180_v42 = vadd.f32 %v15103_v20, %v14866_v29  ;;  %v25445_v55 = vld [vmem:[#allocation88_spill] sm:$0xff] }
 0xb38   : > { %v18851_v9 = vpop.f32.mrf.mxu0  ;;  %v14875_v38 = vadd.f32 %v24706_v27, %v14561_v24  ;;  %v14562_v30 = vadd.f32 %v25445_v55, %v14248_v5  ;;  %v25446_v12 = vld [vmem:[#allocation24_spill] sm:$0xff]  ;;  %v14251_v20 = vadd.f32 %v25448_v49, %v25447_v19  ;;  %v14873_v16 = vadd.f32 %v24724_v34, %v14559_v33 }
 0xb39   : > { %15316 = vst.msk [vmem:[%s24606_s25 + $0x90] sm:$0xff] %vm474_vm1, %v15284_v62  ;;  %v15282_v3 = vadd.f32 %v15250_v14, %v25434_v40  ;;  %v15253_v56 = vmul.f32 0.2, %v15221_v35  ;;  %v15219_v26 = vadd.f32 %v24580_v54, %v15180_v42  ;;  %v15185_v13 = vadd.f32 %v18851_v9, %v14871_v50  ;;  %v25449_v62 = vld [vmem:[#allocation89_spill] sm:$0xff]  ;;  %v14834_v35 = vpop.f32.mrf.mxu1  ;;  %v25450_v42 = vld [vmem:[#allocation18_spill] sm:$0xff] }
 0xb3a   : > { %v15116_v47 = vpop.f32.mrf.mxu0  ;;  %v14560_v14 = vadd.f32 %v25449_v62, %v14246_v58  ;;  %v14249_v9 = vadd.f32 %v25452_v17, %v25451_v37  ;;  %v14876_v40 = vadd.f32 %v18818_v61, %v14562_v30  ;;  %v25464_v62 = vld [vmem:[#allocation27_spill] sm:$0xff] }
 0xb3b   : > { %15314 = vst.msk [vmem:[%s24606_s25 + $0x80] sm:$0xff] %vm474_vm1, %v15282_v3  ;;  %v15285_v18 = vadd.f32 %v15253_v56, %v25438_v45  ;;  %v15251_v59 = vmul.f32 0.2, %v15219_v26  ;;  %v15224_v51 = vadd.f32 %v24580_v54, %v15185_v13  ;;  %v15183_v10 = vadd.f32 %v15116_v47, %v14869_v36  ;;  %v25453_v3 = vld [vmem:[#allocation91_spill] sm:$0xff]  ;;  %v25454_v26 = vld [vmem:[#allocation25_spill] sm:$0xff]  ;;  %v25457_v45 = vld [vmem:[#allocation92_spill] sm:$0xff]  ;;  %v18822_v61 = vpop.f32.mrf.mxu1 }
 0xb3c   : > { %v18852_v11 = vpop.f32.mrf.mxu0  ;;  %v14565_v56 = vadd.f32 %v25453_v3, %v14251_v20  ;;  %v14874_v47 = vadd.f32 %v14821_v44, %v14560_v14 }
 0xb3d   : > { %15317 = vst.msk [vmem:[%s24606_s25 + $0x98] sm:$0xff] %vm474_vm1, %v15285_v18  ;;  %v15283_v48 = vadd.f32 %v15251_v59, %v25442_v22  ;;  %v15256_v63 = vmul.f32 0.2, %v15224_v51  ;;  %v15222_v29 = vadd.f32 %v24580_v54, %v15183_v10  ;;  %v15186_v25 = vadd.f32 %v18852_v11, %v14872_v46  ;;  %v25455_v46 = vld [vmem:[#allocation78_spill] sm:$0xff]  ;;  %v25458_v51 = vld [vmem:[#allocation19_spill] sm:$0xff]  ;;  %v14837_v55 = vpop.f32.mrf.mxu1 }
 0xb3e   : > { %v15119_v8 = vpop.f32.mrf.mxu0  ;;  %v14252_v24 = vadd.f32 %v25456_v28, %v25455_v46  ;;  %v14563_v18 = vadd.f32 %v25457_v45, %v14249_v9  ;;  %v14879_v11 = vadd.f32 %v18821_v7, %v14565_v56  ;;  %v25462_v7 = vld [vmem:[#allocation26_spill] sm:$0xff] }
 0xb3f   : > { %15315 = vst.msk [vmem:[%s24606_s25 + $0x88] sm:$0xff] %vm474_vm1, %v15283_v48  ;;  %v15288_v2 = vadd.f32 %v15256_v63, %v25446_v12  ;;  %v15254_v21 = vmul.f32 0.2, %v15222_v29  ;;  %v15225_v6 = vadd.f32 %v24580_v54, %v15186_v25  ;;  %v15184_v50 = vadd.f32 %v15119_v8, %v14870_v53  ;;  %v25459_v53 = vld [vmem:[#allocation65_spill] sm:$0xff]  ;;  %v25461_v48 = vld [vmem:[#allocation32_spill] sm:$0xff]  ;;  %v25466_v9 = vld [vmem:[#allocation34_spill] sm:$0xff] }
 0xb40   : > { %v18855_v27 = vpop.f32.mrf.mxu0  ;;  %v14250_v33 = vadd.f32 %v25460_v0, %v25459_v53  ;;  %v14566_v22 = vadd.f32 %v24564_v41, %v14252_v24  ;;  %v14877_v31 = vadd.f32 %v14834_v35, %v14563_v18 }
 0xb41   : > { %15320 = vst.msk [vmem:[%s24606_s25 + $0xb0] sm:$0xff] %vm474_vm1, %v15288_v2  ;;  %v15286_v39 = vadd.f32 %v15254_v21, %v25450_v42  ;;  %v15257_v15 = vmul.f32 0.2, %v15225_v6  ;;  %v15223_v60 = vadd.f32 %v24580_v54, %v15184_v50  ;;  %v15189_v36 = vadd.f32 %v18855_v27, %v14875_v38  ;;  %v25463_v6 = vld [vmem:[#allocation33_spill] sm:$0xff] }
 0xb42   : > { %v15132_v34 = vpop.f32.mrf.mxu0  ;;  %v14564_v58 = vadd.f32 %v24568_v1, %v14250_v33  ;;  %v14880_v2 = vadd.f32 %v18822_v61, %v14566_v22 }
 0xb43   : > { %15318 = vst.msk [vmem:[%s24606_s25 + $0xa0] sm:$0xff] %vm474_vm1, %v15286_v39  ;;  %v15289_v13 = vadd.f32 %v15257_v15, %v25454_v26  ;;  %v15255_v4 = vmul.f32 0.2, %v15223_v60  ;;  %v15228_v52 = vadd.f32 %v24580_v54, %v15189_v36  ;;  %v15187_v23 = vadd.f32 %v15132_v34, %v14873_v16  ;;  %v25465_v15 = vld [vmem:[#allocation36_spill] sm:$0xff]  ;;  %v25467_v34 = vld [vmem:[#allocation37_spill] sm:$0xff] }
 0xb44   : > { %v18856_v59 = vpop.f32.mrf.mxu0  ;;  %v14878_v20 = vadd.f32 %v14837_v55, %v14564_v58 }
 0xb45   : > { %15321 = vst.msk [vmem:[%s24606_s25 + $0xb8] sm:$0xff] %vm474_vm1, %v15289_v13  ;;  %v15287_v10 = vadd.f32 %v15255_v4, %v25458_v51  ;;  %v15260_v32 = vmul.f32 0.2, %v15228_v52  ;;  %v15226_v43 = vadd.f32 %v24580_v54, %v15187_v23  ;;  %v15190_v5 = vadd.f32 %v18856_v59, %v14876_v40 }
 0xb46   : > { %v15135_v44 = vpop.f32.mrf.mxu0 }
 0xb47   : > { %15319 = vst.msk [vmem:[%s24606_s25 + $0xa8] sm:$0xff] %vm474_vm1, %v15287_v10  ;;  %v15292_v63 = vadd.f32 %v15260_v32, %v25461_v48  ;;  %v15258_v29 = vmul.f32 0.2, %v15226_v43  ;;  %v15229_v25 = vadd.f32 %v24580_v54, %v15190_v5  ;;  %v15188_v57 = vadd.f32 %v15135_v44, %v14874_v47 }
 0xb48   : > { %v18859_v38 = vpop.f32.mrf.mxu0 }
 0xb49   : > { %15324 = vst.msk [vmem:[%s24606_s25 + $0xd0] sm:$0xff] %vm474_vm1, %v15292_v63  ;;  %v15290_v41 = vadd.f32 %v15258_v29, %v25462_v7  ;;  %v15261_v30 = vmul.f32 0.2, %v15229_v25  ;;  %v15227_v8 = vadd.f32 %v24580_v54, %v15188_v57  ;;  %v15193_v12 = vadd.f32 %v18859_v38, %v14879_v11 }
 0xb4a   : > { %v15148_v21 = vpop.f32.mrf.mxu0 }
 0xb4b   : > { %15322 = vst.msk [vmem:[%s24606_s25 + $0xc0] sm:$0xff] %vm474_vm1, %v15290_v41  ;;  %v15293_v50 = vadd.f32 %v15261_v30, %v25463_v6  ;;  %v15259_v19 = vmul.f32 0.2, %v15227_v8  ;;  %v15232_v1 = vadd.f32 %v24580_v54, %v15193_v12  ;;  %v15191_v49 = vadd.f32 %v15148_v21, %v14877_v31 }
 0xb4c   : > { %v18860_v16 = vpop.f32.mrf.mxu0 }
 0xb4d   : > { %15325 = vst.msk [vmem:[%s24606_s25 + $0xd8] sm:$0xff] %vm474_vm1, %v15293_v50  ;;  %v15291_v14 = vadd.f32 %v15259_v19, %v25464_v62  ;;  %v15264_v27 = vmul.f32 0.2, %v15232_v1  ;;  %v15230_v35 = vadd.f32 %v24580_v54, %v15191_v49  ;;  %v15194_v42 = vadd.f32 %v18860_v16, %v14880_v2 }
 0xb4e   : > { %v15151_v39 = vpop.f32.mrf.mxu0 }
 0xb4f   : > { %15323 = vst.msk [vmem:[%s24606_s25 + $0xc8] sm:$0xff] %vm474_vm1, %v15291_v14  ;;  %v15296_v60 = vadd.f32 %v15264_v27, %v25465_v15  ;;  %v15262_v36 = vmul.f32 0.2, %v15230_v35  ;;  %v15233_v37 = vadd.f32 %v24580_v54, %v15194_v42  ;;  %v15192_v17 = vadd.f32 %v15151_v39, %v14878_v20 }
 0xb51   : > { %15328 = vst.msk [vmem:[%s24606_s25 + $0xf0] sm:$0xff] %vm474_vm1, %v15296_v60  ;;  %v15294_v40 = vadd.f32 %v15262_v36, %v25466_v9  ;;  %v15265_v3 = vmul.f32 0.2, %v15233_v37  ;;  %v15231_v56 = vadd.f32 %v24580_v54, %v15192_v17  ;;  %v25468_v54 = vld [vmem:[#allocation35_spill] sm:$0xff] }
 0xb53   : > { %15326 = vst.msk [vmem:[%s24606_s25 + $0xe0] sm:$0xff] %vm474_vm1, %v15294_v40  ;;  %v15297_v26 = vadd.f32 %v15265_v3, %v25467_v34  ;;  %v15263_v13 = vmul.f32 0.2, %v15231_v56 }
 0xb55   : > { %15329 = vst.msk [vmem:[%s24606_s25 + $0xf8] sm:$0xff] %vm474_vm1, %v15297_v26  ;;  %v15295_v4 = vadd.f32 %v15263_v13, %v25468_v54 }
 0xb57   : > { %15327 = vst.msk [vmem:[%s24606_s25 + $0xe8] sm:$0xff] %vm474_vm1, %v15295_v4 }
 0xb58   : > { %19039 = shalt.err (!%p19036_p3)
}
 0xb59   : > { %s19040_s15 = scalar_lea.hbm %s24836_s14, 4096  ;;  %s19044_s13 = scalar_lea.hbm %s24898_s11, 8192 }
 0xb5a   : > { %p19041_p4 = scmp.ne.s32.totalorder %s24836_s14, %s19040_s15  ;;  %p19045_p9 = scmp.lt.s32.totalorder %s24836_s14, %s24898_s11 }
 0xb5b   : > { %p19046_p10 = scmp.lt.s32.totalorder %s19044_s13, %s19040_s15 }
 0xb5c   : > { %p19042_p7 = pnand %p19041_p4, %p19194_p5 }
 0xb5d   : > { %p19047_p11 = por %p19046_p10, %p19045_p9 }
 0xb5e   : > { %p19043_p8 = pneg %p19042_p7 }
 0xb60   : > { %p19048_p12 = pnand %p19047_p11, %p19043_p8 }
 0xb62   : > { %19051 = shalt.err (!%p19048_p12)
}
 0xb63   : > { %s19094_s16 = smov 128   ;;  %s19095_s24 = smov 8  }
 0xb64   : > { %18881 = dma.vmem_to_hbm [thread:$0]  (%p19194_p5), %s24838_s30, 4096, %s24836_s14, %s24847_s21, %s19094_s16, %s19094_s16, %s19095_s24  }
 0xb65 PF: > { %p18887_p13 = scmp.ge.s32.totalorder %s19086_s20, 2  ;;  %s15359_s29 = sand.u32 1, %s19074_s17  }
 0xb66   : > { %s15360_s0 = scalar_lea.sflag [#allocation4], %s15359_s29 }
 0xb67   : > { %p18884_p0 = pnand %p18887_p13, %p19198_p6 }
 0xb69   : > { %p18885_p1 = pneg %p18884_p0 }
 0xb6b   : > { %19069 = dma.done.wait (%p18885_p1), %s15360_s0, 4096  }
 0xb6c   : > { %19071 = vsyncadd (%p18885_p1), %s15360_s0, 4294963200  ;;  %p21_p2 = scmp.ge.s32.totalorder %s19181_s23, 4   ;;  %s25469_s17 = smov %s19078_s18 }
 0xb6d   : > { %s25470_s18 = smov %s19082_s19  ;;  %s25471_s19 = smov %s19192_s26 }
 0xb6e   : > { %s25472_s20 = smov %s19181_s23  ;;  %23 = sbr.rel (!%p21_p2) target bundleno = 5 (0x5), region = 141 }
 0xb73   :  { %15365 = vsyncpa [#allocation4], 1 }
 0xb74   :  { %15367 = vsyncpa [#allocation4 + $0x1], 1 }

</bundles_post_ra>
